<compile_context>
chip_gen: v7x
topology: tpu7x:2x2x1
jax: 0.10.0
libtpu: 0.0.40
codegen_flags: <defaults>
</compile_context>

<pallas_src>
import functools

import numpy as np
import jax
import jax.numpy as jnp
from jax.experimental import pallas as pl
from jax.experimental.pallas import tpu as pltpu

NEG_SLOPE = 0.2
GAIN = float(np.sqrt(2.0))
MXU_DTYPE = jnp.bfloat16           # MXU operands; accumulation / epilogue stay f32
_VMEM_LIMIT = 32 * 1024 * 1024


# ------------------------------------------------------------ in-kernel helpers

def _lrelu(y):
    return jnp.where(y >= 0.0, y, NEG_SLOPE * y)


def _conv1x1_vpu(x, w, b):
    """1x1 conv with tiny C_in (RGB): VPU multiply-adds, lane-dense in C_out."""
    acc = b
    for ci in range(x.shape[1]):
        acc = acc + x[:, ci:ci + 1] * w[ci:ci + 1, :]
    return acc


def _zero_pad_border(pad_ref):
    """Zero only the 1-pixel border of the (Bk, H+2, W+2, C) pad scratch."""
    bk, hp, wp, c = pad_ref.shape
    h, w = hp - 2, wp - 2
    zr = jnp.zeros((bk, 1, wp, c), jnp.float32)
    pad_ref[:, pl.ds(0, 1), :, :] = zr
    pad_ref[:, pl.ds(h + 1, 1), :, :] = zr
    zc = jnp.zeros((bk, h, 1, c), jnp.float32)
    pad_ref[:, pl.ds(1, h), pl.ds(0, 1), :] = zc
    pad_ref[:, pl.ds(1, h), pl.ds(w + 1, 1), :] = zc


def _conv3x3_im2col(pad_ref, col_ref, w_ref):
    """3x3 'same' conv: build (rows, 9*Cin) bf16 im2col in VMEM, one MXU matmul.

    pad_ref: (Bk, H+2, W+2, Cin) f32, zero border.  w_ref: (9*Cin, Cout) bf16.
    Returns (Bk*H*W, Cout) f32, rows in (b, y, x) order.
    """
    bk, hp, wp, cin = pad_ref.shape
    h, w = hp - 2, wp - 2
    for k in range(9):
        dy, dx = divmod(k, 3)
        col_ref[:, pl.ds(k * cin, cin)] = (
            pad_ref[:, pl.ds(dy, h), pl.ds(dx, w), :]
            .reshape(bk * h * w, cin).astype(MXU_DTYPE))
    return jnp.dot(col_ref[...], w_ref[...], preferred_element_type=jnp.float32)


def _avg_pool_2x2(acc2d, conv_ref):
    """2x2 / stride-2 average pooling via VPU adds (no pooling matmul).

    acc2d: (Bk*H*W, C) f32 value, rows (b, y, x).  conv_ref: (Bk, H, W, C) f32
    scratch.  Returns (Bk*Ho*Wo, C), rows (b, i, j).
    """
    bk, h, w, c = conv_ref.shape
    ho, wo = h // 2, w // 2
    conv_ref[...] = acc2d.reshape(bk, h, w, c)
    # pair columns x=2j / 2j+1 with stride-2 reads
    wsum = (conv_ref[:, :, pl.ds(0, wo, 2), :] +
            conv_ref[:, :, pl.ds(1, wo, 2), :])                 # (bk, h, wo, c)
    # pair rows y=2i / 2i+1 via a leading-dim split
    w5 = wsum.reshape(bk, ho, 2, wo, c)
    pooled = 0.25 * (w5[:, :, 0] + w5[:, :, 1])                 # (bk, ho, wo, c)
    return pooled.reshape(bk * ho * wo, c)


def _block_core(pad_ref, col_ref, conv_ref, w0_ref, b0_ref, w1_ref, b1_ref):
    """conv0+bias+lrelu -> [1,2,1]/4 blur -> conv1 -> 2x2 avgpool -> +bias -> lrelu.

    Input activation is already in the interior of pad_ref (border zero).
    Returns (Bk*Ho*Wo, Cout) in (b, i, j) row order.
    """
    bk, hp, wp, cin = pad_ref.shape
    h, w = hp - 2, wp - 2
    # conv0 (Cin -> Cin) + bias + LeakyReLU
    y = _lrelu(_conv3x3_im2col(pad_ref, col_ref, w0_ref) + b0_ref[...])
    pad_ref[:, pl.ds(1, h), pl.ds(1, w), :] = y.reshape(bk, h, w, cin)
    # separable normalized [1,2,1] blur with zero padding (VPU, 6 taps)
    hb = (0.25 * pad_ref[:, :, pl.ds(0, w), :] +
          0.50 * pad_ref[:, :, pl.ds(1, w), :] +
          0.25 * pad_ref[:, :, pl.ds(2, w), :])                 # (bk, h+2, w, cin)
    vb = 0.25 * hb[:, 0:h] + 0.50 * hb[:, 1:h + 1] + 0.25 * hb[:, 2:h + 2]
    pad_ref[:, pl.ds(1, h), pl.ds(1, w), :] = vb
    # conv1 (Cin -> Cout, no bias) -> fused 2x2 avg pool -> bias -> lrelu
    acc = _conv3x3_im2col(pad_ref, col_ref, w1_ref)             # (bk*h*w, cout)
    pooled = _avg_pool_2x2(acc, conv_ref)
    return _lrelu(pooled + b1_ref[...])


# --------------------------------------------------------------------- kernels

def _disc_block_kernel(x_ref, w0_ref, b0_ref, w1_ref, b1_ref, o_ref,
                       pad_ref, col_ref, conv_ref):
    bk, hp, wp, cin = pad_ref.shape
    h, w = hp - 2, wp - 2
    _zero_pad_border(pad_ref)
    pad_ref[:, pl.ds(1, h), pl.ds(1, w), :] = x_ref[...].reshape(bk, h, w, cin)
    o_ref[...] = _block_core(pad_ref, col_ref, conv_ref,
                             w0_ref, b0_ref, w1_ref, b1_ref)


def _fadein_block_kernel(alpha_ref, img_ref, wrs_ref, brs_ref,
                         w0_ref, b0_ref, w1_ref, b1_ref, wrr_ref, brr_ref,
                         o_ref, pad_ref, col_ref, conv_ref):
    bk, hp, wp, c1 = pad_ref.shape
    h, w = hp - 2, wp - 2
    _zero_pad_border(pad_ref)
    img = img_ref[...]                                          # (bk*h*w, Cimg) f32
    # straight path: from_rgb (no act) -> DiscriminatorBlock
    y = _conv1x1_vpu(img, wrs_ref[...], brs_ref[...])
    pad_ref[:, pl.ds(1, h), pl.ds(1, w), :] = y.reshape(bk, h, w, c1)
    straight = _block_core(pad_ref, col_ref, conv_ref,
                           w0_ref, b0_ref, w1_ref, b1_ref)
    # residual path: from_rgb on the image, then 2x2 avg pool
    # (exactly equals from_rgb(AvgPool2d(2)(img)) since a 1x1 conv commutes
    #  with average pooling and avgpool of a constant bias is the bias)
    rr = _conv1x1_vpu(img, wrr_ref[...], brr_ref[...])
    residual = _avg_pool_2x2(rr, conv_ref)
    # fade-in lerp; alpha is a runtime SMEM scalar (no recompile per alpha)
    a = alpha_ref[0, 0]
    o_ref[...] = a * straight + (1.0 - a) * residual


def _rgb1x1_kernel(img_ref, w_ref, b_ref, o_ref):
    o_ref[...] = _conv1x1_vpu(img_ref[...], w_ref[...], b_ref[...])


def _final_kernel(x_ref, wc_ref, bc_ref, t_ref, wd0_ref, bd0_ref,
                  wd1_ref, bd1_ref, o_ref,
                  pad_ref, col_ref, y_ref, ycat_ref, *, G, M):
    """minibatch-stddev -> 3x3 conv (+ stddev channel as additive term) ->
    lrelu -> dense0 (single K=P*Cmid matmul) -> lrelu -> dense1."""
    b, p, cmid = y_ref.shape
    bk, hp, wp, c = pad_ref.shape
    h, w = hp - 2, wp - 2
    x = x_ref[...]                                              # (B*P, C), rows (b, p)
    # ---- minibatch stddev scalar per group member m (torch reshape ordering,
    #      batch index b = g*M + m, stats over g) ----
    x4 = x.reshape(G, M, p, c)
    mu = jnp.mean(x4, axis=0, keepdims=True)
    sd = jnp.sqrt(jnp.mean((x4 - mu) ** 2, axis=0) + 1e-8)      # (M, P, C)
    s = jnp.mean(jnp.mean(sd, axis=2, keepdims=True), axis=1, keepdims=True)
    s_rows = jnp.broadcast_to(s.reshape(1, M, 1, 1),
                              (G, M, p, cmid)).reshape(b * p, cmid)
    # ---- 3x3 conv; the constant stddev "33rd channel" enters as an additive
    #      rank-1 term (s * precomputed tap-sum map), so no C=33 concat ----
    _zero_pad_border(pad_ref)
    pad_ref[:, pl.ds(1, h), pl.ds(1, w), :] = x.reshape(b, h, w, c)
    acc = _conv3x3_im2col(pad_ref, col_ref, wc_ref)             # (B*P, Cmid)
    t_rows = jnp.broadcast_to(t_ref[...][None], (b, p, cmid)).reshape(b * p, cmid)
    y = _lrelu(acc + s_rows * t_rows + bc_ref[...])
    # ---- dense0: pack (p, c) features along the lane dim -> ONE K=P*Cmid matmul
    y_ref[...] = y.reshape(b, p, cmid)
    for pp in range(p):
        ycat_ref[:, pl.ds(pp * cmid, cmid)] = y_ref[:, pp, :].astype(MXU_DTYPE)
    d0 = _lrelu(jnp.dot(ycat_ref[...], wd0_ref[...],
                        preferred_element_type=jnp.float32) + bd0_ref[...])
    # ---- dense1 (N=1): VPU reduction instead of a degenerate matmul ----
    o_ref[...] = jnp.sum(d0 * wd1_ref[...], axis=1, keepdims=True) + bd1_ref[...]


# ------------------------------------------------------------ spec helpers

def _bcast_spec(a):
    nd = a.ndim
    return pl.BlockSpec(a.shape, lambda *_, nd=nd: (0,) * nd)


# -------------------------------------------------------- host-side weight prep

def _pack_conv_taps(w):
    """torch (Co, Ci, 3, 3) -> (9*Ci, Co) bf16, row index k*Ci + ci, k = dy*3+dx."""
    co, ci = int(w.shape[0]), int(w.shape[1])
    return jnp.transpose(w, (2, 3, 1, 0)).reshape(9 * ci, co).astype(MXU_DTYPE)


def _rgb_mat(w):
    """torch (Co, Ci, 1, 1) -> (Ci, Co) f32 (used on the VPU)."""
    return jnp.transpose(w[:, :, 0, 0], (1, 0)).astype(jnp.float32)


def _stddev_tap_map(wc, H, W):
    """Per-pixel additive conv contribution of the constant mbstd channel
    (accounts for zero padding at the borders).  Returns (H*W, Cmid) f32."""
    co = int(wc.shape[0])
    wst = wc[:, -1, :, :].reshape(co, 9)
    mask = np.zeros((H * W, 9), np.float32)
    for y in range(H):
        for x in range(W):
            for k in range(9):
                dy, dx = k // 3 - 1, k % 3 - 1
                if 0 <= y + dy < H and 0 <= x + dx < W:
                    mask[y * W + x, k] = 1.0
    return jnp.dot(jnp.asarray(mask), wst.T).astype(jnp.float32)


# ---------------------------------------------------------- pallas_call wrappers

def run_disc_block(x2d, blk, B, H, W):
    w0p, b0, w1p, b1 = blk
    cin, cout = int(w0p.shape[1]), int(w1p.shape[1])
    ho, wo = H // 2, W // 2
    wargs = (w0p, b0, w1p, b1)
    return pl.pallas_call(
        _disc_block_kernel,
        grid=(B,),
        in_specs=[pl.BlockSpec((H * W, cin), lambda b: (b, 0))]
                 + [_bcast_spec(a) for a in wargs],
        out_specs=pl.BlockSpec((ho * wo, cout), lambda b: (b, 0)),
        out_shape=jax.ShapeDtypeStruct((B * ho * wo, cout), jnp.float32),
        scratch_shapes=[
            pltpu.VMEM((1, H + 2, W + 2, cin), jnp.float32),   # zero-padded act
            pltpu.VMEM((H * W, 9 * cin), MXU_DTYPE),           # im2col
            pltpu.VMEM((1, H, W, cout), jnp.float32),          # conv1 out / pool
        ],
        compiler_params=pltpu.CompilerParams(
            dimension_semantics=("parallel",),
            vmem_limit_bytes=_VMEM_LIMIT),
    )(x2d, *wargs)


def run_fadein_block(img2d, alpha_arr, rgb_straight, rgb_residual, blk, B, H, W):
    ws, bs = rgb_straight
    wr, br = rgb_residual
    w0p, b0, w1p, b1 = blk
    c1, c2 = int(w0p.shape[1]), int(w1p.shape[1])
    cimg = int(img2d.shape[1])
    ho, wo = H // 2, W // 2
    args = (alpha_arr, img2d, ws, bs, w0p, b0, w1p, b1, wr, br)
    in_specs = ([pl.BlockSpec(memory_space=pltpu.MemorySpace.SMEM),
                 pl.BlockSpec((H * W, cimg), lambda b: (b, 0))]
                + [_bcast_spec(a) for a in args[2:]])
    return pl.pallas_call(
        _fadein_block_kernel,
        grid=(B,),
        in_specs=in_specs,
        out_specs=pl.BlockSpec((ho * wo, c2), lambda b: (b, 0)),
        out_shape=jax.ShapeDtypeStruct((B * ho * wo, c2), jnp.float32),
        scratch_shapes=[
            pltpu.VMEM((1, H + 2, W + 2, c1), jnp.float32),
            pltpu.VMEM((H * W, 9 * c1), MXU_DTYPE),
            pltpu.VMEM((1, H, W, c2), jnp.float32),
        ],
        compiler_params=pltpu.CompilerParams(
            dimension_semantics=("parallel",),
            vmem_limit_bytes=_VMEM_LIMIT),
    )(*args)


def run_from_rgb(img2d, wmat, b):
    co = int(wmat.shape[1])
    rows = int(img2d.shape[0])
    args = (img2d, wmat, b)
    return pl.pallas_call(
        _rgb1x1_kernel,
        grid=(1,),
        in_specs=[_bcast_spec(a) for a in args],
        out_specs=pl.BlockSpec((rows, co), lambda *_: (0, 0)),
        out_shape=jax.ShapeDtypeStruct((rows, co), jnp.float32),
        compiler_params=pltpu.CompilerParams(
            dimension_semantics=("arbitrary",),
            vmem_limit_bytes=_VMEM_LIMIT),
    )(*args)


def run_final(x2d, fin, B, H=4, W=4, group_size=4):
    wc_p, bc, t, wd0_p, bd0, wd1, bd1 = fin
    c = int(wc_p.shape[0]) // 9
    cmid = int(wc_p.shape[1])
    P = H * W
    G = min(group_size, B)
    assert B % G == 0
    M = B // G
    args = (x2d, wc_p, bc, t, wd0_p, bd0, wd1, bd1)
    kernel = functools.partial(_final_kernel, G=G, M=M)
    return pl.pallas_call(
        kernel,
        grid=(1,),
        in_specs=[_bcast_spec(a) for a in args],
        out_specs=pl.BlockSpec((B, 1), lambda *_: (0, 0)),
        out_shape=jax.ShapeDtypeStruct((B, 1), jnp.float32),
        scratch_shapes=[
            pltpu.VMEM((B, H + 2, W + 2, c), jnp.float32),      # zero-padded act
            pltpu.VMEM((B * P, 9 * c), MXU_DTYPE),              # im2col
            pltpu.VMEM((B, P, cmid), jnp.float32),              # conv activations
            pltpu.VMEM((B, P * cmid), MXU_DTYPE),               # dense0 lhs
        ],
        compiler_params=pltpu.CompilerParams(
            dimension_semantics=("arbitrary",),
            vmem_limit_bytes=_VMEM_LIMIT),
    )(*args)


# --------------------------------------------------------------- parameters

def build_raw_params(key, resolution=16, num_channels=3,
                     fmap_base=128, fmap_decay=1.0, fmap_max=32):
    """PyTorch-layout parameters with the use_wscale effective scale baked in."""
    def nf(stage):
        return min(int(fmap_base / 2.0 ** (stage * fmap_decay)), fmap_max)

    rlog2 = int(np.log2(resolution))
    assert resolution == 2 ** rlog2 and resolution >= 4
    keys = iter(jax.random.split(key, 64))

    def conv(co, ci, k, gain=GAIN):
        std = gain * (ci * k * k) ** (-0.5)
        return (jax.random.normal(next(keys), (co, ci, k, k), jnp.float32) * std,
                jnp.zeros((co,), jnp.float32))

    def linear(out_f, in_f, gain=GAIN):
        std = gain * in_f ** (-0.5)
        return (jax.random.normal(next(keys), (out_f, in_f), jnp.float32) * std,
                jnp.zeros((out_f,), jnp.float32))

    blocks, from_rgb = [], []
    for res in range(rlog2, 2, -1):
        blocks.append((*conv(nf(res - 1), nf(res - 1), 3),
                       *conv(nf(res - 2), nf(res - 1), 3)))
        from_rgb.append(conv(nf(res - 1), num_channels, 1))
    from_rgb.append(conv(nf(2), num_channels, 1))
    final = (*conv(nf(2), nf(2) + 1, 3),                 # +1: mbstd feature channel
             *linear(nf(2), nf(2) * 4 * 4),
             *linear(1, nf(2), gain=1.0))                # last_gain = 1
    return {"blocks": blocks, "from_rgb": from_rgb, "final": final}


def prepare_params(raw):
    """Pack raw weights into kernel-ready (bf16 / pre-transposed) arrays once."""
    blocks = []
    for w0, b0, w1, b1 in raw["blocks"]:
        blocks.append((_pack_conv_taps(w0), b0.reshape(1, -1).astype(jnp.float32),
                       _pack_conv_taps(w1), b1.reshape(1, -1).astype(jnp.float32)))
    from_rgb = [(_rgb_mat(w), b.reshape(1, -1).astype(jnp.float32))
                for w, b in raw["from_rgb"]]
    wc, bc, wd0, bd0, wd1, bd1 = raw["final"]
    cmid = int(wc.shape[0])
    cin = int(wc.shape[1]) - 1
    n0 = int(wd0.shape[0])
    P = 16
    wc_p = _pack_conv_taps(wc[:, :cin])
    t = _stddev_tap_map(wc, 4, 4)
    # torch View(-1) flatten order is (c, p); re-order columns to (p, c)
    wd0_p = (jnp.transpose(wd0.reshape(n0, cmid, P), (2, 1, 0))
             .reshape(P * cmid, n0).astype(MXU_DTYPE))
    final = (wc_p, bc.reshape(1, cmid).astype(jnp.float32), t,
             wd0_p, bd0.reshape(1, n0).astype(jnp.float32),
             wd1.reshape(1, n0).astype(jnp.float32),
             bd1.reshape(1, 1).astype(jnp.float32))
    return {"blocks": blocks, "from_rgb": from_rgb, "final": final}


# ------------------------------------------------------------------ forward

def discriminator_forward(params, images_nchw, depth, alpha=1.0):
    """Matches Discriminator.forward (structure='linear', conditional=False)."""
    blocks = params["blocks"]
    from_rgb = params["from_rgb"]
    D = len(blocks) + 1
    assert depth < D, "Requested output depth cannot be produced"
    x_nhwc = jnp.transpose(images_nchw, (0, 2, 3, 1)).astype(jnp.float32)
    B, H, W, cimg = x_nhwc.shape
    img2d = x_nhwc.reshape(B * H * W, cimg)
    alpha_arr = jnp.asarray(alpha, jnp.float32).reshape(1, 1)

    if depth > 0:
        i = D - depth - 1
        # residual = from_rgb[i+1](avgpool2(img));
        # straight = blocks[i](from_rgb[i](img));  x = alpha-lerp(straight, residual)
        x = run_fadein_block(img2d, alpha_arr, from_rgb[i], from_rgb[i + 1],
                             blocks[i], B, H, W)
        h, w = H // 2, W // 2
        for blk in blocks[D - depth:]:
            x = run_disc_block(x, blk, B, h, w)
            h, w = h // 2, w // 2
    else:
        x = run_from_rgb(img2d, *from_rgb[-1])
        h, w = H, W

    assert (h, w) == (4, 4), "final block expects a 4x4 feature map"
    return run_final(x, params["final"], B, 4, 4, group_size=4)


# --------------------------------------------------------------------- main

if __name__ == "__main__":
    key = jax.random.PRNGKey(0)
    pkey, xkey = jax.random.split(key)

    raw = build_raw_params(pkey, resolution=16, num_channels=3,
                           fmap_base=128, fmap_max=32)
    params = prepare_params(raw)
    images = jax.random.normal(xkey, (4, 3, 16, 16), jnp.float32)  # NCHW like PyTorch

    fwd = jax.jit(discriminator_forward, static_argnames=("depth",))
    scores = fwd(params, images, depth=2, alpha=jnp.float32(0.7))
    scores = jax.block_until_ready(scores)

    assert scores.shape == (4, 1) and scores.dtype == jnp.float32
    assert bool(jnp.all(jnp.isfinite(scores)))
    print("KERNEL_OK")
</pallas_src>

<mosaic_0001>
module attributes {stable_mosaic.version = 11 : i64} {
  func.func @_fadein_block_kernel(%arg0: i32, %arg1: memref<1x1xf32, #tpu.memory_space<smem>>, %arg2: memref<256x3xf32, #tpu.memory_space<vmem>>, %arg3: memref<3x16xf32, #tpu.memory_space<vmem>>, %arg4: memref<1x16xf32, #tpu.memory_space<vmem>>, %arg5: memref<144x16xbf16, #tpu.memory_space<vmem>>, %arg6: memref<1x16xf32, #tpu.memory_space<vmem>>, %arg7: memref<144x32xbf16, #tpu.memory_space<vmem>>, %arg8: memref<1x32xf32, #tpu.memory_space<vmem>>, %arg9: memref<3x32xf32, #tpu.memory_space<vmem>>, %arg10: memref<1x32xf32, #tpu.memory_space<vmem>>, %arg11: memref<64x32xf32, #tpu.memory_space<vmem>>, %arg12: memref<1x18x18x16xf32, #tpu.memory_space<vmem>>, %arg13: memref<256x144xbf16, #tpu.memory_space<vmem>>, %arg14: memref<1x16x16x32xf32, #tpu.memory_space<vmem>>) attributes {dimension_semantics = [#tpu.dimension_semantics<parallel>], iteration_bounds = array<i64: 4>, scalar_prefetch = 0 : i64, scratch_operands = 3 : i64, tpu.core_type = #tpu.core_type<tc>, window_params = [{transform_indices = @transform_0, window_bounds = array<i64: 1, 1>}, {transform_indices = @transform_1, window_bounds = array<i64: 256, 3>}, {pipeline_mode = #tpu.pipeline_mode<synchronous>, transform_indices = @transform_2, window_bounds = array<i64: 3, 16>}, {pipeline_mode = #tpu.pipeline_mode<synchronous>, transform_indices = @transform_3, window_bounds = array<i64: 1, 16>}, {pipeline_mode = #tpu.pipeline_mode<synchronous>, transform_indices = @transform_4, window_bounds = array<i64: 144, 16>}, {pipeline_mode = #tpu.pipeline_mode<synchronous>, transform_indices = @transform_5, window_bounds = array<i64: 1, 16>}, {pipeline_mode = #tpu.pipeline_mode<synchronous>, transform_indices = @transform_6, window_bounds = array<i64: 144, 32>}, {pipeline_mode = #tpu.pipeline_mode<synchronous>, transform_indices = @transform_7, window_bounds = array<i64: 1, 32>}, {pipeline_mode = #tpu.pipeline_mode<synchronous>, transform_indices = @transform_8, window_bounds = array<i64: 3, 32>}, {pipeline_mode = #tpu.pipeline_mode<synchronous>, transform_indices = @transform_9, window_bounds = array<i64: 1, 32>}, {transform_indices = @transform_10, window_bounds = array<i64: 64, 32>}]} {
    %cst = arith.constant 0.000000e+00 : f32
    %0 = vector.broadcast %cst : f32 to vector<1x1x18x16xf32>
    %c0 = arith.constant 0 : index
    %c0_0 = arith.constant 0 : index
    %c0_1 = arith.constant 0 : index
    %c0_2 = arith.constant 0 : index
    %1 = vector.load %arg12[%c0, %c0_0, %c0_1, %c0_2] : memref<1x18x18x16xf32, #tpu.memory_space<vmem>>, vector<1x1x18x16xf32>
    tpu.vector_store %arg12[%c0, %c0_0, %c0_1, %c0_2], %0 {strides = array<i32>} : memref<1x18x18x16xf32, #tpu.memory_space<vmem>>, vector<1x1x18x16xf32>,
    %c0_3 = arith.constant 0 : index
    %c17 = arith.constant 17 : index
    %c0_4 = arith.constant 0 : index
    %c0_5 = arith.constant 0 : index
    %2 = vector.load %arg12[%c0_3, %c17, %c0_4, %c0_5] : memref<1x18x18x16xf32, #tpu.memory_space<vmem>>, vector<1x1x18x16xf32>
    tpu.vector_store %arg12[%c0_3, %c17, %c0_4, %c0_5], %0 {strides = array<i32>} : memref<1x18x18x16xf32, #tpu.memory_space<vmem>>, vector<1x1x18x16xf32>,
    %cst_6 = arith.constant 0.000000e+00 : f32
    %3 = vector.broadcast %cst_6 : f32 to vector<1x16x1x16xf32>
    %c0_7 = arith.constant 0 : index
    %c1 = arith.constant 1 : index
    %c0_8 = arith.constant 0 : index
    %c0_9 = arith.constant 0 : index
    %4 = vector.load %arg12[%c0_7, %c1, %c0_8, %c0_9] : memref<1x18x18x16xf32, #tpu.memory_space<vmem>>, vector<1x16x1x16xf32>
    tpu.vector_store %arg12[%c0_7, %c1, %c0_8, %c0_9], %3 {strides = array<i32>} : memref<1x18x18x16xf32, #tpu.memory_space<vmem>>, vector<1x16x1x16xf32>,
    %c0_10 = arith.constant 0 : index
    %c1_11 = arith.constant 1 : index
    %c17_12 = arith.constant 17 : index
    %c0_13 = arith.constant 0 : index
    %5 = vector.load %arg12[%c0_10, %c1_11, %c17_12, %c0_13] : memref<1x18x18x16xf32, #tpu.memory_space<vmem>>, vector<1x16x1x16xf32>
    tpu.vector_store %arg12[%c0_10, %c1_11, %c17_12, %c0_13], %3 {strides = array<i32>} : memref<1x18x18x16xf32, #tpu.memory_space<vmem>>, vector<1x16x1x16xf32>,
    %c0_14 = arith.constant 0 : index
    %c0_15 = arith.constant 0 : index
    %6 = vector.load %arg2[%c0_14, %c0_15] : memref<256x3xf32, #tpu.memory_space<vmem>>, vector<256x3xf32>
    %c0_16 = arith.constant 0 : index
    %c0_17 = arith.constant 0 : index
    %7 = vector.load %arg3[%c0_16, %c0_17] : memref<3x16xf32, #tpu.memory_space<vmem>>, vector<3x16xf32>
    %c0_18 = arith.constant 0 : index
    %c0_19 = arith.constant 0 : index
    %8 = vector.load %arg4[%c0_18, %c0_19] : memref<1x16xf32, #tpu.memory_space<vmem>>, vector<1x16xf32>
    %9 = vector.extract_strided_slice %6 {offsets = [0, 0], sizes = [256, 1], strides = [1, 1]} : vector<256x3xf32> to vector<256x1xf32>
    %10 = vector.extract_strided_slice %7 {offsets = [0, 0], sizes = [1, 16], strides = [1, 1]} : vector<3x16xf32> to vector<1x16xf32>
    %11 = vector.broadcast %9 : vector<256x1xf32> to vector<256x16xf32>
    %12 = vector.broadcast %10 : vector<1x16xf32> to vector<256x16xf32>
    %13 = arith.mulf %11, %12 : vector<256x16xf32>
    %14 = vector.broadcast %8 : vector<1x16xf32> to vector<256x16xf32>
    %15 = arith.addf %14, %13 : vector<256x16xf32>
    %16 = vector.extract_strided_slice %6 {offsets = [0, 1], sizes = [256, 1], strides = [1, 1]} : vector<256x3xf32> to vector<256x1xf32>
    %17 = vector.extract_strided_slice %7 {offsets = [1, 0], sizes = [1, 16], strides = [1, 1]} : vector<3x16xf32> to vector<1x16xf32>
    %18 = vector.broadcast %16 : vector<256x1xf32> to vector<256x16xf32>
    %19 = vector.broadcast %17 : vector<1x16xf32> to vector<256x16xf32>
    %20 = arith.mulf %18, %19 : vector<256x16xf32>
    %21 = arith.addf %15, %20 : vector<256x16xf32>
    %22 = vector.extract_strided_slice %6 {offsets = [0, 2], sizes = [256, 1], strides = [1, 1]} : vector<256x3xf32> to vector<256x1xf32>
    %23 = vector.extract_strided_slice %7 {offsets = [2, 0], sizes = [1, 16], strides = [1, 1]} : vector<3x16xf32> to vector<1x16xf32>
    %24 = vector.broadcast %22 : vector<256x1xf32> to vector<256x16xf32>
    %25 = vector.broadcast %23 : vector<1x16xf32> to vector<256x16xf32>
    %26 = arith.mulf %24, %25 : vector<256x16xf32>
    %27 = arith.addf %21, %26 : vector<256x16xf32>
    %28 = vector.shape_cast %27 : vector<256x16xf32> to vector<1x16x16x16xf32>
    %c0_20 = arith.constant 0 : index
    %c1_21 = arith.constant 1 : index
    %c1_22 = arith.constant 1 : index
    %c0_23 = arith.constant 0 : index
    %29 = vector.load %arg12[%c0_20, %c1_21, %c1_22, %c0_23] : memref<1x18x18x16xf32, #tpu.memory_space<vmem>>, vector<1x16x16x16xf32>
    tpu.vector_store %arg12[%c0_20, %c1_21, %c1_22, %c0_23], %28 {strides = array<i32>} : memref<1x18x18x16xf32, #tpu.memory_space<vmem>>, vector<1x16x16x16xf32>,
    %c0_24 = arith.constant 0 : index
    %c0_25 = arith.constant 0 : index
    %c0_26 = arith.constant 0 : index
    %c0_27 = arith.constant 0 : index
    %30 = vector.load %arg12[%c0_24, %c0_25, %c0_26, %c0_27] : memref<1x18x18x16xf32, #tpu.memory_space<vmem>>, vector<1x16x16x16xf32>
    %31 = vector.shape_cast %30 : vector<1x16x16x16xf32> to vector<256x16xf32>
    %32 = arith.truncf %31 : vector<256x16xf32> to vector<256x16xbf16>
    %c0_28 = arith.constant 0 : index
    %c0_29 = arith.constant 0 : index
    %33 = vector.load %arg13[%c0_28, %c0_29] : memref<256x144xbf16, #tpu.memory_space<vmem>>, vector<256x16xbf16>
    tpu.vector_store %arg13[%c0_28, %c0_29], %32 {strides = array<i32>} : memref<256x144xbf16, #tpu.memory_space<vmem>>, vector<256x16xbf16>,
    %c0_30 = arith.constant 0 : index
    %c0_31 = arith.constant 0 : index
    %c1_32 = arith.constant 1 : index
    %c0_33 = arith.constant 0 : index
    %34 = vector.load %arg12[%c0_30, %c0_31, %c1_32, %c0_33] : memref<1x18x18x16xf32, #tpu.memory_space<vmem>>, vector<1x16x16x16xf32>
    %35 = vector.shape_cast %34 : vector<1x16x16x16xf32> to vector<256x16xf32>
    %36 = arith.truncf %35 : vector<256x16xf32> to vector<256x16xbf16>
    %c0_34 = arith.constant 0 : index
    %c16 = arith.constant 16 : index
    %37 = vector.load %arg13[%c0_34, %c16] : memref<256x144xbf16, #tpu.memory_space<vmem>>, vector<256x16xbf16>
    tpu.vector_store %arg13[%c0_34, %c16], %36 {strides = array<i32>} : memref<256x144xbf16, #tpu.memory_space<vmem>>, vector<256x16xbf16>,
    %c0_35 = arith.constant 0 : index
    %c0_36 = arith.constant 0 : index
    %c2 = arith.constant 2 : index
    %c0_37 = arith.constant 0 : index
    %38 = vector.load %arg12[%c0_35, %c0_36, %c2, %c0_37] : memref<1x18x18x16xf32, #tpu.memory_space<vmem>>, vector<1x16x16x16xf32>
    %39 = vector.shape_cast %38 : vector<1x16x16x16xf32> to vector<256x16xf32>
    %40 = arith.truncf %39 : vector<256x16xf32> to vector<256x16xbf16>
    %c0_38 = arith.constant 0 : index
    %c32 = arith.constant 32 : index
    %41 = vector.load %arg13[%c0_38, %c32] : memref<256x144xbf16, #tpu.memory_space<vmem>>, vector<256x16xbf16>
    tpu.vector_store %arg13[%c0_38, %c32], %40 {strides = array<i32>} : memref<256x144xbf16, #tpu.memory_space<vmem>>, vector<256x16xbf16>,
    %c0_39 = arith.constant 0 : index
    %c1_40 = arith.constant 1 : index
    %c0_41 = arith.constant 0 : index
    %c0_42 = arith.constant 0 : index
    %42 = vector.load %arg12[%c0_39, %c1_40, %c0_41, %c0_42] : memref<1x18x18x16xf32, #tpu.memory_space<vmem>>, vector<1x16x16x16xf32>
    %43 = vector.shape_cast %42 : vector<1x16x16x16xf32> to vector<256x16xf32>
    %44 = arith.truncf %43 : vector<256x16xf32> to vector<256x16xbf16>
    %c0_43 = arith.constant 0 : index
    %c48 = arith.constant 48 : index
    %45 = vector.load %arg13[%c0_43, %c48] : memref<256x144xbf16, #tpu.memory_space<vmem>>, vector<256x16xbf16>
    tpu.vector_store %arg13[%c0_43, %c48], %44 {strides = array<i32>} : memref<256x144xbf16, #tpu.memory_space<vmem>>, vector<256x16xbf16>,
    %c0_44 = arith.constant 0 : index
    %c1_45 = arith.constant 1 : index
    %c1_46 = arith.constant 1 : index
    %c0_47 = arith.constant 0 : index
    %46 = vector.load %arg12[%c0_44, %c1_45, %c1_46, %c0_47] : memref<1x18x18x16xf32, #tpu.memory_space<vmem>>, vector<1x16x16x16xf32>
    %47 = vector.shape_cast %46 : vector<1x16x16x16xf32> to vector<256x16xf32>
    %48 = arith.truncf %47 : vector<256x16xf32> to vector<256x16xbf16>
    %c0_48 = arith.constant 0 : index
    %c64 = arith.constant 64 : index
    %49 = vector.load %arg13[%c0_48, %c64] : memref<256x144xbf16, #tpu.memory_space<vmem>>, vector<256x16xbf16>
    tpu.vector_store %arg13[%c0_48, %c64], %48 {strides = array<i32>} : memref<256x144xbf16, #tpu.memory_space<vmem>>, vector<256x16xbf16>,
    %c0_49 = arith.constant 0 : index
    %c1_50 = arith.constant 1 : index
    %c2_51 = arith.constant 2 : index
    %c0_52 = arith.constant 0 : index
    %50 = vector.load %arg12[%c0_49, %c1_50, %c2_51, %c0_52] : memref<1x18x18x16xf32, #tpu.memory_space<vmem>>, vector<1x16x16x16xf32>
    %51 = vector.shape_cast %50 : vector<1x16x16x16xf32> to vector<256x16xf32>
    %52 = arith.truncf %51 : vector<256x16xf32> to vector<256x16xbf16>
    %c0_53 = arith.constant 0 : index
    %c80 = arith.constant 80 : index
    %53 = vector.load %arg13[%c0_53, %c80] : memref<256x144xbf16, #tpu.memory_space<vmem>>, vector<256x16xbf16>
    tpu.vector_store %arg13[%c0_53, %c80], %52 {strides = array<i32>} : memref<256x144xbf16, #tpu.memory_space<vmem>>, vector<256x16xbf16>,
    %c0_54 = arith.constant 0 : index
    %c2_55 = arith.constant 2 : index
    %c0_56 = arith.constant 0 : index
    %c0_57 = arith.constant 0 : index
    %54 = vector.load %arg12[%c0_54, %c2_55, %c0_56, %c0_57] : memref<1x18x18x16xf32, #tpu.memory_space<vmem>>, vector<1x16x16x16xf32>
    %55 = vector.shape_cast %54 : vector<1x16x16x16xf32> to vector<256x16xf32>
    %56 = arith.truncf %55 : vector<256x16xf32> to vector<256x16xbf16>
    %c0_58 = arith.constant 0 : index
    %c96 = arith.constant 96 : index
    %57 = vector.load %arg13[%c0_58, %c96] : memref<256x144xbf16, #tpu.memory_space<vmem>>, vector<256x16xbf16>
    tpu.vector_store %arg13[%c0_58, %c96], %56 {strides = array<i32>} : memref<256x144xbf16, #tpu.memory_space<vmem>>, vector<256x16xbf16>,
    %c0_59 = arith.constant 0 : index
    %c2_60 = arith.constant 2 : index
    %c1_61 = arith.constant 1 : index
    %c0_62 = arith.constant 0 : index
    %58 = vector.load %arg12[%c0_59, %c2_60, %c1_61, %c0_62] : memref<1x18x18x16xf32, #tpu.memory_space<vmem>>, vector<1x16x16x16xf32>
    %59 = vector.shape_cast %58 : vector<1x16x16x16xf32> to vector<256x16xf32>
    %60 = arith.truncf %59 : vector<256x16xf32> to vector<256x16xbf16>
    %c0_63 = arith.constant 0 : index
    %c112 = arith.constant 112 : index
    %61 = vector.load %arg13[%c0_63, %c112] : memref<256x144xbf16, #tpu.memory_space<vmem>>, vector<256x16xbf16>
    tpu.vector_store %arg13[%c0_63, %c112], %60 {strides = array<i32>} : memref<256x144xbf16, #tpu.memory_space<vmem>>, vector<256x16xbf16>,
    %c0_64 = arith.constant 0 : index
    %c2_65 = arith.constant 2 : index
    %c2_66 = arith.constant 2 : index
    %c0_67 = arith.constant 0 : index
    %62 = vector.load %arg12[%c0_64, %c2_65, %c2_66, %c0_67] : memref<1x18x18x16xf32, #tpu.memory_space<vmem>>, vector<1x16x16x16xf32>
    %63 = vector.shape_cast %62 : vector<1x16x16x16xf32> to vector<256x16xf32>
    %64 = arith.truncf %63 : vector<256x16xf32> to vector<256x16xbf16>
    %c0_68 = arith.constant 0 : index
    %c128 = arith.constant 128 : index
    %65 = vector.load %arg13[%c0_68, %c128] : memref<256x144xbf16, #tpu.memory_space<vmem>>, vector<256x16xbf16>
    tpu.vector_store %arg13[%c0_68, %c128], %64 {strides = array<i32>} : memref<256x144xbf16, #tpu.memory_space<vmem>>, vector<256x16xbf16>,
    %c0_69 = arith.constant 0 : index
    %c0_70 = arith.constant 0 : index
    %66 = vector.load %arg13[%c0_69, %c0_70] : memref<256x144xbf16, #tpu.memory_space<vmem>>, vector<256x144xbf16>
    %c0_71 = arith.constant 0 : index
    %c0_72 = arith.constant 0 : index
    %67 = vector.load %arg5[%c0_71, %c0_72] : memref<144x16xbf16, #tpu.memory_space<vmem>>, vector<144x16xbf16>
    %cst_73 = arith.constant dense<0.000000e+00> : vector<256x16xf32>
    %68 = tpu.matmul %66, %67, %cst_73 {dimension_numbers = #tpu.dot_dimension_numbers<[1], [0], [0], [1], [0, 0, 1, 1], [], []>} : vector<256x144xbf16>, vector<144x16xbf16>, vector<256x16xf32> -> vector<256x16xf32>
    %c0_74 = arith.constant 0 : index
    %c0_75 = arith.constant 0 : index
    %69 = vector.load %arg6[%c0_74, %c0_75] : memref<1x16xf32, #tpu.memory_space<vmem>>, vector<1x16xf32>
    %70 = vector.broadcast %69 : vector<1x16xf32> to vector<256x16xf32>
    %71 = arith.addf %68, %70 : vector<256x16xf32>
    %cst_76 = arith.constant 0.000000e+00 : f32
    %72 = vector.broadcast %cst_76 : f32 to vector<256x16xf32>
    %73 = arith.cmpf oge, %71, %72 : vector<256x16xf32>
    %cst_77 = arith.constant 2.000000e-01 : f32
    %74 = vector.broadcast %cst_77 : f32 to vector<256x16xf32>
    %75 = arith.mulf %74, %71 : vector<256x16xf32>
    %76 = arith.select %73, %71, %75 : vector<256x16xi1>, vector<256x16xf32>
    %77 = vector.shape_cast %76 : vector<256x16xf32> to vector<1x16x16x16xf32>
    %c0_78 = arith.constant 0 : index
    %c1_79 = arith.constant 1 : index
    %c1_80 = arith.constant 1 : index
    %c0_81 = arith.constant 0 : index
    %78 = vector.load %arg12[%c0_78, %c1_79, %c1_80, %c0_81] : memref<1x18x18x16xf32, #tpu.memory_space<vmem>>, vector<1x16x16x16xf32>
    tpu.vector_store %arg12[%c0_78, %c1_79, %c1_80, %c0_81], %77 {strides = array<i32>} : memref<1x18x18x16xf32, #tpu.memory_space<vmem>>, vector<1x16x16x16xf32>,
    %c0_82 = arith.constant 0 : index
    %c0_83 = arith.constant 0 : index
    %c0_84 = arith.constant 0 : index
    %c0_85 = arith.constant 0 : index
    %79 = vector.load %arg12[%c0_82, %c0_83, %c0_84, %c0_85] : memref<1x18x18x16xf32, #tpu.memory_space<vmem>>, vector<1x18x16x16xf32>
    %cst_86 = arith.constant 2.500000e-01 : f32
    %80 = vector.broadcast %cst_86 : f32 to vector<1x18x16x16xf32>
    %81 = arith.mulf %80, %79 : vector<1x18x16x16xf32>
    %c0_87 = arith.constant 0 : index
    %c0_88 = arith.constant 0 : index
    %c1_89 = arith.constant 1 : index
    %c0_90 = arith.constant 0 : index
    %82 = vector.load %arg12[%c0_87, %c0_88, %c1_89, %c0_90] : memref<1x18x18x16xf32, #tpu.memory_space<vmem>>, vector<1x18x16x16xf32>
    %cst_91 = arith.constant 5.000000e-01 : f32
    %83 = vector.broadcast %cst_91 : f32 to vector<1x18x16x16xf32>
    %84 = arith.mulf %83, %82 : vector<1x18x16x16xf32>
    %85 = arith.addf %81, %84 : vector<1x18x16x16xf32>
    %c0_92 = arith.constant 0 : index
    %c0_93 = arith.constant 0 : index
    %c2_94 = arith.constant 2 : index
    %c0_95 = arith.constant 0 : index
    %86 = vector.load %arg12[%c0_92, %c0_93, %c2_94, %c0_95] : memref<1x18x18x16xf32, #tpu.memory_space<vmem>>, vector<1x18x16x16xf32>
    %cst_96 = arith.constant 2.500000e-01 : f32
    %87 = vector.broadcast %cst_96 : f32 to vector<1x18x16x16xf32>
    %88 = arith.mulf %87, %86 : vector<1x18x16x16xf32>
    %89 = arith.addf %85, %88 : vector<1x18x16x16xf32>
    %90 = vector.extract_strided_slice %89 {offsets = [0, 0, 0, 0], sizes = [1, 16, 16, 16], strides = [1, 1, 1, 1]} : vector<1x18x16x16xf32> to vector<1x16x16x16xf32>
    %cst_97 = arith.constant 2.500000e-01 : f32
    %91 = vector.broadcast %cst_97 : f32 to vector<1x16x16x16xf32>
    %92 = arith.mulf %91, %90 : vector<1x16x16x16xf32>
    %93 = vector.extract_strided_slice %89 {offsets = [0, 1, 0, 0], sizes = [1, 16, 16, 16], strides = [1, 1, 1, 1]} : vector<1x18x16x16xf32> to vector<1x16x16x16xf32>
    %cst_98 = arith.constant 5.000000e-01 : f32
    %94 = vector.broadcast %cst_98 : f32 to vector<1x16x16x16xf32>
    %95 = arith.mulf %94, %93 : vector<1x16x16x16xf32>
    %96 = arith.addf %92, %95 : vector<1x16x16x16xf32>
    %97 = vector.extract_strided_slice %89 {offsets = [0, 2, 0, 0], sizes = [1, 16, 16, 16], strides = [1, 1, 1, 1]} : vector<1x18x16x16xf32> to vector<1x16x16x16xf32>
    %cst_99 = arith.constant 2.500000e-01 : f32
    %98 = vector.broadcast %cst_99 : f32 to vector<1x16x16x16xf32>
    %99 = arith.mulf %98, %97 : vector<1x16x16x16xf32>
    %100 = arith.addf %96, %99 : vector<1x16x16x16xf32>
    %c0_100 = arith.constant 0 : index
    %c1_101 = arith.constant 1 : index
    %c1_102 = arith.constant 1 : index
    %c0_103 = arith.constant 0 : index
    %101 = vector.load %arg12[%c0_100, %c1_101, %c1_102, %c0_103] : memref<1x18x18x16xf32, #tpu.memory_space<vmem>>, vector<1x16x16x16xf32>
    tpu.vector_store %arg12[%c0_100, %c1_101, %c1_102, %c0_103], %100 {strides = array<i32>} : memref<1x18x18x16xf32, #tpu.memory_space<vmem>>, vector<1x16x16x16xf32>,
    %c0_104 = arith.constant 0 : index
    %c0_105 = arith.constant 0 : index
    %c0_106 = arith.constant 0 : index
    %c0_107 = arith.constant 0 : index
    %102 = vector.load %arg12[%c0_104, %c0_105, %c0_106, %c0_107] : memref<1x18x18x16xf32, #tpu.memory_space<vmem>>, vector<1x16x16x16xf32>
    %103 = vector.shape_cast %102 : vector<1x16x16x16xf32> to vector<256x16xf32>
    %104 = arith.truncf %103 : vector<256x16xf32> to vector<256x16xbf16>
    %c0_108 = arith.constant 0 : index
    %c0_109 = arith.constant 0 : index
    %105 = vector.load %arg13[%c0_108, %c0_109] : memref<256x144xbf16, #tpu.memory_space<vmem>>, vector<256x16xbf16>
    tpu.vector_store %arg13[%c0_108, %c0_109], %104 {strides = array<i32>} : memref<256x144xbf16, #tpu.memory_space<vmem>>, vector<256x16xbf16>,
    %c0_110 = arith.constant 0 : index
    %c0_111 = arith.constant 0 : index
    %c1_112 = arith.constant 1 : index
    %c0_113 = arith.constant 0 : index
    %106 = vector.load %arg12[%c0_110, %c0_111, %c1_112, %c0_113] : memref<1x18x18x16xf32, #tpu.memory_space<vmem>>, vector<1x16x16x16xf32>
    %107 = vector.shape_cast %106 : vector<1x16x16x16xf32> to vector<256x16xf32>
    %108 = arith.truncf %107 : vector<256x16xf32> to vector<256x16xbf16>
    %c0_114 = arith.constant 0 : index
    %c16_115 = arith.constant 16 : index
    %109 = vector.load %arg13[%c0_114, %c16_115] : memref<256x144xbf16, #tpu.memory_space<vmem>>, vector<256x16xbf16>
    tpu.vector_store %arg13[%c0_114, %c16_115], %108 {strides = array<i32>} : memref<256x144xbf16, #tpu.memory_space<vmem>>, vector<256x16xbf16>,
    %c0_116 = arith.constant 0 : index
    %c0_117 = arith.constant 0 : index
    %c2_118 = arith.constant 2 : index
    %c0_119 = arith.constant 0 : index
    %110 = vector.load %arg12[%c0_116, %c0_117, %c2_118, %c0_119] : memref<1x18x18x16xf32, #tpu.memory_space<vmem>>, vector<1x16x16x16xf32>
    %111 = vector.shape_cast %110 : vector<1x16x16x16xf32> to vector<256x16xf32>
    %112 = arith.truncf %111 : vector<256x16xf32> to vector<256x16xbf16>
    %c0_120 = arith.constant 0 : index
    %c32_121 = arith.constant 32 : index
    %113 = vector.load %arg13[%c0_120, %c32_121] : memref<256x144xbf16, #tpu.memory_space<vmem>>, vector<256x16xbf16>
    tpu.vector_store %arg13[%c0_120, %c32_121], %112 {strides = array<i32>} : memref<256x144xbf16, #tpu.memory_space<vmem>>, vector<256x16xbf16>,
    %c0_122 = arith.constant 0 : index
    %c1_123 = arith.constant 1 : index
    %c0_124 = arith.constant 0 : index
    %c0_125 = arith.constant 0 : index
    %114 = vector.load %arg12[%c0_122, %c1_123, %c0_124, %c0_125] : memref<1x18x18x16xf32, #tpu.memory_space<vmem>>, vector<1x16x16x16xf32>
    %115 = vector.shape_cast %114 : vector<1x16x16x16xf32> to vector<256x16xf32>
    %116 = arith.truncf %115 : vector<256x16xf32> to vector<256x16xbf16>
    %c0_126 = arith.constant 0 : index
    %c48_127 = arith.constant 48 : index
    %117 = vector.load %arg13[%c0_126, %c48_127] : memref<256x144xbf16, #tpu.memory_space<vmem>>, vector<256x16xbf16>
    tpu.vector_store %arg13[%c0_126, %c48_127], %116 {strides = array<i32>} : memref<256x144xbf16, #tpu.memory_space<vmem>>, vector<256x16xbf16>,
    %c0_128 = arith.constant 0 : index
    %c1_129 = arith.constant 1 : index
    %c1_130 = arith.constant 1 : index
    %c0_131 = arith.constant 0 : index
    %118 = vector.load %arg12[%c0_128, %c1_129, %c1_130, %c0_131] : memref<1x18x18x16xf32, #tpu.memory_space<vmem>>, vector<1x16x16x16xf32>
    %119 = vector.shape_cast %118 : vector<1x16x16x16xf32> to vector<256x16xf32>
    %120 = arith.truncf %119 : vector<256x16xf32> to vector<256x16xbf16>
    %c0_132 = arith.constant 0 : index
    %c64_133 = arith.constant 64 : index
    %121 = vector.load %arg13[%c0_132, %c64_133] : memref<256x144xbf16, #tpu.memory_space<vmem>>, vector<256x16xbf16>
    tpu.vector_store %arg13[%c0_132, %c64_133], %120 {strides = array<i32>} : memref<256x144xbf16, #tpu.memory_space<vmem>>, vector<256x16xbf16>,
    %c0_134 = arith.constant 0 : index
    %c1_135 = arith.constant 1 : index
    %c2_136 = arith.constant 2 : index
    %c0_137 = arith.constant 0 : index
    %122 = vector.load %arg12[%c0_134, %c1_135, %c2_136, %c0_137] : memref<1x18x18x16xf32, #tpu.memory_space<vmem>>, vector<1x16x16x16xf32>
    %123 = vector.shape_cast %122 : vector<1x16x16x16xf32> to vector<256x16xf32>
    %124 = arith.truncf %123 : vector<256x16xf32> to vector<256x16xbf16>
    %c0_138 = arith.constant 0 : index
    %c80_139 = arith.constant 80 : index
    %125 = vector.load %arg13[%c0_138, %c80_139] : memref<256x144xbf16, #tpu.memory_space<vmem>>, vector<256x16xbf16>
    tpu.vector_store %arg13[%c0_138, %c80_139], %124 {strides = array<i32>} : memref<256x144xbf16, #tpu.memory_space<vmem>>, vector<256x16xbf16>,
    %c0_140 = arith.constant 0 : index
    %c2_141 = arith.constant 2 : index
    %c0_142 = arith.constant 0 : index
    %c0_143 = arith.constant 0 : index
    %126 = vector.load %arg12[%c0_140, %c2_141, %c0_142, %c0_143] : memref<1x18x18x16xf32, #tpu.memory_space<vmem>>, vector<1x16x16x16xf32>
    %127 = vector.shape_cast %126 : vector<1x16x16x16xf32> to vector<256x16xf32>
    %128 = arith.truncf %127 : vector<256x16xf32> to vector<256x16xbf16>
    %c0_144 = arith.constant 0 : index
    %c96_145 = arith.constant 96 : index
    %129 = vector.load %arg13[%c0_144, %c96_145] : memref<256x144xbf16, #tpu.memory_space<vmem>>, vector<256x16xbf16>
    tpu.vector_store %arg13[%c0_144, %c96_145], %128 {strides = array<i32>} : memref<256x144xbf16, #tpu.memory_space<vmem>>, vector<256x16xbf16>,
    %c0_146 = arith.constant 0 : index
    %c2_147 = arith.constant 2 : index
    %c1_148 = arith.constant 1 : index
    %c0_149 = arith.constant 0 : index
    %130 = vector.load %arg12[%c0_146, %c2_147, %c1_148, %c0_149] : memref<1x18x18x16xf32, #tpu.memory_space<vmem>>, vector<1x16x16x16xf32>
    %131 = vector.shape_cast %130 : vector<1x16x16x16xf32> to vector<256x16xf32>
    %132 = arith.truncf %131 : vector<256x16xf32> to vector<256x16xbf16>
    %c0_150 = arith.constant 0 : index
    %c112_151 = arith.constant 112 : index
    %133 = vector.load %arg13[%c0_150, %c112_151] : memref<256x144xbf16, #tpu.memory_space<vmem>>, vector<256x16xbf16>
    tpu.vector_store %arg13[%c0_150, %c112_151], %132 {strides = array<i32>} : memref<256x144xbf16, #tpu.memory_space<vmem>>, vector<256x16xbf16>,
    %c0_152 = arith.constant 0 : index
    %c2_153 = arith.constant 2 : index
    %c2_154 = arith.constant 2 : index
    %c0_155 = arith.constant 0 : index
    %134 = vector.load %arg12[%c0_152, %c2_153, %c2_154, %c0_155] : memref<1x18x18x16xf32, #tpu.memory_space<vmem>>, vector<1x16x16x16xf32>
    %135 = vector.shape_cast %134 : vector<1x16x16x16xf32> to vector<256x16xf32>
    %136 = arith.truncf %135 : vector<256x16xf32> to vector<256x16xbf16>
    %c0_156 = arith.constant 0 : index
    %c128_157 = arith.constant 128 : index
    %137 = vector.load %arg13[%c0_156, %c128_157] : memref<256x144xbf16, #tpu.memory_space<vmem>>, vector<256x16xbf16>
    tpu.vector_store %arg13[%c0_156, %c128_157], %136 {strides = array<i32>} : memref<256x144xbf16, #tpu.memory_space<vmem>>, vector<256x16xbf16>,
    %c0_158 = arith.constant 0 : index
    %c0_159 = arith.constant 0 : index
    %138 = vector.load %arg13[%c0_158, %c0_159] : memref<256x144xbf16, #tpu.memory_space<vmem>>, vector<256x144xbf16>
    %c0_160 = arith.constant 0 : index
    %c0_161 = arith.constant 0 : index
    %139 = vector.load %arg7[%c0_160, %c0_161] : memref<144x32xbf16, #tpu.memory_space<vmem>>, vector<144x32xbf16>
    %cst_162 = arith.constant dense<0.000000e+00> : vector<256x32xf32>
    %140 = tpu.matmul %138, %139, %cst_162 {dimension_numbers = #tpu.dot_dimension_numbers<[1], [0], [0], [1], [0, 0, 1, 1], [], []>} : vector<256x144xbf16>, vector<144x32xbf16>, vector<256x32xf32> -> vector<256x32xf32>
    %141 = vector.shape_cast %140 : vector<256x32xf32> to vector<1x16x16x32xf32>
    %c0_163 = arith.constant 0 : index
    %c0_164 = arith.constant 0 : index
    %c0_165 = arith.constant 0 : index
    %c0_166 = arith.constant 0 : index
    %142 = vector.load %arg14[%c0_163, %c0_164, %c0_165, %c0_166] : memref<1x16x16x32xf32, #tpu.memory_space<vmem>>, vector<1x16x16x32xf32>
    tpu.vector_store %arg14[%c0_163, %c0_164, %c0_165, %c0_166], %141 {strides = array<i32>} : memref<1x16x16x32xf32, #tpu.memory_space<vmem>>, vector<1x16x16x32xf32>,
    %c0_167 = arith.constant 0 : index
    %c0_168 = arith.constant 0 : index
    %c0_169 = arith.constant 0 : index
    %c0_170 = arith.constant 0 : index
    %143 = tpu.strided_load %arg14[%c0_167, %c0_168, %c0_169, %c0_170] {strides = array<i32: 1, 1, 2, 1>} : memref<1x16x16x32xf32, #tpu.memory_space<vmem>>, vector<1x16x8x32xf32>
    %c0_171 = arith.constant 0 : index
    %c0_172 = arith.constant 0 : index
    %c1_173 = arith.constant 1 : index
    %c0_174 = arith.constant 0 : index
    %144 = tpu.strided_load %arg14[%c0_171, %c0_172, %c1_173, %c0_174] {strides = array<i32: 1, 1, 2, 1>} : memref<1x16x16x32xf32, #tpu.memory_space<vmem>>, vector<1x16x8x32xf32>
    %145 = arith.addf %143, %144 : vector<1x16x8x32xf32>
    %146 = vector.shape_cast %145 : vector<1x16x8x32xf32> to vector<1x8x2x8x32xf32>
    %147 = vector.extract_strided_slice %146 {offsets = [0, 0, 0, 0, 0], sizes = [1, 8, 1, 8, 32], strides = [1, 1, 1, 1, 1]} : vector<1x8x2x8x32xf32> to vector<1x8x1x8x32xf32>
    %148 = vector.shape_cast %147 : vector<1x8x1x8x32xf32> to vector<1x8x8x32xf32>
    %149 = vector.extract_strided_slice %146 {offsets = [0, 0, 1, 0, 0], sizes = [1, 8, 1, 8, 32], strides = [1, 1, 1, 1, 1]} : vector<1x8x2x8x32xf32> to vector<1x8x1x8x32xf32>
    %150 = vector.shape_cast %149 : vector<1x8x1x8x32xf32> to vector<1x8x8x32xf32>
    %151 = arith.addf %148, %150 : vector<1x8x8x32xf32>
    %cst_175 = arith.constant 2.500000e-01 : f32
    %152 = vector.broadcast %cst_175 : f32 to vector<1x8x8x32xf32>
    %153 = arith.mulf %152, %151 : vector<1x8x8x32xf32>
    %154 = vector.shape_cast %153 : vector<1x8x8x32xf32> to vector<64x32xf32>
    %c0_176 = arith.constant 0 : index
    %c0_177 = arith.constant 0 : index
    %155 = vector.load %arg8[%c0_176, %c0_177] : memref<1x32xf32, #tpu.memory_space<vmem>>, vector<1x32xf32>
    %156 = vector.broadcast %155 : vector<1x32xf32> to vector<64x32xf32>
    %157 = arith.addf %154, %156 : vector<64x32xf32>
    %cst_178 = arith.constant 0.000000e+00 : f32
    %158 = vector.broadcast %cst_178 : f32 to vector<64x32xf32>
    %159 = arith.cmpf oge, %157, %158 : vector<64x32xf32>
    %cst_179 = arith.constant 2.000000e-01 : f32
    %160 = vector.broadcast %cst_179 : f32 to vector<64x32xf32>
    %161 = arith.mulf %160, %157 : vector<64x32xf32>
    %162 = arith.select %159, %157, %161 : vector<64x32xi1>, vector<64x32xf32>
    %c0_180 = arith.constant 0 : index
    %c0_181 = arith.constant 0 : index
    %163 = vector.load %arg9[%c0_180, %c0_181] : memref<3x32xf32, #tpu.memory_space<vmem>>, vector<3x32xf32>
    %c0_182 = arith.constant 0 : index
    %c0_183 = arith.constant 0 : index
    %164 = vector.load %arg10[%c0_182, %c0_183] : memref<1x32xf32, #tpu.memory_space<vmem>>, vector<1x32xf32>
    %165 = vector.extract_strided_slice %6 {offsets = [0, 0], sizes = [256, 1], strides = [1, 1]} : vector<256x3xf32> to vector<256x1xf32>
    %166 = vector.extract_strided_slice %163 {offsets = [0, 0], sizes = [1, 32], strides = [1, 1]} : vector<3x32xf32> to vector<1x32xf32>
    %167 = vector.broadcast %165 : vector<256x1xf32> to vector<256x32xf32>
    %168 = vector.broadcast %166 : vector<1x32xf32> to vector<256x32xf32>
    %169 = arith.mulf %167, %168 : vector<256x32xf32>
    %170 = vector.broadcast %164 : vector<1x32xf32> to vector<256x32xf32>
    %171 = arith.addf %170, %169 : vector<256x32xf32>
    %172 = vector.extract_strided_slice %6 {offsets = [0, 1], sizes = [256, 1], strides = [1, 1]} : vector<256x3xf32> to vector<256x1xf32>
    %173 = vector.extract_strided_slice %163 {offsets = [1, 0], sizes = [1, 32], strides = [1, 1]} : vector<3x32xf32> to vector<1x32xf32>
    %174 = vector.broadcast %172 : vector<256x1xf32> to vector<256x32xf32>
    %175 = vector.broadcast %173 : vector<1x32xf32> to vector<256x32xf32>
    %176 = arith.mulf %174, %175 : vector<256x32xf32>
    %177 = arith.addf %171, %176 : vector<256x32xf32>
    %178 = vector.extract_strided_slice %6 {offsets = [0, 2], sizes = [256, 1], strides = [1, 1]} : vector<256x3xf32> to vector<256x1xf32>
    %179 = vector.extract_strided_slice %163 {offsets = [2, 0], sizes = [1, 32], strides = [1, 1]} : vector<3x32xf32> to vector<1x32xf32>
    %180 = vector.broadcast %178 : vector<256x1xf32> to vector<256x32xf32>
    %181 = vector.broadcast %179 : vector<1x32xf32> to vector<256x32xf32>
    %182 = arith.mulf %180, %181 : vector<256x32xf32>
    %183 = arith.addf %177, %182 : vector<256x32xf32>
    %184 = vector.shape_cast %183 : vector<256x32xf32> to vector<1x16x16x32xf32>
    %c0_184 = arith.constant 0 : index
    %c0_185 = arith.constant 0 : index
    %c0_186 = arith.constant 0 : index
    %c0_187 = arith.constant 0 : index
    %185 = vector.load %arg14[%c0_184, %c0_185, %c0_186, %c0_187] : memref<1x16x16x32xf32, #tpu.memory_space<vmem>>, vector<1x16x16x32xf32>
    tpu.vector_store %arg14[%c0_184, %c0_185, %c0_186, %c0_187], %184 {strides = array<i32>} : memref<1x16x16x32xf32, #tpu.memory_space<vmem>>, vector<1x16x16x32xf32>,
    %c0_188 = arith.constant 0 : index
    %c0_189 = arith.constant 0 : index
    %c0_190 = arith.constant 0 : index
    %c0_191 = arith.constant 0 : index
    %186 = tpu.strided_load %arg14[%c0_188, %c0_189, %c0_190, %c0_191] {strides = array<i32: 1, 1, 2, 1>} : memref<1x16x16x32xf32, #tpu.memory_space<vmem>>, vector<1x16x8x32xf32>
    %c0_192 = arith.constant 0 : index
    %c0_193 = arith.constant 0 : index
    %c1_194 = arith.constant 1 : index
    %c0_195 = arith.constant 0 : index
    %187 = tpu.strided_load %arg14[%c0_192, %c0_193, %c1_194, %c0_195] {strides = array<i32: 1, 1, 2, 1>} : memref<1x16x16x32xf32, #tpu.memory_space<vmem>>, vector<1x16x8x32xf32>
    %188 = arith.addf %186, %187 : vector<1x16x8x32xf32>
    %189 = vector.shape_cast %188 : vector<1x16x8x32xf32> to vector<1x8x2x8x32xf32>
    %190 = vector.extract_strided_slice %189 {offsets = [0, 0, 0, 0, 0], sizes = [1, 8, 1, 8, 32], strides = [1, 1, 1, 1, 1]} : vector<1x8x2x8x32xf32> to vector<1x8x1x8x32xf32>
    %191 = vector.shape_cast %190 : vector<1x8x1x8x32xf32> to vector<1x8x8x32xf32>
    %192 = vector.extract_strided_slice %189 {offsets = [0, 0, 1, 0, 0], sizes = [1, 8, 1, 8, 32], strides = [1, 1, 1, 1, 1]} : vector<1x8x2x8x32xf32> to vector<1x8x1x8x32xf32>
    %193 = vector.shape_cast %192 : vector<1x8x1x8x32xf32> to vector<1x8x8x32xf32>
    %194 = arith.addf %191, %193 : vector<1x8x8x32xf32>
    %cst_196 = arith.constant 2.500000e-01 : f32
    %195 = vector.broadcast %cst_196 : f32 to vector<1x8x8x32xf32>
    %196 = arith.mulf %195, %194 : vector<1x8x8x32xf32>
    %197 = vector.shape_cast %196 : vector<1x8x8x32xf32> to vector<64x32xf32>
    %c0_197 = arith.constant 0 : index
    %c0_198 = arith.constant 0 : index
    %198 = memref.load %arg1[%c0_197, %c0_198] : memref<1x1xf32, #tpu.memory_space<smem>>
    %199 = vector.broadcast %198 : f32 to vector<64x32xf32>
    %200 = arith.mulf %199, %162 : vector<64x32xf32>
    %cst_199 = arith.constant 1.000000e+00 : f32
    %201 = arith.subf %cst_199, %198 : f32
    %202 = vector.broadcast %201 : f32 to vector<64x32xf32>
    %203 = arith.mulf %202, %197 : vector<64x32xf32>
    %204 = arith.addf %200, %203 : vector<64x32xf32>
    %c0_200 = arith.constant 0 : index
    %c0_201 = arith.constant 0 : index
    %205 = vector.load %arg11[%c0_200, %c0_201] : memref<64x32xf32, #tpu.memory_space<vmem>>, vector<64x32xf32>
    tpu.vector_store %arg11[%c0_200, %c0_201], %204 {strides = array<i32>} : memref<64x32xf32, #tpu.memory_space<vmem>>, vector<64x32xf32>,
    return
  }
  func.func @transform_0(%arg0: i32) -> (i32, i32) {
    %c0_i32 = arith.constant 0 : i32
    %c0_i32_0 = arith.constant 0 : i32
    %c0_i32_1 = arith.constant 0 : i32
    return %c0_i32, %c0_i32_0 : i32, i32
  }
  func.func @transform_1(%arg0: i32) -> (i32, i32) {
    %c0_i32 = arith.constant 0 : i32
    %c0_i32_0 = arith.constant 0 : i32
    return %arg0, %c0_i32 : i32, i32
  }
  func.func @transform_2(%arg0: i32) -> (i32, i32) {
    %c0_i32 = arith.constant 0 : i32
    %c0_i32_0 = arith.constant 0 : i32
    %c0_i32_1 = arith.constant 0 : i32
    return %c0_i32, %c0_i32_0 : i32, i32
  }
  func.func @transform_3(%arg0: i32) -> (i32, i32) {
    %c0_i32 = arith.constant 0 : i32
    %c0_i32_0 = arith.constant 0 : i32
    %c0_i32_1 = arith.constant 0 : i32
    return %c0_i32, %c0_i32_0 : i32, i32
  }
  func.func @transform_4(%arg0: i32) -> (i32, i32) {
    %c0_i32 = arith.constant 0 : i32
    %c0_i32_0 = arith.constant 0 : i32
    %c0_i32_1 = arith.constant 0 : i32
    return %c0_i32, %c0_i32_0 : i32, i32
  }
  func.func @transform_5(%arg0: i32) -> (i32, i32) {
    %c0_i32 = arith.constant 0 : i32
    %c0_i32_0 = arith.constant 0 : i32
    %c0_i32_1 = arith.constant 0 : i32
    return %c0_i32, %c0_i32_0 : i32, i32
  }
  func.func @transform_6(%arg0: i32) -> (i32, i32) {
    %c0_i32 = arith.constant 0 : i32
    %c0_i32_0 = arith.constant 0 : i32
    %c0_i32_1 = arith.constant 0 : i32
    return %c0_i32, %c0_i32_0 : i32, i32
  }
  func.func @transform_7(%arg0: i32) -> (i32, i32) {
    %c0_i32 = arith.constant 0 : i32
    %c0_i32_0 = arith.constant 0 : i32
    %c0_i32_1 = arith.constant 0 : i32
    return %c0_i32, %c0_i32_0 : i32, i32
  }
  func.func @transform_8(%arg0: i32) -> (i32, i32) {
    %c0_i32 = arith.constant 0 : i32
    %c0_i32_0 = arith.constant 0 : i32
    %c0_i32_1 = arith.constant 0 : i32
    return %c0_i32, %c0_i32_0 : i32, i32
  }
  func.func @transform_9(%arg0: i32) -> (i32, i32) {
    %c0_i32 = arith.constant 0 : i32
    %c0_i32_0 = arith.constant 0 : i32
    %c0_i32_1 = arith.constant 0 : i32
    return %c0_i32, %c0_i32_0 : i32, i32
  }
  func.func @transform_10(%arg0: i32) -> (i32, i32) {
    %c0_i32 = arith.constant 0 : i32
    %c0_i32_0 = arith.constant 0 : i32
    return %arg0, %c0_i32 : i32, i32
  }
}

module attributes {stable_mosaic.version = 11 : i64} {
  func.func @_disc_block_kernel(%arg0: i32, %arg1: memref<64x32xf32, #tpu.memory_space<vmem>>, %arg2: memref<288x32xbf16, #tpu.memory_space<vmem>>, %arg3: memref<1x32xf32, #tpu.memory_space<vmem>>, %arg4: memref<288x32xbf16, #tpu.memory_space<vmem>>, %arg5: memref<1x32xf32, #tpu.memory_space<vmem>>, %arg6: memref<16x32xf32, #tpu.memory_space<vmem>>, %arg7: memref<1x10x10x32xf32, #tpu.memory_space<vmem>>, %arg8: memref<64x288xbf16, #tpu.memory_space<vmem>>, %arg9: memref<1x8x8x32xf32, #tpu.memory_space<vmem>>) attributes {dimension_semantics = [#tpu.dimension_semantics<parallel>], iteration_bounds = array<i64: 4>, scalar_prefetch = 0 : i64, scratch_operands = 3 : i64, tpu.core_type = #tpu.core_type<tc>, window_params = [{transform_indices = @transform_0, window_bounds = array<i64: 64, 32>}, {pipeline_mode = #tpu.pipeline_mode<synchronous>, transform_indices = @transform_1, window_bounds = array<i64: 288, 32>}, {pipeline_mode = #tpu.pipeline_mode<synchronous>, transform_indices = @transform_2, window_bounds = array<i64: 1, 32>}, {pipeline_mode = #tpu.pipeline_mode<synchronous>, transform_indices = @transform_3, window_bounds = array<i64: 288, 32>}, {pipeline_mode = #tpu.pipeline_mode<synchronous>, transform_indices = @transform_4, window_bounds = array<i64: 1, 32>}, {transform_indices = @transform_5, window_bounds = array<i64: 16, 32>}]} {
    %cst = arith.constant 0.000000e+00 : f32
    %0 = vector.broadcast %cst : f32 to vector<1x1x10x32xf32>
    %c0 = arith.constant 0 : index
    %c0_0 = arith.constant 0 : index
    %c0_1 = arith.constant 0 : index
    %c0_2 = arith.constant 0 : index
    %1 = vector.load %arg7[%c0, %c0_0, %c0_1, %c0_2] : memref<1x10x10x32xf32, #tpu.memory_space<vmem>>, vector<1x1x10x32xf32>
    tpu.vector_store %arg7[%c0, %c0_0, %c0_1, %c0_2], %0 {strides = array<i32>} : memref<1x10x10x32xf32, #tpu.memory_space<vmem>>, vector<1x1x10x32xf32>,
    %c0_3 = arith.constant 0 : index
    %c9 = arith.constant 9 : index
    %c0_4 = arith.constant 0 : index
    %c0_5 = arith.constant 0 : index
    %2 = vector.load %arg7[%c0_3, %c9, %c0_4, %c0_5] : memref<1x10x10x32xf32, #tpu.memory_space<vmem>>, vector<1x1x10x32xf32>
    tpu.vector_store %arg7[%c0_3, %c9, %c0_4, %c0_5], %0 {strides = array<i32>} : memref<1x10x10x32xf32, #tpu.memory_space<vmem>>, vector<1x1x10x32xf32>,
    %cst_6 = arith.constant 0.000000e+00 : f32
    %3 = vector.broadcast %cst_6 : f32 to vector<1x8x1x32xf32>
    %c0_7 = arith.constant 0 : index
    %c1 = arith.constant 1 : index
    %c0_8 = arith.constant 0 : index
    %c0_9 = arith.constant 0 : index
    %4 = vector.load %arg7[%c0_7, %c1, %c0_8, %c0_9] : memref<1x10x10x32xf32, #tpu.memory_space<vmem>>, vector<1x8x1x32xf32>
    tpu.vector_store %arg7[%c0_7, %c1, %c0_8, %c0_9], %3 {strides = array<i32>} : memref<1x10x10x32xf32, #tpu.memory_space<vmem>>, vector<1x8x1x32xf32>,
    %c0_10 = arith.constant 0 : index
    %c1_11 = arith.constant 1 : index
    %c9_12 = arith.constant 9 : index
    %c0_13 = arith.constant 0 : index
    %5 = vector.load %arg7[%c0_10, %c1_11, %c9_12, %c0_13] : memref<1x10x10x32xf32, #tpu.memory_space<vmem>>, vector<1x8x1x32xf32>
    tpu.vector_store %arg7[%c0_10, %c1_11, %c9_12, %c0_13], %3 {strides = array<i32>} : memref<1x10x10x32xf32, #tpu.memory_space<vmem>>, vector<1x8x1x32xf32>,
    %c0_14 = arith.constant 0 : index
    %c0_15 = arith.constant 0 : index
    %6 = vector.load %arg1[%c0_14, %c0_15] : memref<64x32xf32, #tpu.memory_space<vmem>>, vector<64x32xf32>
    %7 = vector.shape_cast %6 : vector<64x32xf32> to vector<1x8x8x32xf32>
    %c0_16 = arith.constant 0 : index
    %c1_17 = arith.constant 1 : index
    %c1_18 = arith.constant 1 : index
    %c0_19 = arith.constant 0 : index
    %8 = vector.load %arg7[%c0_16, %c1_17, %c1_18, %c0_19] : memref<1x10x10x32xf32, #tpu.memory_space<vmem>>, vector<1x8x8x32xf32>
    tpu.vector_store %arg7[%c0_16, %c1_17, %c1_18, %c0_19], %7 {strides = array<i32>} : memref<1x10x10x32xf32, #tpu.memory_space<vmem>>, vector<1x8x8x32xf32>,
    %c0_20 = arith.constant 0 : index
    %c0_21 = arith.constant 0 : index
    %c0_22 = arith.constant 0 : index
    %c0_23 = arith.constant 0 : index
    %9 = vector.load %arg7[%c0_20, %c0_21, %c0_22, %c0_23] : memref<1x10x10x32xf32, #tpu.memory_space<vmem>>, vector<1x8x8x32xf32>
    %10 = vector.shape_cast %9 : vector<1x8x8x32xf32> to vector<64x32xf32>
    %11 = arith.truncf %10 : vector<64x32xf32> to vector<64x32xbf16>
    %c0_24 = arith.constant 0 : index
    %c0_25 = arith.constant 0 : index
    %12 = vector.load %arg8[%c0_24, %c0_25] : memref<64x288xbf16, #tpu.memory_space<vmem>>, vector<64x32xbf16>
    tpu.vector_store %arg8[%c0_24, %c0_25], %11 {strides = array<i32>} : memref<64x288xbf16, #tpu.memory_space<vmem>>, vector<64x32xbf16>,
    %c0_26 = arith.constant 0 : index
    %c0_27 = arith.constant 0 : index
    %c1_28 = arith.constant 1 : index
    %c0_29 = arith.constant 0 : index
    %13 = vector.load %arg7[%c0_26, %c0_27, %c1_28, %c0_29] : memref<1x10x10x32xf32, #tpu.memory_space<vmem>>, vector<1x8x8x32xf32>
    %14 = vector.shape_cast %13 : vector<1x8x8x32xf32> to vector<64x32xf32>
    %15 = arith.truncf %14 : vector<64x32xf32> to vector<64x32xbf16>
    %c0_30 = arith.constant 0 : index
    %c32 = arith.constant 32 : index
    %16 = vector.load %arg8[%c0_30, %c32] : memref<64x288xbf16, #tpu.memory_space<vmem>>, vector<64x32xbf16>
    tpu.vector_store %arg8[%c0_30, %c32], %15 {strides = array<i32>} : memref<64x288xbf16, #tpu.memory_space<vmem>>, vector<64x32xbf16>,
    %c0_31 = arith.constant 0 : index
    %c0_32 = arith.constant 0 : index
    %c2 = arith.constant 2 : index
    %c0_33 = arith.constant 0 : index
    %17 = vector.load %arg7[%c0_31, %c0_32, %c2, %c0_33] : memref<1x10x10x32xf32, #tpu.memory_space<vmem>>, vector<1x8x8x32xf32>
    %18 = vector.shape_cast %17 : vector<1x8x8x32xf32> to vector<64x32xf32>
    %19 = arith.truncf %18 : vector<64x32xf32> to vector<64x32xbf16>
    %c0_34 = arith.constant 0 : index
    %c64 = arith.constant 64 : index
    %20 = vector.load %arg8[%c0_34, %c64] : memref<64x288xbf16, #tpu.memory_space<vmem>>, vector<64x32xbf16>
    tpu.vector_store %arg8[%c0_34, %c64], %19 {strides = array<i32>} : memref<64x288xbf16, #tpu.memory_space<vmem>>, vector<64x32xbf16>,
    %c0_35 = arith.constant 0 : index
    %c1_36 = arith.constant 1 : index
    %c0_37 = arith.constant 0 : index
    %c0_38 = arith.constant 0 : index
    %21 = vector.load %arg7[%c0_35, %c1_36, %c0_37, %c0_38] : memref<1x10x10x32xf32, #tpu.memory_space<vmem>>, vector<1x8x8x32xf32>
    %22 = vector.shape_cast %21 : vector<1x8x8x32xf32> to vector<64x32xf32>
    %23 = arith.truncf %22 : vector<64x32xf32> to vector<64x32xbf16>
    %c0_39 = arith.constant 0 : index
    %c96 = arith.constant 96 : index
    %24 = vector.load %arg8[%c0_39, %c96] : memref<64x288xbf16, #tpu.memory_space<vmem>>, vector<64x32xbf16>
    tpu.vector_store %arg8[%c0_39, %c96], %23 {strides = array<i32>} : memref<64x288xbf16, #tpu.memory_space<vmem>>, vector<64x32xbf16>,
    %c0_40 = arith.constant 0 : index
    %c1_41 = arith.constant 1 : index
    %c1_42 = arith.constant 1 : index
    %c0_43 = arith.constant 0 : index
    %25 = vector.load %arg7[%c0_40, %c1_41, %c1_42, %c0_43] : memref<1x10x10x32xf32, #tpu.memory_space<vmem>>, vector<1x8x8x32xf32>
    %26 = vector.shape_cast %25 : vector<1x8x8x32xf32> to vector<64x32xf32>
    %27 = arith.truncf %26 : vector<64x32xf32> to vector<64x32xbf16>
    %c0_44 = arith.constant 0 : index
    %c128 = arith.constant 128 : index
    %28 = vector.load %arg8[%c0_44, %c128] : memref<64x288xbf16, #tpu.memory_space<vmem>>, vector<64x32xbf16>
    tpu.vector_store %arg8[%c0_44, %c128], %27 {strides = array<i32>} : memref<64x288xbf16, #tpu.memory_space<vmem>>, vector<64x32xbf16>,
    %c0_45 = arith.constant 0 : index
    %c1_46 = arith.constant 1 : index
    %c2_47 = arith.constant 2 : index
    %c0_48 = arith.constant 0 : index
    %29 = vector.load %arg7[%c0_45, %c1_46, %c2_47, %c0_48] : memref<1x10x10x32xf32, #tpu.memory_space<vmem>>, vector<1x8x8x32xf32>
    %30 = vector.shape_cast %29 : vector<1x8x8x32xf32> to vector<64x32xf32>
    %31 = arith.truncf %30 : vector<64x32xf32> to vector<64x32xbf16>
    %c0_49 = arith.constant 0 : index
    %c160 = arith.constant 160 : index
    %32 = vector.load %arg8[%c0_49, %c160] : memref<64x288xbf16, #tpu.memory_space<vmem>>, vector<64x32xbf16>
    tpu.vector_store %arg8[%c0_49, %c160], %31 {strides = array<i32>} : memref<64x288xbf16, #tpu.memory_space<vmem>>, vector<64x32xbf16>,
    %c0_50 = arith.constant 0 : index
    %c2_51 = arith.constant 2 : index
    %c0_52 = arith.constant 0 : index
    %c0_53 = arith.constant 0 : index
    %33 = vector.load %arg7[%c0_50, %c2_51, %c0_52, %c0_53] : memref<1x10x10x32xf32, #tpu.memory_space<vmem>>, vector<1x8x8x32xf32>
    %34 = vector.shape_cast %33 : vector<1x8x8x32xf32> to vector<64x32xf32>
    %35 = arith.truncf %34 : vector<64x32xf32> to vector<64x32xbf16>
    %c0_54 = arith.constant 0 : index
    %c192 = arith.constant 192 : index
    %36 = vector.load %arg8[%c0_54, %c192] : memref<64x288xbf16, #tpu.memory_space<vmem>>, vector<64x32xbf16>
    tpu.vector_store %arg8[%c0_54, %c192], %35 {strides = array<i32>} : memref<64x288xbf16, #tpu.memory_space<vmem>>, vector<64x32xbf16>,
    %c0_55 = arith.constant 0 : index
    %c2_56 = arith.constant 2 : index
    %c1_57 = arith.constant 1 : index
    %c0_58 = arith.constant 0 : index
    %37 = vector.load %arg7[%c0_55, %c2_56, %c1_57, %c0_58] : memref<1x10x10x32xf32, #tpu.memory_space<vmem>>, vector<1x8x8x32xf32>
    %38 = vector.shape_cast %37 : vector<1x8x8x32xf32> to vector<64x32xf32>
    %39 = arith.truncf %38 : vector<64x32xf32> to vector<64x32xbf16>
    %c0_59 = arith.constant 0 : index
    %c224 = arith.constant 224 : index
    %40 = vector.load %arg8[%c0_59, %c224] : memref<64x288xbf16, #tpu.memory_space<vmem>>, vector<64x32xbf16>
    tpu.vector_store %arg8[%c0_59, %c224], %39 {strides = array<i32>} : memref<64x288xbf16, #tpu.memory_space<vmem>>, vector<64x32xbf16>,
    %c0_60 = arith.constant 0 : index
    %c2_61 = arith.constant 2 : index
    %c2_62 = arith.constant 2 : index
    %c0_63 = arith.constant 0 : index
    %41 = vector.load %arg7[%c0_60, %c2_61, %c2_62, %c0_63] : memref<1x10x10x32xf32, #tpu.memory_space<vmem>>, vector<1x8x8x32xf32>
    %42 = vector.shape_cast %41 : vector<1x8x8x32xf32> to vector<64x32xf32>
    %43 = arith.truncf %42 : vector<64x32xf32> to vector<64x32xbf16>
    %c0_64 = arith.constant 0 : index
    %c256 = arith.constant 256 : index
    %44 = vector.load %arg8[%c0_64, %c256] : memref<64x288xbf16, #tpu.memory_space<vmem>>, vector<64x32xbf16>
    tpu.vector_store %arg8[%c0_64, %c256], %43 {strides = array<i32>} : memref<64x288xbf16, #tpu.memory_space<vmem>>, vector<64x32xbf16>,
    %c0_65 = arith.constant 0 : index
    %c0_66 = arith.constant 0 : index
    %45 = vector.load %arg8[%c0_65, %c0_66] : memref<64x288xbf16, #tpu.memory_space<vmem>>, vector<64x288xbf16>
    %c0_67 = arith.constant 0 : index
    %c0_68 = arith.constant 0 : index
    %46 = vector.load %arg2[%c0_67, %c0_68] : memref<288x32xbf16, #tpu.memory_space<vmem>>, vector<288x32xbf16>
    %cst_69 = arith.constant dense<0.000000e+00> : vector<64x32xf32>
    %47 = tpu.matmul %45, %46, %cst_69 {dimension_numbers = #tpu.dot_dimension_numbers<[1], [0], [0], [1], [0, 0, 1, 1], [], []>} : vector<64x288xbf16>, vector<288x32xbf16>, vector<64x32xf32> -> vector<64x32xf32>
    %c0_70 = arith.constant 0 : index
    %c0_71 = arith.constant 0 : index
    %48 = vector.load %arg3[%c0_70, %c0_71] : memref<1x32xf32, #tpu.memory_space<vmem>>, vector<1x32xf32>
    %49 = vector.broadcast %48 : vector<1x32xf32> to vector<64x32xf32>
    %50 = arith.addf %47, %49 : vector<64x32xf32>
    %cst_72 = arith.constant 0.000000e+00 : f32
    %51 = vector.broadcast %cst_72 : f32 to vector<64x32xf32>
    %52 = arith.cmpf oge, %50, %51 : vector<64x32xf32>
    %cst_73 = arith.constant 2.000000e-01 : f32
    %53 = vector.broadcast %cst_73 : f32 to vector<64x32xf32>
    %54 = arith.mulf %53, %50 : vector<64x32xf32>
    %55 = arith.select %52, %50, %54 : vector<64x32xi1>, vector<64x32xf32>
    %56 = vector.shape_cast %55 : vector<64x32xf32> to vector<1x8x8x32xf32>
    %c0_74 = arith.constant 0 : index
    %c1_75 = arith.constant 1 : index
    %c1_76 = arith.constant 1 : index
    %c0_77 = arith.constant 0 : index
    %57 = vector.load %arg7[%c0_74, %c1_75, %c1_76, %c0_77] : memref<1x10x10x32xf32, #tpu.memory_space<vmem>>, vector<1x8x8x32xf32>
    tpu.vector_store %arg7[%c0_74, %c1_75, %c1_76, %c0_77], %56 {strides = array<i32>} : memref<1x10x10x32xf32, #tpu.memory_space<vmem>>, vector<1x8x8x32xf32>,
    %c0_78 = arith.constant 0 : index
    %c0_79 = arith.constant 0 : index
    %c0_80 = arith.constant 0 : index
    %c0_81 = arith.constant 0 : index
    %58 = vector.load %arg7[%c0_78, %c0_79, %c0_80, %c0_81] : memref<1x10x10x32xf32, #tpu.memory_space<vmem>>, vector<1x10x8x32xf32>
    %cst_82 = arith.constant 2.500000e-01 : f32
    %59 = vector.broadcast %cst_82 : f32 to vector<1x10x8x32xf32>
    %60 = arith.mulf %59, %58 : vector<1x10x8x32xf32>
    %c0_83 = arith.constant 0 : index
    %c0_84 = arith.constant 0 : index
    %c1_85 = arith.constant 1 : index
    %c0_86 = arith.constant 0 : index
    %61 = vector.load %arg7[%c0_83, %c0_84, %c1_85, %c0_86] : memref<1x10x10x32xf32, #tpu.memory_space<vmem>>, vector<1x10x8x32xf32>
    %cst_87 = arith.constant 5.000000e-01 : f32
    %62 = vector.broadcast %cst_87 : f32 to vector<1x10x8x32xf32>
    %63 = arith.mulf %62, %61 : vector<1x10x8x32xf32>
    %64 = arith.addf %60, %63 : vector<1x10x8x32xf32>
    %c0_88 = arith.constant 0 : index
    %c0_89 = arith.constant 0 : index
    %c2_90 = arith.constant 2 : index
    %c0_91 = arith.constant 0 : index
    %65 = vector.load %arg7[%c0_88, %c0_89, %c2_90, %c0_91] : memref<1x10x10x32xf32, #tpu.memory_space<vmem>>, vector<1x10x8x32xf32>
    %cst_92 = arith.constant 2.500000e-01 : f32
    %66 = vector.broadcast %cst_92 : f32 to vector<1x10x8x32xf32>
    %67 = arith.mulf %66, %65 : vector<1x10x8x32xf32>
    %68 = arith.addf %64, %67 : vector<1x10x8x32xf32>
    %69 = vector.extract_strided_slice %68 {offsets = [0, 0, 0, 0], sizes = [1, 8, 8, 32], strides = [1, 1, 1, 1]} : vector<1x10x8x32xf32> to vector<1x8x8x32xf32>
    %cst_93 = arith.constant 2.500000e-01 : f32
    %70 = vector.broadcast %cst_93 : f32 to vector<1x8x8x32xf32>
    %71 = arith.mulf %70, %69 : vector<1x8x8x32xf32>
    %72 = vector.extract_strided_slice %68 {offsets = [0, 1, 0, 0], sizes = [1, 8, 8, 32], strides = [1, 1, 1, 1]} : vector<1x10x8x32xf32> to vector<1x8x8x32xf32>
    %cst_94 = arith.constant 5.000000e-01 : f32
    %73 = vector.broadcast %cst_94 : f32 to vector<1x8x8x32xf32>
    %74 = arith.mulf %73, %72 : vector<1x8x8x32xf32>
    %75 = arith.addf %71, %74 : vector<1x8x8x32xf32>
    %76 = vector.extract_strided_slice %68 {offsets = [0, 2, 0, 0], sizes = [1, 8, 8, 32], strides = [1, 1, 1, 1]} : vector<1x10x8x32xf32> to vector<1x8x8x32xf32>
    %cst_95 = arith.constant 2.500000e-01 : f32
    %77 = vector.broadcast %cst_95 : f32 to vector<1x8x8x32xf32>
    %78 = arith.mulf %77, %76 : vector<1x8x8x32xf32>
    %79 = arith.addf %75, %78 : vector<1x8x8x32xf32>
    %c0_96 = arith.constant 0 : index
    %c1_97 = arith.constant 1 : index
    %c1_98 = arith.constant 1 : index
    %c0_99 = arith.constant 0 : index
    %80 = vector.load %arg7[%c0_96, %c1_97, %c1_98, %c0_99] : memref<1x10x10x32xf32, #tpu.memory_space<vmem>>, vector<1x8x8x32xf32>
    tpu.vector_store %arg7[%c0_96, %c1_97, %c1_98, %c0_99], %79 {strides = array<i32>} : memref<1x10x10x32xf32, #tpu.memory_space<vmem>>, vector<1x8x8x32xf32>,
    %c0_100 = arith.constant 0 : index
    %c0_101 = arith.constant 0 : index
    %c0_102 = arith.constant 0 : index
    %c0_103 = arith.constant 0 : index
    %81 = vector.load %arg7[%c0_100, %c0_101, %c0_102, %c0_103] : memref<1x10x10x32xf32, #tpu.memory_space<vmem>>, vector<1x8x8x32xf32>
    %82 = vector.shape_cast %81 : vector<1x8x8x32xf32> to vector<64x32xf32>
    %83 = arith.truncf %82 : vector<64x32xf32> to vector<64x32xbf16>
    %c0_104 = arith.constant 0 : index
    %c0_105 = arith.constant 0 : index
    %84 = vector.load %arg8[%c0_104, %c0_105] : memref<64x288xbf16, #tpu.memory_space<vmem>>, vector<64x32xbf16>
    tpu.vector_store %arg8[%c0_104, %c0_105], %83 {strides = array<i32>} : memref<64x288xbf16, #tpu.memory_space<vmem>>, vector<64x32xbf16>,
    %c0_106 = arith.constant 0 : index
    %c0_107 = arith.constant 0 : index
    %c1_108 = arith.constant 1 : index
    %c0_109 = arith.constant 0 : index
    %85 = vector.load %arg7[%c0_106, %c0_107, %c1_108, %c0_109] : memref<1x10x10x32xf32, #tpu.memory_space<vmem>>, vector<1x8x8x32xf32>
    %86 = vector.shape_cast %85 : vector<1x8x8x32xf32> to vector<64x32xf32>
    %87 = arith.truncf %86 : vector<64x32xf32> to vector<64x32xbf16>
    %c0_110 = arith.constant 0 : index
    %c32_111 = arith.constant 32 : index
    %88 = vector.load %arg8[%c0_110, %c32_111] : memref<64x288xbf16, #tpu.memory_space<vmem>>, vector<64x32xbf16>
    tpu.vector_store %arg8[%c0_110, %c32_111], %87 {strides = array<i32>} : memref<64x288xbf16, #tpu.memory_space<vmem>>, vector<64x32xbf16>,
    %c0_112 = arith.constant 0 : index
    %c0_113 = arith.constant 0 : index
    %c2_114 = arith.constant 2 : index
    %c0_115 = arith.constant 0 : index
    %89 = vector.load %arg7[%c0_112, %c0_113, %c2_114, %c0_115] : memref<1x10x10x32xf32, #tpu.memory_space<vmem>>, vector<1x8x8x32xf32>
    %90 = vector.shape_cast %89 : vector<1x8x8x32xf32> to vector<64x32xf32>
    %91 = arith.truncf %90 : vector<64x32xf32> to vector<64x32xbf16>
    %c0_116 = arith.constant 0 : index
    %c64_117 = arith.constant 64 : index
    %92 = vector.load %arg8[%c0_116, %c64_117] : memref<64x288xbf16, #tpu.memory_space<vmem>>, vector<64x32xbf16>
    tpu.vector_store %arg8[%c0_116, %c64_117], %91 {strides = array<i32>} : memref<64x288xbf16, #tpu.memory_space<vmem>>, vector<64x32xbf16>,
    %c0_118 = arith.constant 0 : index
    %c1_119 = arith.constant 1 : index
    %c0_120 = arith.constant 0 : index
    %c0_121 = arith.constant 0 : index
    %93 = vector.load %arg7[%c0_118, %c1_119, %c0_120, %c0_121] : memref<1x10x10x32xf32, #tpu.memory_space<vmem>>, vector<1x8x8x32xf32>
    %94 = vector.shape_cast %93 : vector<1x8x8x32xf32> to vector<64x32xf32>
    %95 = arith.truncf %94 : vector<64x32xf32> to vector<64x32xbf16>
    %c0_122 = arith.constant 0 : index
    %c96_123 = arith.constant 96 : index
    %96 = vector.load %arg8[%c0_122, %c96_123] : memref<64x288xbf16, #tpu.memory_space<vmem>>, vector<64x32xbf16>
    tpu.vector_store %arg8[%c0_122, %c96_123], %95 {strides = array<i32>} : memref<64x288xbf16, #tpu.memory_space<vmem>>, vector<64x32xbf16>,
    %c0_124 = arith.constant 0 : index
    %c1_125 = arith.constant 1 : index
    %c1_126 = arith.constant 1 : index
    %c0_127 = arith.constant 0 : index
    %97 = vector.load %arg7[%c0_124, %c1_125, %c1_126, %c0_127] : memref<1x10x10x32xf32, #tpu.memory_space<vmem>>, vector<1x8x8x32xf32>
    %98 = vector.shape_cast %97 : vector<1x8x8x32xf32> to vector<64x32xf32>
    %99 = arith.truncf %98 : vector<64x32xf32> to vector<64x32xbf16>
    %c0_128 = arith.constant 0 : index
    %c128_129 = arith.constant 128 : index
    %100 = vector.load %arg8[%c0_128, %c128_129] : memref<64x288xbf16, #tpu.memory_space<vmem>>, vector<64x32xbf16>
    tpu.vector_store %arg8[%c0_128, %c128_129], %99 {strides = array<i32>} : memref<64x288xbf16, #tpu.memory_space<vmem>>, vector<64x32xbf16>,
    %c0_130 = arith.constant 0 : index
    %c1_131 = arith.constant 1 : index
    %c2_132 = arith.constant 2 : index
    %c0_133 = arith.constant 0 : index
    %101 = vector.load %arg7[%c0_130, %c1_131, %c2_132, %c0_133] : memref<1x10x10x32xf32, #tpu.memory_space<vmem>>, vector<1x8x8x32xf32>
    %102 = vector.shape_cast %101 : vector<1x8x8x32xf32> to vector<64x32xf32>
    %103 = arith.truncf %102 : vector<64x32xf32> to vector<64x32xbf16>
    %c0_134 = arith.constant 0 : index
    %c160_135 = arith.constant 160 : index
    %104 = vector.load %arg8[%c0_134, %c160_135] : memref<64x288xbf16, #tpu.memory_space<vmem>>, vector<64x32xbf16>
    tpu.vector_store %arg8[%c0_134, %c160_135], %103 {strides = array<i32>} : memref<64x288xbf16, #tpu.memory_space<vmem>>, vector<64x32xbf16>,
    %c0_136 = arith.constant 0 : index
    %c2_137 = arith.constant 2 : index
    %c0_138 = arith.constant 0 : index
    %c0_139 = arith.constant 0 : index
    %105 = vector.load %arg7[%c0_136, %c2_137, %c0_138, %c0_139] : memref<1x10x10x32xf32, #tpu.memory_space<vmem>>, vector<1x8x8x32xf32>
    %106 = vector.shape_cast %105 : vector<1x8x8x32xf32> to vector<64x32xf32>
    %107 = arith.truncf %106 : vector<64x32xf32> to vector<64x32xbf16>
    %c0_140 = arith.constant 0 : index
    %c192_141 = arith.constant 192 : index
    %108 = vector.load %arg8[%c0_140, %c192_141] : memref<64x288xbf16, #tpu.memory_space<vmem>>, vector<64x32xbf16>
    tpu.vector_store %arg8[%c0_140, %c192_141], %107 {strides = array<i32>} : memref<64x288xbf16, #tpu.memory_space<vmem>>, vector<64x32xbf16>,
    %c0_142 = arith.constant 0 : index
    %c2_143 = arith.constant 2 : index
    %c1_144 = arith.constant 1 : index
    %c0_145 = arith.constant 0 : index
    %109 = vector.load %arg7[%c0_142, %c2_143, %c1_144, %c0_145] : memref<1x10x10x32xf32, #tpu.memory_space<vmem>>, vector<1x8x8x32xf32>
    %110 = vector.shape_cast %109 : vector<1x8x8x32xf32> to vector<64x32xf32>
    %111 = arith.truncf %110 : vector<64x32xf32> to vector<64x32xbf16>
    %c0_146 = arith.constant 0 : index
    %c224_147 = arith.constant 224 : index
    %112 = vector.load %arg8[%c0_146, %c224_147] : memref<64x288xbf16, #tpu.memory_space<vmem>>, vector<64x32xbf16>
    tpu.vector_store %arg8[%c0_146, %c224_147], %111 {strides = array<i32>} : memref<64x288xbf16, #tpu.memory_space<vmem>>, vector<64x32xbf16>,
    %c0_148 = arith.constant 0 : index
    %c2_149 = arith.constant 2 : index
    %c2_150 = arith.constant 2 : index
    %c0_151 = arith.constant 0 : index
    %113 = vector.load %arg7[%c0_148, %c2_149, %c2_150, %c0_151] : memref<1x10x10x32xf32, #tpu.memory_space<vmem>>, vector<1x8x8x32xf32>
    %114 = vector.shape_cast %113 : vector<1x8x8x32xf32> to vector<64x32xf32>
    %115 = arith.truncf %114 : vector<64x32xf32> to vector<64x32xbf16>
    %c0_152 = arith.constant 0 : index
    %c256_153 = arith.constant 256 : index
    %116 = vector.load %arg8[%c0_152, %c256_153] : memref<64x288xbf16, #tpu.memory_space<vmem>>, vector<64x32xbf16>
    tpu.vector_store %arg8[%c0_152, %c256_153], %115 {strides = array<i32>} : memref<64x288xbf16, #tpu.memory_space<vmem>>, vector<64x32xbf16>,
    %c0_154 = arith.constant 0 : index
    %c0_155 = arith.constant 0 : index
    %117 = vector.load %arg8[%c0_154, %c0_155] : memref<64x288xbf16, #tpu.memory_space<vmem>>, vector<64x288xbf16>
    %c0_156 = arith.constant 0 : index
    %c0_157 = arith.constant 0 : index
    %118 = vector.load %arg4[%c0_156, %c0_157] : memref<288x32xbf16, #tpu.memory_space<vmem>>, vector<288x32xbf16>
    %cst_158 = arith.constant dense<0.000000e+00> : vector<64x32xf32>
    %119 = tpu.matmul %117, %118, %cst_158 {dimension_numbers = #tpu.dot_dimension_numbers<[1], [0], [0], [1], [0, 0, 1, 1], [], []>} : vector<64x288xbf16>, vector<288x32xbf16>, vector<64x32xf32> -> vector<64x32xf32>
    %120 = vector.shape_cast %119 : vector<64x32xf32> to vector<1x8x8x32xf32>
    %c0_159 = arith.constant 0 : index
    %c0_160 = arith.constant 0 : index
    %c0_161 = arith.constant 0 : index
    %c0_162 = arith.constant 0 : index
    %121 = vector.load %arg9[%c0_159, %c0_160, %c0_161, %c0_162] : memref<1x8x8x32xf32, #tpu.memory_space<vmem>>, vector<1x8x8x32xf32>
    tpu.vector_store %arg9[%c0_159, %c0_160, %c0_161, %c0_162], %120 {strides = array<i32>} : memref<1x8x8x32xf32, #tpu.memory_space<vmem>>, vector<1x8x8x32xf32>,
    %c0_163 = arith.constant 0 : index
    %c0_164 = arith.constant 0 : index
    %c0_165 = arith.constant 0 : index
    %c0_166 = arith.constant 0 : index
    %122 = tpu.strided_load %arg9[%c0_163, %c0_164, %c0_165, %c0_166] {strides = array<i32: 1, 1, 2, 1>} : memref<1x8x8x32xf32, #tpu.memory_space<vmem>>, vector<1x8x4x32xf32>
    %c0_167 = arith.constant 0 : index
    %c0_168 = arith.constant 0 : index
    %c1_169 = arith.constant 1 : index
    %c0_170 = arith.constant 0 : index
    %123 = tpu.strided_load %arg9[%c0_167, %c0_168, %c1_169, %c0_170] {strides = array<i32: 1, 1, 2, 1>} : memref<1x8x8x32xf32, #tpu.memory_space<vmem>>, vector<1x8x4x32xf32>
    %124 = arith.addf %122, %123 : vector<1x8x4x32xf32>
    %125 = vector.shape_cast %124 : vector<1x8x4x32xf32> to vector<1x4x2x4x32xf32>
    %126 = vector.extract_strided_slice %125 {offsets = [0, 0, 0, 0, 0], sizes = [1, 4, 1, 4, 32], strides = [1, 1, 1, 1, 1]} : vector<1x4x2x4x32xf32> to vector<1x4x1x4x32xf32>
    %127 = vector.shape_cast %126 : vector<1x4x1x4x32xf32> to vector<1x4x4x32xf32>
    %128 = vector.extract_strided_slice %125 {offsets = [0, 0, 1, 0, 0], sizes = [1, 4, 1, 4, 32], strides = [1, 1, 1, 1, 1]} : vector<1x4x2x4x32xf32> to vector<1x4x1x4x32xf32>
    %129 = vector.shape_cast %128 : vector<1x4x1x4x32xf32> to vector<1x4x4x32xf32>
    %130 = arith.addf %127, %129 : vector<1x4x4x32xf32>
    %cst_171 = arith.constant 2.500000e-01 : f32
    %131 = vector.broadcast %cst_171 : f32 to vector<1x4x4x32xf32>
    %132 = arith.mulf %131, %130 : vector<1x4x4x32xf32>
    %133 = vector.shape_cast %132 : vector<1x4x4x32xf32> to vector<16x32xf32>
    %c0_172 = arith.constant 0 : index
    %c0_173 = arith.constant 0 : index
    %134 = vector.load %arg5[%c0_172, %c0_173] : memref<1x32xf32, #tpu.memory_space<vmem>>, vector<1x32xf32>
    %135 = vector.broadcast %134 : vector<1x32xf32> to vector<16x32xf32>
    %136 = arith.addf %133, %135 : vector<16x32xf32>
    %cst_174 = arith.constant 0.000000e+00 : f32
    %137 = vector.broadcast %cst_174 : f32 to vector<16x32xf32>
    %138 = arith.cmpf oge, %136, %137 : vector<16x32xf32>
    %cst_175 = arith.constant 2.000000e-01 : f32
    %139 = vector.broadcast %cst_175 : f32 to vector<16x32xf32>
    %140 = arith.mulf %139, %136 : vector<16x32xf32>
    %141 = arith.select %138, %136, %140 : vector<16x32xi1>, vector<16x32xf32>
    %c0_176 = arith.constant 0 : index
    %c0_177 = arith.constant 0 : index
    %142 = vector.load %arg6[%c0_176, %c0_177] : memref<16x32xf32, #tpu.memory_space<vmem>>, vector<16x32xf32>
    tpu.vector_store %arg6[%c0_176, %c0_177], %141 {strides = array<i32>} : memref<16x32xf32, #tpu.memory_space<vmem>>, vector<16x32xf32>,
    return
  }
  func.func @transform_0(%arg0: i32) -> (i32, i32) {
    %c0_i32 = arith.constant 0 : i32
    %c0_i32_0 = arith.constant 0 : i32
    return %arg0, %c0_i32 : i32, i32
  }
  func.func @transform_1(%arg0: i32) -> (i32, i32) {
    %c0_i32 = arith.constant 0 : i32
    %c0_i32_0 = arith.constant 0 : i32
    %c0_i32_1 = arith.constant 0 : i32
    return %c0_i32, %c0_i32_0 : i32, i32
  }
  func.func @transform_2(%arg0: i32) -> (i32, i32) {
    %c0_i32 = arith.constant 0 : i32
    %c0_i32_0 = arith.constant 0 : i32
    %c0_i32_1 = arith.constant 0 : i32
    return %c0_i32, %c0_i32_0 : i32, i32
  }
  func.func @transform_3(%arg0: i32) -> (i32, i32) {
    %c0_i32 = arith.constant 0 : i32
    %c0_i32_0 = arith.constant 0 : i32
    %c0_i32_1 = arith.constant 0 : i32
    return %c0_i32, %c0_i32_0 : i32, i32
  }
  func.func @transform_4(%arg0: i32) -> (i32, i32) {
    %c0_i32 = arith.constant 0 : i32
    %c0_i32_0 = arith.constant 0 : i32
    %c0_i32_1 = arith.constant 0 : i32
    return %c0_i32, %c0_i32_0 : i32, i32
  }
  func.func @transform_5(%arg0: i32) -> (i32, i32) {
    %c0_i32 = arith.constant 0 : i32
    %c0_i32_0 = arith.constant 0 : i32
    return %arg0, %c0_i32 : i32, i32
  }
}

module attributes {stable_mosaic.version = 11 : i64} {
  func.func @_final_kernel(%arg0: i32, %arg1: memref<64x32xf32, #tpu.memory_space<vmem>>, %arg2: memref<288x32xbf16, #tpu.memory_space<vmem>>, %arg3: memref<1x32xf32, #tpu.memory_space<vmem>>, %arg4: memref<16x32xf32, #tpu.memory_space<vmem>>, %arg5: memref<512x32xbf16, #tpu.memory_space<vmem>>, %arg6: memref<1x32xf32, #tpu.memory_space<vmem>>, %arg7: memref<1x32xf32, #tpu.memory_space<vmem>>, %arg8: memref<1x1xf32, #tpu.memory_space<vmem>>, %arg9: memref<4x1xf32, #tpu.memory_space<vmem>>, %arg10: memref<4x6x6x32xf32, #tpu.memory_space<vmem>>, %arg11: memref<64x288xbf16, #tpu.memory_space<vmem>>, %arg12: memref<4x16x32xf32, #tpu.memory_space<vmem>>, %arg13: memref<4x512xbf16, #tpu.memory_space<vmem>>) attributes {dimension_semantics = [#tpu.dimension_semantics<arbitrary>], iteration_bounds = array<i64: 1>, scalar_prefetch = 0 : i64, scratch_operands = 4 : i64, tpu.core_type = #tpu.core_type<tc>, window_params = [{pipeline_mode = #tpu.pipeline_mode<synchronous>, transform_indices = @transform_0, window_bounds = array<i64: 64, 32>}, {pipeline_mode = #tpu.pipeline_mode<synchronous>, transform_indices = @transform_1, window_bounds = array<i64: 288, 32>}, {pipeline_mode = #tpu.pipeline_mode<synchronous>, transform_indices = @transform_2, window_bounds = array<i64: 1, 32>}, {pipeline_mode = #tpu.pipeline_mode<synchronous>, transform_indices = @transform_3, window_bounds = array<i64: 16, 32>}, {pipeline_mode = #tpu.pipeline_mode<synchronous>, transform_indices = @transform_4, window_bounds = array<i64: 512, 32>}, {pipeline_mode = #tpu.pipeline_mode<synchronous>, transform_indices = @transform_5, window_bounds = array<i64: 1, 32>}, {pipeline_mode = #tpu.pipeline_mode<synchronous>, transform_indices = @transform_6, window_bounds = array<i64: 1, 32>}, {pipeline_mode = #tpu.pipeline_mode<synchronous>, transform_indices = @transform_7, window_bounds = array<i64: 1, 1>}, {pipeline_mode = #tpu.pipeline_mode<synchronous>, transform_indices = @transform_8, window_bounds = array<i64: 4, 1>}]} {
    %c0 = arith.constant 0 : index
    %c0_0 = arith.constant 0 : index
    %0 = vector.load %arg1[%c0, %c0_0] : memref<64x32xf32, #tpu.memory_space<vmem>>, vector<64x32xf32>
    %1 = vector.shape_cast %0 : vector<64x32xf32> to vector<4x1x16x32xf32>
    %cst = arith.constant dense<0.000000e+00> : vector<1x16x32xf32>
    %2 = vector.multi_reduction <add>, %1, %cst [0] : vector<4x1x16x32xf32> to vector<1x16x32xf32>
    %3 = vector.shape_cast %2 : vector<1x16x32xf32> to vector<1x1x16x32xf32>
    %cst_1 = arith.constant 4.000000e+00 : f32
    %4 = vector.broadcast %cst_1 : f32 to vector<1x1x16x32xf32>
    %5 = arith.divf %3, %4 : vector<1x1x16x32xf32>
    %6 = vector.broadcast %5 : vector<1x1x16x32xf32> to vector<4x1x16x32xf32>
    %7 = arith.subf %1, %6 : vector<4x1x16x32xf32>
    %8 = arith.mulf %7, %7 : vector<4x1x16x32xf32>
    %cst_2 = arith.constant dense<0.000000e+00> : vector<1x16x32xf32>
    %9 = vector.multi_reduction <add>, %8, %cst_2 [0] : vector<4x1x16x32xf32> to vector<1x16x32xf32>
    %cst_3 = arith.constant 4.000000e+00 : f32
    %10 = vector.broadcast %cst_3 : f32 to vector<1x16x32xf32>
    %11 = arith.divf %9, %10 : vector<1x16x32xf32>
    %cst_4 = arith.constant 9.99999993E-9 : f32
    %12 = vector.broadcast %cst_4 : f32 to vector<1x16x32xf32>
    %13 = arith.addf %11, %12 : vector<1x16x32xf32>
    %14 = math.sqrt %13 : vector<1x16x32xf32>
    %cst_5 = arith.constant dense<0.000000e+00> : vector<1x16xf32>
    %15 = vector.multi_reduction <add>, %14, %cst_5 [2] : vector<1x16x32xf32> to vector<1x16xf32>
    %16 = vector.shape_cast %15 : vector<1x16xf32> to vector<1x16x1xf32>
    %cst_6 = arith.constant 3.200000e+01 : f32
    %17 = vector.broadcast %cst_6 : f32 to vector<1x16x1xf32>
    %18 = arith.divf %16, %17 : vector<1x16x1xf32>
    %cst_7 = arith.constant dense<0.000000e+00> : vector<1x1xf32>
    %19 = vector.multi_reduction <add>, %18, %cst_7 [1] : vector<1x16x1xf32> to vector<1x1xf32>
    %20 = vector.shape_cast %19 : vector<1x1xf32> to vector<1x1x1xf32>
    %cst_8 = arith.constant 1.600000e+01 : f32
    %21 = vector.broadcast %cst_8 : f32 to vector<1x1x1xf32>
    %22 = arith.divf %20, %21 : vector<1x1x1xf32>
    %23 = vector.shape_cast %22 : vector<1x1x1xf32> to vector<1x1x1x1xf32>
    %24 = vector.shape_cast %23 : vector<1x1x1x1xf32> to vector<1x1x1x1xf32>
    %25 = vector.broadcast %24 : vector<1x1x1x1xf32> to vector<4x1x16x32xf32>
    %26 = vector.shape_cast %25 : vector<4x1x16x32xf32> to vector<64x32xf32>
    %cst_9 = arith.constant 0.000000e+00 : f32
    %27 = vector.broadcast %cst_9 : f32 to vector<4x1x6x32xf32>
    %c0_10 = arith.constant 0 : index
    %c0_11 = arith.constant 0 : index
    %c0_12 = arith.constant 0 : index
    %c0_13 = arith.constant 0 : index
    %28 = vector.load %arg10[%c0_10, %c0_11, %c0_12, %c0_13] : memref<4x6x6x32xf32, #tpu.memory_space<vmem>>, vector<4x1x6x32xf32>
    tpu.vector_store %arg10[%c0_10, %c0_11, %c0_12, %c0_13], %27 {strides = array<i32>} : memref<4x6x6x32xf32, #tpu.memory_space<vmem>>, vector<4x1x6x32xf32>,
    %c0_14 = arith.constant 0 : index
    %c5 = arith.constant 5 : index
    %c0_15 = arith.constant 0 : index
    %c0_16 = arith.constant 0 : index
    %29 = vector.load %arg10[%c0_14, %c5, %c0_15, %c0_16] : memref<4x6x6x32xf32, #tpu.memory_space<vmem>>, vector<4x1x6x32xf32>
    tpu.vector_store %arg10[%c0_14, %c5, %c0_15, %c0_16], %27 {strides = array<i32>} : memref<4x6x6x32xf32, #tpu.memory_space<vmem>>, vector<4x1x6x32xf32>,
    %cst_17 = arith.constant 0.000000e+00 : f32
    %30 = vector.broadcast %cst_17 : f32 to vector<4x4x1x32xf32>
    %c0_18 = arith.constant 0 : index
    %c1 = arith.constant 1 : index
    %c0_19 = arith.constant 0 : index
    %c0_20 = arith.constant 0 : index
    %31 = vector.load %arg10[%c0_18, %c1, %c0_19, %c0_20] : memref<4x6x6x32xf32, #tpu.memory_space<vmem>>, vector<4x4x1x32xf32>
    tpu.vector_store %arg10[%c0_18, %c1, %c0_19, %c0_20], %30 {strides = array<i32>} : memref<4x6x6x32xf32, #tpu.memory_space<vmem>>, vector<4x4x1x32xf32>,
    %c0_21 = arith.constant 0 : index
    %c1_22 = arith.constant 1 : index
    %c5_23 = arith.constant 5 : index
    %c0_24 = arith.constant 0 : index
    %32 = vector.load %arg10[%c0_21, %c1_22, %c5_23, %c0_24] : memref<4x6x6x32xf32, #tpu.memory_space<vmem>>, vector<4x4x1x32xf32>
    tpu.vector_store %arg10[%c0_21, %c1_22, %c5_23, %c0_24], %30 {strides = array<i32>} : memref<4x6x6x32xf32, #tpu.memory_space<vmem>>, vector<4x4x1x32xf32>,
    %33 = vector.shape_cast %0 : vector<64x32xf32> to vector<4x4x4x32xf32>
    %c0_25 = arith.constant 0 : index
    %c1_26 = arith.constant 1 : index
    %c1_27 = arith.constant 1 : index
    %c0_28 = arith.constant 0 : index
    %34 = vector.load %arg10[%c0_25, %c1_26, %c1_27, %c0_28] : memref<4x6x6x32xf32, #tpu.memory_space<vmem>>, vector<4x4x4x32xf32>
    tpu.vector_store %arg10[%c0_25, %c1_26, %c1_27, %c0_28], %33 {strides = array<i32>} : memref<4x6x6x32xf32, #tpu.memory_space<vmem>>, vector<4x4x4x32xf32>,
    %c0_29 = arith.constant 0 : index
    %c0_30 = arith.constant 0 : index
    %c0_31 = arith.constant 0 : index
    %c0_32 = arith.constant 0 : index
    %35 = vector.load %arg10[%c0_29, %c0_30, %c0_31, %c0_32] : memref<4x6x6x32xf32, #tpu.memory_space<vmem>>, vector<4x4x4x32xf32>
    %36 = vector.shape_cast %35 : vector<4x4x4x32xf32> to vector<64x32xf32>
    %37 = arith.truncf %36 : vector<64x32xf32> to vector<64x32xbf16>
    %c0_33 = arith.constant 0 : index
    %c0_34 = arith.constant 0 : index
    %38 = vector.load %arg11[%c0_33, %c0_34] : memref<64x288xbf16, #tpu.memory_space<vmem>>, vector<64x32xbf16>
    tpu.vector_store %arg11[%c0_33, %c0_34], %37 {strides = array<i32>} : memref<64x288xbf16, #tpu.memory_space<vmem>>, vector<64x32xbf16>,
    %c0_35 = arith.constant 0 : index
    %c0_36 = arith.constant 0 : index
    %c1_37 = arith.constant 1 : index
    %c0_38 = arith.constant 0 : index
    %39 = vector.load %arg10[%c0_35, %c0_36, %c1_37, %c0_38] : memref<4x6x6x32xf32, #tpu.memory_space<vmem>>, vector<4x4x4x32xf32>
    %40 = vector.shape_cast %39 : vector<4x4x4x32xf32> to vector<64x32xf32>
    %41 = arith.truncf %40 : vector<64x32xf32> to vector<64x32xbf16>
    %c0_39 = arith.constant 0 : index
    %c32 = arith.constant 32 : index
    %42 = vector.load %arg11[%c0_39, %c32] : memref<64x288xbf16, #tpu.memory_space<vmem>>, vector<64x32xbf16>
    tpu.vector_store %arg11[%c0_39, %c32], %41 {strides = array<i32>} : memref<64x288xbf16, #tpu.memory_space<vmem>>, vector<64x32xbf16>,
    %c0_40 = arith.constant 0 : index
    %c0_41 = arith.constant 0 : index
    %c2 = arith.constant 2 : index
    %c0_42 = arith.constant 0 : index
    %43 = vector.load %arg10[%c0_40, %c0_41, %c2, %c0_42] : memref<4x6x6x32xf32, #tpu.memory_space<vmem>>, vector<4x4x4x32xf32>
    %44 = vector.shape_cast %43 : vector<4x4x4x32xf32> to vector<64x32xf32>
    %45 = arith.truncf %44 : vector<64x32xf32> to vector<64x32xbf16>
    %c0_43 = arith.constant 0 : index
    %c64 = arith.constant 64 : index
    %46 = vector.load %arg11[%c0_43, %c64] : memref<64x288xbf16, #tpu.memory_space<vmem>>, vector<64x32xbf16>
    tpu.vector_store %arg11[%c0_43, %c64], %45 {strides = array<i32>} : memref<64x288xbf16, #tpu.memory_space<vmem>>, vector<64x32xbf16>,
    %c0_44 = arith.constant 0 : index
    %c1_45 = arith.constant 1 : index
    %c0_46 = arith.constant 0 : index
    %c0_47 = arith.constant 0 : index
    %47 = vector.load %arg10[%c0_44, %c1_45, %c0_46, %c0_47] : memref<4x6x6x32xf32, #tpu.memory_space<vmem>>, vector<4x4x4x32xf32>
    %48 = vector.shape_cast %47 : vector<4x4x4x32xf32> to vector<64x32xf32>
    %49 = arith.truncf %48 : vector<64x32xf32> to vector<64x32xbf16>
    %c0_48 = arith.constant 0 : index
    %c96 = arith.constant 96 : index
    %50 = vector.load %arg11[%c0_48, %c96] : memref<64x288xbf16, #tpu.memory_space<vmem>>, vector<64x32xbf16>
    tpu.vector_store %arg11[%c0_48, %c96], %49 {strides = array<i32>} : memref<64x288xbf16, #tpu.memory_space<vmem>>, vector<64x32xbf16>,
    %c0_49 = arith.constant 0 : index
    %c1_50 = arith.constant 1 : index
    %c1_51 = arith.constant 1 : index
    %c0_52 = arith.constant 0 : index
    %51 = vector.load %arg10[%c0_49, %c1_50, %c1_51, %c0_52] : memref<4x6x6x32xf32, #tpu.memory_space<vmem>>, vector<4x4x4x32xf32>
    %52 = vector.shape_cast %51 : vector<4x4x4x32xf32> to vector<64x32xf32>
    %53 = arith.truncf %52 : vector<64x32xf32> to vector<64x32xbf16>
    %c0_53 = arith.constant 0 : index
    %c128 = arith.constant 128 : index
    %54 = vector.load %arg11[%c0_53, %c128] : memref<64x288xbf16, #tpu.memory_space<vmem>>, vector<64x32xbf16>
    tpu.vector_store %arg11[%c0_53, %c128], %53 {strides = array<i32>} : memref<64x288xbf16, #tpu.memory_space<vmem>>, vector<64x32xbf16>,
    %c0_54 = arith.constant 0 : index
    %c1_55 = arith.constant 1 : index
    %c2_56 = arith.constant 2 : index
    %c0_57 = arith.constant 0 : index
    %55 = vector.load %arg10[%c0_54, %c1_55, %c2_56, %c0_57] : memref<4x6x6x32xf32, #tpu.memory_space<vmem>>, vector<4x4x4x32xf32>
    %56 = vector.shape_cast %55 : vector<4x4x4x32xf32> to vector<64x32xf32>
    %57 = arith.truncf %56 : vector<64x32xf32> to vector<64x32xbf16>
    %c0_58 = arith.constant 0 : index
    %c160 = arith.constant 160 : index
    %58 = vector.load %arg11[%c0_58, %c160] : memref<64x288xbf16, #tpu.memory_space<vmem>>, vector<64x32xbf16>
    tpu.vector_store %arg11[%c0_58, %c160], %57 {strides = array<i32>} : memref<64x288xbf16, #tpu.memory_space<vmem>>, vector<64x32xbf16>,
    %c0_59 = arith.constant 0 : index
    %c2_60 = arith.constant 2 : index
    %c0_61 = arith.constant 0 : index
    %c0_62 = arith.constant 0 : index
    %59 = vector.load %arg10[%c0_59, %c2_60, %c0_61, %c0_62] : memref<4x6x6x32xf32, #tpu.memory_space<vmem>>, vector<4x4x4x32xf32>
    %60 = vector.shape_cast %59 : vector<4x4x4x32xf32> to vector<64x32xf32>
    %61 = arith.truncf %60 : vector<64x32xf32> to vector<64x32xbf16>
    %c0_63 = arith.constant 0 : index
    %c192 = arith.constant 192 : index
    %62 = vector.load %arg11[%c0_63, %c192] : memref<64x288xbf16, #tpu.memory_space<vmem>>, vector<64x32xbf16>
    tpu.vector_store %arg11[%c0_63, %c192], %61 {strides = array<i32>} : memref<64x288xbf16, #tpu.memory_space<vmem>>, vector<64x32xbf16>,
    %c0_64 = arith.constant 0 : index
    %c2_65 = arith.constant 2 : index
    %c1_66 = arith.constant 1 : index
    %c0_67 = arith.constant 0 : index
    %63 = vector.load %arg10[%c0_64, %c2_65, %c1_66, %c0_67] : memref<4x6x6x32xf32, #tpu.memory_space<vmem>>, vector<4x4x4x32xf32>
    %64 = vector.shape_cast %63 : vector<4x4x4x32xf32> to vector<64x32xf32>
    %65 = arith.truncf %64 : vector<64x32xf32> to vector<64x32xbf16>
    %c0_68 = arith.constant 0 : index
    %c224 = arith.constant 224 : index
    %66 = vector.load %arg11[%c0_68, %c224] : memref<64x288xbf16, #tpu.memory_space<vmem>>, vector<64x32xbf16>
    tpu.vector_store %arg11[%c0_68, %c224], %65 {strides = array<i32>} : memref<64x288xbf16, #tpu.memory_space<vmem>>, vector<64x32xbf16>,
    %c0_69 = arith.constant 0 : index
    %c2_70 = arith.constant 2 : index
    %c2_71 = arith.constant 2 : index
    %c0_72 = arith.constant 0 : index
    %67 = vector.load %arg10[%c0_69, %c2_70, %c2_71, %c0_72] : memref<4x6x6x32xf32, #tpu.memory_space<vmem>>, vector<4x4x4x32xf32>
    %68 = vector.shape_cast %67 : vector<4x4x4x32xf32> to vector<64x32xf32>
    %69 = arith.truncf %68 : vector<64x32xf32> to vector<64x32xbf16>
    %c0_73 = arith.constant 0 : index
    %c256 = arith.constant 256 : index
    %70 = vector.load %arg11[%c0_73, %c256] : memref<64x288xbf16, #tpu.memory_space<vmem>>, vector<64x32xbf16>
    tpu.vector_store %arg11[%c0_73, %c256], %69 {strides = array<i32>} : memref<64x288xbf16, #tpu.memory_space<vmem>>, vector<64x32xbf16>,
    %c0_74 = arith.constant 0 : index
    %c0_75 = arith.constant 0 : index
    %71 = vector.load %arg11[%c0_74, %c0_75] : memref<64x288xbf16, #tpu.memory_space<vmem>>, vector<64x288xbf16>
    %c0_76 = arith.constant 0 : index
    %c0_77 = arith.constant 0 : index
    %72 = vector.load %arg2[%c0_76, %c0_77] : memref<288x32xbf16, #tpu.memory_space<vmem>>, vector<288x32xbf16>
    %cst_78 = arith.constant dense<0.000000e+00> : vector<64x32xf32>
    %73 = tpu.matmul %71, %72, %cst_78 {dimension_numbers = #tpu.dot_dimension_numbers<[1], [0], [0], [1], [0, 0, 1, 1], [], []>} : vector<64x288xbf16>, vector<288x32xbf16>, vector<64x32xf32> -> vector<64x32xf32>
    %c0_79 = arith.constant 0 : index
    %c0_80 = arith.constant 0 : index
    %74 = vector.load %arg4[%c0_79, %c0_80] : memref<16x32xf32, #tpu.memory_space<vmem>>, vector<16x32xf32>
    %75 = vector.shape_cast %74 : vector<16x32xf32> to vector<1x16x32xf32>
    %76 = vector.shape_cast %75 : vector<1x16x32xf32> to vector<1x16x32xf32>
    %77 = vector.broadcast %76 : vector<1x16x32xf32> to vector<4x16x32xf32>
    %78 = vector.shape_cast %77 : vector<4x16x32xf32> to vector<64x32xf32>
    %79 = arith.mulf %26, %78 : vector<64x32xf32>
    %80 = arith.addf %73, %79 : vector<64x32xf32>
    %c0_81 = arith.constant 0 : index
    %c0_82 = arith.constant 0 : index
    %81 = vector.load %arg3[%c0_81, %c0_82] : memref<1x32xf32, #tpu.memory_space<vmem>>, vector<1x32xf32>
    %82 = vector.broadcast %81 : vector<1x32xf32> to vector<64x32xf32>
    %83 = arith.addf %80, %82 : vector<64x32xf32>
    %cst_83 = arith.constant 0.000000e+00 : f32
    %84 = vector.broadcast %cst_83 : f32 to vector<64x32xf32>
    %85 = arith.cmpf oge, %83, %84 : vector<64x32xf32>
    %cst_84 = arith.constant 2.000000e-01 : f32
    %86 = vector.broadcast %cst_84 : f32 to vector<64x32xf32>
    %87 = arith.mulf %86, %83 : vector<64x32xf32>
    %88 = arith.select %85, %83, %87 : vector<64x32xi1>, vector<64x32xf32>
    %89 = vector.shape_cast %88 : vector<64x32xf32> to vector<4x16x32xf32>
    %c0_85 = arith.constant 0 : index
    %c0_86 = arith.constant 0 : index
    %c0_87 = arith.constant 0 : index
    %90 = vector.load %arg12[%c0_85, %c0_86, %c0_87] : memref<4x16x32xf32, #tpu.memory_space<vmem>>, vector<4x16x32xf32>
    tpu.vector_store %arg12[%c0_85, %c0_86, %c0_87], %89 {strides = array<i32>} : memref<4x16x32xf32, #tpu.memory_space<vmem>>, vector<4x16x32xf32>,
    %c0_88 = arith.constant 0 : index
    %c0_89 = arith.constant 0 : index
    %c0_90 = arith.constant 0 : index
    %91 = vector.load %arg12[%c0_88, %c0_89, %c0_90] : memref<4x16x32xf32, #tpu.memory_space<vmem>>, vector<4x1x32xf32>
    %92 = vector.shape_cast %91 : vector<4x1x32xf32> to vector<4x32xf32>
    %93 = arith.truncf %92 : vector<4x32xf32> to vector<4x32xbf16>
    %c0_91 = arith.constant 0 : index
    %c0_92 = arith.constant 0 : index
    %94 = vector.load %arg13[%c0_91, %c0_92] : memref<4x512xbf16, #tpu.memory_space<vmem>>, vector<4x32xbf16>
    tpu.vector_store %arg13[%c0_91, %c0_92], %93 {strides = array<i32>} : memref<4x512xbf16, #tpu.memory_space<vmem>>, vector<4x32xbf16>,
    %c0_93 = arith.constant 0 : index
    %c1_94 = arith.constant 1 : index
    %c0_95 = arith.constant 0 : index
    %95 = vector.load %arg12[%c0_93, %c1_94, %c0_95] : memref<4x16x32xf32, #tpu.memory_space<vmem>>, vector<4x1x32xf32>
    %96 = vector.shape_cast %95 : vector<4x1x32xf32> to vector<4x32xf32>
    %97 = arith.truncf %96 : vector<4x32xf32> to vector<4x32xbf16>
    %c0_96 = arith.constant 0 : index
    %c32_97 = arith.constant 32 : index
    %98 = vector.load %arg13[%c0_96, %c32_97] : memref<4x512xbf16, #tpu.memory_space<vmem>>, vector<4x32xbf16>
    tpu.vector_store %arg13[%c0_96, %c32_97], %97 {strides = array<i32>} : memref<4x512xbf16, #tpu.memory_space<vmem>>, vector<4x32xbf16>,
    %c0_98 = arith.constant 0 : index
    %c2_99 = arith.constant 2 : index
    %c0_100 = arith.constant 0 : index
    %99 = vector.load %arg12[%c0_98, %c2_99, %c0_100] : memref<4x16x32xf32, #tpu.memory_space<vmem>>, vector<4x1x32xf32>
    %100 = vector.shape_cast %99 : vector<4x1x32xf32> to vector<4x32xf32>
    %101 = arith.truncf %100 : vector<4x32xf32> to vector<4x32xbf16>
    %c0_101 = arith.constant 0 : index
    %c64_102 = arith.constant 64 : index
    %102 = vector.load %arg13[%c0_101, %c64_102] : memref<4x512xbf16, #tpu.memory_space<vmem>>, vector<4x32xbf16>
    tpu.vector_store %arg13[%c0_101, %c64_102], %101 {strides = array<i32>} : memref<4x512xbf16, #tpu.memory_space<vmem>>, vector<4x32xbf16>,
    %c0_103 = arith.constant 0 : index
    %c3 = arith.constant 3 : index
    %c0_104 = arith.constant 0 : index
    %103 = vector.load %arg12[%c0_103, %c3, %c0_104] : memref<4x16x32xf32, #tpu.memory_space<vmem>>, vector<4x1x32xf32>
    %104 = vector.shape_cast %103 : vector<4x1x32xf32> to vector<4x32xf32>
    %105 = arith.truncf %104 : vector<4x32xf32> to vector<4x32xbf16>
    %c0_105 = arith.constant 0 : index
    %c96_106 = arith.constant 96 : index
    %106 = vector.load %arg13[%c0_105, %c96_106] : memref<4x512xbf16, #tpu.memory_space<vmem>>, vector<4x32xbf16>
    tpu.vector_store %arg13[%c0_105, %c96_106], %105 {strides = array<i32>} : memref<4x512xbf16, #tpu.memory_space<vmem>>, vector<4x32xbf16>,
    %c0_107 = arith.constant 0 : index
    %c4 = arith.constant 4 : index
    %c0_108 = arith.constant 0 : index
    %107 = vector.load %arg12[%c0_107, %c4, %c0_108] : memref<4x16x32xf32, #tpu.memory_space<vmem>>, vector<4x1x32xf32>
    %108 = vector.shape_cast %107 : vector<4x1x32xf32> to vector<4x32xf32>
    %109 = arith.truncf %108 : vector<4x32xf32> to vector<4x32xbf16>
    %c0_109 = arith.constant 0 : index
    %c128_110 = arith.constant 128 : index
    %110 = vector.load %arg13[%c0_109, %c128_110] : memref<4x512xbf16, #tpu.memory_space<vmem>>, vector<4x32xbf16>
    tpu.vector_store %arg13[%c0_109, %c128_110], %109 {strides = array<i32>} : memref<4x512xbf16, #tpu.memory_space<vmem>>, vector<4x32xbf16>,
    %c0_111 = arith.constant 0 : index
    %c5_112 = arith.constant 5 : index
    %c0_113 = arith.constant 0 : index
    %111 = vector.load %arg12[%c0_111, %c5_112, %c0_113] : memref<4x16x32xf32, #tpu.memory_space<vmem>>, vector<4x1x32xf32>
    %112 = vector.shape_cast %111 : vector<4x1x32xf32> to vector<4x32xf32>
    %113 = arith.truncf %112 : vector<4x32xf32> to vector<4x32xbf16>
    %c0_114 = arith.constant 0 : index
    %c160_115 = arith.constant 160 : index
    %114 = vector.load %arg13[%c0_114, %c160_115] : memref<4x512xbf16, #tpu.memory_space<vmem>>, vector<4x32xbf16>
    tpu.vector_store %arg13[%c0_114, %c160_115], %113 {strides = array<i32>} : memref<4x512xbf16, #tpu.memory_space<vmem>>, vector<4x32xbf16>,
    %c0_116 = arith.constant 0 : index
    %c6 = arith.constant 6 : index
    %c0_117 = arith.constant 0 : index
    %115 = vector.load %arg12[%c0_116, %c6, %c0_117] : memref<4x16x32xf32, #tpu.memory_space<vmem>>, vector<4x1x32xf32>
    %116 = vector.shape_cast %115 : vector<4x1x32xf32> to vector<4x32xf32>
    %117 = arith.truncf %116 : vector<4x32xf32> to vector<4x32xbf16>
    %c0_118 = arith.constant 0 : index
    %c192_119 = arith.constant 192 : index
    %118 = vector.load %arg13[%c0_118, %c192_119] : memref<4x512xbf16, #tpu.memory_space<vmem>>, vector<4x32xbf16>
    tpu.vector_store %arg13[%c0_118, %c192_119], %117 {strides = array<i32>} : memref<4x512xbf16, #tpu.memory_space<vmem>>, vector<4x32xbf16>,
    %c0_120 = arith.constant 0 : index
    %c7 = arith.constant 7 : index
    %c0_121 = arith.constant 0 : index
    %119 = vector.load %arg12[%c0_120, %c7, %c0_121] : memref<4x16x32xf32, #tpu.memory_space<vmem>>, vector<4x1x32xf32>
    %120 = vector.shape_cast %119 : vector<4x1x32xf32> to vector<4x32xf32>
    %121 = arith.truncf %120 : vector<4x32xf32> to vector<4x32xbf16>
    %c0_122 = arith.constant 0 : index
    %c224_123 = arith.constant 224 : index
    %122 = vector.load %arg13[%c0_122, %c224_123] : memref<4x512xbf16, #tpu.memory_space<vmem>>, vector<4x32xbf16>
    tpu.vector_store %arg13[%c0_122, %c224_123], %121 {strides = array<i32>} : memref<4x512xbf16, #tpu.memory_space<vmem>>, vector<4x32xbf16>,
    %c0_124 = arith.constant 0 : index
    %c8 = arith.constant 8 : index
    %c0_125 = arith.constant 0 : index
    %123 = vector.load %arg12[%c0_124, %c8, %c0_125] : memref<4x16x32xf32, #tpu.memory_space<vmem>>, vector<4x1x32xf32>
    %124 = vector.shape_cast %123 : vector<4x1x32xf32> to vector<4x32xf32>
    %125 = arith.truncf %124 : vector<4x32xf32> to vector<4x32xbf16>
    %c0_126 = arith.constant 0 : index
    %c256_127 = arith.constant 256 : index
    %126 = vector.load %arg13[%c0_126, %c256_127] : memref<4x512xbf16, #tpu.memory_space<vmem>>, vector<4x32xbf16>
    tpu.vector_store %arg13[%c0_126, %c256_127], %125 {strides = array<i32>} : memref<4x512xbf16, #tpu.memory_space<vmem>>, vector<4x32xbf16>,
    %c0_128 = arith.constant 0 : index
    %c9 = arith.constant 9 : index
    %c0_129 = arith.constant 0 : index
    %127 = vector.load %arg12[%c0_128, %c9, %c0_129] : memref<4x16x32xf32, #tpu.memory_space<vmem>>, vector<4x1x32xf32>
    %128 = vector.shape_cast %127 : vector<4x1x32xf32> to vector<4x32xf32>
    %129 = arith.truncf %128 : vector<4x32xf32> to vector<4x32xbf16>
    %c0_130 = arith.constant 0 : index
    %c288 = arith.constant 288 : index
    %130 = vector.load %arg13[%c0_130, %c288] : memref<4x512xbf16, #tpu.memory_space<vmem>>, vector<4x32xbf16>
    tpu.vector_store %arg13[%c0_130, %c288], %129 {strides = array<i32>} : memref<4x512xbf16, #tpu.memory_space<vmem>>, vector<4x32xbf16>,
    %c0_131 = arith.constant 0 : index
    %c10 = arith.constant 10 : index
    %c0_132 = arith.constant 0 : index
    %131 = vector.load %arg12[%c0_131, %c10, %c0_132] : memref<4x16x32xf32, #tpu.memory_space<vmem>>, vector<4x1x32xf32>
    %132 = vector.shape_cast %131 : vector<4x1x32xf32> to vector<4x32xf32>
    %133 = arith.truncf %132 : vector<4x32xf32> to vector<4x32xbf16>
    %c0_133 = arith.constant 0 : index
    %c320 = arith.constant 320 : index
    %134 = vector.load %arg13[%c0_133, %c320] : memref<4x512xbf16, #tpu.memory_space<vmem>>, vector<4x32xbf16>
    tpu.vector_store %arg13[%c0_133, %c320], %133 {strides = array<i32>} : memref<4x512xbf16, #tpu.memory_space<vmem>>, vector<4x32xbf16>,
    %c0_134 = arith.constant 0 : index
    %c11 = arith.constant 11 : index
    %c0_135 = arith.constant 0 : index
    %135 = vector.load %arg12[%c0_134, %c11, %c0_135] : memref<4x16x32xf32, #tpu.memory_space<vmem>>, vector<4x1x32xf32>
    %136 = vector.shape_cast %135 : vector<4x1x32xf32> to vector<4x32xf32>
    %137 = arith.truncf %136 : vector<4x32xf32> to vector<4x32xbf16>
    %c0_136 = arith.constant 0 : index
    %c352 = arith.constant 352 : index
    %138 = vector.load %arg13[%c0_136, %c352] : memref<4x512xbf16, #tpu.memory_space<vmem>>, vector<4x32xbf16>
    tpu.vector_store %arg13[%c0_136, %c352], %137 {strides = array<i32>} : memref<4x512xbf16, #tpu.memory_space<vmem>>, vector<4x32xbf16>,
    %c0_137 = arith.constant 0 : index
    %c12 = arith.constant 12 : index
    %c0_138 = arith.constant 0 : index
    %139 = vector.load %arg12[%c0_137, %c12, %c0_138] : memref<4x16x32xf32, #tpu.memory_space<vmem>>, vector<4x1x32xf32>
    %140 = vector.shape_cast %139 : vector<4x1x32xf32> to vector<4x32xf32>
    %141 = arith.truncf %140 : vector<4x32xf32> to vector<4x32xbf16>
    %c0_139 = arith.constant 0 : index
    %c384 = arith.constant 384 : index
    %142 = vector.load %arg13[%c0_139, %c384] : memref<4x512xbf16, #tpu.memory_space<vmem>>, vector<4x32xbf16>
    tpu.vector_store %arg13[%c0_139, %c384], %141 {strides = array<i32>} : memref<4x512xbf16, #tpu.memory_space<vmem>>, vector<4x32xbf16>,
    %c0_140 = arith.constant 0 : index
    %c13 = arith.constant 13 : index
    %c0_141 = arith.constant 0 : index
    %143 = vector.load %arg12[%c0_140, %c13, %c0_141] : memref<4x16x32xf32, #tpu.memory_space<vmem>>, vector<4x1x32xf32>
    %144 = vector.shape_cast %143 : vector<4x1x32xf32> to vector<4x32xf32>
    %145 = arith.truncf %144 : vector<4x32xf32> to vector<4x32xbf16>
    %c0_142 = arith.constant 0 : index
    %c416 = arith.constant 416 : index
    %146 = vector.load %arg13[%c0_142, %c416] : memref<4x512xbf16, #tpu.memory_space<vmem>>, vector<4x32xbf16>
    tpu.vector_store %arg13[%c0_142, %c416], %145 {strides = array<i32>} : memref<4x512xbf16, #tpu.memory_space<vmem>>, vector<4x32xbf16>,
    %c0_143 = arith.constant 0 : index
    %c14 = arith.constant 14 : index
    %c0_144 = arith.constant 0 : index
    %147 = vector.load %arg12[%c0_143, %c14, %c0_144] : memref<4x16x32xf32, #tpu.memory_space<vmem>>, vector<4x1x32xf32>
    %148 = vector.shape_cast %147 : vector<4x1x32xf32> to vector<4x32xf32>
    %149 = arith.truncf %148 : vector<4x32xf32> to vector<4x32xbf16>
    %c0_145 = arith.constant 0 : index
    %c448 = arith.constant 448 : index
    %150 = vector.load %arg13[%c0_145, %c448] : memref<4x512xbf16, #tpu.memory_space<vmem>>, vector<4x32xbf16>
    tpu.vector_store %arg13[%c0_145, %c448], %149 {strides = array<i32>} : memref<4x512xbf16, #tpu.memory_space<vmem>>, vector<4x32xbf16>,
    %c0_146 = arith.constant 0 : index
    %c15 = arith.constant 15 : index
    %c0_147 = arith.constant 0 : index
    %151 = vector.load %arg12[%c0_146, %c15, %c0_147] : memref<4x16x32xf32, #tpu.memory_space<vmem>>, vector<4x1x32xf32>
    %152 = vector.shape_cast %151 : vector<4x1x32xf32> to vector<4x32xf32>
    %153 = arith.truncf %152 : vector<4x32xf32> to vector<4x32xbf16>
    %c0_148 = arith.constant 0 : index
    %c480 = arith.constant 480 : index
    %154 = vector.load %arg13[%c0_148, %c480] : memref<4x512xbf16, #tpu.memory_space<vmem>>, vector<4x32xbf16>
    tpu.vector_store %arg13[%c0_148, %c480], %153 {strides = array<i32>} : memref<4x512xbf16, #tpu.memory_space<vmem>>, vector<4x32xbf16>,
    %c0_149 = arith.constant 0 : index
    %c0_150 = arith.constant 0 : index
    %155 = vector.load %arg13[%c0_149, %c0_150] : memref<4x512xbf16, #tpu.memory_space<vmem>>, vector<4x512xbf16>
    %c0_151 = arith.constant 0 : index
    %c0_152 = arith.constant 0 : index
    %156 = vector.load %arg5[%c0_151, %c0_152] : memref<512x32xbf16, #tpu.memory_space<vmem>>, vector<512x32xbf16>
    %cst_153 = arith.constant dense<0.000000e+00> : vector<4x32xf32>
    %157 = tpu.matmul %155, %156, %cst_153 {dimension_numbers = #tpu.dot_dimension_numbers<[1], [0], [0], [1], [0, 0, 1, 1], [], []>} : vector<4x512xbf16>, vector<512x32xbf16>, vector<4x32xf32> -> vector<4x32xf32>
    %c0_154 = arith.constant 0 : index
    %c0_155 = arith.constant 0 : index
    %158 = vector.load %arg6[%c0_154, %c0_155] : memref<1x32xf32, #tpu.memory_space<vmem>>, vector<1x32xf32>
    %159 = vector.broadcast %158 : vector<1x32xf32> to vector<4x32xf32>
    %160 = arith.addf %157, %159 : vector<4x32xf32>
    %cst_156 = arith.constant 0.000000e+00 : f32
    %161 = vector.broadcast %cst_156 : f32 to vector<4x32xf32>
    %162 = arith.cmpf oge, %160, %161 : vector<4x32xf32>
    %cst_157 = arith.constant 2.000000e-01 : f32
    %163 = vector.broadcast %cst_157 : f32 to vector<4x32xf32>
    %164 = arith.mulf %163, %160 : vector<4x32xf32>
    %165 = arith.select %162, %160, %164 : vector<4x32xi1>, vector<4x32xf32>
    %c0_158 = arith.constant 0 : index
    %c0_159 = arith.constant 0 : index
    %166 = vector.load %arg7[%c0_158, %c0_159] : memref<1x32xf32, #tpu.memory_space<vmem>>, vector<1x32xf32>
    %167 = vector.broadcast %166 : vector<1x32xf32> to vector<4x32xf32>
    %168 = arith.mulf %165, %167 : vector<4x32xf32>
    %cst_160 = arith.constant dense<0.000000e+00> : vector<4xf32>
    %169 = vector.multi_reduction <add>, %168, %cst_160 [1] : vector<4x32xf32> to vector<4xf32>
    %170 = vector.shape_cast %169 : vector<4xf32> to vector<4x1xf32>
    %c0_161 = arith.constant 0 : index
    %c0_162 = arith.constant 0 : index
    %171 = vector.load %arg8[%c0_161, %c0_162] : memref<1x1xf32, #tpu.memory_space<vmem>>, vector<1x1xf32>
    %172 = vector.broadcast %171 : vector<1x1xf32> to vector<4x1xf32>
    %173 = arith.addf %170, %172 : vector<4x1xf32>
    %c0_163 = arith.constant 0 : index
    %c0_164 = arith.constant 0 : index
    %174 = vector.load %arg9[%c0_163, %c0_164] : memref<4x1xf32, #tpu.memory_space<vmem>>, vector<4x1xf32>
    tpu.vector_store %arg9[%c0_163, %c0_164], %173 {strides = array<i32>} : memref<4x1xf32, #tpu.memory_space<vmem>>, vector<4x1xf32>,
    return
  }
  func.func @transform_0(%arg0: i32) -> (i32, i32) {
    %c0_i32 = arith.constant 0 : i32
    %c0_i32_0 = arith.constant 0 : i32
    %c0_i32_1 = arith.constant 0 : i32
    return %c0_i32, %c0_i32_0 : i32, i32
  }
  func.func @transform_1(%arg0: i32) -> (i32, i32) {
    %c0_i32 = arith.constant 0 : i32
    %c0_i32_0 = arith.constant 0 : i32
    %c0_i32_1 = arith.constant 0 : i32
    return %c0_i32, %c0_i32_0 : i32, i32
  }
  func.func @transform_2(%arg0: i32) -> (i32, i32) {
    %c0_i32 = arith.constant 0 : i32
    %c0_i32_0 = arith.constant 0 : i32
    %c0_i32_1 = arith.constant 0 : i32
    return %c0_i32, %c0_i32_0 : i32, i32
  }
  func.func @transform_3(%arg0: i32) -> (i32, i32) {
    %c0_i32 = arith.constant 0 : i32
    %c0_i32_0 = arith.constant 0 : i32
    %c0_i32_1 = arith.constant 0 : i32
    return %c0_i32, %c0_i32_0 : i32, i32
  }
  func.func @transform_4(%arg0: i32) -> (i32, i32) {
    %c0_i32 = arith.constant 0 : i32
    %c0_i32_0 = arith.constant 0 : i32
    %c0_i32_1 = arith.constant 0 : i32
    return %c0_i32, %c0_i32_0 : i32, i32
  }
  func.func @transform_5(%arg0: i32) -> (i32, i32) {
    %c0_i32 = arith.constant 0 : i32
    %c0_i32_0 = arith.constant 0 : i32
    %c0_i32_1 = arith.constant 0 : i32
    return %c0_i32, %c0_i32_0 : i32, i32
  }
  func.func @transform_6(%arg0: i32) -> (i32, i32) {
    %c0_i32 = arith.constant 0 : i32
    %c0_i32_0 = arith.constant 0 : i32
    %c0_i32_1 = arith.constant 0 : i32
    return %c0_i32, %c0_i32_0 : i32, i32
  }
  func.func @transform_7(%arg0: i32) -> (i32, i32) {
    %c0_i32 = arith.constant 0 : i32
    %c0_i32_0 = arith.constant 0 : i32
    %c0_i32_1 = arith.constant 0 : i32
    return %c0_i32, %c0_i32_0 : i32, i32
  }
  func.func @transform_8(%arg0: i32) -> (i32, i32) {
    %c0_i32 = arith.constant 0 : i32
    %c0_i32_0 = arith.constant 0 : i32
    %c0_i32_1 = arith.constant 0 : i32
    return %c0_i32, %c0_i32_0 : i32, i32
  }
}

</mosaic_0001>

<bundles_post_ra>
// kernel: discriminator_forward.4
= control target key start
LH: loop header
LB: loop body
LE: loop exit
PB: predicated region body
PF: predicated region fallthrough
CT: control target
= control target key end

     0   :  { %s1920_s18 = smov 0   ;;  %s2376_s0 = inlined_call_operand.vmem [shape: f32[256,32], index: 0, kind: input, shape index: {}]   ;;  %s2377_s1 = inlined_call_operand.vmem [shape: bf16[288,32], index: 1, kind: input, shape index: {}]   ;;  %s2378_s2 = inlined_call_operand.vmem [shape: f32[1,32], index: 2, kind: input, shape index: {}]   ;;  %s2379_s3 = inlined_call_operand.vmem [shape: bf16[288,32], index: 3, kind: input, shape index: {}]   ;;  %s2380_s4 = inlined_call_operand.vmem [shape: f32[1,32], index: 4, kind: input, shape index: {}]   ;;  %s2381_s5 = inlined_call_operand.vmem [shape: f32[64,32], index: 5, kind: output, shape index: {}]  }
   0x1 LB: > { %s1657_s19 = sadd.s32 4294967295, %s1884_s18   ;;  %p1661_p0 = scmp.ge.s32.totalorder %s1884_s18, 1  ;;  %s1884_s18 = sphi %s1920_s18, %s15_s18  }
   0x2   : > { %p188_p1 = scmp.lt.s32.totalorder %s1884_s18, 5 }
   0x4   : > { %p189_p2 = pnand %p1661_p0, %p188_p1 }
   0x5   : > { %s1662_s20 = sshll.u32 (!%p189_p2), %s1657_s19, 3  ;;  %vm229_vm0 = vcmask (!%p189_p2), 261120   ;;  %vm237_vm1 = vcmask (!%p189_p2), 253952   ;;  %vm231_vm2 = vcmask (!%p189_p2), 254976   ;;  %v1886_v0 = vmov (!%p189_p2), 0.0   ;;  %v1842_v1 = vld [vmem:[%s2377_s1 + $0x40] sm:$0xff] (!%p189_p2)  }
   0x6   : > { %192 = sbr.rel (%p189_p2) target bundleno = 833 (0x341), region = 40  ;;  %p217_p3 = scmp.lt.s32.totalorder (!%p189_p2), %s1662_s20, 31  ;;  %246 = vst.msk [vmem:[#allocation2 + $0x19] sm:$0x1] (!%p189_p2), %vm237_vm1, %v1886_v0  ;;  %247 = vst.msk [vmem:[#allocation2 + $0x29] sm:$0x1] (!%p189_p2), %vm237_vm1, %v1886_v0  ;;  %1714 = vmatprep.subr.bf16.mxu0 (!%p189_p2), %v1842_v1 }
   0x7   : > { %230 = vst.msk [vmem:[#allocation2] sm:$0xff] (!%p189_p2), %vm229_vm0, %v1886_v0  ;;  %234 = vst.msk [vmem:[#allocation2 + $0x90] sm:$0xff] (!%p189_p2), %vm229_vm0, %v1886_v0  ;;  %v1843_v2 = vld [vmem:[%s2377_s1] sm:$0xff] (!%p189_p2)   ;;  %v1844_v3 = vld [vmem:[%s2377_s1 + $0x48] sm:$0xff] (!%p189_p2)   ;;  %s1887_s16 = smov (!%p189_p2), 32   ;;  %s1888_s17 = smov (!%p189_p2), 64  }
   0x8   : > { %238 = vst.msk [vmem:[#allocation2 + $0x10] sm:$0x1] (!%p189_p2), %vm237_vm1, %v1886_v0  ;;  %239 = vst.msk [vmem:[#allocation2 + $0x20] sm:$0x1] (!%p189_p2), %vm237_vm1, %v1886_v0  ;;  %1715 = vmatpush3.bf16.msra.mxu0 (!%p189_p2), %v1843_v2  ;;  %v1845_v4 = vld [vmem:[%s2377_s1 + $0x8] sm:$0xff] (!%p189_p2)   ;;  %v1846_v5 = vld [vmem:[%s2377_s1 + $0x50] sm:$0xff] (!%p189_p2)  }
   0x9   : > { %240 = vst.msk [vmem:[#allocation2 + $0x30] sm:$0x1] (!%p189_p2), %vm237_vm1, %v1886_v0  ;;  %241 = vst.msk [vmem:[#allocation2 + $0x40] sm:$0x1] (!%p189_p2), %vm237_vm1, %v1886_v0  ;;  %1716 = vmatprep.subr.bf16.mxu0 (!%p189_p2), %v1844_v3  ;;  %v1847_v17 = vld [vmem:[%s2377_s1 + $0x10] sm:$0xff] (!%p189_p2)   ;;  %v1848_v20 = vld [vmem:[%s2377_s1 + $0x58] sm:$0xff] (!%p189_p2)  }
   0xa   : > { %242 = vst.msk [vmem:[#allocation2 + $0x50] sm:$0x1] (!%p189_p2), %vm237_vm1, %v1886_v0  ;;  %243 = vst.msk [vmem:[#allocation2 + $0x60] sm:$0x1] (!%p189_p2), %vm237_vm1, %v1886_v0  ;;  %v1849_v24 = vld [vmem:[%s2377_s1 + $0x18] sm:$0xff] (!%p189_p2)   ;;  %v1850_v59 = vld [vmem:[%s2377_s1 + $0x60] sm:$0xff] (!%p189_p2)  }
   0xb   : > { %244 = vst.msk [vmem:[#allocation2 + $0x70] sm:$0x1] (!%p189_p2), %vm237_vm1, %v1886_v0  ;;  %245 = vst.msk [vmem:[#allocation2 + $0x80] sm:$0x1] (!%p189_p2), %vm237_vm1, %v1886_v0  ;;  %v1851_v60 = vld [vmem:[%s2377_s1 + $0x20] sm:$0xff] (!%p189_p2)   ;;  %v1852_v61 = vld [vmem:[%s2377_s1 + $0x68] sm:$0xff] (!%p189_p2)  }
   0xc   : > { %248 = vst.msk [vmem:[#allocation2 + $0x39] sm:$0x1] (!%p189_p2), %vm237_vm1, %v1886_v0  ;;  %249 = vst.msk [vmem:[#allocation2 + $0x49] sm:$0x1] (!%p189_p2), %vm237_vm1, %v1886_v0  ;;  %1717 = vmatpush3.bf16.msra.mxu0 (!%p189_p2), %v1845_v4  ;;  %s1889_s26 = smov (!%p189_p2), 96   ;;  %v1853_v63 = vld [vmem:[%s2377_s1 + $0x28] sm:$0xff] (!%p189_p2)  }
   0xd   : > { %250 = vst.msk [vmem:[#allocation2 + $0x59] sm:$0x1] %vm237_vm1, %v1886_v0  ;;  %251 = vst.msk [vmem:[#allocation2 + $0x69] sm:$0x1] %vm237_vm1, %v1886_v0  ;;  %s2383_s20 = smov (!%p217_p3, %s1662_s20), 31  ;;  %1718 = vmatprep.subr.bf16.mxu0 %v1846_v5  ;;  %v1854_v1 = vld [vmem:[%s2377_s1 + $0x70] sm:$0xff]  }
   0xe   : > { %252 = vst.msk [vmem:[#allocation2 + $0x79] sm:$0x1] %vm237_vm1, %v1886_v0  ;;  %253 = vst.msk [vmem:[#allocation2 + $0x89] sm:$0x1] %vm237_vm1, %v1886_v0  ;;  %s1663_s27 = sshll.u32 %s2383_s20, 3  ;;  %v1975_v14 = vld [vmem:[#allocation2 + $0x90] sm:$0xff] }
   0xf   : > { %232 = vst.msk [vmem:[#allocation2 + $0x8] sm:$0x3] %vm231_vm2, %v1886_v0  ;;  %235 = vst.msk [vmem:[#allocation2 + $0x98] sm:$0x3] %vm231_vm2, %v1886_v0  ;;  %s220_s7 = scalar_lea.vmem %s2376_s0, %s1663_s27  ;;  %v870_v15 = vmul.f32 0.25, %v1975_v14  ;;  %v1991_v21 = vld [vmem:[#allocation2] sm:$0xff] }
  0x10   : > { %v254_v6 = vld [vmem:[%s220_s7] sm:$0xff]  ;;  %v255_v7 = vld [vmem:[%s220_s7 + $0x8] sm:$0xff]  ;;  %v256_v8 = vld [vmem:[%s220_s7 + $0x10] sm:$0xff]  ;;  %1719 = vmatpush3.bf16.msra.mxu0 %v1847_v17  ;;  %vm314_vm3 = vcmask 523520   ;;  %vm347_vm4 = vcmask 785920   ;;  %vm380_vm5 = vcmask 1048320  }
  0x11   : > { %262 = vst.msk [vmem:[#allocation2 + $0x11] sm:$0xff] %vm229_vm0, %v254_v6  ;;  %263 = vst.msk [vmem:[#allocation2 + $0x21] sm:$0xff] %vm229_vm0, %v255_v7  ;;  %v257_v9 = vld [vmem:[%s220_s7 + $0x18] sm:$0xff]  ;;  %v258_v10 = vld [vmem:[%s220_s7 + $0x20] sm:$0xff]  ;;  %1720 = vmatprep.subr.bf16.mxu0 %v1848_v20 }
  0x12   : > { %264 = vst.msk [vmem:[#allocation2 + $0x31] sm:$0xff] %vm229_vm0, %v256_v8  ;;  %v259_v11 = vld [vmem:[%s220_s7 + $0x28] sm:$0xff]  ;;  %265 = vst.msk [vmem:[#allocation2 + $0x41] sm:$0xff] %vm229_vm0, %v257_v9  ;;  %v260_v12 = vld [vmem:[%s220_s7 + $0x30] sm:$0xff] }
  0x13   : > { %266 = vst.msk [vmem:[#allocation2 + $0x51] sm:$0xff] %vm229_vm0, %v258_v10  ;;  %267 = vst.msk [vmem:[#allocation2 + $0x61] sm:$0xff] %vm229_vm0, %v259_v11  ;;  %v261_v13 = vld [vmem:[%s220_s7 + $0x38] sm:$0xff]  ;;  %v1855_v2 = vld [vmem:[%s2377_s1 + $0x30] sm:$0xff]  }
  0x14   : > { %268 = vst.msk [vmem:[#allocation2 + $0x71] sm:$0xff] %vm229_vm0, %v260_v12  ;;  %269 = vst.msk [vmem:[#allocation2 + $0x81] sm:$0xff] %vm229_vm0, %v261_v13  ;;  %1721 = vmatpush3.bf16.msra.mxu0 %v1849_v24  ;;  %v1857_v3 = vld [vmem:[%s2377_s1 + $0x80] sm:$0xff]   ;;  %v1856_v4 = vld [vmem:[%s2377_s1 + $0x78] sm:$0xff]  }
  0x15   : > { %1722 = vmatprep.subr.bf16.mxu0 %v1850_v59  ;;  %1806 = vmatprep.subr.bf16.mxu1 %v1857_v3  ;;  %v1858_v6 = vld [vmem:[%s2377_s1 + $0x38] sm:$0xff]   ;;  %v1859_v7 = vld [vmem:[%s2377_s1 + $0x88] sm:$0xff]  }
  0x16   : > { %v1980_v16 = vld [vmem:[#allocation2 + $0x91] sm:$0xff]  ;;  %v1986_v19 = vld [vmem:[#allocation2 + $0x1] sm:$0xff]  ;;  %1807 = vmatpush3.bf16.msra.mxu1 %v1857_v3 }
  0x17   : > { %v890_v18 = vmul.f32 0.5, %v1980_v16  ;;  %v1993_v22 = vld [vmem:[#allocation2 + $0x2] sm:$0xff]  ;;  %v2081_v5 = vld [vmem:[#allocation2 + $0x92] sm:$0xff]  ;;  %1808 = vmatprep.subr.bf16.mxu1 %v1859_v7 }
  0x18   : > { %v401_v25 = vld [vmem:[#allocation2 + $0x12] sm:$0xff]  ;;  %v402_v26 = vld [vmem:[#allocation2 + $0x22] sm:$0xff]  ;;  %1723 = vmatpush3.bf16.msra.mxu0 %v1851_v60 }
  0x19   : > { %v1995_v23 = vadd.f32 %v890_v18, %v870_v15  ;;  %v434_v27 = vld [vmem:[#allocation2 + $0x20] sm:$0xff]  ;;  %v409_v28 = vpack.c.bf16 %v402_v26, %v401_v25  ;;  %v2000_v29 = vld [vmem:[#allocation2 + $0x30] sm:$0xff]  ;;  %v327_v41 = vpack.c.bf16 %v401_v25, %v1993_v22  ;;  %1724 = vmatprep.subr.bf16.mxu0 %v1852_v61 }
  0x1a   : > { %v287_v30 = vld [vmem:[#allocation2 + $0x11] sm:$0xff]  ;;  %v466_v31 = vld [vmem:[#allocation2 + $0x21] sm:$0xff]  ;;  %v442_v32 = vpack.c.bf16 %v2000_v29, %v434_v27  ;;  %1809 = vmatpush3.bf16.msra.mxu1 %v1859_v7 }
  0x1b   : > { %v467_v33 = vld [vmem:[#allocation2 + $0x31] sm:$0xff]  ;;  %v393_v35 = vpack.c.bf16 %v466_v31, %v287_v30  ;;  %417 = vrot.lane.b32.xlu0 %v409_v28, %s1887_s16  ;;  %v294_v36 = vpack.c.bf16 %v287_v30, %v1986_v19  ;;  %v2005_v38 = vld [vmem:[#allocation2 + $0x40] sm:$0xff] }
  0x1c   : > { %v403_v34 = vld [vmem:[#allocation2 + $0x32] sm:$0xff]  ;;  %450 = vrot.lane.b32.xlu1 %v442_v32, %s1888_s17  ;;  %v404_v42 = vld [vmem:[#allocation2 + $0x42] sm:$0xff]  ;;  %283 = vst.msk [vmem:[#allocation3 + $0x18] sm:$0xff] %vm229_vm0, %v442_v32  ;;  %v474_v54 = vpack.c.bf16 %v467_v33, %v466_v31  ;;  %1725 = vmatpush3.bf16.msra.mxu0 %v1853_v63  ;;  %v361_v11 = vpack.c.bf16 %v2005_v38, %v2000_v29 }
  0x1d   : > { %v352_v37 = vld [vmem:[#allocation2 + $0x10] sm:$0xff]  ;;  %v2009_v40 = vpack.c.bf16 %v403_v34, %v402_v26  ;;  %v468_v44 = vld [vmem:[#allocation2 + $0x41] sm:$0xff]  ;;  %397 = vst.msk [vmem:[#allocation3 + $0x8] sm:$0xff] %vm229_vm0, %v393_v35  ;;  %v410_v62 = vpack.c.bf16 %v404_v42, %v403_v34  ;;  %1726 = vmatprep.subr.bf16.mxu0 %v1854_v1 }
  0x1e   : > { %v2007_v39 = vld [vmem:[#allocation2 + $0x50] sm:$0xff]  ;;  %v278_v46 = vpack.c.bf16 %v352_v37, %v1991_v21  ;;  %v2020_v47 = vld [vmem:[#allocation2 + $0x60] sm:$0xff]  ;;  %v394_v50 = vpack.c.bf16 %v468_v44, %v467_v33  ;;  %v360_v56 = vpack.c.bf16 %v434_v27, %v352_v37 }
  0x1f   : > { %v443_v43 = vpack.c.bf16 %v2007_v39, %v2005_v38  ;;  %v2015_v45 = vld [vmem:[#allocation2 + $0x52] sm:$0xff]  ;;  %510 = vst.msk [vmem:[#allocation3 + $0x10] sm:$0xff] %vm229_vm0, %v2009_v40  ;;  %v2029_v51 = vld [vmem:[#allocation2 + $0x62] sm:$0xff]  ;;  %302 = vrot.lane.b32.xlu0 %v294_v36, %s1887_s16  ;;  %v362_v27 = vpack.c.bf16 %v2020_v47, %v2007_v39 }
  0x20   : > { %v2022_v48 = vld [vmem:[#allocation2 + $0x70] sm:$0xff]  ;;  %v2025_v49 = vpack.c.bf16 %v2015_v45, %v404_v42  ;;  %282 = vst.msk [vmem:[#allocation3] sm:$0xff] %vm229_vm0, %v278_v46  ;;  %398 = vst.msk [vmem:[#allocation3 + $0x20] sm:$0xff] %vm229_vm0, %v394_v50  ;;  %335 = vrot.lane.b32.xlu1 %v327_v41, %s1888_s17  ;;  %v470_v58 = vld [vmem:[#allocation2 + $0x61] sm:$0xff]  ;;  %1727 = vmatpush3.bf16.msra.mxu0 %v1855_v2  ;;  %v411_v18 = vpack.c.bf16 %v2029_v51, %v2015_v45 }
  0x21   : > { %v2033_v52 = vpack.c.bf16 %v2022_v48, %v2020_v47  ;;  %v2035_v53 = vld [vmem:[#allocation2 + $0x72] sm:$0xff]  ;;  %284 = vst.msk [vmem:[#allocation3 + $0x30] sm:$0xff] %vm229_vm0, %v443_v43  ;;  %v408_v10 = vld [vmem:[#allocation2 + $0x82] sm:$0xff]  ;;  %1728 = vmatprep.subr.bf16.mxu0 %v1856_v4 }
  0x22   : > { %v2042_v55 = vpack.c.bf16 %v2035_v53, %v2029_v51  ;;  %511 = vst.msk [vmem:[#allocation3 + $0x28] sm:$0xff] %vm229_vm0, %v2025_v49  ;;  %v469_v57 = vld [vmem:[#allocation2 + $0x51] sm:$0xff]  ;;  %v472_v13 = vld [vmem:[#allocation2 + $0x81] sm:$0xff]  ;;  %v509_v17 = vpack.c.bf16 %v2081_v5, %v408_v10  ;;  %v412_v28 = vpack.c.bf16 %v408_v10, %v2035_v53 }
  0x23   : > { %285 = vst.msk [vmem:[#allocation3 + $0x48] sm:$0xff] %vm229_vm0, %v2033_v52  ;;  %482 = vrot.lane.b32.xlu0 %v474_v54, %s1889_s26  ;;  %v395_v0 = vpack.c.bf16 %v470_v58, %v469_v57  ;;  %v475_v9 = vpack.c.bf16 %v469_v57, %v468_v44  ;;  %v471_v12 = vld [vmem:[#allocation2 + $0x71] sm:$0xff]  ;;  %v440_v29 = vld [vmem:[#allocation2 + $0x80] sm:$0xff]  ;;  %v477_v31 = vpack.c.bf16 %v1980_v16, %v472_v13 }
  0x24   : > { %512 = vst.msk [vmem:[#allocation3 + $0x40] sm:$0xff] %vm229_vm0, %v2042_v55  ;;  %368 = vrot.lane.b32.xlu1 %v360_v56, %s1889_s26  ;;  %1729 = vmatpush3.bf16.msra.mxu0 %v1858_v6  ;;  %v396_v20 = vpack.c.bf16 %v472_v13, %v471_v12  ;;  %513 = vst.msk [vmem:[#allocation3 + $0x58] sm:$0xff] %vm229_vm0, %v509_v17  ;;  %v476_v25 = vpack.c.bf16 %v471_v12, %v470_v58  ;;  %v1862_v10 = vld [vmem:[%s2379_s3 + $0x40] sm:$0xff]   ;;  %v1864_v12 = vld [vmem:[%s2379_s3 + $0x48] sm:$0xff]  }
  0x25   : > { %399 = vst.msk [vmem:[#allocation3 + $0x38] sm:$0xff] %vm229_vm0, %v395_v0  ;;  %v445_v30 = vpack.c.bf16 %v1975_v14, %v440_v29  ;;  %v363_v32 = vpack.c.bf16 %v440_v29, %v2022_v48  ;;  %1760 = vmatprep.subr.bf16.mxu1 %v1862_v10  ;;  %v2176_v17 = vld [vmem:[%s2378_s2] ss:$0 sm:$0xff] }
  0x26   : > { %v516_v8 = vld [vmem:[#allocation3 + $0x10] sm:$0xff]  ;;  %400 = vst.msk [vmem:[#allocation3 + $0x50] sm:$0xff] %vm229_vm0, %v396_v20 }
  0x27   : > { %419 = vrot.lane.b32.xlu0 %v410_v62, %s1887_s16  ;;  %1810 = vmatprep.mubr.msk.bf16.mxu1 %vm229_vm0, %v516_v8  ;;  %v1860_v8 = vld [vmem:[%s2379_s3 + $0x80] sm:$0xff]  }
  0x28   : > { %304 = vrot.lane.b32.xlu1 %v474_v54, %s1887_s16  ;;  %1818 = vmatprep.subr.bf16.mxu0 %v1860_v8 }
  0x29   : > { %v519_v15 = vld [vmem:[#allocation3 + $0x28] sm:$0xff] }
  0x2a   : > { %1811 = vmatmul.mubr.msk.bf16.vlgmr.msra.gmra.mrb[0].mxu1 %vm229_vm0, %v519_v15 }
  0x2b   : > { %452 = vrot.lane.b32.xlu0 %v443_v43, %s1888_s17  ;;  %v522_v24 = vld [vmem:[#allocation3 + $0x40] sm:$0xff]  ;;  %v525_v26 = vld [vmem:[#allocation3 + $0x58] sm:$0xff] }
  0x2c   : > { %337 = vrot.lane.b32.xlu1 %v2009_v40, %s1888_s17  ;;  %1814 = vmatprep.mubr.msk.bf16.mxu1 %vm229_vm0, %v522_v24 }
  0x2f   : > { %484 = vrot.lane.b32.xlu0 %v475_v9, %s1889_s26 }
  0x30   : > { %370 = vrot.lane.b32.xlu1 %v361_v11, %s1889_s26  ;;  %v1863_v11 = vld [vmem:[%s2379_s3] sm:$0xff]  }
  0x31   : > { %1761 = vmatpush3.bf16.msra.mxu1 %v1863_v11 }
  0x32   : > { %1815 = vmatmul.mubr.msk.bf16.gmra.mrb[4].mxu1 %vm229_vm0, %v525_v26  ;;  %1762 = vmatprep.subr.bf16.mxu1 %v1864_v12 }
  0x33   : > { %421 = vrot.lane.b32.xlu0 %v411_v18, %s1887_s16 }
  0x34   : > { %306 = vrot.lane.b32.xlu1 %v475_v9, %s1887_s16  ;;  %v1861_v9 = vld [vmem:[%s2379_s3 + $0x88] sm:$0xff]  }
  0x37   : > { %454 = vrot.lane.b32.xlu0 %v2033_v52, %s1888_s17 }
  0x38   : > { %339 = vrot.lane.b32.xlu1 %v2025_v49, %s1888_s17 }
  0x3b   : > { %486 = vrot.lane.b32.xlu0 %v476_v25, %s1889_s26 }
  0x3c   : > { %372 = vrot.lane.b32.xlu1 %v362_v27, %s1889_s26 }
  0x3f   : > { %423 = vrot.lane.b32.xlu0 %v412_v28, %s1887_s16 }
  0x40   : > { %308 = vrot.lane.b32.xlu1 %v476_v25, %s1887_s16 }
  0x43   : > { %456 = vrot.lane.b32.xlu0 %v445_v30, %s1888_s17 }
  0x44   : > { %341 = vrot.lane.b32.xlu1 %v2042_v55, %s1888_s17 }
  0x47   : > { %488 = vrot.lane.b32.xlu0 %v477_v31, %s1889_s26 }
  0x48   : > { %374 = vrot.lane.b32.xlu1 %v363_v32, %s1889_s26 }
  0x8d   : > { %v418_v33 = vpop.permute.xlu0 %417 }
  0x8e   : > { %429 = vst.msk [vmem:[#allocation3 + $0x8] sm:$0xff] %vm314_vm3, %v418_v33  ;;  %v451_v14 = vpop.permute.xlu1 %450  ;;  %v861_v33 = vmul.f32 0.25, %v1991_v21 }
  0x8f   : > { %462 = vst.msk [vmem:[#allocation3 + $0x8] sm:$0xff] %vm347_vm4, %v451_v14  ;;  %v881_v14 = vmul.f32 0.5, %v1986_v19 }
  0x91   : > { %v303_v34 = vpop.permute.xlu0 %302 }
  0x92   : > { %315 = vst.msk [vmem:[#allocation3] sm:$0xff] %vm314_vm3, %v303_v34  ;;  %v336_v16 = vpop.permute.xlu1 %335 }
  0x93   : > { %348 = vst.msk [vmem:[#allocation3] sm:$0xff] %vm347_vm4, %v336_v16 }
  0x95   : > { %v483_v35 = vpop.permute.xlu0 %482 }
  0x96   : > { %494 = vst.msk [vmem:[#allocation3 + $0x8] sm:$0xff] %vm380_vm5, %v483_v35  ;;  %v369_v36 = vpop.permute.xlu1 %368 }
  0x97   : > { %381 = vst.msk [vmem:[#allocation3] sm:$0xff] %vm380_vm5, %v369_v36 }
  0x99   : > { %v420_v37 = vpop.permute.xlu0 %419 }
  0x9a   : > { %430 = vst.msk [vmem:[#allocation3 + $0x20] sm:$0xff] %vm314_vm3, %v420_v37  ;;  %v305_v38 = vpop.permute.xlu1 %304 }
  0x9b   : > { %316 = vst.msk [vmem:[#allocation3 + $0x18] sm:$0xff] %vm314_vm3, %v305_v38  ;;  %v891_v38 = vadd.f32 %v881_v14, %v861_v33 }
  0x9d   : > { %v453_v39 = vpop.permute.xlu0 %452  ;;  %v515_v40 = vld [vmem:[#allocation3 + $0x8] sm:$0xff] }
  0x9e   : > { %463 = vst.msk [vmem:[#allocation3 + $0x20] sm:$0xff] %vm347_vm4, %v453_v39  ;;  %v338_v41 = vpop.permute.xlu1 %337  ;;  %721 = vmatprep.mubr.bf16.mxu0 %v515_v40  ;;  %v514_v42 = vld [vmem:[#allocation3] sm:$0xff]  ;;  %v911_v39 = vmul.f32 0.25, %v1993_v22 }
  0x9f   : > { %349 = vst.msk [vmem:[#allocation3 + $0x18] sm:$0xff] %vm347_vm4, %v338_v41  ;;  %722 = vmatmul.mubr.bf16.vlgmr.msra.gmra.mrb[0].mxu0 %v514_v42 }
  0xa0   : > { %1819 = vmatpush3.bf16.msra.mxu0 %v1860_v8 }
  0xa1   : > { %v485_v43 = vpop.permute.xlu0 %484  ;;  %1820 = vmatprep.subr.bf16.mxu0 %v1861_v9 }
  0xa2   : > { %495 = vst.msk [vmem:[#allocation3 + $0x20] sm:$0xff] %vm380_vm5, %v485_v43  ;;  %v371_v44 = vpop.permute.xlu1 %370 }
  0xa3   : > { %382 = vst.msk [vmem:[#allocation3 + $0x18] sm:$0xff] %vm380_vm5, %v371_v44 }
  0xa4   : > { %1821 = vmatpush3.bf16.msra.mxu0 %v1861_v9 }
  0xa5   : > { %v422_v45 = vpop.permute.xlu0 %421 }
  0xa6   : > { %431 = vst.msk [vmem:[#allocation3 + $0x38] sm:$0xff] %vm314_vm3, %v422_v45  ;;  %v307_v46 = vpop.permute.xlu1 %306 }
  0xa7   : > { %317 = vst.msk [vmem:[#allocation3 + $0x30] sm:$0xff] %vm314_vm3, %v307_v46 }
  0xa9   : > { %v455_v47 = vpop.permute.xlu0 %454  ;;  %v518_v48 = vld [vmem:[#allocation3 + $0x20] sm:$0xff] }
  0xaa   : > { %464 = vst.msk [vmem:[#allocation3 + $0x38] sm:$0xff] %vm347_vm4, %v455_v47  ;;  %v340_v49 = vpop.permute.xlu1 %339  ;;  %729 = vmatprep.mubr.bf16.mxu0 %v518_v48  ;;  %v517_v50 = vld [vmem:[#allocation3 + $0x18] sm:$0xff] }
  0xab   : > { %350 = vst.msk [vmem:[#allocation3 + $0x30] sm:$0xff] %vm347_vm4, %v340_v49  ;;  %730 = vmatmul.mubr.bf16.gmra.mrb[4].mxu0 %v517_v50  ;;  %v921_v49 = vadd.f32 %v911_v39, %v891_v38 }
  0xad   : > { %v487_v51 = vpop.permute.xlu0 %486 }
  0xae   : > { %496 = vst.msk [vmem:[#allocation3 + $0x38] sm:$0xff] %vm380_vm5, %v487_v51  ;;  %v373_v52 = vpop.permute.xlu1 %372 }
  0xaf   : > { %383 = vst.msk [vmem:[#allocation3 + $0x30] sm:$0xff] %vm380_vm5, %v373_v52 }
  0xb1   : > { %v424_v53 = vpop.permute.xlu0 %423 }
  0xb2   : > { %432 = vst.msk [vmem:[#allocation3 + $0x50] sm:$0xff] %vm314_vm3, %v424_v53  ;;  %v309_v54 = vpop.permute.xlu1 %308 }
  0xb3   : > { %318 = vst.msk [vmem:[#allocation3 + $0x48] sm:$0xff] %vm314_vm3, %v309_v54 }
  0xb5   : > { %v457_v55 = vpop.permute.xlu0 %456  ;;  %v521_v56 = vld [vmem:[#allocation3 + $0x38] sm:$0xff] }
  0xb6   : > { %465 = vst.msk [vmem:[#allocation3 + $0x50] sm:$0xff] %vm347_vm4, %v457_v55  ;;  %v342_v57 = vpop.permute.xlu1 %341  ;;  %737 = vmatprep.mubr.bf16.mxu0 %v521_v56  ;;  %v520_v58 = vld [vmem:[#allocation3 + $0x30] sm:$0xff] }
  0xb7   : > { %351 = vst.msk [vmem:[#allocation3 + $0x48] sm:$0xff] %vm347_vm4, %v342_v57  ;;  %738 = vmatmul.mubr.bf16.gmra.mrb[8].mxu0 %v520_v58 }
  0xb9   : > { %v489_v59 = vpop.permute.xlu0 %488 }
  0xba   : > { %497 = vst.msk [vmem:[#allocation3 + $0x50] sm:$0xff] %vm380_vm5, %v489_v59  ;;  %v375_v60 = vpop.permute.xlu1 %374 }
  0xbb   : > { %384 = vst.msk [vmem:[#allocation3 + $0x48] sm:$0xff] %vm380_vm5, %v375_v60 }
  0xc1   : > { %v524_v61 = vld [vmem:[#allocation3 + $0x50] sm:$0xff] }
  0xc2   : > { %745 = vmatprep.mubr.bf16.mxu0 %v524_v61  ;;  %v523_v62 = vld [vmem:[#allocation3 + $0x48] sm:$0xff] }
  0xc3   : > { %746 = vmatmul.mubr.bf16.gmra.mrb[12].mxu0 %v523_v62  ;;  %v931_v62 = vmul.f32 0.25, %v921_v49 }
  0xfd   : > { %v1812_v63 = vpop.f32.mrb[0].mxu1 }
  0xfe   : > { %v788_v0 = vpop.f32.mrb[1].mxu1 }
  0xff   : > { %v1813_v1 = vpop.f32.mrb[2].mxu1 }
 0x100   : > { %v791_v2 = vpop.f32.mrb[3].mxu1 }
 0x105   : > { %v2150_v3 = vpop.f32.mrb[4].mxu1 }
 0x106   : > { %v2152_v4 = vpop.f32.mrb[5].mxu1 }
 0x107   : > { %v2154_v6 = vpop.f32.mrb[6].mxu1 }
 0x108   : > { %v2156_v7 = vpop.f32.mrb[7].mxu1 }
 0x172   : > { %v1730_v13 = vpop.f32.mrb[0].mxu0 }
 0x173   : > { %v1731_v15 = vpop.f32.mrb[1].mxu0 }
 0x174   : > { %v1732_v18 = vadd.f32 %v1731_v15, %v1730_v13  ;;  %v1733_v20 = vpop.f32.mrb[2].mxu0 }
 0x175   : > { %v1734_v24 = vpop.f32.mrb[3].mxu0 }
 0x176   : > { %v1735_v25 = vadd.f32 %v1734_v24, %v1733_v20  ;;  %v724_v26 = vadd.f32 %v1732_v18, %v2176_v17 }
 0x178   : > { %v789_v27 = vadd.f32 %v788_v0, %v724_v26  ;;  %v727_v28 = vadd.f32 %v1735_v25, %v2176_v17  ;;  %v1865_v25 = vld [vmem:[%s2379_s3 + $0x8] sm:$0xff]  }
 0x179   : > { %1763 = vmatpush3.bf16.msra.mxu1 %v1865_v25 }
 0x17a   : > { %vm819_vm6 = vcmp.ge.f32.partialorder %v789_v27, 0.0  ;;  %v827_v29 = vmul.f32 0.2, %v789_v27  ;;  %v792_v30 = vadd.f32 %v791_v2, %v727_v28 }
 0x17c   : > { %v835_v31 = vsel %vm819_vm6, %v789_v27, %v827_v29  ;;  %vm820_vm7 = vcmp.ge.f32.partialorder %v792_v30, 0.0  ;;  %v828_v32 = vmul.f32 0.2, %v792_v30  ;;  %v1866_v27 = vld [vmem:[%s2379_s3 + $0x50] sm:$0xff]  }
 0x17d   : > { %843 = vst.msk [vmem:[#allocation2 + $0x11] sm:$0xff] %vm229_vm0, %v835_v31  ;;  %1764 = vmatprep.subr.bf16.mxu1 %v1866_v27 }
 0x17e   : > { %v836_v34 = vsel %vm820_vm7, %v792_v30, %v828_v32  ;;  %v1736_v16 = vpop.f32.mrb[4].mxu0 }
 0x17f   : > { %844 = vst.msk [vmem:[#allocation2 + $0x21] sm:$0xff] %vm229_vm0, %v836_v34  ;;  %v1737_v35 = vpop.f32.mrb[5].mxu0 }
 0x180   : > { %v1738_v36 = vadd.f32 %v1737_v35, %v1736_v16  ;;  %v1739_v37 = vpop.f32.mrb[6].mxu0 }
 0x181   : > { %v1740_v40 = vpop.f32.mrb[7].mxu0 }
 0x182   : > { %v732_v41 = vadd.f32 %v1738_v36, %v2176_v17  ;;  %v1741_v42 = vadd.f32 %v1740_v40, %v1739_v37 }
 0x184   : > { %v852_v43 = vld [vmem:[#allocation2 + $0x10] sm:$0xff]  ;;  %v797_v45 = vadd.f32 %v1812_v63, %v732_v41  ;;  %v735_v46 = vadd.f32 %v1741_v42, %v2176_v17 }
 0x185   : > { %v872_v21 = vld [vmem:[#allocation2 + $0x11] sm:$0xff]  ;;  %v862_v47 = vmul.f32 0.25, %v852_v43 }
 0x186   : > { %v902_v44 = vld [vmem:[#allocation2 + $0x12] sm:$0xff]  ;;  %v882_v48 = vmul.f32 0.5, %v872_v21  ;;  %v853_v50 = vld [vmem:[#allocation2 + $0x20] sm:$0xff]  ;;  %vm821_vm8 = vcmp.ge.f32.partialorder %v797_v45, 0.0  ;;  %v829_v53 = vmul.f32 0.2, %v797_v45  ;;  %v800_v54 = vadd.f32 %v1813_v1, %v735_v46 }
 0x187   : > { %v873_v51 = vld [vmem:[#allocation2 + $0x21] sm:$0xff]  ;;  %v912_v56 = vmul.f32 0.25, %v902_v44  ;;  %v863_v57 = vmul.f32 0.25, %v853_v50  ;;  %v1867_v42 = vld [vmem:[%s2379_s3 + $0x10] sm:$0xff]   ;;  %v1868_v43 = vld [vmem:[%s2379_s3 + $0x58] sm:$0xff]  }
 0x188   : > { %v903_v52 = vld [vmem:[#allocation2 + $0x22] sm:$0xff]  ;;  %v892_v55 = vadd.f32 %v882_v48, %v862_v47  ;;  %v883_v58 = vmul.f32 0.5, %v873_v51  ;;  %v837_v59 = vsel %vm821_vm8, %v797_v45, %v829_v53  ;;  %vm822_vm9 = vcmp.ge.f32.partialorder %v800_v54, 0.0  ;;  %1765 = vmatpush3.bf16.msra.mxu1 %v1867_v42 }
 0x189   : > { %v830_v60 = vmul.f32 0.2, %v800_v54  ;;  %v913_v0 = vmul.f32 0.25, %v903_v52  ;;  %845 = vst.msk [vmem:[#allocation2 + $0x31] sm:$0xff] %vm229_vm0, %v837_v59  ;;  %1766 = vmatprep.subr.bf16.mxu1 %v1868_v43 }
 0x18a   : > { %v922_v61 = vadd.f32 %v912_v56, %v892_v55  ;;  %v893_v63 = vadd.f32 %v883_v58, %v863_v57  ;;  %v1742_v8 = vpop.f32.mrb[8].mxu0 }
 0x18b   : > { %v838_v2 = vsel %vm822_vm9, %v800_v54, %v830_v60  ;;  %v1743_v1 = vpop.f32.mrb[9].mxu0  ;;  %v973_v60 = vld [vmem:[#allocation2] sm:$0xff] }
 0x18c   : > { %v939_v9 = vmul.f32 0.5, %v922_v61  ;;  %v923_v10 = vadd.f32 %v913_v0, %v893_v63  ;;  %846 = vst.msk [vmem:[#allocation2 + $0x41] sm:$0xff] %vm229_vm0, %v838_v2  ;;  %v1744_v11 = vadd.f32 %v1743_v1, %v1742_v8  ;;  %v1745_v12 = vpop.f32.mrb[10].mxu0  ;;  %v932_v45 = vmul.f32 0.25, %v922_v61  ;;  %v1870_v2 = vld [vmem:[%s2379_s3 + $0x60] sm:$0xff]  }
 0x18d   : > { %v1746_v18 = vpop.f32.mrb[11].mxu0  ;;  %v1871_v8 = vld [vmem:[%s2379_s3 + $0x20] sm:$0xff]  }
 0x18e   : > { %v947_v13 = vadd.f32 %v939_v9, %v931_v62  ;;  %v933_v15 = vmul.f32 0.25, %v923_v10  ;;  %v740_v20 = vadd.f32 %v1744_v11, %v2176_v17  ;;  %v1747_v24 = vadd.f32 %v1746_v18, %v1745_v12 }
 0x18f   : > { %v940_v33 = vmul.f32 0.5, %v923_v10 }
 0x190   : > { %v957_v26 = vadd.f32 %v947_v13, %v933_v15  ;;  %v854_v28 = vld [vmem:[#allocation2 + $0x30] sm:$0xff]  ;;  %v805_v31 = vadd.f32 %v2152_v4, %v740_v20  ;;  %v743_v32 = vadd.f32 %v1747_v24, %v2176_v17 }
 0x191   : > { %v874_v29 = vld [vmem:[#allocation2 + $0x31] sm:$0xff]  ;;  %v864_v14 = vmul.f32 0.25, %v854_v28  ;;  %v948_v51 = vadd.f32 %v940_v33, %v932_v45  ;;  %v1872_v28 = vld [vmem:[%s2379_s3 + $0x68] sm:$0xff]  }
 0x192   : > { %v904_v30 = vld [vmem:[#allocation2 + $0x32] sm:$0xff]  ;;  %965 = vst.msk [vmem:[#allocation2 + $0x11] sm:$0xff] %vm229_vm0, %v957_v26  ;;  %v884_v34 = vmul.f32 0.5, %v874_v29  ;;  %vm823_vm10 = vcmp.ge.f32.partialorder %v805_v31, 0.0  ;;  %v831_v37 = vmul.f32 0.2, %v805_v31  ;;  %v808_v38 = vadd.f32 %v2156_v7, %v743_v32 }
 0x193   : > { %v855_v16 = vld [vmem:[#allocation2 + $0x40] sm:$0xff]  ;;  %v914_v40 = vmul.f32 0.25, %v904_v30  ;;  %v1869_v7 = vld [vmem:[%s2379_s3 + $0x18] sm:$0xff]  }
 0x194   : > { %v875_v35 = vld [vmem:[#allocation2 + $0x41] sm:$0xff]  ;;  %v894_v39 = vadd.f32 %v884_v34, %v864_v14  ;;  %v865_v41 = vmul.f32 0.25, %v855_v16  ;;  %v839_v21 = vsel %vm823_vm10, %v805_v31, %v831_v37  ;;  %vm824_vm11 = vcmp.ge.f32.partialorder %v808_v38, 0.0  ;;  %1767 = vmatpush3.bf16.msra.mxu1 %v1869_v7 }
 0x195   : > { %v905_v36 = vld [vmem:[#allocation2 + $0x42] sm:$0xff]  ;;  %v885_v4 = vmul.f32 0.5, %v875_v35  ;;  %v832_v44 = vmul.f32 0.2, %v808_v38  ;;  %847 = vst.msk [vmem:[#allocation2 + $0x51] sm:$0xff] %vm229_vm0, %v839_v21  ;;  %1768 = vmatprep.subr.bf16.mxu1 %v1870_v2 }
 0x196   : > { %v924_v46 = vadd.f32 %v914_v40, %v894_v39  ;;  %v915_v48 = vmul.f32 0.25, %v905_v36  ;;  %v1748_v50 = vpop.f32.mrb[12].mxu0 }
 0x197   : > { %v895_v47 = vadd.f32 %v885_v4, %v865_v41  ;;  %v840_v49 = vsel %vm824_vm11, %v808_v38, %v832_v44  ;;  %v1749_v55 = vpop.f32.mrb[13].mxu0 }
 0x198   : > { %v2210_v52 = vmul.f32 0.25, %v924_v46  ;;  %v941_v53 = vmul.f32 0.5, %v924_v46  ;;  %848 = vst.msk [vmem:[#allocation2 + $0x61] sm:$0xff] %vm229_vm0, %v840_v49  ;;  %v1750_v56 = vadd.f32 %v1749_v55, %v1748_v50  ;;  %v1751_v57 = vpop.f32.mrb[14].mxu0  ;;  %1769 = vmatpush3.bf16.msra.mxu1 %v1871_v8  ;;  %v1876_v55 = vld [vmem:[%s2379_s3 + $0x78] sm:$0xff]  }
 0x199   : > { %v925_v54 = vadd.f32 %v915_v48, %v895_v47  ;;  %v2213_v58 = vld [vmem:[#allocation2 + $0x11] sm:$0xff]  ;;  %v1752_v62 = vpop.f32.mrb[15].mxu0  ;;  %1770 = vmatprep.subr.bf16.mxu1 %v1872_v28 }
 0x19a   : > { %v2215_v59 = vld [vmem:[#allocation2 + $0x10] sm:$0xff]  ;;  %v958_v61 = vadd.f32 %v948_v51, %v2210_v52  ;;  %v949_v0 = vadd.f32 %v941_v53, %v933_v15  ;;  %v748_v9 = vadd.f32 %v1750_v56, %v2176_v17  ;;  %v1753_v10 = vadd.f32 %v1752_v62, %v1751_v57  ;;  %v1877_v56 = vld [vmem:[%s2379_s3 + $0x38] sm:$0xff]  }
 0x19b   : > { %v2218_v63 = vmul.f32 0.25, %v925_v54  ;;  %v997_v1 = vpack.c.bf16 %v2213_v58, %v1986_v19  ;;  %v1022_v12 = vld [vmem:[#allocation2 + $0x12] sm:$0xff]  ;;  %v981_v13 = vpack.c.bf16 %v2215_v59, %v973_v60  ;;  %v942_v26 = vmul.f32 0.5, %v925_v54 }
 0x19c   : > { %966 = vst.msk [vmem:[#allocation2 + $0x21] sm:$0xff] %vm229_vm0, %v958_v61  ;;  %v856_v15 = vld [vmem:[#allocation2 + $0x50] sm:$0xff]  ;;  %v813_v24 = vadd.f32 %v2150_v3, %v748_v9  ;;  %v751_v25 = vadd.f32 %v1753_v10, %v2176_v17  ;;  %v1873_v3 = vld [vmem:[%s2379_s3 + $0x28] sm:$0xff]   ;;  %v1029_v33 = vpack.c.bf16 %v1022_v12, %v1993_v22  ;;  %v920_v60 = vmul.f32 0.25, %v2081_v5 }
 0x19d   : > { %v959_v11 = vadd.f32 %v949_v0, %v2218_v63  ;;  %v876_v18 = vld [vmem:[#allocation2 + $0x51] sm:$0xff]  ;;  %1005 = vrot.lane.b32.xlu1 %v997_v1, %s1887_s16  ;;  %v866_v27 = vmul.f32 0.25, %v856_v15  ;;  %985 = vst.msk [vmem:[#allocation3] sm:$0xff] %vm229_vm0, %v981_v13  ;;  %1771 = vmatpush3.bf16.msra.mxu1 %v1873_v3  ;;  %v950_v4 = vadd.f32 %v942_v26, %v2210_v52 }
 0x19e   : > { %v906_v20 = vld [vmem:[#allocation2 + $0x52] sm:$0xff]  ;;  %v886_v19 = vmul.f32 0.5, %v876_v18  ;;  %vm825_vm12 = vcmp.ge.f32.partialorder %v813_v24, 0.0  ;;  %v833_v31 = vmul.f32 0.2, %v813_v24  ;;  %v816_v32 = vadd.f32 %v2154_v6, %v751_v25 }
 0x19f   : > { %967 = vst.msk [vmem:[#allocation2 + $0x31] sm:$0xff] %vm229_vm0, %v959_v11  ;;  %v857_v29 = vld [vmem:[#allocation2 + $0x60] sm:$0xff]  ;;  %v916_v34 = vmul.f32 0.25, %v906_v20  ;;  %v1874_v22 = vld [vmem:[%s2379_s3 + $0x70] sm:$0xff]   ;;  %v930_v20 = vadd.f32 %v920_v60, %v1995_v23 }
 0x1a0   : > { %v877_v17 = vld [vmem:[#allocation2 + $0x61] sm:$0xff]  ;;  %v896_v14 = vadd.f32 %v886_v19, %v866_v27  ;;  %v867_v16 = vmul.f32 0.25, %v857_v29  ;;  %v841_v36 = vsel %vm825_vm12, %v813_v24, %v833_v31  ;;  %vm826_vm13 = vcmp.ge.f32.partialorder %v816_v32, 0.0  ;;  %v1875_v6 = vld [vmem:[%s2379_s3 + $0x30] sm:$0xff]   ;;  %1772 = vmatprep.subr.bf16.mxu1 %v1874_v22 }
 0x1a1   : > { %v907_v30 = vld [vmem:[#allocation2 + $0x62] sm:$0xff]  ;;  %v887_v35 = vmul.f32 0.5, %v877_v17  ;;  %v834_v37 = vmul.f32 0.2, %v816_v32  ;;  %1037 = vrot.lane.b32.xlu1 %v1029_v33, %s1888_s17  ;;  %849 = vst.msk [vmem:[#allocation2 + $0x71] sm:$0xff] %vm229_vm0, %v841_v36  ;;  %1773 = vmatpush3.bf16.msra.mxu1 %v1875_v6  ;;  %v956_v33 = vmul.f32 0.25, %v930_v20 }
 0x1a2   : > { %v926_v38 = vadd.f32 %v916_v34, %v896_v14  ;;  %v917_v40 = vmul.f32 0.25, %v907_v30  ;;  %1774 = vmatprep.subr.bf16.mxu1 %v1876_v55 }
 0x1a3   : > { %v897_v39 = vadd.f32 %v887_v35, %v867_v16  ;;  %v842_v41 = vsel %vm826_vm13, %v816_v32, %v834_v37  ;;  %v1102_v42 = vld [vmem:[#allocation2 + $0x22] sm:$0xff] }
 0x1a4   : > { %v1054_v43 = vld [vmem:[#allocation2 + $0x20] sm:$0xff]  ;;  %v943_v44 = vmul.f32 0.5, %v926_v38  ;;  %850 = vst.msk [vmem:[#allocation2 + $0x81] sm:$0xff] %vm229_vm0, %v842_v41  ;;  %v936_v46 = vmul.f32 0.25, %v926_v38  ;;  %v1109_v47 = vpack.c.bf16 %v1102_v42, %v1022_v12 }
 0x1a5   : > { %v991_v21 = vld [vmem:[#allocation2 + $0x21] sm:$0xff]  ;;  %v927_v45 = vadd.f32 %v917_v40, %v897_v39  ;;  %v1061_v48 = vpack.c.bf16 %v1054_v43, %v2215_v59  ;;  %1775 = vmatpush3.bf16.msra.mxu1 %v1877_v56 }
 0x1a6   : > { %v2256_v7 = vld [vmem:[#allocation2 + $0x30] sm:$0xff]  ;;  %v1093_v50 = vpack.c.bf16 %v991_v21, %v2213_v58  ;;  %v951_v52 = vadd.f32 %v943_v44, %v2218_v63  ;;  %v960_v53 = vadd.f32 %v950_v4, %v936_v46  ;;  %1117 = vrot.lane.b32.xlu0 %v1109_v47, %s1887_s16 }
 0x1a7   : > { %v2258_v49 = vld [vmem:[#allocation2 + $0x32] sm:$0xff]  ;;  %v937_v51 = vmul.f32 0.25, %v927_v45  ;;  %1069 = vrot.lane.b32.xlu1 %v1061_v48, %s1889_s26  ;;  %v1141_v57 = vpack.c.bf16 %v2256_v7, %v1054_v43  ;;  %v944_v11 = vmul.f32 0.5, %v927_v45 }
 0x1a8   : > { %v2263_v54 = vld [vmem:[#allocation2 + $0x31] sm:$0xff]  ;;  %v1030_v58 = vpack.c.bf16 %v2258_v49, %v1102_v42  ;;  %1097 = vst.msk [vmem:[#allocation3 + $0x8] sm:$0xff] %vm229_vm0, %v1093_v50  ;;  %968 = vst.msk [vmem:[#allocation2 + $0x41] sm:$0xff] %vm229_vm0, %v960_v53 }
 0x1a9   : > { %v961_v59 = vadd.f32 %v951_v52, %v937_v51  ;;  %v858_v61 = vld [vmem:[#allocation2 + $0x70] sm:$0xff]  ;;  %v998_v0 = vpack.c.bf16 %v2263_v54, %v991_v21  ;;  %986 = vst.msk [vmem:[#allocation3 + $0x18] sm:$0xff] %vm229_vm0, %v1141_v57  ;;  %v952_v27 = vadd.f32 %v944_v11, %v936_v46 }
 0x1aa   : > { %v878_v62 = vld [vmem:[#allocation2 + $0x71] sm:$0xff]  ;;  %1209 = vst.msk [vmem:[#allocation3 + $0x10] sm:$0xff] %vm229_vm0, %v1030_v58  ;;  %v868_v2 = vmul.f32 0.25, %v858_v61  ;;  %1149 = vrot.lane.b32.xlu0 %v1141_v57, %s1888_s17 }
 0x1ab   : > { %v908_v63 = vld [vmem:[#allocation2 + $0x72] sm:$0xff]  ;;  %v888_v8 = vmul.f32 0.5, %v878_v62  ;;  %969 = vst.msk [vmem:[#allocation2 + $0x51] sm:$0xff] %vm229_vm0, %v961_v59  ;;  %v859_v9 = vld [vmem:[#allocation2 + $0x80] sm:$0xff]  ;;  %1007 = vrot.lane.b32.xlu1 %v998_v0, %s1887_s16 }
 0x1ac   : > { %v879_v10 = vld [vmem:[#allocation2 + $0x81] sm:$0xff]  ;;  %v869_v12 = vmul.f32 0.25, %v859_v9  ;;  %v918_v18 = vmul.f32 0.25, %v908_v63  ;;  %v1140_v62 = vld [vmem:[#allocation2 + $0x90] sm:$0xff] }
 0x1ad   : > { %v909_v1 = vld [vmem:[#allocation2 + $0x82] sm:$0xff]  ;;  %v889_v13 = vmul.f32 0.5, %v879_v10  ;;  %v898_v15 = vadd.f32 %v888_v8, %v868_v2 }
 0x1ae   : > { %v919_v25 = vmul.f32 0.25, %v909_v1  ;;  %1181 = vrot.lane.b32.xlu0 %v998_v0, %s1889_s26  ;;  %v1172_v0 = vld [vmem:[#allocation2 + $0x91] sm:$0xff] }
 0x1af   : > { %v899_v24 = vadd.f32 %v889_v13, %v869_v12  ;;  %v928_v26 = vadd.f32 %v918_v18, %v898_v15  ;;  %1039 = vrot.lane.b32.xlu1 %v1030_v58, %s1888_s17  ;;  %v1104_v19 = vld [vmem:[#allocation2 + $0x42] sm:$0xff] }
 0x1b0   : > { %v1056_v28 = vld [vmem:[#allocation2 + $0x40] sm:$0xff]  ;;  %v1110_v32 = vpack.c.bf16 %v1104_v19, %v2258_v49 }
 0x1b1   : > { %v993_v3 = vld [vmem:[#allocation2 + $0x41] sm:$0xff]  ;;  %v929_v29 = vadd.f32 %v919_v25, %v899_v24  ;;  %v938_v17 = vmul.f32 0.25, %v928_v26  ;;  %v945_v30 = vmul.f32 0.5, %v928_v26  ;;  %v1215_v31 = vld [vmem:[#allocation3 + $0x10] sm:$0xff]  ;;  %v1062_v23 = vpack.c.bf16 %v1056_v28, %v2256_v7 }
 0x1b2   : > { %1822 = vmatprep.mubr.msk.bf16.mxu0 %vm229_vm0, %v1215_v31  ;;  %v1136_v14 = vld [vmem:[#allocation2 + $0x50] sm:$0xff]  ;;  %v1094_v16 = vpack.c.bf16 %v993_v3, %v2263_v54  ;;  %1119 = vrot.lane.b32.xlu0 %v1110_v32, %s1887_s16 }
 0x1b3   : > { %v1026_v34 = vld [vmem:[#allocation2 + $0x52] sm:$0xff]  ;;  %v946_v35 = vmul.f32 0.5, %v929_v29  ;;  %v953_v36 = vadd.f32 %v945_v30, %v937_v51  ;;  %v955_v37 = vmul.f32 0.25, %v929_v29  ;;  %v962_v38 = vadd.f32 %v952_v27, %v938_v17  ;;  %1071 = vrot.lane.b32.xlu1 %v1062_v23, %s1889_s26 }
 0x1b4   : > { %v994_v39 = vld [vmem:[#allocation2 + $0x51] sm:$0xff]  ;;  %v1142_v40 = vpack.c.bf16 %v1136_v14, %v1056_v28  ;;  %v1031_v22 = vpack.c.bf16 %v1026_v34, %v1104_v19  ;;  %1098 = vst.msk [vmem:[#allocation3 + $0x20] sm:$0xff] %vm229_vm0, %v1094_v16 }
 0x1b5   : > { %v954_v6 = vadd.f32 %v946_v35, %v938_v17  ;;  %v963_v41 = vadd.f32 %v955_v37, %v953_v36  ;;  %970 = vst.msk [vmem:[#allocation2 + $0x61] sm:$0xff] %vm229_vm0, %v962_v38  ;;  %v999_v4 = vpack.c.bf16 %v994_v39, %v993_v3 }
 0x1b6   : > { %1210 = vst.msk [vmem:[#allocation3 + $0x28] sm:$0xff] %vm229_vm0, %v1031_v22  ;;  %987 = vst.msk [vmem:[#allocation3 + $0x30] sm:$0xff] %vm229_vm0, %v1142_v40  ;;  %1151 = vrot.lane.b32.xlu0 %v1142_v40, %s1888_s17 }
 0x1b7   : > { %v964_v42 = vadd.f32 %v956_v33, %v954_v6  ;;  %971 = vst.msk [vmem:[#allocation2 + $0x71] sm:$0xff] %vm229_vm0, %v963_v41  ;;  %1009 = vrot.lane.b32.xlu1 %v999_v4, %s1887_s16 }
 0x1b9   : > { %972 = vst.msk [vmem:[#allocation2 + $0x81] sm:$0xff] %vm229_vm0, %v964_v42 }
 0x1ba   : > { %1183 = vrot.lane.b32.xlu0 %v999_v4, %s1889_s26 }
 0x1bb   : > { %1041 = vrot.lane.b32.xlu1 %v1031_v22, %s1888_s17 }
 0x1bc   : > { %v1106_v43 = vld [vmem:[#allocation2 + $0x62] sm:$0xff] }
 0x1bd   : > { %v1058_v21 = vld [vmem:[#allocation2 + $0x60] sm:$0xff]  ;;  %v1218_v45 = vld [vmem:[#allocation3 + $0x28] sm:$0xff]  ;;  %v1111_v46 = vpack.c.bf16 %v1106_v43, %v1026_v34 }
 0x1be   : > { %v995_v44 = vld [vmem:[#allocation2 + $0x61] sm:$0xff]  ;;  %v1063_v47 = vpack.c.bf16 %v1058_v21, %v1136_v14  ;;  %1823 = vmatmul.mubr.msk.bf16.vlgmr.msra.gmra.mrb[16].mxu0 %vm229_vm0, %v1218_v45  ;;  %v1138_v7 = vld [vmem:[#allocation2 + $0x70] sm:$0xff] }
 0x1bf   : > { %v1095_v48 = vpack.c.bf16 %v995_v44, %v994_v39  ;;  %v1028_v49 = vld [vmem:[#allocation2 + $0x72] sm:$0xff]  ;;  %1121 = vrot.lane.b32.xlu0 %v1111_v46, %s1887_s16  ;;  %v1143_v50 = vpack.c.bf16 %v1138_v7, %v1058_v21 }
 0x1c0   : > { %v996_v51 = vld [vmem:[#allocation2 + $0x71] sm:$0xff]  ;;  %v1032_v52 = vpack.c.bf16 %v1028_v49, %v1106_v43  ;;  %1073 = vrot.lane.b32.xlu1 %v1063_v47, %s1889_s26  ;;  %v1203_v53 = vld [vmem:[#allocation2 + $0x82] sm:$0xff] }
 0x1c1   : > { %1099 = vst.msk [vmem:[#allocation3 + $0x38] sm:$0xff] %vm229_vm0, %v1095_v48  ;;  %v1171_v54 = vld [vmem:[#allocation2 + $0x81] sm:$0xff]  ;;  %v1208_v55 = vpack.c.bf16 %v2081_v5, %v1203_v53  ;;  %988 = vst.msk [vmem:[#allocation3 + $0x48] sm:$0xff] %vm229_vm0, %v1143_v50  ;;  %v1000_v56 = vpack.c.bf16 %v996_v51, %v995_v44  ;;  %v1112_v5 = vpack.c.bf16 %v1203_v53, %v1028_v49 }
 0x1c2   : > { %1211 = vst.msk [vmem:[#allocation3 + $0x40] sm:$0xff] %vm229_vm0, %v1032_v52  ;;  %v1096_v57 = vpack.c.bf16 %v1171_v54, %v996_v51  ;;  %v1060_v58 = vld [vmem:[#allocation2 + $0x80] sm:$0xff]  ;;  %v1176_v2 = vpack.c.bf16 %v1172_v0, %v1171_v54 }
 0x1c3   : > { %1153 = vrot.lane.b32.xlu0 %v1143_v50, %s1888_s17  ;;  %1212 = vst.msk [vmem:[#allocation3 + $0x58] sm:$0xff] %vm229_vm0, %v1208_v55  ;;  %v1064_v61 = vpack.c.bf16 %v1060_v58, %v1138_v7  ;;  %v1144_v63 = vpack.c.bf16 %v1140_v62, %v1060_v58 }
 0x1c4   : > { %1011 = vrot.lane.b32.xlu1 %v1000_v56, %s1887_s16  ;;  %1100 = vst.msk [vmem:[#allocation3 + $0x50] sm:$0xff] %vm229_vm0, %v1096_v57 }
 0x1c7   : > { %1185 = vrot.lane.b32.xlu0 %v1000_v56, %s1889_s26 }
 0x1c8   : > { %1043 = vrot.lane.b32.xlu1 %v1032_v52, %s1888_s17 }
 0x1c9   : > { %v1221_v59 = vld [vmem:[#allocation3 + $0x40] sm:$0xff] }
 0x1ca   : > { %1826 = vmatprep.mubr.msk.bf16.mxu0 %vm229_vm0, %v1221_v59  ;;  %v1224_v60 = vld [vmem:[#allocation3 + $0x58] sm:$0xff] }
 0x1cb   : > { %1827 = vmatmul.mubr.msk.bf16.gmra.mrb[20].mxu0 %vm229_vm0, %v1224_v60  ;;  %1123 = vrot.lane.b32.xlu0 %v1112_v5, %s1887_s16  ;;  %s1664_s16 = sshll.u32 %s1657_s19, 1 }
 0x1cc   : > { %1075 = vrot.lane.b32.xlu1 %v1064_v61, %s1889_s26  ;;  %p223_p4 = scmp.lt.s32.totalorder %s1664_s16, 7 }
 0x1ce   : > { %s2385_s16 = smov (!%p223_p4, %s1664_s16), 7 }
 0x1cf   : > { %1155 = vrot.lane.b32.xlu0 %v1144_v63, %s1888_s17  ;;  %s1665_s19 = sshll.u32 %s2385_s16, 3 }
 0x1d0   : > { %s2363_s20 = scalar_lea.vmem %s2381_s5, %s1665_s19 }
 0x1d3   : > { %1187 = vrot.lane.b32.xlu0 %v1176_v2, %s1889_s26 }
 0x20f   : > { %v1006_v8 = vpop.permute.xlu1 %1005 }
 0x210   : > { %1017 = vst.msk [vmem:[#allocation3] sm:$0xff] %vm314_vm3, %v1006_v8 }
 0x213   : > { %v1038_v9 = vpop.permute.xlu1 %1037 }
 0x214   : > { %1049 = vst.msk [vmem:[#allocation3] sm:$0xff] %vm347_vm4, %v1038_v9 }
 0x218   : > { %v1118_v10 = vpop.permute.xlu0 %1117 }
 0x219   : > { %1129 = vst.msk [vmem:[#allocation3 + $0x8] sm:$0xff] %vm314_vm3, %v1118_v10  ;;  %v1070_v1 = vpop.permute.xlu1 %1069 }
 0x21a   : > { %1081 = vst.msk [vmem:[#allocation3] sm:$0xff] %vm380_vm5, %v1070_v1 }
 0x21c   : > { %v1150_v11 = vpop.permute.xlu0 %1149 }
 0x21d   : > { %1161 = vst.msk [vmem:[#allocation3 + $0x8] sm:$0xff] %vm347_vm4, %v1150_v11  ;;  %v1008_v12 = vpop.permute.xlu1 %1007 }
 0x21e   : > { %1018 = vst.msk [vmem:[#allocation3 + $0x18] sm:$0xff] %vm314_vm3, %v1008_v12 }
 0x220   : > { %v1182_v13 = vpop.permute.xlu0 %1181 }
 0x221   : > { %1193 = vst.msk [vmem:[#allocation3 + $0x8] sm:$0xff] %vm380_vm5, %v1182_v13  ;;  %v1040_v15 = vpop.permute.xlu1 %1039  ;;  %v1213_v27 = vld [vmem:[#allocation3] sm:$0xff] }
 0x222   : > { %1050 = vst.msk [vmem:[#allocation3 + $0x18] sm:$0xff] %vm347_vm4, %v1040_v15  ;;  %v1711_v13 = vld [vmem:[%s2380_s4] ss:$0 sm:$0xff] }
 0x224   : > { %v1120_v18 = vpop.permute.xlu0 %1119 }
 0x225   : > { %1130 = vst.msk [vmem:[#allocation3 + $0x20] sm:$0xff] %vm314_vm3, %v1120_v18  ;;  %v1072_v20 = vpop.permute.xlu1 %1071 }
 0x226   : > { %1082 = vst.msk [vmem:[#allocation3 + $0x18] sm:$0xff] %vm380_vm5, %v1072_v20 }
 0x228   : > { %v1152_v24 = vpop.permute.xlu0 %1151  ;;  %v1214_v25 = vld [vmem:[#allocation3 + $0x8] sm:$0xff] }
 0x229   : > { %1162 = vst.msk [vmem:[#allocation3 + $0x20] sm:$0xff] %vm347_vm4, %v1152_v24  ;;  %v1010_v26 = vpop.permute.xlu1 %1009  ;;  %1413 = vmatprep.mubr.bf16.mxu1 %v1214_v25 }
 0x22a   : > { %1019 = vst.msk [vmem:[#allocation3 + $0x30] sm:$0xff] %vm314_vm3, %v1010_v26  ;;  %1414 = vmatmul.mubr.bf16.vlgmr.msra.gmra.mrb[8].mxu1 %v1213_v27 }
 0x22c   : > { %v1184_v19 = vpop.permute.xlu0 %1183 }
 0x22d   : > { %1194 = vst.msk [vmem:[#allocation3 + $0x20] sm:$0xff] %vm380_vm5, %v1184_v19  ;;  %v1042_v28 = vpop.permute.xlu1 %1041  ;;  %v1216_v32 = vld [vmem:[#allocation3 + $0x18] sm:$0xff] }
 0x22e   : > { %1051 = vst.msk [vmem:[#allocation3 + $0x30] sm:$0xff] %vm347_vm4, %v1042_v28 }
 0x231   : > { %v1122_v3 = vpop.permute.xlu0 %1121 }
 0x232   : > { %1131 = vst.msk [vmem:[#allocation3 + $0x38] sm:$0xff] %vm314_vm3, %v1122_v3  ;;  %v1074_v29 = vpop.permute.xlu1 %1073 }
 0x233   : > { %1083 = vst.msk [vmem:[#allocation3 + $0x30] sm:$0xff] %vm380_vm5, %v1074_v29  ;;  %v1573_v29 = vcombine.high %v1711_v13, %v1711_v13 }
 0x234   : > { %v1217_v30 = vld [vmem:[#allocation3 + $0x20] sm:$0xff] }
 0x235   : > { %v1154_v17 = vpop.permute.xlu0 %1153  ;;  %1421 = vmatprep.mubr.bf16.mxu1 %v1217_v30 }
 0x236   : > { %1163 = vst.msk [vmem:[#allocation3 + $0x38] sm:$0xff] %vm347_vm4, %v1154_v17  ;;  %v1012_v31 = vpop.permute.xlu1 %1011  ;;  %1422 = vmatmul.mubr.bf16.gmra.mrb[12].mxu1 %v1216_v32 }
 0x237   : > { %1020 = vst.msk [vmem:[#allocation3 + $0x48] sm:$0xff] %vm314_vm3, %v1012_v31 }
 0x239   : > { %v1186_v33 = vpop.permute.xlu0 %1185 }
 0x23a   : > { %1195 = vst.msk [vmem:[#allocation3 + $0x38] sm:$0xff] %vm380_vm5, %v1186_v33  ;;  %v1044_v23 = vpop.permute.xlu1 %1043  ;;  %v1219_v36 = vld [vmem:[#allocation3 + $0x30] sm:$0xff] }
 0x23b   : > { %1052 = vst.msk [vmem:[#allocation3 + $0x48] sm:$0xff] %vm347_vm4, %v1044_v23 }
 0x23d   : > { %v1124_v14 = vpop.permute.xlu0 %1123 }
 0x23e   : > { %1132 = vst.msk [vmem:[#allocation3 + $0x50] sm:$0xff] %vm314_vm3, %v1124_v14  ;;  %v1076_v34 = vpop.permute.xlu1 %1075 }
 0x23f   : > { %1084 = vst.msk [vmem:[#allocation3 + $0x48] sm:$0xff] %vm380_vm5, %v1076_v34 }
 0x241   : > { %v1156_v16 = vpop.permute.xlu0 %1155  ;;  %v1220_v35 = vld [vmem:[#allocation3 + $0x38] sm:$0xff] }
 0x242   : > { %1164 = vst.msk [vmem:[#allocation3 + $0x50] sm:$0xff] %vm347_vm4, %v1156_v16  ;;  %1429 = vmatprep.mubr.bf16.mxu1 %v1220_v35 }
 0x243   : > { %1430 = vmatmul.mubr.bf16.gmra.mrb[16].mxu1 %v1219_v36 }
 0x245   : > { %v1188_v37 = vpop.permute.xlu0 %1187 }
 0x246   : > { %1196 = vst.msk [vmem:[#allocation3 + $0x50] sm:$0xff] %vm380_vm5, %v1188_v37  ;;  %v1222_v39 = vld [vmem:[#allocation3 + $0x48] sm:$0xff] }
 0x24d   : > { %v1223_v38 = vld [vmem:[#allocation3 + $0x50] sm:$0xff] }
 0x24e   : > { %1437 = vmatprep.mubr.bf16.mxu1 %v1223_v38 }
 0x24f   : > { %1438 = vmatmul.mubr.bf16.gmra.mrb[20].mxu1 %v1222_v39 }
 0x291   : > { %v1824_v40 = vpop.f32.mrb[16].mxu0 }
 0x292   : > { %v1480_v22 = vpop.f32.mrb[17].mxu0 }
 0x293   : > { %v1825_v6 = vpop.f32.mrb[18].mxu0 }
 0x294   : > { %v1483_v41 = vpop.f32.mrb[19].mxu0 }
 0x29e   : > { %v2345_v4 = vpop.f32.mrb[20].mxu0 }
 0x29f   : > { %v1496_v42 = vpop.f32.mrb[21].mxu0 }
 0x2a0   : > { %v2347_v43 = vpop.f32.mrb[22].mxu0 }
 0x2a1   : > { %v1499_v21 = vpop.f32.mrb[23].mxu0 }
 0x2fd   : > { %v1776_v44 = vpop.f32.mrb[8].mxu1 }
 0x2fe   : > { %v1777_v45 = vpop.f32.mrb[9].mxu1 }
 0x2ff   : > { %v1778_v46 = vadd.f32 %v1777_v45, %v1776_v44  ;;  %v1779_v47 = vpop.f32.mrb[10].mxu1 }
 0x300   : > { %v1780_v48 = vpop.f32.mrb[11].mxu1 }
 0x301   : > { %v1481_v7 = vadd.f32 %v1778_v46, %v1480_v22  ;;  %v1781_v49 = vadd.f32 %v1780_v48, %v1779_v47 }
 0x303   : > { %1511 = vst.msk [vmem:[#allocation4] sm:$0xff] %vm229_vm0, %v1481_v7  ;;  %v1484_v50 = vadd.f32 %v1781_v49, %v1483_v41 }
 0x305   : > { %1512 = vst.msk [vmem:[#allocation4 + $0x8] sm:$0xff] %vm229_vm0, %v1484_v50 }
 0x309   : > { %v1782_v51 = vpop.f32.mrb[12].mxu1 }
 0x30a   : > { %v1783_v52 = vpop.f32.mrb[13].mxu1  ;;  %v1519_v5 = vld [vmem:[#allocation4] ss:$2 sm:$0xf] }
 0x30b   : > { %v1784_v53 = vadd.f32 %v1783_v52, %v1782_v51  ;;  %v1785_v55 = vpop.f32.mrb[14].mxu1  ;;  %v1535_v60 = vld [vmem:[#allocation4 + $0x1] ss:$2 sm:$0xf] }
 0x30c   : > { %v1521_v54 = vld [vmem:[#allocation4 + $0x8] ss:$2 sm:$0xf]  ;;  %v1537_v56 = vld [vmem:[#allocation4 + $0x9] ss:$2 sm:$0xf]  ;;  %v1550_v63 = vadd.f32 %v1535_v60, %v1519_v5 }
 0x30d   : > { %v1489_v57 = vadd.f32 %v1824_v40, %v1784_v53  ;;  %v1786_v58 = vpop.f32.mrb[15].mxu1  ;;  %v1551_v61 = vadd.f32 %v1537_v56, %v1521_v54 }
 0x30e   : > { %v1787_v59 = vadd.f32 %v1786_v58, %v1785_v55 }
 0x30f   : > { %1513 = vst.msk [vmem:[#allocation4 + $0x10] sm:$0xff] %vm229_vm0, %v1489_v57  ;;  %v1558_v0 = vadd.f32 %v1551_v61, %v1550_v63 }
 0x310   : > { %v1492_v62 = vadd.f32 %v1825_v6, %v1787_v59 }
 0x311   : > { %v1562_v12 = vmul.f32 0.25, %v1558_v0 }
 0x312   : > { %1514 = vst.msk [vmem:[#allocation4 + $0x18] sm:$0xff] %vm229_vm0, %v1492_v62 }
 0x313   : > { %v1575_v28 = vadd.f32 %v1711_v13, %v1562_v12 }
 0x315   : > { %v1583_v30 = vmul.f32 0.2, %v1575_v28  ;;  %vm1579_vm14 = vcmp.ge.f32.partialorder %v1575_v28, 0.0 }
 0x316   : > { %v1788_v2 = vpop.f32.mrb[16].mxu1  ;;  %v1523_v9 = vld [vmem:[#allocation4 + $0x10] ss:$2 sm:$0xf] }
 0x317   : > { %v1789_v8 = vpop.f32.mrb[17].mxu1  ;;  %v1539_v1 = vld [vmem:[#allocation4 + $0x11] ss:$2 sm:$0xf]  ;;  %v1587_v16 = vsel %vm1579_vm14, %v1575_v28, %v1583_v30 }
 0x318   : > { %v1790_v10 = vadd.f32 %v1789_v8, %v1788_v2  ;;  %v1791_v11 = vpop.f32.mrb[18].mxu1  ;;  %v1552_v26 = vadd.f32 %v1539_v1, %v1523_v9 }
 0x319   : > { %v1792_v18 = vpop.f32.mrb[19].mxu1  ;;  %v1525_v20 = vld [vmem:[#allocation4 + $0x18] ss:$2 sm:$0xf] }
 0x31a   : > { %v1497_v15 = vadd.f32 %v1790_v10, %v1496_v42  ;;  %v1541_v24 = vld [vmem:[#allocation4 + $0x19] ss:$2 sm:$0xf]  ;;  %v1793_v25 = vadd.f32 %v1792_v18, %v1791_v11 }
 0x31b   : > { %v1553_v27 = vadd.f32 %v1541_v24, %v1525_v20 }
 0x31c   : > { %1515 = vst.msk [vmem:[#allocation4 + $0x20] sm:$0xff] %vm229_vm0, %v1497_v15  ;;  %v1500_v19 = vadd.f32 %v1793_v25, %v1499_v21 }
 0x31d   : > { %v1559_v3 = vadd.f32 %v1553_v27, %v1552_v26 }
 0x31e   : > { %1516 = vst.msk [vmem:[#allocation4 + $0x28] sm:$0xff] %vm229_vm0, %v1500_v19 }
 0x31f   : > { %v1563_v17 = vmul.f32 0.25, %v1559_v3 }
 0x321   : > { %v1576_v31 = vadd.f32 %v1573_v29, %v1563_v17 }
 0x322   : > { %v1794_v32 = vpop.f32.mrb[20].mxu1 }
 0x323   : > { %vm1580_vm15 = vcmp.ge.f32.partialorder %v1576_v31, 0.0  ;;  %v1584_v33 = vmul.f32 0.2, %v1576_v31  ;;  %v1795_v23 = vpop.f32.mrb[21].mxu1 }
 0x324   : > { %v1796_v14 = vadd.f32 %v1795_v23, %v1794_v32  ;;  %v1797_v34 = vpop.f32.mrb[22].mxu1  ;;  %v1527_v6 = vld [vmem:[#allocation4 + $0x20] ss:$2 sm:$0xf] }
 0x325   : > { %v1588_v35 = vsel %vm1580_vm15, %v1576_v31, %v1584_v33  ;;  %v1529_v36 = vld [vmem:[#allocation4 + $0x28] ss:$2 sm:$0xf]  ;;  %v1545_v38 = vld [vmem:[#allocation4 + $0x29] ss:$2 sm:$0xf] }
 0x326   : > { %v1595_v37 = vcombine.low %v1587_v16, %v1588_v35  ;;  %v1505_v39 = vadd.f32 %v2345_v4, %v1796_v14  ;;  %v1798_v40 = vpop.f32.mrb[23].mxu1  ;;  %v1543_v41 = vld [vmem:[#allocation4 + $0x21] ss:$2 sm:$0xf]  ;;  %v1555_v42 = vadd.f32 %v1545_v38, %v1529_v36 }
 0x327   : > { %v1799_v22 = vadd.f32 %v1798_v40, %v1797_v34  ;;  %v1554_v44 = vadd.f32 %v1543_v41, %v1527_v6 }
 0x328   : > { %1599 = vst.msk [vmem:[%s2363_s20] sm:$0xff] %vm229_vm0, %v1595_v37  ;;  %1517 = vst.msk [vmem:[#allocation4 + $0x30] sm:$0xff] %vm229_vm0, %v1505_v39 }
 0x329   : > { %v1508_v21 = vadd.f32 %v2347_v43, %v1799_v22  ;;  %v1560_v45 = vadd.f32 %v1555_v42, %v1554_v44 }
 0x32b   : > { %1518 = vst.msk [vmem:[#allocation4 + $0x38] sm:$0xff] %vm229_vm0, %v1508_v21  ;;  %v1564_v48 = vmul.f32 0.25, %v1560_v45 }
 0x32d   : > { %v1577_v51 = vadd.f32 %v1711_v13, %v1564_v48 }
 0x32f   : > { %v1531_v46 = vld [vmem:[#allocation4 + $0x30] ss:$2 sm:$0xf]  ;;  %v1547_v47 = vld [vmem:[#allocation4 + $0x31] ss:$2 sm:$0xf] }
 0x330   : > { %v1556_v49 = vadd.f32 %v1547_v47, %v1531_v46  ;;  %v1585_v54 = vmul.f32 0.2, %v1577_v51  ;;  %vm1581_vm1 = vcmp.ge.f32.partialorder %v1577_v51, 0.0 }
 0x332   : > { %v1533_v4 = vld [vmem:[#allocation4 + $0x38] ss:$2 sm:$0xf]  ;;  %v1549_v7 = vld [vmem:[#allocation4 + $0x39] ss:$2 sm:$0xf]  ;;  %v1589_v56 = vsel %vm1581_vm1, %v1577_v51, %v1585_v54 }
 0x333   : > { %v1557_v50 = vadd.f32 %v1549_v7, %v1533_v4 }
 0x335   : > { %v1561_v52 = vadd.f32 %v1557_v50, %v1556_v49 }
 0x337   : > { %v1565_v53 = vmul.f32 0.25, %v1561_v52 }
 0x339   : > { %v1578_v55 = vadd.f32 %v1573_v29, %v1565_v53 }
 0x33b   : > { %vm1582_vm2 = vcmp.ge.f32.partialorder %v1578_v55, 0.0  ;;  %v1586_v43 = vmul.f32 0.2, %v1578_v55 }
 0x33d   : > { %v1590_v57 = vsel %vm1582_vm2, %v1578_v55, %v1586_v43 }
 0x33e   : > { %v1596_v58 = vcombine.low %v1589_v56, %v1590_v57 }
 0x340   : > { %1600 = vst.msk [vmem:[%s2363_s20 + $0x8] sm:$0xff] %vm229_vm0, %v1596_v58 }
 0x341 PF: > { %s15_s18 = sadd.s32 1, %s1884_s18  }
 0x342   : > { %p12_p5 = scmp.ge.s32.totalorder %s15_s18, 6  }
 0x344   :  { %14 = sbr.rel (!%p12_p5) target bundleno = 1 (0x1), region = 88 }

// kernel: discriminator_forward.3
= control target key start
LH: loop header
LB: loop body
LE: loop exit
PB: predicated region body
PF: predicated region fallthrough
CT: control target
= control target key end

     0   :  { %s5178_s15 = smov 0   ;;  %s7449_s0 = inlined_call_operand.<no memory space> [shape: f32[1,1], index: 0, kind: input, shape index: {}]   ;;  %s7450_s1 = inlined_call_operand.vmem [shape: f32[1024,3], index: 1, kind: input, shape index: {}]   ;;  %s7451_s2 = inlined_call_operand.vmem [shape: f32[3,16], index: 2, kind: input, shape index: {}]   ;;  %s7452_s3 = inlined_call_operand.vmem [shape: f32[1,16], index: 3, kind: input, shape index: {}]   ;;  %s7453_s4 = inlined_call_operand.vmem [shape: bf16[144,16], index: 4, kind: input, shape index: {}]   ;;  %s7454_s5 = inlined_call_operand.vmem [shape: f32[1,16], index: 5, kind: input, shape index: {}]   ;;  %s7455_s6 = inlined_call_operand.vmem [shape: bf16[144,32], index: 6, kind: input, shape index: {}]   ;;  %s7456_s7 = inlined_call_operand.vmem [shape: f32[1,32], index: 7, kind: input, shape index: {}]   ;;  %s7457_s8 = inlined_call_operand.vmem [shape: f32[3,32], index: 8, kind: input, shape index: {}]   ;;  %s7458_s9 = inlined_call_operand.vmem [shape: f32[1,32], index: 9, kind: input, shape index: {}]   ;;  %s7459_s10 = inlined_call_operand.vmem [shape: f32[256,32], index: 10, kind: output, shape index: {}]  }
   0x1   :  { %15 = sst [smem:[#allocation5]] %s7449_s0 }
   0x2 LB: > { %s4936_s16 = sadd.s32 4294967295, %s5107_s15   ;;  %p4940_p0 = scmp.ge.s32.totalorder %s5107_s15, 1  ;;  %s5107_s15 = sphi %s5178_s15, %s21_s15  }
   0x3   : > { %p314_p1 = scmp.lt.s32.totalorder %s5107_s15, 5 }
   0x5   : > { %p315_p2 = pnand %p4940_p0, %p314_p1 }
   0x7   : > { %318 = sbr.rel (%p315_p2) target bundleno = 1332 (0x534), region = 60 }
   0xe   : > { %s4941_s17 = sshll.u32 %s4936_s16, 5  ;;  %vm365_vm0 = vcmask 130048   ;;  %v7468_v0 = vmov 2   ;;  %v7463_v1 = vmov 1   ;;  %vm368_vm1 = vcmask 123904   ;;  %s5113_s21 = smov 16  }
   0xf   : > { %5022 = vset.pattern.permute.xlu0 %v7468_v0  ;;  %5020 = vset.pattern.permute.xlu1 %v7463_v1  ;;  %p353_p3 = scmp.lt.s32.totalorder %s4941_s17, 127  ;;  %v5111_v2 = vmov 0.0   ;;  %v7465_v3 = vmov 0   ;;  %vm375_vm2 = vcmask 122880   ;;  %v602_v34 = vlaneseq  ;;  %v440_v41 = vld [vmem:[%s7451_s2] sm:$0x7] }
  0x10   : > { %366 = vst.msk [vmem:[#allocation2] sm:$0xff] %vm365_vm0, %v5111_v2  ;;  %367 = vst.msk [vmem:[#allocation2 + $0x8] sm:$0xff] %vm365_vm0, %v5111_v2  ;;  %2291 = vmatprep.subr.bf16.mxu0 %v7465_v3  ;;  %4208 = vmatprep.subr.bf16.mxu1 %v7465_v3  ;;  %v5408_v52 = vld [vmem:[%s7452_s3] ss:$0 sm:$0xff]  ;;  %s5114_s26 = smov 64   ;;  %vm1276_vm3 = vcmask 261248  }
  0x11   : > { %369 = vst.msk [vmem:[#allocation2 + $0x10] sm:$0x3] %vm368_vm1, %v5111_v2  ;;  %373 = vst.msk [vmem:[#allocation2 + $0x1a8] sm:$0x3] %vm368_vm1, %v5111_v2  ;;  %s7680_s17 = smov (!%p353_p3, %s4941_s17), 127  ;;  %v5367_v37 = vshrl.u32 %v602_v34, 7 }
  0x12   : > { %371 = vst.msk [vmem:[#allocation2 + $0x198] sm:$0xff] %vm365_vm0, %v5111_v2  ;;  %372 = vst.msk [vmem:[#allocation2 + $0x1a0] sm:$0xff] %vm365_vm0, %v5111_v2  ;;  %s4942_s0 = sshll.u32 %s7680_s17, 3  ;;  %s5115_s27 = smov 32   ;;  %vm1405_vm4 = vcmask 392448   ;;  %vm1534_vm5 = vcmask 523648  }
  0x13   : > { %s5205_s20 = scalar_lea.vmem %s7450_s1, %s4942_s0  ;;  %394 = vst.msk [vmem:[#allocation2 + $0x59] sm:$0x1] %vm375_vm2, %v5111_v2  ;;  %376 = vst.msk [vmem:[#allocation2 + $0x18] sm:$0x1] %vm375_vm2, %v5111_v2  ;;  %v7462_v39 = vsub.s32 0, %v5367_v37  ;;  %v7461_v42 = vsub.s32 1, %v5367_v37 }
  0x14   : > { %v408_v4 = vld [vmem:[%s5205_s20] sm:$0xff]  ;;  %v409_v5 = vld [vmem:[%s5205_s20 + $0x8] sm:$0xff]  ;;  %v411_v6 = vld [vmem:[%s5205_s20 + $0x18] sm:$0xff]  ;;  %377 = vst.msk [vmem:[#allocation2 + $0x30] sm:$0x1] %vm375_vm2, %v5111_v2  ;;  %v7460_v46 = vsub.s32 2, %v5367_v37 }
  0x15   : > { %873 = vperm.xlu0 %5022, %v408_v4   ;;  %677 = vperm.xlu1 %5020, %v408_v4   ;;  %v5212_v7 = vld [vmem:[%s5205_s20 + $0x28] sm:$0xff]  ;;  %v5217_v8 = vld [vmem:[%s5205_s20 + $0x38] sm:$0xff]  ;;  %v410_v10 = vld [vmem:[%s5205_s20 + $0x10] sm:$0xff]  ;;  %378 = vst.msk [vmem:[#allocation2 + $0x48] sm:$0x1] %vm375_vm2, %v5111_v2  ;;  %v5386_v45 = vrot.slane %v440_v41, %v7462_v39  ;;  %v5395_v48 = vrot.slane %v440_v41, %v7461_v42  ;;  %s5116_s12 = smov 48  }
  0x16   : > { %v5220_v9 = vld [vmem:[%s5205_s20 + $0x48] sm:$0xff]  ;;  %v412_v11 = vld [vmem:[%s5205_s20 + $0x20] sm:$0xff]  ;;  %379 = vst.msk [vmem:[#allocation2 + $0x60] sm:$0x1] %vm375_vm2, %v5111_v2  ;;  %380 = vst.msk [vmem:[#allocation2 + $0x78] sm:$0x1] %vm375_vm2, %v5111_v2  ;;  %v5403_v51 = vrot.slane %v440_v41, %v7460_v46 }
  0x17   : > { %381 = vst.msk [vmem:[#allocation2 + $0x90] sm:$0x1] %vm375_vm2, %v5111_v2  ;;  %382 = vst.msk [vmem:[#allocation2 + $0xa8] sm:$0x1] %vm375_vm2, %v5111_v2  ;;  %v414_v12 = vld [vmem:[%s5205_s20 + $0x30] sm:$0xff]  ;;  %v416_v13 = vld [vmem:[%s5205_s20 + $0x40] sm:$0xff] }
  0x18   : > { %383 = vst.msk [vmem:[#allocation2 + $0xc0] sm:$0x1] %vm375_vm2, %v5111_v2  ;;  %384 = vst.msk [vmem:[#allocation2 + $0xd8] sm:$0x1] %vm375_vm2, %v5111_v2  ;;  %v418_v14 = vld [vmem:[%s5205_s20 + $0x50] sm:$0xff]  ;;  %v420_v15 = vld [vmem:[%s5205_s20 + $0x60] sm:$0xff] }
  0x19   : > { %5025 = vset.pattern.permute.xlu0 %v7463_v1  ;;  %681 = vperm.xlu1 %5020, %v409_v5   ;;  %385 = vst.msk [vmem:[#allocation2 + $0xf0] sm:$0x1] %vm375_vm2, %v5111_v2  ;;  %386 = vst.msk [vmem:[#allocation2 + $0x108] sm:$0x1] %vm375_vm2, %v5111_v2  ;;  %v422_v16 = vld [vmem:[%s5205_s20 + $0x70] sm:$0xff]  ;;  %v5307_v17 = vld [vmem:[%s5205_s20 + $0x80] sm:$0xff] }
  0x1a   : > { %689 = vperm.xlu0 %5025, %v411_v6   ;;  %387 = vst.msk [vmem:[#allocation2 + $0x120] sm:$0x1] %vm375_vm2, %v5111_v2  ;;  %388 = vst.msk [vmem:[#allocation2 + $0x138] sm:$0x1] %vm375_vm2, %v5111_v2  ;;  %v5312_v18 = vld [vmem:[%s5205_s20 + $0x90] sm:$0xff]  ;;  %v5317_v19 = vld [vmem:[%s5205_s20 + $0xa0] sm:$0xff] }
  0x1b   : > { %389 = vst.msk [vmem:[#allocation2 + $0x150] sm:$0x1] %vm375_vm2, %v5111_v2  ;;  %390 = vst.msk [vmem:[#allocation2 + $0x168] sm:$0x1] %vm375_vm2, %v5111_v2  ;;  %v1164_v20 = vld [vmem:[#allocation2 + $0x1] sm:$0xff]  ;;  %v1165_v21 = vld [vmem:[#allocation2 + $0x9] sm:$0xff] }
  0x1c   : > { %391 = vst.msk [vmem:[#allocation2 + $0x180] sm:$0x1] %vm375_vm2, %v5111_v2  ;;  %392 = vst.msk [vmem:[#allocation2 + $0x29] sm:$0x1] %vm375_vm2, %v5111_v2  ;;  %v1196_v22 = vpack.c.bf16 %v1165_v21, %v1164_v20  ;;  %v5325_v23 = vld [vmem:[%s5205_s20 + $0xb0] sm:$0xff]  ;;  %v2580_v24 = vld [vmem:[#allocation2] sm:$0xff] }
  0x1d   : > { %5021 = vset.pattern.permute.xlu1 %v7465_v3  ;;  %393 = vst.msk [vmem:[#allocation2 + $0x41] sm:$0x1] %vm375_vm2, %v5111_v2  ;;  %395 = vst.msk [vmem:[#allocation2 + $0x71] sm:$0x1] %vm375_vm2, %v5111_v2  ;;  %v2581_v25 = vld [vmem:[#allocation2 + $0x8] sm:$0xff]  ;;  %v5333_v27 = vld [vmem:[%s5205_s20 + $0x58] sm:$0xff] }
  0x1e   : > { %697 = vperm.xlu0 %5025, %v5212_v7   ;;  %459 = vperm.xlu1 %5021, %v411_v6   ;;  %396 = vst.msk [vmem:[#allocation2 + $0x89] sm:$0x1] %vm375_vm2, %v5111_v2  ;;  %397 = vst.msk [vmem:[#allocation2 + $0xa1] sm:$0x1] %vm375_vm2, %v5111_v2  ;;  %v1132_v26 = vpack.c.bf16 %v2581_v25, %v2580_v24  ;;  %v5341_v28 = vld [vmem:[%s5205_s20 + $0x68] sm:$0xff]  ;;  %v5349_v29 = vld [vmem:[%s5205_s20 + $0x78] sm:$0xff] }
  0x1f   : > { %398 = vst.msk [vmem:[#allocation2 + $0xb9] sm:$0x1] %vm375_vm2, %v5111_v2  ;;  %399 = vst.msk [vmem:[#allocation2 + $0xd1] sm:$0x1] %vm375_vm2, %v5111_v2  ;;  %v5382_v44 = vld [vmem:[%s5205_s20 + $0x88] sm:$0xff]  ;;  %s5117_s18 = smov 80  }
  0x20   : > { %400 = vst.msk [vmem:[#allocation2 + $0xe9] sm:$0x1] %vm375_vm2, %v5111_v2  ;;  %401 = vst.msk [vmem:[#allocation2 + $0x101] sm:$0x1] %vm375_vm2, %v5111_v2  ;;  %s5118_s23 = smov 96   ;;  %s5119_s30 = smov 112  }
  0x21   : > { %402 = vst.msk [vmem:[#allocation2 + $0x119] sm:$0x1] %vm375_vm2, %v5111_v2  ;;  %403 = vst.msk [vmem:[#allocation2 + $0x131] sm:$0x1] %vm375_vm2, %v5111_v2  ;;  %vm1663_vm6 = vcmask 654848   ;;  %vm1792_vm7 = vcmask 786048  }
  0x22   : > { %705 = vperm.xlu0 %5025, %v5217_v8   ;;  %5023 = vset.pattern.permute.xlu1 %v7468_v0  ;;  %404 = vst.msk [vmem:[#allocation2 + $0x149] sm:$0x1] %vm375_vm2, %v5111_v2  ;;  %405 = vst.msk [vmem:[#allocation2 + $0x161] sm:$0x1] %vm375_vm2, %v5111_v2  ;;  %vm1922_vm8 = vcmask 917248   ;;  %vm2051_vm9 = vcmask 1048448  }
  0x23   : > { %877 = vperm.xlu1 %5023, %v409_v5   ;;  %406 = vst.msk [vmem:[#allocation2 + $0x179] sm:$0x1] %vm375_vm2, %v5111_v2  ;;  %407 = vst.msk [vmem:[#allocation2 + $0x191] sm:$0x1] %vm375_vm2, %v5111_v2 }
  0x24   : > { %1148 = vst.msk [vmem:[#allocation3] sm:$0xff] %vm365_vm0, %v1132_v26 }
  0x26   : > { %713 = vperm.xlu0 %5025, %v5220_v9  }
  0x27   : > { %5024 = vset.pattern.permute.xlu1 %v7463_v1 }
  0x28   : > { %685 = vperm.xlu1 %5024, %v410_v10  }
  0x2a   : > { %5035 = vset.pattern.permute.xlu0 %v7465_v3 }
  0x2b   : > { %444 = vperm.xlu0 %5035, %v408_v4  }
  0x2c   : > { %5026 = vset.pattern.permute.xlu1 %v7468_v0 }
  0x2d   : > { %881 = vperm.xlu1 %5026, %v410_v10  }
  0x2f   : > { %449 = vperm.xlu0 %5035, %v409_v5  }
  0x31   : > { %885 = vperm.xlu1 %5026, %v411_v6  }
  0x33   : > { %454 = vperm.xlu0 %5035, %v410_v10  }
  0x35   : > { %5027 = vset.pattern.permute.xlu1 %v7465_v3 }
  0x36   : > { %469 = vperm.xlu1 %5027, %v5212_v7  }
  0x37   : > { %464 = vperm.xlu0 %5035, %v412_v11  }
  0x3a   : > { %5028 = vset.pattern.permute.xlu1 %v7463_v1 }
  0x3b   : > { %474 = vperm.xlu0 %5035, %v414_v12   ;;  %693 = vperm.xlu1 %5028, %v412_v11  }
  0x3f   : > { %484 = vperm.xlu0 %5035, %v416_v13   ;;  %5029 = vset.pattern.permute.xlu1 %v7468_v0 }
  0x40   : > { %889 = vperm.xlu1 %5029, %v412_v11  }
  0x43   : > { %494 = vperm.xlu0 %5035, %v418_v14  }
  0x44   : > { %893 = vperm.xlu1 %5029, %v5212_v7  }
  0x47   : > { %504 = vperm.xlu0 %5035, %v420_v15  }
  0x48   : > { %5030 = vset.pattern.permute.xlu1 %v7465_v3 }
  0x49   : > { %479 = vperm.xlu1 %5030, %v5217_v8  }
  0x4b   : > { %514 = vperm.xlu0 %5035, %v422_v16  }
  0x4d   : > { %5031 = vset.pattern.permute.xlu1 %v7463_v1 }
  0x4e   : > { %701 = vperm.xlu1 %5031, %v414_v12  }
  0x4f   : > { %524 = vperm.xlu0 %5035, %v5307_v17  }
  0x52   : > { %5032 = vset.pattern.permute.xlu1 %v7468_v0 }
  0x53   : > { %534 = vperm.xlu0 %5035, %v5312_v18   ;;  %897 = vperm.xlu1 %5032, %v414_v12  }
  0x57   : > { %544 = vperm.xlu0 %5035, %v5317_v19   ;;  %901 = vperm.xlu1 %5032, %v5217_v8  }
  0x5b   : > { %1228 = vrot.lane.b32.xlu0 %v1196_v22, %s5113_s21  ;;  %5033 = vset.pattern.permute.xlu1 %v7465_v3  ;;  %v5457_v22 = vld [vmem:[%s5205_s20 + $0x98] sm:$0xff] }
  0x5c   : > { %489 = vperm.xlu1 %5033, %v5220_v9  }
  0x5f   : > { %554 = vperm.xlu0 %5035, %v5325_v23  }
  0x60   : > { %5034 = vset.pattern.permute.xlu1 %v7463_v1 }
  0x61   : > { %709 = vperm.xlu1 %5034, %v416_v13  }
  0x65   : > { %5036 = vset.pattern.permute.xlu1 %v7468_v0 }
  0x66   : > { %905 = vperm.xlu1 %5036, %v416_v13  }
  0x6a   : > { %909 = vperm.xlu1 %5036, %v5220_v9  }
  0x6e   : > { %5037 = vset.pattern.permute.xlu1 %v7465_v3 }
  0x6f   : > { %499 = vperm.xlu1 %5037, %v5333_v27  }
  0x73   : > { %5038 = vset.pattern.permute.xlu1 %v7463_v1 }
  0x74   : > { %717 = vperm.xlu1 %5038, %v418_v14  }
  0x78   : > { %5039 = vset.pattern.permute.xlu1 %v7468_v0 }
  0x79   : > { %913 = vperm.xlu1 %5039, %v418_v14  }
  0x7d   : > { %917 = vperm.xlu1 %5039, %v5333_v27  }
  0x81   : > { %5040 = vset.pattern.permute.xlu1 %v7465_v3 }
  0x82   : > { %509 = vperm.xlu1 %5040, %v5341_v28  }
  0x86   : > { %5041 = vset.pattern.permute.xlu1 %v7463_v1 }
  0x87   : > { %725 = vperm.xlu1 %5041, %v420_v15  }
  0x8b   : > { %5042 = vset.pattern.permute.xlu1 %v7468_v0 }
  0x8c   : > { %921 = vperm.xlu1 %5042, %v420_v15  }
  0x90   : > { %925 = vperm.xlu1 %5042, %v5341_v28  }
  0x94   : > { %v5351_v30 = vpop.permute.xlu0 %873  ;;  %5043 = vset.pattern.permute.xlu1 %v7465_v3  ;;  %v5354_v31 = vpop.permute.xlu1 %677 }
  0x95   : > { %519 = vperm.xlu1 %5043, %v5349_v29   ;;  %v808_v55 = vmul.f32 %v5395_v48, %v5354_v31  ;;  %v1004_v59 = vmul.f32 %v5403_v51, %v5351_v30 }
  0x98   : > { %v5357_v32 = vpop.permute.xlu1 %681 }
  0x99   : > { %v5359_v33 = vpop.permute.xlu0 %689  ;;  %5044 = vset.pattern.permute.xlu1 %v7463_v1  ;;  %v809_v2 = vmul.f32 %v5395_v48, %v5357_v32 }
  0x9a   : > { %733 = vperm.xlu1 %5044, %v422_v16   ;;  %v811_v62 = vmul.f32 %v5395_v48, %v5359_v33 }
  0x9d   : > { %v5362_v35 = vpop.permute.xlu0 %697  ;;  %v5364_v36 = vpop.permute.xlu1 %459 }
  0x9e   : > { %5045 = vset.pattern.permute.xlu1 %v7468_v0  ;;  %v609_v49 = vmul.f32 %v5386_v45, %v5364_v36 }
  0x9f   : > { %929 = vperm.xlu1 %5045, %v422_v16  }
  0xa0   : > { %v647_v57 = vadd.f32 %v5408_v52, %v609_v49 }
  0xa1   : > { %v5369_v38 = vpop.permute.xlu0 %705 }
  0xa2   : > { %7537 = vst [vmem:[#allocation6_spill] sm:$0xff] %v5369_v38  ;;  %v5372_v40 = vpop.permute.xlu1 %877  ;;  %v843_v6 = vadd.f32 %v811_v62, %v647_v57 }
  0xa3   : > { %933 = vperm.xlu1 %5045, %v5349_v29   ;;  %v1005_v9 = vmul.f32 %v5403_v51, %v5372_v40 }
  0xa5   : > { %v5379_v43 = vpop.permute.xlu0 %713 }
  0xa6   : > { %7538 = vst [vmem:[#allocation7_spill] sm:$0xff] %v5379_v43 }
  0xa7   : > { %5046 = vset.pattern.permute.xlu1 %v7465_v3  ;;  %v5390_v47 = vpop.permute.xlu1 %685 }
  0xa8   : > { %529 = vperm.xlu1 %5046, %v5382_v44   ;;  %v810_v13 = vmul.f32 %v5395_v48, %v5390_v47 }
  0xaa   : > { %v5399_v50 = vpop.permute.xlu0 %444 }
  0xab   : > { %v606_v53 = vmul.f32 %v5386_v45, %v5399_v50 }
  0xac   : > { %5047 = vset.pattern.permute.xlu1 %v7463_v1  ;;  %v5413_v54 = vpop.permute.xlu1 %881 }
  0xad   : > { %v644_v56 = vadd.f32 %v5408_v52, %v606_v53  ;;  %741 = vperm.xlu1 %5047, %v5307_v17   ;;  %v1006_v20 = vmul.f32 %v5403_v51, %v5413_v54 }
  0xae   : > { %v5420_v58 = vpop.permute.xlu0 %449 }
  0xaf   : > { %v840_v60 = vadd.f32 %v808_v55, %v644_v56  ;;  %v607_v61 = vmul.f32 %v5386_v45, %v5420_v58 }
  0xb0   : > { %v5428_v63 = vpop.permute.xlu1 %885 }
  0xb1   : > { %v1036_v4 = vadd.f32 %v1004_v59, %v840_v60  ;;  %v645_v5 = vadd.f32 %v5408_v52, %v607_v61  ;;  %5048 = vset.pattern.permute.xlu1 %v7468_v0  ;;  %v1007_v7 = vmul.f32 %v5403_v51, %v5428_v63 }
  0xb2   : > { %v5436_v8 = vpop.permute.xlu0 %454  ;;  %937 = vperm.xlu1 %5048, %v5307_v17  }
  0xb3   : > { %1068 = vst.msk [vmem:[#allocation2 + $0x19] sm:$0xff] %vm365_vm0, %v1036_v4  ;;  %v841_v10 = vadd.f32 %v809_v2, %v645_v5  ;;  %v608_v11 = vmul.f32 %v5386_v45, %v5436_v8  ;;  %v1039_v12 = vadd.f32 %v1007_v7, %v843_v6  ;;  %v813_v7 = vmul.f32 %v5395_v48, %v5362_v35 }
  0xb5   : > { %v1037_v14 = vadd.f32 %v1005_v9, %v841_v10  ;;  %v646_v15 = vadd.f32 %v5408_v52, %v608_v11  ;;  %v5447_v16 = vpop.permute.xlu1 %469  ;;  %1071 = vst.msk [vmem:[#allocation2 + $0x39] sm:$0xff] %vm365_vm0, %v1039_v12 }
  0xb6   : > { %v5450_v17 = vpop.permute.xlu0 %464  ;;  %941 = vperm.xlu1 %5048, %v5382_v44   ;;  %v611_v41 = vmul.f32 %v5386_v45, %v5447_v16 }
  0xb7   : > { %1069 = vst.msk [vmem:[#allocation2 + $0x21] sm:$0xff] %vm365_vm0, %v1037_v14  ;;  %v842_v21 = vadd.f32 %v810_v13, %v646_v15  ;;  %v610_v25 = vmul.f32 %v5386_v45, %v5450_v17 }
  0xb8   : > { %v649_v4 = vadd.f32 %v5408_v52, %v611_v41 }
  0xb9   : > { %v1038_v24 = vadd.f32 %v1006_v20, %v842_v21  ;;  %v648_v55 = vadd.f32 %v5408_v52, %v610_v25 }
  0xba   : > { %v5461_v26 = vpop.permute.xlu0 %474  ;;  %5049 = vset.pattern.permute.xlu1 %v7465_v3  ;;  %v5464_v34 = vpop.permute.xlu1 %693  ;;  %v1551_v53 = vld [vmem:[#allocation2 + $0x19] sm:$0xff]  ;;  %v845_v21 = vadd.f32 %v813_v7, %v649_v4 }
  0xbb   : > { %7539 = vst [vmem:[#allocation8_spill] sm:$0xff] %v5461_v26  ;;  %1070 = vst.msk [vmem:[#allocation2 + $0x31] sm:$0xff] %vm365_vm0, %v1038_v24  ;;  %539 = vperm.xlu1 %5049, %v5457_v22   ;;  %v812_v49 = vmul.f32 %v5395_v48, %v5464_v34  ;;  %v1422_v59 = vld [vmem:[#allocation2 + $0x18] sm:$0xff] }
  0xbc   : > { %v2069_v12 = vld [vmem:[#allocation2 + $0x3a] sm:$0xff] }
  0xbd   : > { %v844_v5 = vadd.f32 %v812_v49, %v648_v55 }
  0xbe   : > { %v5473_v56 = vpop.permute.xlu0 %484  ;;  %v1552_v57 = vld [vmem:[#allocation2 + $0x21] sm:$0xff] }
  0xbf   : > { %7540 = vst [vmem:[#allocation9_spill] sm:$0xff] %v5473_v56  ;;  %v1423_v60 = vld [vmem:[#allocation2 + $0x20] sm:$0xff]  ;;  %5050 = vset.pattern.permute.xlu1 %v7463_v1  ;;  %v5476_v61 = vpop.permute.xlu1 %889  ;;  %v1583_v62 = vpack.c.bf16 %v1552_v57, %v1551_v53 }
  0xc0   : > { %v5478_v2 = vpack.c.bf16 %v1423_v60, %v1422_v59  ;;  %v1008_v6 = vmul.f32 %v5403_v51, %v5476_v61  ;;  %749 = vperm.xlu1 %5050, %v5312_v18   ;;  %v5510_v53 = vld [vmem:[%s5205_s20 + $0xc0] sm:$0xff]  ;;  %v5520_v60 = vld [vmem:[%s5205_s20 + $0xa8] sm:$0xff] }
  0xc1   : > { %1615 = vrot.lane.b32.xlu0 %v1583_v62, %s5114_s26  ;;  %v1554_v59 = vld [vmem:[#allocation2 + $0x39] sm:$0xff] }
  0xc2   : > { %1149 = vst.msk [vmem:[#allocation3 + $0x10] sm:$0xff] %vm365_vm0, %v5478_v2  ;;  %v1040_v9 = vadd.f32 %v1008_v6, %v844_v5  ;;  %v5489_v10 = vpop.permute.xlu0 %494  ;;  %v2068_v11 = vld [vmem:[#allocation2 + $0x32] sm:$0xff]  ;;  %v612_v5 = vmul.f32 %v5386_v45, %v5461_v26 }
  0xc3   : > { %7541 = vst [vmem:[#allocation10_spill] sm:$0xff] %v5489_v10  ;;  %v1810_v13 = vld [vmem:[#allocation2 + $0x30] sm:$0xff]  ;;  %v5491_v14 = vpop.permute.xlu1 %893  ;;  %v5493_v15 = vpack.c.bf16 %v2069_v12, %v2068_v11  ;;  %v1811_v20 = vld [vmem:[#allocation2 + $0x38] sm:$0xff] }
  0xc4   : > { %7542 = vst [vmem:[#allocation11_spill] sm:$0xff] %v5491_v14  ;;  %1072 = vst.msk [vmem:[#allocation2 + $0x49] sm:$0xff] %vm365_vm0, %v1040_v9  ;;  %v1009_v24 = vmul.f32 %v5403_v51, %v5491_v14  ;;  %5051 = vset.pattern.permute.xlu1 %v7468_v0  ;;  %v5499_v25 = vpack.c.bf16 %v1811_v20, %v1810_v13 }
  0xc5   : > { %945 = vperm.xlu1 %5051, %v5312_v18   ;;  %1230 = vrot.lane.b32.xlu0 %v1583_v62, %s5113_s21  ;;  %2116 = vst.msk [vmem:[#allocation3 + $0x8] sm:$0xff] %vm365_vm0, %v5493_v15  ;;  %v1553_v18 = vld [vmem:[#allocation2 + $0x31] sm:$0xff] }
  0xc6   : > { %v1041_v41 = vadd.f32 %v1009_v24, %v845_v21  ;;  %v5505_v49 = vpop.permute.xlu0 %504  ;;  %1150 = vst.msk [vmem:[#allocation3 + $0x20] sm:$0xff] %vm365_vm0, %v5499_v25  ;;  %v5522_v4 = vpack.c.bf16 %v1554_v59, %v1553_v18 }
  0xc7   : > { %7543 = vst [vmem:[#allocation12_spill] sm:$0xff] %v5505_v49 }
  0xc8   : > { %1073 = vst.msk [vmem:[#allocation2 + $0x51] sm:$0xff] %vm365_vm0, %v1041_v41  ;;  %v5513_v55 = vpop.permute.xlu1 %479  ;;  %v650_v41 = vadd.f32 %v5408_v52, %v612_v5 }
  0xc9   : > { %7544 = vst [vmem:[#allocation13_spill] sm:$0xff] %v5513_v55  ;;  %949 = vperm.xlu1 %5051, %v5457_v22   ;;  %564 = vperm.xlu0 %5035, %v5510_v53   ;;  %v613_v12 = vmul.f32 %v5386_v45, %v5513_v55 }
  0xca   : > { %v5517_v57 = vpop.permute.xlu0 %514 }
  0xcb   : > { %7545 = vst [vmem:[#allocation14_spill] sm:$0xff] %v5517_v57  ;;  %v1812_v20 = vld [vmem:[#allocation2 + $0x48] sm:$0xff]  ;;  %v651_v46 = vadd.f32 %v5408_v52, %v613_v12 }
  0xcc   : > { %v2133_v62 = vld [vmem:[#allocation3 + $0x8] sm:$0xff] }
  0xcd   : > { %5052 = vset.pattern.permute.xlu1 %v7465_v3  ;;  %4956 = vmatprep.mubr.msk.bf16.mxu0 %vm365_vm0, %v2133_v62  ;;  %v5528_v6 = vpop.permute.xlu1 %701  ;;  %v2761_v3 = vld [vmem:[#allocation2 + $0xa] sm:$0xff] }
  0xce   : > { %7546 = vst [vmem:[#allocation15_spill] sm:$0xff] %v5528_v6  ;;  %1617 = vrot.lane.b32.xlu0 %v5522_v4, %s5114_s26  ;;  %v5532_v7 = vpop.permute.xlu0 %524  ;;  %549 = vperm.xlu1 %5052, %v5520_v60   ;;  %v814_v13 = vmul.f32 %v5395_v48, %v5528_v6 }
  0xcf   : > { %7547 = vst [vmem:[#allocation16_spill] sm:$0xff] %v5532_v7  ;;  %v2070_v9 = vld [vmem:[#allocation2 + $0x4a] sm:$0xff]  ;;  %v2071_v11 = vld [vmem:[#allocation2 + $0x52] sm:$0xff] }
  0xd0   : > { %v1813_v21 = vld [vmem:[#allocation2 + $0x50] sm:$0xff]  ;;  %v5539_v24 = vpack.c.bf16 %v2071_v11, %v2070_v9  ;;  %v846_v9 = vadd.f32 %v814_v13, %v650_v41 }
  0xd1   : > { %v5542_v18 = vpack.c.bf16 %v1813_v21, %v1812_v20  ;;  %v5558_v11 = vld [vmem:[%s5205_s20 + $0xd0] sm:$0xff]  ;;  %v815_v20 = vmul.f32 %v5395_v48, %v5369_v38 }
  0xd2   : > { %1232 = vrot.lane.b32.xlu0 %v5522_v4, %s5113_s21  ;;  %v5546_v59 = vpop.permute.xlu0 %534  ;;  %5053 = vset.pattern.permute.xlu1 %v7463_v1  ;;  %v5549_v62 = vpop.permute.xlu1 %897  ;;  %2117 = vst.msk [vmem:[#allocation3 + $0x18] sm:$0xff] %vm365_vm0, %v5539_v24  ;;  %v1556_v42 = vld [vmem:[#allocation2 + $0x51] sm:$0xff]  ;;  %v1555_v1 = vld [vmem:[#allocation2 + $0x49] sm:$0xff] }
  0xd3   : > { %7548 = vst [vmem:[#allocation17_spill] sm:$0xff] %v5546_v59  ;;  %7549 = vst [vmem:[#allocation18_spill] sm:$0xff] %v5549_v62  ;;  %v1010_v5 = vmul.f32 %v5403_v51, %v5549_v62  ;;  %757 = vperm.xlu1 %5053, %v5317_v19   ;;  %v847_v13 = vadd.f32 %v815_v20, %v651_v46 }
  0xd4   : > { %1151 = vst.msk [vmem:[#allocation3 + $0x30] sm:$0xff] %vm365_vm0, %v5542_v18 }
  0xd5   : > { %v1042_v21 = vadd.f32 %v1010_v5, %v846_v9  ;;  %v5574_v9 = vpack.c.bf16 %v1556_v42, %v1555_v1  ;;  %v2760_v5 = vld [vmem:[#allocation2 + $0x2] sm:$0xff]  ;;  %v614_v42 = vmul.f32 %v5386_v45, %v5473_v56 }
  0xd6   : > { %574 = vperm.xlu0 %5035, %v5558_v11   ;;  %v5565_v39 = vpop.permute.xlu0 %544  ;;  %v5567_v12 = vpop.permute.xlu1 %901  ;;  %v5586_v1 = vld [vmem:[%s5205_s20 + $0xe0] sm:$0xff] }
  0xd7   : > { %7550 = vst [vmem:[#allocation19_spill] sm:$0xff] %v5565_v39  ;;  %7551 = vst [vmem:[#allocation20_spill] sm:$0xff] %v5567_v12  ;;  %v1011_v41 = vmul.f32 %v5403_v51, %v5567_v12  ;;  %5054 = vset.pattern.permute.xlu1 %v7468_v0  ;;  %v652_v55 = vadd.f32 %v5408_v52, %v614_v42 }
  0xd8   : > { %1074 = vst.msk [vmem:[#allocation2 + $0x61] sm:$0xff] %vm365_vm0, %v1042_v21  ;;  %953 = vperm.xlu1 %5054, %v5317_v19   ;;  %v1325_v19 = vpack.c.bf16 %v2761_v3, %v2760_v5  ;;  %v5598_v3 = vld [vmem:[%s5205_s20 + $0xb8] sm:$0xff] }
  0xd9   : > { %v1043_v62 = vadd.f32 %v1011_v41, %v847_v13  ;;  %v7554_v13 = vmov 0  }
  0xda   : > { %1619 = vrot.lane.b32.xlu0 %v5574_v9, %s5114_s26  ;;  %v1229_v46 = vpop.permute.xlu0 %1228 }
  0xdb   : > { %1075 = vst.msk [vmem:[#allocation2 + $0x69] sm:$0xff] %vm365_vm0, %v1043_v62  ;;  %v5580_v20 = vpop.permute.xlu1 %489  ;;  %v5072_v62 = vld [vmem:[%s7453_s4] sm:$0xff]  }
  0xdc   : > { %1277 = vst.msk [vmem:[#allocation3] sm:$0xff] %vm1276_vm3, %v1229_v46  ;;  %7552 = vst [vmem:[#allocation21_spill] sm:$0xff] %v5580_v20  ;;  %957 = vperm.xlu1 %5054, %v5520_v60   ;;  %v615_v0 = vmul.f32 %v5386_v45, %v5580_v20  ;;  %2292 = vmatpush1.bf16.msra.mxu0 %v5072_v62 }
  0xdd   : > { %2293 = vmatprep.subr.bf16.mxu0 %v7554_v13 }
  0xde   : > { %1234 = vrot.lane.b32.xlu0 %v5574_v9, %s5113_s21  ;;  %v653_v62 = vadd.f32 %v5408_v52, %v615_v0  ;;  %v5074_v0 = vld [vmem:[%s7453_s4 + $0x10] sm:$0xff]  }
  0xdf   : > { %v1557_v41 = vld [vmem:[#allocation2 + $0x61] sm:$0xff] }
  0xe0   : > { %1357 = vrot.lane.b32.xlu1 %v1325_v19, %s5115_s27  ;;  %v5591_v21 = vpop.permute.xlu1 %709  ;;  %v1814_v38 = vld [vmem:[#allocation2 + $0x60] sm:$0xff] }
  0xe1   : > { %7553 = vst [vmem:[#allocation22_spill] sm:$0xff] %v5591_v21  ;;  %5055 = vset.pattern.permute.xlu1 %v7554_v13  ;;  %v816_v56 = vmul.f32 %v5395_v48, %v5591_v21  ;;  %v5073_v21 = vld [vmem:[%s7453_s4 + $0x8] sm:$0xff]  }
  0xe2   : > { %v2072_v5 = vld [vmem:[#allocation2 + $0x62] sm:$0xff]  ;;  %v2073_v46 = vld [vmem:[#allocation2 + $0x6a] sm:$0xff]  ;;  %584 = vperm.xlu0 %5035, %v5586_v1   ;;  %2294 = vmatpush1.bf16.msra.mxu0 %v5073_v21 }
  0xe3   : > { %v1558_v19 = vld [vmem:[#allocation2 + $0x69] sm:$0xff]  ;;  %v5607_v26 = vpack.c.bf16 %v2073_v46, %v2072_v5  ;;  %2295 = vmatprep.subr.bf16.mxu0 %v7554_v13 }
  0xe4   : > { %v5605_v12 = vpack.c.bf16 %v1558_v19, %v1557_v41  ;;  %v1815_v6 = vld [vmem:[#allocation2 + $0x68] sm:$0xff]  ;;  %559 = vperm.xlu1 %5055, %v5598_v3   ;;  %v848_v41 = vadd.f32 %v816_v56, %v652_v55  ;;  %v7557_v55 = vmov 1   ;;  %v5645_v46 = vld [vmem:[%s5205_s20 + $0xf0] sm:$0xff] }
  0xe5   : > { %v5612_v20 = vpack.c.bf16 %v1815_v6, %v1814_v38  ;;  %v5617_v14 = vpop.permute.xlu1 %905  ;;  %2118 = vst.msk [vmem:[#allocation3 + $0x28] sm:$0xff] %vm365_vm0, %v5607_v26  ;;  %v817_v38 = vmul.f32 %v5395_v48, %v5379_v43  ;;  %v1681_v19 = vld [vmem:[#allocation2 + $0x22] sm:$0xff] }
  0xe6   : > { %7555 = vst [vmem:[#allocation23_spill] sm:$0xff] %v5617_v14  ;;  %1621 = vrot.lane.b32.xlu0 %v5605_v12, %s5114_s26  ;;  %v1012_v42 = vmul.f32 %v5403_v51, %v5617_v14  ;;  %2296 = vmatpush1.bf16.msra.mxu0 %v5074_v0  ;;  %v7558_v0 = vmov 2  }
  0xe7   : > { %1152 = vst.msk [vmem:[#allocation3 + $0x40] sm:$0xff] %vm365_vm0, %v5612_v20  ;;  %v849_v21 = vadd.f32 %v817_v38, %v653_v62  ;;  %2297 = vmatprep.subr.bf16.mxu0 %v7554_v13 }
  0xe8   : > { %v1044_v6 = vadd.f32 %v1012_v42, %v848_v41  ;;  %1486 = vrot.lane.b32.xlu1 %v5478_v2, %s5116_s12  ;;  %v1680_v2 = vld [vmem:[#allocation2 + $0x1a] sm:$0xff] }
  0xe9   : > { %v5636_v56 = vpop.permute.xlu1 %909  ;;  %5056 = vset.pattern.permute.xlu1 %v7557_v55  ;;  %v5075_v42 = vld [vmem:[%s7453_s4 + $0x18] sm:$0xff]   ;;  %v1712_v38 = vpack.c.bf16 %v1681_v19, %v1680_v2  ;;  %v5077_v2 = vld [vmem:[%s7453_s4 + $0x28] sm:$0xff]  }
  0xea   : > { %7556 = vst [vmem:[#allocation24_spill] sm:$0xff] %v5636_v56  ;;  %1076 = vst.msk [vmem:[#allocation2 + $0x79] sm:$0xff] %vm365_vm0, %v1044_v6  ;;  %1236 = vrot.lane.b32.xlu0 %v5605_v12, %s5113_s21  ;;  %v1013_v5 = vmul.f32 %v5403_v51, %v5636_v56  ;;  %2298 = vmatpush1.bf16.msra.mxu0 %v5075_v42  ;;  %v5076_v6 = vld [vmem:[%s7453_s4 + $0x20] sm:$0xff]  }
  0xeb   : > { %2299 = vmatprep.subr.bf16.mxu0 %v7554_v13 }
  0xec   : > { %v1045_v41 = vadd.f32 %v1013_v5, %v849_v21  ;;  %765 = vperm.xlu1 %5056, %v5325_v23   ;;  %v616_v21 = vmul.f32 %v5386_v45, %v5489_v10 }
  0xee   : > { %1077 = vst.msk [vmem:[#allocation2 + $0x81] sm:$0xff] %vm365_vm0, %v1045_v41  ;;  %594 = vperm.xlu0 %5035, %v5645_v46   ;;  %v5654_v62 = vpop.permute.xlu1 %499  ;;  %2300 = vmatpush1.bf16.msra.mxu0 %v5076_v6  ;;  %v654_v56 = vadd.f32 %v5408_v52, %v616_v21 }
  0xef   : > { %2301 = vmatprep.subr.bf16.mxu0 %v7554_v13 }
  0xf0   : > { %1744 = vrot.lane.b32.xlu1 %v1712_v38, %s5117_s18 }
  0xf1   : > { %5057 = vset.pattern.permute.xlu1 %v7558_v0  ;;  %v1816_v6 = vld [vmem:[#allocation2 + $0x78] sm:$0xff] }
  0xf2   : > { %5067 = vset.pattern.permute.xlu0 %v7557_v55  ;;  %2302 = vmatpush1.bf16.msra.mxu0 %v5077_v2 }
  0xf3   : > { %721 = vperm.xlu0 %5067, %v5333_v27   ;;  %v5666_v5 = vpop.permute.xlu1 %717  ;;  %2303 = vmatprep.subr.bf16.mxu0 %v7554_v13 }
  0xf4   : > { %7559 = vst [vmem:[#allocation25_spill] sm:$0xff] %v5666_v5  ;;  %1874 = vrot.lane.b32.xlu1 %v5499_v25, %s5118_s23  ;;  %v818_v42 = vmul.f32 %v5395_v48, %v5666_v5  ;;  %v5078_v5 = vld [vmem:[%s7453_s4 + $0x30] sm:$0xff]  }
  0xf5   : > { %v2074_v19 = vld [vmem:[#allocation2 + $0x7a] sm:$0xff]  ;;  %v2075_v41 = vld [vmem:[#allocation2 + $0x82] sm:$0xff] }
  0xf6   : > { %v1817_v10 = vld [vmem:[#allocation2 + $0x80] sm:$0xff]  ;;  %v5676_v27 = vpack.c.bf16 %v2075_v41, %v2074_v19  ;;  %v850_v2 = vadd.f32 %v818_v42, %v654_v56  ;;  %2304 = vmatpush1.bf16.msra.mxu0 %v5078_v5  ;;  %v5079_v56 = vld [vmem:[%s7453_s4 + $0x38] sm:$0xff]   ;;  %v433_v5 = vld [vmem:[%s5205_s20 + $0xc8] sm:$0xff]  ;;  %v618_v19 = vmul.f32 %v5386_v45, %v5505_v49 }
  0xf7   : > { %729 = vperm.xlu0 %5067, %v5341_v28   ;;  %v5680_v14 = vpack.c.bf16 %v1817_v10, %v1816_v6  ;;  %2305 = vmatprep.subr.bf16.mxu0 %v7554_v13 }
  0xf8   : > { %965 = vperm.xlu1 %5057, %v5598_v3   ;;  %v5684_v43 = vpop.permute.xlu1 %913  ;;  %2119 = vst.msk [vmem:[#allocation3 + $0x38] sm:$0xff] %vm365_vm0, %v5676_v27 }
  0xf9   : > { %7560 = vst [vmem:[#allocation26_spill] sm:$0xff] %v5684_v43  ;;  %v1014_v21 = vmul.f32 %v5403_v51, %v5684_v43  ;;  %1153 = vst.msk [vmem:[#allocation3 + $0x50] sm:$0xff] %vm365_vm0, %v5680_v14 }
  0xfa   : > { %2306 = vmatpush1.bf16.msra.mxu0 %v5079_v56  ;;  %v1559_v56 = vld [vmem:[#allocation2 + $0x79] sm:$0xff] }
  0xfb   : > { %v1046_v28 = vadd.f32 %v1014_v21, %v850_v2  ;;  %737 = vperm.xlu0 %5067, %v5349_v29   ;;  %2307 = vmatprep.subr.bf16.mxu0 %v7554_v13  ;;  %v5080_v29 = vld [vmem:[%s7453_s4 + $0x40] sm:$0xff]   ;;  %v5745_v21 = vld [vmem:[%s5205_s20 + $0xe8] sm:$0xff] }
  0xfc   : > { %2003 = vrot.lane.b32.xlu1 %v5522_v4, %s5119_s30  ;;  %v5699_v10 = vpop.permute.xlu1 %917 }
  0xfd   : > { %7561 = vst [vmem:[#allocation27_spill] sm:$0xff] %v5699_v10  ;;  %1078 = vst.msk [vmem:[#allocation2 + $0x91] sm:$0xff] %vm365_vm0, %v1046_v28  ;;  %5058 = vset.pattern.permute.xlu1 %v7554_v13  ;;  %v1560_v28 = vld [vmem:[#allocation2 + $0x81] sm:$0xff] }
  0xfe   : > { %2308 = vmatpush1.bf16.msra.mxu0 %v5080_v29  ;;  %v620_v29 = vmul.f32 %v5386_v45, %v5517_v57 }
  0xff   : > { %745 = vperm.xlu0 %5067, %v5382_v44  }
 0x100   : > { %1359 = vrot.lane.b32.xlu1 %v1712_v38, %s5115_s27  ;;  %v656_v38 = vadd.f32 %v5408_v52, %v618_v19 }
 0x101   : > { %v5712_v4 = vpop.permute.xlu1 %509 }
 0x102   : > { %7562 = vst [vmem:[#allocation28_spill] sm:$0xff] %v5712_v4 }
 0x103   : > { %753 = vperm.xlu0 %5067, %v5457_v22  }
 0x104   : > { %569 = vperm.xlu1 %5058, %v433_v5  }
 0x106   : > { %v5718_v41 = vpop.permute.xlu1 %725 }
 0x107   : > { %7563 = vst [vmem:[#allocation29_spill] sm:$0xff] %v5718_v41  ;;  %761 = vperm.xlu0 %5067, %v5520_v60   ;;  %v820_v44 = vmul.f32 %v5395_v48, %v5718_v41 }
 0x108   : > { %1488 = vrot.lane.b32.xlu1 %v5499_v25, %s5116_s12  ;;  %v435_v25 = vld [vmem:[%s5205_s20 + $0xd8] sm:$0xff] }
 0x109   : > { %5059 = vset.pattern.permute.xlu1 %v7557_v55  ;;  %v852_v42 = vadd.f32 %v820_v44, %v656_v38  ;;  %v5752_v44 = vpack.c.bf16 %v1560_v28, %v1559_v56 }
 0x10b   : > { %769 = vperm.xlu0 %5067, %v5598_v3   ;;  %v5728_v22 = vpop.permute.xlu1 %921 }
 0x10c   : > { %7564 = vst [vmem:[#allocation30_spill] sm:$0xff] %v5728_v22  ;;  %v1016_v6 = vmul.f32 %v5403_v51, %v5728_v22  ;;  %773 = vperm.xlu1 %5059, %v5510_v53  }
 0x10e   : > { %v1048_v60 = vadd.f32 %v1016_v6, %v852_v42  ;;  %v5761_v42 = vld [vmem:[%s5205_s20 + $0xf8] sm:$0xff] }
 0x10f   : > { %777 = vperm.xlu0 %5067, %v433_v5   ;;  %v5733_v2 = vpop.permute.xlu1 %925 }
 0x110   : > { %7565 = vst [vmem:[#allocation31_spill] sm:$0xff] %v5733_v2  ;;  %1080 = vst.msk [vmem:[#allocation2 + $0xa9] sm:$0xff] %vm365_vm0, %v1048_v60  ;;  %1746 = vrot.lane.b32.xlu1 %v5493_v15, %s5117_s18 }
 0x111   : > { %5060 = vset.pattern.permute.xlu1 %v7558_v0 }
 0x113   : > { %785 = vperm.xlu0 %5067, %v435_v25  }
 0x114   : > { %1876 = vrot.lane.b32.xlu1 %v5542_v18, %s5118_s23  ;;  %v5742_v3 = vpop.permute.xlu1 %519 }
 0x115   : > { %7566 = vst [vmem:[#allocation32_spill] sm:$0xff] %v5742_v3 }
 0x117   : > { %793 = vperm.xlu0 %5067, %v5745_v21  }
 0x118   : > { %973 = vperm.xlu1 %5060, %v433_v5   ;;  %v658_v5 = vadd.f32 %v5408_v52, %v620_v29 }
 0x119   : > { %v5750_v19 = vpop.permute.xlu1 %733 }
 0x11a   : > { %7567 = vst [vmem:[#allocation33_spill] sm:$0xff] %v5750_v19  ;;  %v822_v38 = vmul.f32 %v5395_v48, %v5750_v19 }
 0x11b   : > { %1623 = vrot.lane.b32.xlu0 %v5752_v44, %s5114_s26 }
 0x11c   : > { %2005 = vrot.lane.b32.xlu1 %v5574_v9, %s5119_s30  ;;  %v854_v60 = vadd.f32 %v822_v38, %v658_v5  ;;  %v5791_v38 = vpop.permute.xlu0 %554 }
 0x11d   : > { %5061 = vset.pattern.permute.xlu1 %v7554_v13  ;;  %7572 = vst [vmem:[#allocation38_spill] sm:$0xff] %v5791_v38 }
 0x11e   : > { %v5765_v6 = vpop.permute.xlu1 %929 }
 0x11f   : > { %7568 = vst [vmem:[#allocation34_spill] sm:$0xff] %v5765_v6  ;;  %801 = vperm.xlu0 %5067, %v5761_v42   ;;  %v1018_v28 = vmul.f32 %v5403_v51, %v5765_v6 }
 0x120   : > { %1361 = vrot.lane.b32.xlu1 %v5493_v15, %s5115_s27  ;;  %v622_v15 = vmul.f32 %v5386_v45, %v5532_v7 }
 0x121   : > { %v1050_v56 = vadd.f32 %v1018_v28, %v854_v60 }
 0x122   : > { %v5772_v19 = vpop.permute.xlu1 %933 }
 0x123   : > { %7569 = vst [vmem:[#allocation35_spill] sm:$0xff] %v5772_v19  ;;  %1082 = vst.msk [vmem:[#allocation2 + $0xc1] sm:$0xff] %vm365_vm0, %v1050_v56  ;;  %5070 = vset.pattern.permute.xlu0 %v7558_v0 }
 0x124   : > { %961 = vperm.xlu0 %5070, %v5325_v23   ;;  %579 = vperm.xlu1 %5061, %v435_v25  }
 0x127   : > { %v5777_v9 = vpop.permute.xlu1 %529 }
 0x128   : > { %7570 = vst [vmem:[#allocation36_spill] sm:$0xff] %v5777_v9  ;;  %969 = vperm.xlu0 %5070, %v5510_v53   ;;  %1490 = vrot.lane.b32.xlu1 %v5542_v18, %s5116_s12  ;;  %v660_v53 = vadd.f32 %v5408_v52, %v622_v15 }
 0x129   : > { %5062 = vset.pattern.permute.xlu1 %v7557_v55 }
 0x12c   : > { %977 = vperm.xlu0 %5070, %v5558_v11   ;;  %781 = vperm.xlu1 %5062, %v5558_v11   ;;  %v5787_v29 = vpop.permute.xlu1 %741 }
 0x12d   : > { %7571 = vst [vmem:[#allocation37_spill] sm:$0xff] %v5787_v29  ;;  %v824_v23 = vmul.f32 %v5395_v48, %v5787_v29 }
 0x12f   : > { %v856_v5 = vadd.f32 %v824_v23, %v660_v53  ;;  %v624_v53 = vmul.f32 %v5386_v45, %v5546_v59 }
 0x130   : > { %985 = vperm.xlu0 %5070, %v5586_v1   ;;  %1748 = vrot.lane.b32.xlu1 %v5539_v24, %s5117_s18 }
 0x131   : > { %v5797_v18 = vpop.permute.xlu1 %937  ;;  %5063 = vset.pattern.permute.xlu1 %v7558_v0 }
 0x132   : > { %7573 = vst [vmem:[#allocation39_spill] sm:$0xff] %v5797_v18  ;;  %v1020_v11 = vmul.f32 %v5403_v51, %v5797_v18 }
 0x133   : > { %v5802_v60 = vpop.permute.xlu0 %1615 }
 0x134   : > { %v1052_v28 = vadd.f32 %v1020_v11, %v856_v5  ;;  %993 = vperm.xlu0 %5070, %v5645_v46   ;;  %1878 = vrot.lane.b32.xlu1 %v5612_v20, %s5118_s23 }
 0x135   : > { %v5807_v56 = vpop.permute.xlu1 %941 }
 0x136   : > { %7574 = vst [vmem:[#allocation40_spill] sm:$0xff] %v5807_v56  ;;  %1084 = vst.msk [vmem:[#allocation2 + $0xd9] sm:$0xff] %vm365_vm0, %v1052_v28 }
 0x137   : > { %v1231_v15 = vpop.permute.xlu0 %1230 }
 0x138   : > { %1278 = vst.msk [vmem:[#allocation3 + $0x10] sm:$0xff] %vm1276_vm3, %v1231_v15  ;;  %1238 = vrot.lane.b32.xlu0 %v5752_v44, %s5113_s21  ;;  %981 = vperm.xlu1 %5063, %v435_v25   ;;  %v662_v25 = vadd.f32 %v5408_v52, %v624_v53 }
 0x13a   : > { %v5813_v23 = vpop.permute.xlu1 %539 }
 0x13b   : > { %7575 = vst [vmem:[#allocation41_spill] sm:$0xff] %v5813_v23 }
 0x13c   : > { %2007 = vrot.lane.b32.xlu1 %v5605_v12, %s5119_s30 }
 0x13d   : > { %5064 = vset.pattern.permute.xlu1 %v7554_v13 }
 0x13f   : > { %v5820_v5 = vpop.permute.xlu1 %749 }
 0x140   : > { %7576 = vst [vmem:[#allocation42_spill] sm:$0xff] %v5820_v5  ;;  %1363 = vrot.lane.b32.xlu1 %v5539_v24, %s5115_s27  ;;  %v826_v11 = vmul.f32 %v5395_v48, %v5820_v5 }
 0x142   : > { %v858_v12 = vadd.f32 %v826_v11, %v662_v25 }
 0x144   : > { %589 = vperm.xlu1 %5064, %v5745_v21   ;;  %v5828_v28 = vpop.permute.xlu1 %945 }
 0x145   : > { %7577 = vst [vmem:[#allocation43_spill] sm:$0xff] %v5828_v28  ;;  %v1022_v15 = vmul.f32 %v5403_v51, %v5828_v28 }
 0x147   : > { %v1054_v18 = vadd.f32 %v1022_v15, %v858_v12 }
 0x148   : > { %1492 = vrot.lane.b32.xlu1 %v5612_v20, %s5116_s12  ;;  %v5834_v59 = vpop.permute.xlu1 %949  ;;  %v5837_v24 = vpop.permute.xlu0 %564  ;;  %v626_v20 = vmul.f32 %v5386_v45, %v5565_v39 }
 0x149   : > { %7578 = vst [vmem:[#allocation44_spill] sm:$0xff] %v5834_v59  ;;  %1086 = vst.msk [vmem:[#allocation2 + $0xf1] sm:$0xff] %vm365_vm0, %v1054_v18  ;;  %5065 = vset.pattern.permute.xlu1 %v7557_v55 }
 0x14a   : > { %7579 = vst [vmem:[#allocation45_spill] sm:$0xff] %v5837_v24  ;;  %v664_v15 = vadd.f32 %v5408_v52, %v626_v20 }
 0x14c   : > { %789 = vperm.xlu1 %5065, %v5586_v1   ;;  %v5841_v53 = vpop.permute.xlu0 %1617 }
 0x14d   : > { %v5843_v11 = vpop.permute.xlu1 %549 }
 0x14e   : > { %7580 = vst [vmem:[#allocation46_spill] sm:$0xff] %v5843_v11 }
 0x150   : > { %1750 = vrot.lane.b32.xlu1 %v5607_v26, %s5117_s18  ;;  %v1233_v25 = vpop.permute.xlu0 %1232 }
 0x151   : > { %5066 = vset.pattern.permute.xlu1 %v7558_v0  ;;  %1279 = vst.msk [vmem:[#allocation3 + $0x20] sm:$0xff] %vm1276_vm3, %v1233_v25 }
 0x152   : > { %v5851_v18 = vpop.permute.xlu1 %757 }
 0x153   : > { %7581 = vst [vmem:[#allocation47_spill] sm:$0xff] %v5851_v18  ;;  %v828_v1 = vmul.f32 %v5395_v48, %v5851_v18 }
 0x154   : > { %1880 = vrot.lane.b32.xlu1 %v5680_v14, %s5118_s23 }
 0x155   : > { %v5857_v12 = vpop.permute.xlu0 %574  ;;  %v860_v5 = vadd.f32 %v828_v1, %v664_v15  ;;  %v617_v1 = vmul.f32 %v5386_v45, %v5654_v62 }
 0x156   : > { %7582 = vst [vmem:[#allocation48_spill] sm:$0xff] %v5857_v12 }
 0x157   : > { %v5860_v28 = vpop.permute.xlu1 %953 }
 0x158   : > { %7583 = vst [vmem:[#allocation49_spill] sm:$0xff] %v5860_v28  ;;  %v1024_v39 = vmul.f32 %v5403_v51, %v5860_v28  ;;  %989 = vperm.xlu1 %5066, %v5745_v21  }
 0x159   : > { %v5865_v25 = vpop.permute.xlu0 %1619 }
 0x15a   : > { %v1056_v29 = vadd.f32 %v1024_v39, %v860_v5 }
 0x15b   : > { %v5867_v7 = vpop.permute.xlu1 %957 }
 0x15c   : > { %7584 = vst [vmem:[#allocation50_spill] sm:$0xff] %v5867_v7  ;;  %1088 = vst.msk [vmem:[#allocation2 + $0x109] sm:$0xff] %vm365_vm0, %v1056_v29  ;;  %2009 = vrot.lane.b32.xlu1 %v5752_v44, %s5119_s30 }
 0x15d   : > { %v1235_v18 = vpop.permute.xlu0 %1234  ;;  %5068 = vset.pattern.permute.xlu1 %v7554_v13 }
 0x15e   : > { %1280 = vst.msk [vmem:[#allocation3 + $0x30] sm:$0xff] %vm1276_vm3, %v1235_v18 }
 0x15f   : > { %v1358_v20 = vpop.permute.xlu1 %1357 }
 0x160   : > { %1406 = vst.msk [vmem:[#allocation3] sm:$0xff] %vm1405_vm4, %v1358_v20  ;;  %1365 = vrot.lane.b32.xlu1 %v5607_v26, %s5115_s27 }
 0x161   : > { %v5877_v39 = vpop.permute.xlu0 %584 }
 0x163   : > { %v5879_v21 = vpop.permute.xlu1 %559 }
 0x164   : > { %7585 = vst [vmem:[#allocation51_spill] sm:$0xff] %v5879_v21  ;;  %599 = vperm.xlu1 %5068, %v5761_v42  }
 0x165   : > { %v5882_v29 = vpop.permute.xlu0 %1621 }
 0x167   : > { %v1487_v44 = vpop.permute.xlu1 %1486 }
 0x168   : > { %1535 = vst.msk [vmem:[#allocation3] sm:$0xff] %vm1534_vm5, %v1487_v44  ;;  %1494 = vrot.lane.b32.xlu1 %v5680_v14, %s5116_s12  ;;  %v1015_v44 = vmul.f32 %v5403_v51, %v5699_v10 }
 0x169   : > { %v1237_v5 = vpop.permute.xlu0 %1236  ;;  %5069 = vset.pattern.permute.xlu1 %v7557_v55  ;;  %1664 = vst.msk [vmem:[#allocation3] sm:$0xff] %vm1663_vm6, %v5802_v60  ;;  %v655_v55 = vadd.f32 %v5408_v52, %v617_v1  ;;  %v621_v1 = vmul.f32 %v5386_v45, %v5742_v3 }
 0x16a   : > { %1281 = vst.msk [vmem:[#allocation3 + $0x40] sm:$0xff] %vm1276_vm3, %v1237_v5 }
 0x16b   : > { %v5891_v26 = vpop.permute.xlu1 %765 }
 0x16c   : > { %7586 = vst [vmem:[#allocation52_spill] sm:$0xff] %v5891_v26  ;;  %797 = vperm.xlu1 %5069, %v5645_v46   ;;  %v619_v46 = vmul.f32 %v5386_v45, %v5712_v4 }
 0x16d   : > { %v5894_v18 = vpop.permute.xlu0 %594 }
 0x16f   : > { %v1745_v15 = vpop.permute.xlu1 %1744 }
 0x170   : > { %1793 = vst.msk [vmem:[#allocation3] sm:$0xff] %vm1792_vm7, %v1745_v15  ;;  %1752 = vrot.lane.b32.xlu1 %v5676_v27, %s5117_s18 }
 0x171   : > { %5071 = vset.pattern.permute.xlu1 %v7558_v0  ;;  %v657_v0 = vadd.f32 %v5408_v52, %v619_v46  ;;  %v659_v46 = vadd.f32 %v5408_v52, %v621_v1  ;;  %v625_v1 = vmul.f32 %v5386_v45, %v5813_v23 }
 0x172   : > { %v5902_v14 = vpop.permute.xlu0 %721 }
 0x173   : > { %v819_v60 = vmul.f32 %v5395_v48, %v5902_v14  ;;  %v1875_v20 = vpop.permute.xlu1 %1874 }
 0x174   : > { %1923 = vst.msk [vmem:[#allocation3] sm:$0xff] %vm1922_vm8, %v1875_v20  ;;  %v1017_v20 = vmul.f32 %v5403_v51, %v5733_v2  ;;  %v1019_v2 = vmul.f32 %v5403_v51, %v5772_v19 }
 0x175   : > { %v851_v5 = vadd.f32 %v819_v60, %v655_v55  ;;  %v623_v60 = vmul.f32 %v5386_v45, %v5777_v9 }
 0x176   : > { %v5912_v15 = vpop.permute.xlu0 %729 }
 0x177   : > { %7587 = vst [vmem:[#allocation53_spill] sm:$0xff] %v5912_v15  ;;  %v1047_v28 = vadd.f32 %v1015_v44, %v851_v5  ;;  %v821_v6 = vmul.f32 %v5395_v48, %v5912_v15  ;;  %v5919_v57 = vpop.permute.xlu1 %965  ;;  %v663_v15 = vadd.f32 %v5408_v52, %v625_v1  ;;  %v1820_v1 = vld [vmem:[#allocation2 + $0xa8] sm:$0xff] }
 0x178   : > { %7588 = vst [vmem:[#allocation54_spill] sm:$0xff] %v5919_v57 }
 0x179   : > { %1079 = vst.msk [vmem:[#allocation2 + $0x99] sm:$0xff] %vm365_vm0, %v1047_v28  ;;  %v853_v22 = vadd.f32 %v821_v6, %v657_v0  ;;  %v661_v0 = vadd.f32 %v5408_v52, %v623_v60 }
 0x17a   : > { %v5924_v55 = vpop.permute.xlu0 %737 }
 0x17b   : > { %7589 = vst [vmem:[#allocation55_spill] sm:$0xff] %v5924_v55  ;;  %v1049_v44 = vadd.f32 %v1017_v20, %v853_v22  ;;  %v823_v5 = vmul.f32 %v5395_v48, %v5924_v55  ;;  %v2004_v3 = vpop.permute.xlu1 %2003  ;;  %v1432_v55 = vld [vmem:[#allocation2 + $0x90] sm:$0xff] }
 0x17c   : > { %2052 = vst.msk [vmem:[#allocation3] sm:$0xff] %vm2051_vm9, %v2004_v3 }
 0x17d   : > { %1081 = vst.msk [vmem:[#allocation2 + $0xb1] sm:$0xff] %vm365_vm0, %v1049_v44  ;;  %v855_v6 = vadd.f32 %v823_v5, %v659_v46  ;;  %v1021_v46 = vmul.f32 %v5403_v51, %v5807_v56 }
 0x17e   : > { %v5935_v28 = vpop.permute.xlu0 %745 }
 0x17f   : > { %7590 = vst [vmem:[#allocation56_spill] sm:$0xff] %v5935_v28  ;;  %v1051_v22 = vadd.f32 %v1019_v2, %v855_v6  ;;  %v825_v20 = vmul.f32 %v5395_v48, %v5935_v28  ;;  %v1360_v9 = vpop.permute.xlu1 %1359  ;;  %v1112_v2 = vld [vmem:[#allocation2 + $0x90] sm:$0xff] }
 0x180   : > { %v2076_v3 = vld [vmem:[#allocation2 + $0x92] sm:$0xff]  ;;  %1407 = vst.msk [vmem:[#allocation3 + $0x10] sm:$0xff] %vm1405_vm4, %v1360_v9  ;;  %v1691_v41 = vld [vmem:[#allocation2 + $0x9a] sm:$0xff]  ;;  %v627_v9 = vmul.f32 %v5386_v45, %v5843_v11 }
 0x181   : > { %v1433_v19 = vld [vmem:[#allocation2 + $0x98] sm:$0xff]  ;;  %1083 = vst.msk [vmem:[#allocation2 + $0xc9] sm:$0xff] %vm365_vm0, %v1051_v22  ;;  %v857_v60 = vadd.f32 %v825_v20, %v661_v0  ;;  %v5946_v5 = vpack.c.bf16 %v1691_v41, %v2076_v3  ;;  %v1023_v20 = vmul.f32 %v5403_v51, %v5834_v59 }
 0x182   : > { %v1459_v44 = vpack.c.bf16 %v1433_v19, %v1432_v55  ;;  %v1113_v6 = vld [vmem:[#allocation2 + $0x98] sm:$0xff]  ;;  %v5948_v23 = vpop.permute.xlu0 %753  ;;  %v2135_v19 = vld [vmem:[#allocation3 + $0x18] sm:$0xff] }
 0x183   : > { %7591 = vst [vmem:[#allocation57_spill] sm:$0xff] %v5948_v23  ;;  %v1138_v28 = vpack.c.bf16 %v1113_v6, %v1112_v2  ;;  %v1053_v49 = vadd.f32 %v1021_v46, %v857_v60  ;;  %v827_v56 = vmul.f32 %v5395_v48, %v5948_v23  ;;  %v5956_v0 = vpop.permute.xlu1 %569  ;;  %v2132_v41 = vld [vmem:[#allocation3] sm:$0xff]  ;;  %2120 = vst.msk [vmem:[#allocation3 + $0x48] sm:$0xff] %vm365_vm0, %v5946_v5 }
 0x184   : > { %1496 = vrot.lane.b32.xlu0 %v1459_v44, %s5116_s12  ;;  %7592 = vst [vmem:[#allocation58_spill] sm:$0xff] %v5956_v0  ;;  %v2078_v55 = vld [vmem:[#allocation2 + $0xaa] sm:$0xff]  ;;  %1882 = vrot.lane.b32.xlu1 %v1459_v44, %s5118_s23  ;;  %v1693_v60 = vld [vmem:[#allocation2 + $0xb2] sm:$0xff] }
 0x185   : > { %2324 = vmatmul.mubr.bf16.vlgmr.msra.gmra.mrb[0].mxu0 %v2132_v41  ;;  %v1821_v22 = vld [vmem:[#allocation2 + $0xb0] sm:$0xff]  ;;  %1154 = vst.msk [vmem:[#allocation3 + $0x60] sm:$0xff] %vm365_vm0, %v1138_v28  ;;  %1085 = vst.msk [vmem:[#allocation2 + $0xe1] sm:$0xff] %vm365_vm0, %v1053_v49  ;;  %v859_v3 = vadd.f32 %v827_v56, %v663_v15  ;;  %v5970_v44 = vpack.c.bf16 %v1693_v60, %v2078_v55  ;;  %v665_v41 = vadd.f32 %v5408_v52, %v627_v9  ;;  %v1948_v15 = vld [vmem:[#allocation2 + $0x99] sm:$0xff] }
 0x186   : > { %4957 = vmatprep.mubr.msk.bf16.mxu0 %vm365_vm0, %v2135_v19  ;;  %v5966_v46 = vpack.c.bf16 %v1821_v22, %v1820_v1  ;;  %v5968_v2 = vpop.permute.xlu0 %761  ;;  %v1950_v6 = vld [vmem:[#allocation2 + $0xb1] sm:$0xff]  ;;  %v629_v28 = vmul.f32 %v5386_v45, %v5879_v21  ;;  %v1949_v9 = vld [vmem:[#allocation2 + $0xa9] sm:$0xff]  ;;  %v1025_v1 = vmul.f32 %v5403_v51, %v5867_v7  ;;  %v1116_v60 = vld [vmem:[#allocation2 + $0xc0] sm:$0xff] }
 0x187   : > { %7593 = vst [vmem:[#allocation59_spill] sm:$0xff] %v5968_v2  ;;  %v1055_v11 = vadd.f32 %v1023_v20, %v859_v3  ;;  %v829_v49 = vmul.f32 %v5395_v48, %v5968_v2  ;;  %v1489_v56 = vpop.permute.xlu1 %1488  ;;  %2121 = vst.msk [vmem:[#allocation3 + $0x58] sm:$0xff] %vm365_vm0, %v5970_v44  ;;  %v5990_v20 = vpack.c.bf16 %v1950_v6, %v1949_v9  ;;  %v1947_v3 = vld [vmem:[#allocation2 + $0x91] sm:$0xff] }
 0x188   : > { %1754 = vrot.lane.b32.xlu0 %v5946_v5, %s5117_s18  ;;  %1155 = vst.msk [vmem:[#allocation3 + $0x70] sm:$0xff] %vm365_vm0, %v5966_v46  ;;  %v2080_v19 = vld [vmem:[#allocation2 + $0xc2] sm:$0xff]  ;;  %997 = vperm.xlu1 %5071, %v5761_v42   ;;  %v1695_v55 = vld [vmem:[#allocation2 + $0xca] sm:$0xff]  ;;  %v5996_v2 = vpack.c.bf16 %v1948_v15, %v1947_v3  ;;  %v667_v7 = vadd.f32 %v5408_v52, %v629_v28 }
 0x189   : > { %1536 = vst.msk [vmem:[#allocation3 + $0x10] sm:$0xff] %vm1534_vm5, %v1489_v56  ;;  %v861_v22 = vadd.f32 %v829_v49, %v665_v41  ;;  %v5992_v42 = vpack.c.bf16 %v1695_v55, %v2080_v19  ;;  %v1117_v56 = vld [vmem:[#allocation2 + $0xc8] sm:$0xff]  ;;  %v1824_v41 = vld [vmem:[#allocation2 + $0xd8] sm:$0xff]  ;;  %v1027_v52 = vmul.f32 %v5403_v51, %v5919_v57  ;;  %v1826_v3 = vld [vmem:[#allocation2 + $0xf0] sm:$0xff] }
 0x18a   : > { %1087 = vst.msk [vmem:[#allocation2 + $0xf9] sm:$0xff] %vm365_vm0, %v1055_v11  ;;  %v5994_v21 = vpop.permute.xlu0 %769  ;;  %v1140_v59 = vpack.c.bf16 %v1117_v56, %v1116_v60  ;;  %v1951_v57 = vld [vmem:[#allocation2 + $0xc1] sm:$0xff] }
 0x18b   : > { %1665 = vst.msk [vmem:[#allocation3 + $0x10] sm:$0xff] %vm1663_vm6, %v5841_v53  ;;  %7594 = vst [vmem:[#allocation60_spill] sm:$0xff] %v5994_v21  ;;  %v1057_v23 = vadd.f32 %v1025_v1, %v861_v22  ;;  %v831_v11 = vmul.f32 %v5395_v48, %v5994_v21  ;;  %v6003_v53 = vpop.permute.xlu1 %773 }
 0x18c   : > { %2013 = vrot.lane.b32.xlu0 %v5990_v20, %s5119_s30  ;;  %7595 = vst [vmem:[#allocation61_spill] sm:$0xff] %v6003_v53  ;;  %2122 = vst.msk [vmem:[#allocation3 + $0x68] sm:$0xff] %vm365_vm0, %v5992_v42  ;;  %v2082_v6 = vld [vmem:[#allocation2 + $0xda] sm:$0xff]  ;;  %2011 = vrot.lane.b32.xlu1 %v5996_v2, %s5119_s30  ;;  %v1697_v19 = vld [vmem:[#allocation2 + $0xe2] sm:$0xff] }
 0x18d   : > { %v1825_v49 = vld [vmem:[#allocation2 + $0xe0] sm:$0xff]  ;;  %1156 = vst.msk [vmem:[#allocation3 + $0x80] sm:$0xff] %vm365_vm0, %v1140_v59  ;;  %1089 = vst.msk [vmem:[#allocation2 + $0x111] sm:$0xff] %vm365_vm0, %v1057_v23  ;;  %v863_v28 = vadd.f32 %v831_v11, %v667_v7  ;;  %v6017_v55 = vpack.c.bf16 %v1697_v19, %v2082_v6  ;;  %v631_v7 = vmul.f32 %v5386_v45, %v5956_v0  ;;  %v1823_v6 = vld [vmem:[#allocation2 + $0xc8] sm:$0xff] }
 0x18e   : > { %v6013_v15 = vpack.c.bf16 %v1825_v49, %v1824_v41  ;;  %v6015_v9 = vpop.permute.xlu0 %777  ;;  %v1822_v41 = vld [vmem:[#allocation2 + $0xc0] sm:$0xff] }
 0x18f   : > { %7596 = vst [vmem:[#allocation62_spill] sm:$0xff] %v6015_v9  ;;  %v1059_v1 = vadd.f32 %v1027_v52, %v863_v28  ;;  %v1747_v22 = vpop.permute.xlu1 %1746  ;;  %2123 = vst.msk [vmem:[#allocation3 + $0x78] sm:$0xff] %vm365_vm0, %v6017_v55  ;;  %v6046_v49 = vld [vmem:[%s7452_s3] ss:$0 sm:$0xff]  ;;  %v833_v19 = vmul.f32 %v5395_v48, %v6015_v9 }
 0x190   : > { %1369 = vrot.lane.b32.xlu0 %v5946_v5, %s5115_s27  ;;  %1157 = vst.msk [vmem:[#allocation3 + $0x90] sm:$0xff] %vm365_vm0, %v6013_v15  ;;  %1367 = vrot.lane.b32.xlu1 %v5676_v27, %s5115_s27  ;;  %v669_v52 = vadd.f32 %v6046_v49, %v631_v7 }
 0x191   : > { %v2084_v59 = vld [vmem:[#allocation2 + $0xf2] sm:$0xff]  ;;  %1794 = vst.msk [vmem:[#allocation3 + $0x10] sm:$0xff] %vm1792_vm7, %v1747_v22  ;;  %v1699_v60 = vld [vmem:[#allocation2 + $0xfa] sm:$0xff] }
 0x192   : > { %v1827_v23 = vld [vmem:[#allocation2 + $0xf8] sm:$0xff]  ;;  %1091 = vst.msk [vmem:[#allocation2 + $0x129] sm:$0xff] %vm365_vm0, %v1059_v1  ;;  %v6033_v56 = vpack.c.bf16 %v1699_v60, %v2084_v59  ;;  %v6035_v11 = vpop.permute.xlu0 %785  ;;  %v1828_v1 = vld [vmem:[#allocation2 + $0x108] sm:$0xff]  ;;  %v865_v9 = vadd.f32 %v833_v19, %v669_v52  ;;  %v628_v52 = vmul.f32 %v5386_v45, %v5791_v38 }
 0x193   : > { %v6031_v5 = vpack.c.bf16 %v1827_v23, %v1826_v3  ;;  %v1877_v27 = vpop.permute.xlu1 %1876  ;;  %v1848_v3 = vpack.c.bf16 %v1823_v6, %v1822_v41  ;;  %v835_v43 = vmul.f32 %v5395_v48, %v6035_v11 }
 0x194   : > { %1627 = vrot.lane.b32.xlu0 %v5990_v20, %s5114_s26  ;;  %2124 = vst.msk [vmem:[#allocation3 + $0x88] sm:$0xff] %vm365_vm0, %v6033_v56  ;;  %v2086_v28 = vld [vmem:[#allocation2 + $0x10a] sm:$0xff]  ;;  %1625 = vrot.lane.b32.xlu1 %v5996_v2, %s5114_s26  ;;  %v1701_v23 = vld [vmem:[#allocation2 + $0x112] sm:$0xff] }
 0x195   : > { %1158 = vst.msk [vmem:[#allocation3 + $0xa0] sm:$0xff] %vm365_vm0, %v6031_v5  ;;  %v1829_v22 = vld [vmem:[#allocation2 + $0x110] sm:$0xff]  ;;  %v6058_v0 = vpack.c.bf16 %v1701_v23, %v2086_v28 }
 0x196   : > { %1924 = vst.msk [vmem:[#allocation3 + $0x10] sm:$0xff] %vm1922_vm8, %v1877_v27  ;;  %v6054_v59 = vpack.c.bf16 %v1829_v22, %v1828_v1  ;;  %v6056_v60 = vpop.permute.xlu0 %793  ;;  %v830_v1 = vmul.f32 %v5395_v48, %v5891_v26  ;;  %v1954_v22 = vld [vmem:[#allocation2 + $0xe1] sm:$0xff] }
 0x197   : > { %v6061_v7 = vpop.permute.xlu1 %973  ;;  %2125 = vst.msk [vmem:[#allocation3 + $0x98] sm:$0xff] %vm365_vm0, %v6058_v0 }
 0x198   : > { %1886 = vrot.lane.b32.xlu0 %v1848_v3, %s5118_s23  ;;  %7597 = vst [vmem:[#allocation63_spill] sm:$0xff] %v6061_v7  ;;  %1159 = vst.msk [vmem:[#allocation3 + $0xb0] sm:$0xff] %vm365_vm0, %v6054_v59  ;;  %1884 = vrot.lane.b32.xlu1 %v5966_v46, %s5118_s23  ;;  %v1029_v6 = vmul.f32 %v5403_v51, %v6061_v7  ;;  %v2137_v7 = vld [vmem:[#allocation3 + $0x28] sm:$0xff] }
 0x19a   : > { %v1061_v27 = vadd.f32 %v1029_v6, %v865_v9  ;;  %v6071_v41 = vpop.permute.xlu0 %1623 }
 0x19b   : > { %v2006_v28 = vpop.permute.xlu1 %2005 }
 0x19c   : > { %1242 = vrot.lane.b32.xlu0 %v5990_v20, %s5113_s21  ;;  %1093 = vst.msk [vmem:[#allocation2 + $0x141] sm:$0xff] %vm365_vm0, %v1061_v27  ;;  %1240 = vrot.lane.b32.xlu1 %v5996_v2, %s5113_s21  ;;  %v666_v2 = vadd.f32 %v6046_v49, %v628_v52  ;;  %v630_v20 = vmul.f32 %v5386_v45, %v5837_v24  ;;  %v1952_v27 = vld [vmem:[#allocation2 + $0xc9] sm:$0xff] }
 0x19d   : > { %2053 = vst.msk [vmem:[#allocation3 + $0x10] sm:$0xff] %vm2051_vm9, %v2006_v28 }
 0x19e   : > { %v6081_v19 = vpop.permute.xlu0 %801  ;;  %v862_v28 = vadd.f32 %v830_v1, %v666_v2  ;;  %v668_v26 = vadd.f32 %v6046_v49, %v630_v20  ;;  %v6108_v1 = vpack.c.bf16 %v1952_v27, %v1951_v57 }
 0x19f   : > { %7598 = vst [vmem:[#allocation64_spill] sm:$0xff] %v6081_v19  ;;  %v1362_v9 = vpop.permute.xlu1 %1361 }
 0x1a0   : > { %1500 = vrot.lane.b32.xlu0 %v1848_v3, %s5116_s12  ;;  %1498 = vrot.lane.b32.xlu1 %v5966_v46, %s5116_s12  ;;  %1408 = vst.msk [vmem:[#allocation3 + $0x20] sm:$0xff] %vm1405_vm4, %v1362_v9  ;;  %v832_v46 = vmul.f32 %v5395_v48, %v6003_v53  ;;  %v1953_v9 = vld [vmem:[#allocation2 + $0xd9] sm:$0xff] }
 0x1a1   : > { %v6104_v24 = vpack.c.bf16 %v1954_v22, %v1953_v9 }
 0x1a3   : > { %v6092_v23 = vpop.permute.xlu0 %961  ;;  %v6096_v3 = vpop.permute.xlu1 %579 }
 0x1a4   : > { %7599 = vst [vmem:[#allocation65_spill] sm:$0xff] %v6092_v23  ;;  %1758 = vrot.lane.b32.xlu0 %v5992_v42, %s5117_s18  ;;  %7600 = vst [vmem:[#allocation66_spill] sm:$0xff] %v6096_v3  ;;  %v2134_v6 = vld [vmem:[#allocation3 + $0x10] sm:$0xff]  ;;  %v1026_v52 = vmul.f32 %v5403_v51, %v6092_v23  ;;  %1756 = vrot.lane.b32.xlu1 %v5970_v44, %s5117_s18  ;;  %v864_v23 = vadd.f32 %v832_v46, %v668_v26 }
 0x1a5   : > { %2332 = vmatmul.mubr.bf16.gmra.mrb[4].mxu0 %v2134_v6  ;;  %v632_v6 = vmul.f32 %v5386_v45, %v5857_v12 }
 0x1a6   : > { %v1058_v21 = vadd.f32 %v1026_v52, %v862_v28  ;;  %4958 = vmatprep.mubr.msk.bf16.mxu0 %vm365_vm0, %v2137_v7  ;;  %v633_v52 = vmul.f32 %v5386_v45, %v6096_v3 }
 0x1a7   : > { %v6110_v2 = vpop.permute.xlu0 %969  ;;  %v1491_v53 = vpop.permute.xlu1 %1490 }
 0x1a8   : > { %7601 = vst [vmem:[#allocation67_spill] sm:$0xff] %v6110_v2  ;;  %2017 = vrot.lane.b32.xlu0 %v6104_v24, %s5119_s30  ;;  %1090 = vst.msk [vmem:[#allocation2 + $0x121] sm:$0xff] %vm365_vm0, %v1058_v21  ;;  %v1028_v20 = vmul.f32 %v5403_v51, %v6110_v2  ;;  %2015 = vrot.lane.b32.xlu1 %v6108_v1, %s5119_s30  ;;  %v670_v21 = vadd.f32 %v6046_v49, %v632_v6  ;;  %v6147_v6 = vld [vmem:[#allocation2 + $0x198] sm:$0xff] }
 0x1a9   : > { %1537 = vst.msk [vmem:[#allocation3 + $0x20] sm:$0xff] %vm1534_vm5, %v1491_v53 }
 0x1aa   : > { %1666 = vst.msk [vmem:[#allocation3 + $0x20] sm:$0xff] %vm1663_vm6, %v5865_v25  ;;  %v1060_v57 = vadd.f32 %v1028_v20, %v864_v23 }
 0x1ab   : > { %v6124_v7 = vpop.permute.xlu0 %977  ;;  %v6128_v26 = vpop.permute.xlu1 %781 }
 0x1ac   : > { %7602 = vst [vmem:[#allocation68_spill] sm:$0xff] %v6124_v7  ;;  %1373 = vrot.lane.b32.xlu0 %v5992_v42, %s5115_s27  ;;  %7603 = vst [vmem:[#allocation69_spill] sm:$0xff] %v6128_v26  ;;  %v1030_v22 = vmul.f32 %v5403_v51, %v6124_v7  ;;  %1371 = vrot.lane.b32.xlu1 %v5970_v44, %s5115_s27  ;;  %v834_v25 = vmul.f32 %v5395_v48, %v6128_v26  ;;  %v1703_v44 = vld [vmem:[#allocation2 + $0x12a] sm:$0xff]  ;;  %v6157_v7 = vld [vmem:[#allocation2 + $0x1a1] sm:$0xff] }
 0x1ad   : > { %1092 = vst.msk [vmem:[#allocation2 + $0x139] sm:$0xff] %vm365_vm0, %v1060_v57  ;;  %v2723_v26 = vmul.f32 0.5, %v6157_v7 }
 0x1ae   : > { %v866_v53 = vadd.f32 %v834_v25, %v670_v21  ;;  %v6153_v21 = vld [vmem:[#allocation2 + $0x1a0] sm:$0xff] }
 0x1af   : > { %v2088_v23 = vld [vmem:[#allocation2 + $0x122] sm:$0xff]  ;;  %v6138_v27 = vpop.permute.xlu0 %985  ;;  %v1749_v42 = vpop.permute.xlu1 %1748  ;;  %v6155_v25 = vld [vmem:[#allocation2 + $0x199] sm:$0xff] }
 0x1b0   : > { %1631 = vrot.lane.b32.xlu0 %v6104_v24, %s5114_s26  ;;  %v1830_v28 = vld [vmem:[#allocation2 + $0x120] sm:$0xff]  ;;  %v1831_v46 = vld [vmem:[#allocation2 + $0x128] sm:$0xff]  ;;  %v1062_v9 = vadd.f32 %v1030_v22, %v866_v53  ;;  %1629 = vrot.lane.b32.xlu1 %v6108_v1, %s5114_s26  ;;  %1795 = vst.msk [vmem:[#allocation3 + $0x20] sm:$0xff] %vm1792_vm7, %v1749_v42  ;;  %v6151_v57 = vpack.c.bf16 %v1703_v44, %v2088_v23  ;;  %v2650_v22 = vmul.f32 0.25, %v6147_v6  ;;  %v2651_v53 = vmul.f32 0.25, %v6153_v21 }
 0x1b1   : > { %v6149_v20 = vpack.c.bf16 %v1831_v46, %v1830_v28  ;;  %v2722_v42 = vmul.f32 0.5, %v6155_v25  ;;  %v2091_v28 = vld [vmem:[#allocation2 + $0x142] sm:$0xff] }
 0x1b2   : > { %1094 = vst.msk [vmem:[#allocation2 + $0x151] sm:$0xff] %vm365_vm0, %v1062_v9  ;;  %2126 = vst.msk [vmem:[#allocation3 + $0xa8] sm:$0xff] %vm365_vm0, %v6151_v57  ;;  %v671_v9 = vadd.f32 %v6046_v49, %v633_v52  ;;  %v6182_v10 = vadd.f32 %v2723_v26, %v2651_v53 }
 0x1b3   : > { %v6164_v23 = vpop.permute.xlu0 %993  ;;  %v1879_v44 = vpop.permute.xlu1 %1878  ;;  %1160 = vst.msk [vmem:[#allocation3 + $0xc0] sm:$0xff] %vm365_vm0, %v6149_v20  ;;  %v6180_v4 = vadd.f32 %v2722_v42, %v2650_v22  ;;  %v1955_v42 = vld [vmem:[#allocation2 + $0xf1] sm:$0xff] }
 0x1b4   : > { %v2090_v46 = vld [vmem:[#allocation2 + $0x13a] sm:$0xff]  ;;  %7604 = vst [vmem:[#allocation70_spill] sm:$0xff] %v6164_v23  ;;  %1890 = vrot.lane.b32.xlu0 %v6031_v5, %s5118_s23  ;;  %1888 = vrot.lane.b32.xlu1 %v6013_v15, %s5118_s23  ;;  %1925 = vst.msk [vmem:[#allocation3 + $0x20] sm:$0xff] %vm1922_vm8, %v1879_v44 }
 0x1b5   : > { %v1832_v3 = vld [vmem:[#allocation2 + $0x138] sm:$0xff]  ;;  %v1833_v12 = vld [vmem:[#allocation2 + $0x140] sm:$0xff]  ;;  %v6176_v2 = vpack.c.bf16 %v2091_v28, %v2090_v46 }
 0x1b6   : > { %v6178_v38 = vpack.c.bf16 %v1833_v12, %v1832_v3  ;;  %v867_v12 = vadd.f32 %v835_v43, %v671_v9 }
 0x1b7   : > { %2127 = vst.msk [vmem:[#allocation3 + $0xb8] sm:$0xff] %vm365_vm0, %v6176_v2  ;;  %v1239_v52 = vpop.permute.xlu0 %1238  ;;  %v6190_v44 = vpop.permute.xlu1 %981 }
 0x1b8   : > { %1246 = vrot.lane.b32.xlu0 %v6104_v24, %s5113_s21  ;;  %1161 = vst.msk [vmem:[#allocation3 + $0xd0] sm:$0xff] %vm365_vm0, %v6178_v38  ;;  %1244 = vrot.lane.b32.xlu1 %v6108_v1, %s5113_s21  ;;  %v1031_v3 = vmul.f32 %v5403_v51, %v6190_v44  ;;  %v1958_v24 = vld [vmem:[#allocation2 + $0x111] sm:$0xff]  ;;  %v1956_v1 = vld [vmem:[#allocation2 + $0xf9] sm:$0xff] }
 0x1b9   : > { %1282 = vst.msk [vmem:[#allocation3 + $0x50] sm:$0xff] %vm1276_vm3, %v1239_v52  ;;  %v1979_v28 = vpack.c.bf16 %v1956_v1, %v1955_v42  ;;  %v634_v1 = vmul.f32 %v5386_v45, %v5877_v39  ;;  %v1032_v42 = vmul.f32 %v5403_v51, %v6138_v27 }
 0x1ba   : > { %v1063_v26 = vadd.f32 %v1031_v3, %v867_v12  ;;  %v2139_v12 = vld [vmem:[#allocation3 + $0x38] sm:$0xff]  ;;  %v1834_v3 = vld [vmem:[#allocation2 + $0x150] sm:$0xff] }
 0x1bb   : > { %v2008_v22 = vpop.permute.xlu1 %2007 }
 0x1bc   : > { %1504 = vrot.lane.b32.xlu0 %v6031_v5, %s5116_s12  ;;  %1095 = vst.msk [vmem:[#allocation2 + $0x159] sm:$0xff] %vm365_vm0, %v1063_v26  ;;  %1502 = vrot.lane.b32.xlu1 %v6013_v15, %s5116_s12  ;;  %v1957_v5 = vld [vmem:[#allocation2 + $0x109] sm:$0xff] }
 0x1bd   : > { %2054 = vst.msk [vmem:[#allocation3 + $0x20] sm:$0xff] %vm2051_vm9, %v2008_v22  ;;  %v1980_v53 = vpack.c.bf16 %v1958_v24, %v1957_v5 }
 0x1bf   : > { %v1364_v43 = vpop.permute.xlu1 %1363 }
 0x1c0   : > { %1762 = vrot.lane.b32.xlu0 %v6033_v56, %s5117_s18  ;;  %1760 = vrot.lane.b32.xlu1 %v6017_v55, %s5117_s18  ;;  %1409 = vst.msk [vmem:[#allocation3 + $0x30] sm:$0xff] %vm1405_vm4, %v1364_v43 }
 0x1c3   : > { %v2092_v46 = vld [vmem:[#allocation2 + $0x152] sm:$0xff]  ;;  %v2093_v9 = vld [vmem:[#allocation2 + $0x15a] sm:$0xff]  ;;  %v6211_v15 = vpop.permute.xlu1 %589 }
 0x1c4   : > { %2021 = vrot.lane.b32.xlu0 %v1980_v53, %s5119_s30  ;;  %v2136_v52 = vld [vmem:[#allocation3 + $0x20] sm:$0xff]  ;;  %2019 = vrot.lane.b32.xlu1 %v1979_v28, %s5119_s30  ;;  %v1835_v26 = vld [vmem:[#allocation2 + $0x158] sm:$0xff]  ;;  %v6214_v22 = vpack.c.bf16 %v2093_v9, %v2092_v46 }
 0x1c5   : > { %2340 = vmatmul.mubr.bf16.gmra.mrb[8].mxu0 %v2136_v52  ;;  %v6217_v24 = vpack.c.bf16 %v1835_v26, %v1834_v3  ;;  %v837_v26 = vmul.f32 %v5395_v48, %v6056_v60 }
 0x1c6   : > { %4959 = vmatprep.mubr.msk.bf16.mxu0 %vm365_vm0, %v2139_v12  ;;  %2128 = vst.msk [vmem:[#allocation3 + $0xc8] sm:$0xff] %vm365_vm0, %v6214_v22 }
 0x1c7   : > { %v1493_v43 = vpop.permute.xlu1 %1492  ;;  %1162 = vst.msk [vmem:[#allocation3 + $0xe0] sm:$0xff] %vm365_vm0, %v6217_v24 }
 0x1c8   : > { %1377 = vrot.lane.b32.xlu0 %v6033_v56, %s5115_s27  ;;  %1375 = vrot.lane.b32.xlu1 %v6017_v55, %s5115_s27  ;;  %1538 = vst.msk [vmem:[#allocation3 + $0x30] sm:$0xff] %vm1534_vm5, %v1493_v43  ;;  %v672_v56 = vadd.f32 %v6046_v49, %v634_v1 }
 0x1c9   : > { %1667 = vst.msk [vmem:[#allocation3 + $0x30] sm:$0xff] %vm1663_vm6, %v5882_v29  ;;  %v635_v29 = vmul.f32 %v5386_v45, %v6211_v15 }
 0x1cb   : > { %v6233_v5 = vpop.permute.xlu1 %789  ;;  %v673_v3 = vadd.f32 %v6046_v49, %v635_v29 }
 0x1cc   : > { %1635 = vrot.lane.b32.xlu0 %v1980_v53, %s5114_s26  ;;  %1633 = vrot.lane.b32.xlu1 %v1979_v28, %s5114_s26  ;;  %v836_v46 = vmul.f32 %v5395_v48, %v6233_v5 }
 0x1cd   : > { %v869_v1 = vadd.f32 %v837_v26, %v673_v3 }
 0x1ce   : > { %v868_v55 = vadd.f32 %v836_v46, %v672_v56  ;;  %v1959_v46 = vld [vmem:[#allocation2 + $0x121] sm:$0xff] }
 0x1cf   : > { %v1751_v9 = vpop.permute.xlu1 %1750 }
 0x1d0   : > { %1894 = vrot.lane.b32.xlu0 %v6149_v20, %s5118_s23  ;;  %v1064_v52 = vadd.f32 %v1032_v42, %v868_v55  ;;  %1892 = vrot.lane.b32.xlu1 %v6054_v59, %s5118_s23  ;;  %1796 = vst.msk [vmem:[#allocation3 + $0x30] sm:$0xff] %vm1792_vm7, %v1751_v9  ;;  %v1961_v42 = vld [vmem:[#allocation2 + $0x139] sm:$0xff] }
 0x1d2   : > { %1096 = vst.msk [vmem:[#allocation2 + $0x169] sm:$0xff] %vm365_vm0, %v1064_v52 }
 0x1d3   : > { %v1881_v12 = vpop.permute.xlu1 %1880 }
 0x1d4   : > { %1250 = vrot.lane.b32.xlu0 %v1980_v53, %s5113_s21  ;;  %1248 = vrot.lane.b32.xlu1 %v1979_v28, %s5113_s21  ;;  %1926 = vst.msk [vmem:[#allocation3 + $0x30] sm:$0xff] %vm1922_vm8, %v1881_v12 }
 0x1d7   : > { %v6257_v43 = vpop.permute.xlu1 %989 }
 0x1d8   : > { %1508 = vrot.lane.b32.xlu0 %v6149_v20, %s5116_s12  ;;  %1506 = vrot.lane.b32.xlu1 %v6054_v59, %s5116_s12  ;;  %v1033_v53 = vmul.f32 %v5403_v51, %v6257_v43  ;;  %v1962_v20 = vld [vmem:[#allocation2 + $0x141] sm:$0xff]  ;;  %v1960_v59 = vld [vmem:[#allocation2 + $0x129] sm:$0xff] }
 0x1d9   : > { %v1982_v55 = vpack.c.bf16 %v1962_v20, %v1961_v42  ;;  %v1981_v9 = vpack.c.bf16 %v1960_v59, %v1959_v46 }
 0x1da   : > { %v1065_v56 = vadd.f32 %v1033_v53, %v869_v1  ;;  %v2141_v1 = vld [vmem:[#allocation3 + $0x48] sm:$0xff]  ;;  %v1836_v53 = vld [vmem:[#allocation2 + $0x168] sm:$0xff] }
 0x1db   : > { %v2010_v28 = vpop.permute.xlu1 %2009 }
 0x1dc   : > { %1766 = vrot.lane.b32.xlu0 %v6151_v57, %s5117_s18  ;;  %1097 = vst.msk [vmem:[#allocation2 + $0x171] sm:$0xff] %vm365_vm0, %v1065_v56  ;;  %1764 = vrot.lane.b32.xlu1 %v6058_v0, %s5117_s18 }
 0x1dd   : > { %2055 = vst.msk [vmem:[#allocation3 + $0x30] sm:$0xff] %vm2051_vm9, %v2010_v28 }
 0x1df   : > { %v1366_v29 = vpop.permute.xlu1 %1365 }
 0x1e0   : > { %2025 = vrot.lane.b32.xlu0 %v1982_v55, %s5119_s30  ;;  %2023 = vrot.lane.b32.xlu1 %v1981_v9, %s5119_s30  ;;  %1410 = vst.msk [vmem:[#allocation3 + $0x40] sm:$0xff] %vm1405_vm4, %v1366_v29  ;;  %v1034_v29 = vmul.f32 %v5403_v51, %v6164_v23 }
 0x1e3   : > { %v2094_v52 = vld [vmem:[#allocation2 + $0x16a] sm:$0xff]  ;;  %v2095_v12 = vld [vmem:[#allocation2 + $0x172] sm:$0xff]  ;;  %v6274_v3 = vpop.permute.xlu1 %599 }
 0x1e4   : > { %1381 = vrot.lane.b32.xlu0 %v6151_v57, %s5115_s27  ;;  %7605 = vst [vmem:[#allocation71_spill] sm:$0xff] %v6274_v3  ;;  %v2138_v26 = vld [vmem:[#allocation3 + $0x30] sm:$0xff]  ;;  %1379 = vrot.lane.b32.xlu1 %v6058_v0, %s5115_s27  ;;  %v1837_v56 = vld [vmem:[#allocation2 + $0x170] sm:$0xff]  ;;  %v6278_v42 = vpack.c.bf16 %v2095_v12, %v2094_v52  ;;  %v636_v0 = vmul.f32 %v5386_v45, %v5894_v18 }
 0x1e5   : > { %2348 = vmatmul.mubr.bf16.gmra.mrb[12].mxu0 %v2138_v26  ;;  %v1855_v28 = vpack.c.bf16 %v1837_v56, %v1836_v53  ;;  %v1966_v53 = vld [vmem:[#allocation2 + $0x171] sm:$0xff] }
 0x1e6   : > { %4960 = vmatprep.mubr.msk.bf16.mxu0 %vm365_vm0, %v2141_v1  ;;  %2129 = vst.msk [vmem:[#allocation3 + $0xd8] sm:$0xff] %vm365_vm0, %v6278_v42  ;;  %v674_v20 = vadd.f32 %v6046_v49, %v636_v0 }
 0x1e7   : > { %v1495_v57 = vpop.permute.xlu1 %1494  ;;  %1163 = vst.msk [vmem:[#allocation3 + $0xf0] sm:$0xff] %vm365_vm0, %v1855_v28 }
 0x1e8   : > { %1639 = vrot.lane.b32.xlu0 %v1982_v55, %s5114_s26  ;;  %1637 = vrot.lane.b32.xlu1 %v1981_v9, %s5114_s26  ;;  %1539 = vst.msk [vmem:[#allocation3 + $0x40] sm:$0xff] %vm1534_vm5, %v1495_v57  ;;  %v1963_v57 = vld [vmem:[#allocation2 + $0x151] sm:$0xff] }
 0x1e9   : > { %1668 = vst.msk [vmem:[#allocation3 + $0x40] sm:$0xff] %vm1663_vm6, %v6071_v41 }
 0x1eb   : > { %v6293_v46 = vpop.permute.xlu1 %797 }
 0x1ec   : > { %1898 = vrot.lane.b32.xlu0 %v6217_v24, %s5118_s23  ;;  %7606 = vst [vmem:[#allocation72_spill] sm:$0xff] %v6293_v46  ;;  %1896 = vrot.lane.b32.xlu1 %v6178_v38, %s5118_s23  ;;  %v838_v59 = vmul.f32 %v5395_v48, %v6293_v46 }
 0x1ee   : > { %v870_v52 = vadd.f32 %v838_v59, %v674_v20  ;;  %v637_v20 = vmul.f32 %v5386_v45, %v6274_v3 }
 0x1ef   : > { %v1753_v41 = vpop.permute.xlu1 %1752 }
 0x1f0   : > { %1254 = vrot.lane.b32.xlu0 %v1982_v55, %s5113_s21  ;;  %v1066_v12 = vadd.f32 %v1034_v29, %v870_v52  ;;  %1252 = vrot.lane.b32.xlu1 %v1981_v9, %s5113_s21  ;;  %1797 = vst.msk [vmem:[#allocation3 + $0x40] sm:$0xff] %vm1792_vm7, %v1753_v41  ;;  %v1964_v55 = vld [vmem:[#allocation2 + $0x159] sm:$0xff]  ;;  %v1965_v9 = vld [vmem:[#allocation2 + $0x169] sm:$0xff]  ;;  %v675_v29 = vadd.f32 %v6046_v49, %v637_v20 }
 0x1f1   : > { %v1984_v0 = vpack.c.bf16 %v1966_v53, %v1965_v9  ;;  %v839_v41 = vmul.f32 %v5395_v48, %v6081_v19 }
 0x1f2   : > { %1098 = vst.msk [vmem:[#allocation2 + $0x181] sm:$0xff] %vm365_vm0, %v1066_v12 }
 0x1f4   : > { %1512 = vrot.lane.b32.xlu0 %v6217_v24, %s5116_s12  ;;  %1510 = vrot.lane.b32.xlu1 %v6178_v38, %s5116_s12  ;;  %v1983_v24 = vpack.c.bf16 %v1964_v55, %v1963_v57  ;;  %v2143_v55 = vld [vmem:[#allocation3 + $0x58] sm:$0xff] }
 0x1f6   : > { %v1497_v26 = vpop.permute.xlu0 %1496  ;;  %v1883_v1 = vpop.permute.xlu1 %1882 }
 0x1f7   : > { %1927 = vst.msk [vmem:[#allocation3 + $0x40] sm:$0xff] %vm1922_vm8, %v1883_v1 }
 0x1f8   : > { %1770 = vrot.lane.b32.xlu0 %v6214_v22, %s5117_s18  ;;  %1768 = vrot.lane.b32.xlu1 %v6176_v2, %s5117_s18 }
 0x1fa   : > { %v1755_v56 = vpop.permute.xlu0 %1754 }
 0x1fc   : > { %2029 = vrot.lane.b32.xlu0 %v1984_v0, %s5119_s30  ;;  %2027 = vrot.lane.b32.xlu1 %v1983_v24, %s5119_s30 }
 0x1fe   : > { %v2014_v38 = vpop.permute.xlu0 %2013 }
 0x200   : > { %1385 = vrot.lane.b32.xlu0 %v6214_v22, %s5115_s27  ;;  %1383 = vrot.lane.b32.xlu1 %v6176_v2, %s5115_s27  ;;  %v871_v22 = vadd.f32 %v839_v41, %v675_v29 }
 0x202   : > { %v1370_v59 = vpop.permute.xlu0 %1369 }
 0x204   : > { %1643 = vrot.lane.b32.xlu0 %v1984_v0, %s5114_s26  ;;  %1641 = vrot.lane.b32.xlu1 %v1983_v24, %s5114_s26 }
 0x206   : > { %v1628_v52 = vpop.permute.xlu0 %1627 }
 0x207   : > { %v6328_v12 = vpop.permute.xlu1 %997 }
 0x208   : > { %7607 = vst [vmem:[#allocation73_spill] sm:$0xff] %v6328_v12  ;;  %v1035_v45 = vmul.f32 %v5403_v51, %v6328_v12  ;;  %1900 = vrot.lane.b32.xlu1 %v1855_v28, %s5118_s23 }
 0x20a   : > { %v6333_v2 = vpop.permute.xlu0 %1886  ;;  %v1067_v1 = vadd.f32 %v1035_v45, %v871_v22 }
 0x20b   : > { %v2012_v53 = vpop.permute.xlu1 %2011 }
 0x20c   : > { %1099 = vst.msk [vmem:[#allocation2 + $0x189] sm:$0xff] %vm365_vm0, %v1067_v1  ;;  %1256 = vrot.lane.b32.xlu1 %v1983_v24, %s5113_s21  ;;  %v1838_v24 = vld [vmem:[#allocation2 + $0x180] sm:$0xff] }
 0x20d   : > { %2056 = vst.msk [vmem:[#allocation3 + $0x40] sm:$0xff] %vm2051_vm9, %v2012_v53  ;;  %v1967_v1 = vld [vmem:[#allocation2 + $0x181] sm:$0xff] }
 0x20e   : > { %v1243_v49 = vpop.permute.xlu0 %1242 }
 0x20f   : > { %1284 = vst.msk [vmem:[#allocation3 + $0x70] sm:$0xff] %vm1276_vm3, %v1243_v49  ;;  %v1368_v48 = vpop.permute.xlu1 %1367 }
 0x210   : > { %1411 = vst.msk [vmem:[#allocation3 + $0x50] sm:$0xff] %vm1405_vm4, %v1368_v48  ;;  %1514 = vrot.lane.b32.xlu1 %v1855_v28, %s5116_s12 }
 0x211   : > { %1540 = vst.msk [vmem:[#allocation3 + $0x50] sm:$0xff] %vm1534_vm5, %v1497_v26 }
 0x212   : > { %v6342_v51 = vpop.permute.xlu0 %1500 }
 0x213   : > { %v2096_v9 = vld [vmem:[#allocation2 + $0x182] sm:$0xff]  ;;  %v2097_v57 = vld [vmem:[#allocation2 + $0x18a] sm:$0xff]  ;;  %v1626_v20 = vpop.permute.xlu1 %1625 }
 0x214   : > { %v2140_v29 = vld [vmem:[#allocation3 + $0x40] sm:$0xff]  ;;  %1669 = vst.msk [vmem:[#allocation3 + $0x50] sm:$0xff] %vm1663_vm6, %v1626_v20  ;;  %1772 = vrot.lane.b32.xlu1 %v6278_v42, %s5117_s18  ;;  %v1839_v41 = vld [vmem:[#allocation2 + $0x188] sm:$0xff]  ;;  %v1727_v45 = vpack.c.bf16 %v2097_v57, %v2096_v9  ;;  %v2794_v57 = vld [vmem:[#allocation2 + $0x19a] sm:$0xff] }
 0x215   : > { %2356 = vmatmul.mubr.bf16.gmra.mrb[16].mxu0 %v2140_v29  ;;  %v1968_v22 = vld [vmem:[#allocation2 + $0x189] sm:$0xff]  ;;  %1798 = vst.msk [vmem:[#allocation3 + $0x50] sm:$0xff] %vm1792_vm7, %v1755_v56  ;;  %v1856_v26 = vpack.c.bf16 %v1839_v41, %v1838_v24  ;;  %v2145_v29 = vld [vmem:[#allocation3 + $0x68] sm:$0xff] }
 0x216   : > { %4961 = vmatprep.mubr.msk.bf16.mxu0 %vm365_vm0, %v2143_v55  ;;  %v6349_v28 = vpop.permute.xlu0 %1758  ;;  %v1985_v53 = vpack.c.bf16 %v1968_v22, %v1967_v1  ;;  %2130 = vst.msk [vmem:[#allocation3 + $0xe8] sm:$0xff] %vm365_vm0, %v1727_v45  ;;  %v2795_v20 = vld [vmem:[#allocation2 + $0x1a2] sm:$0xff]  ;;  %v1986_v22 = vpack.c.bf16 %v6157_v7, %v6155_v25 }
 0x217   : > { %1902 = vrot.lane.b32.xlu0 %v1856_v26, %s5118_s23  ;;  %v1885_v49 = vpop.permute.xlu1 %1884  ;;  %v3097_v24 = vld [vmem:[#allocation2 + $0x9] sm:$0xff] }
 0x218   : > { %1928 = vst.msk [vmem:[#allocation3 + $0x50] sm:$0xff] %vm1922_vm8, %v1885_v49  ;;  %2031 = vrot.lane.b32.xlu1 %v1985_v53, %s5119_s30 }
 0x219   : > { %2057 = vst.msk [vmem:[#allocation3 + $0x50] sm:$0xff] %vm2051_vm9, %v2014_v38 }
 0x21a   : > { %v2018_v48 = vpop.permute.xlu0 %2017 }
 0x21b   : > { %1258 = vrot.lane.b32.xlu0 %v1984_v0, %s5113_s21  ;;  %v1241_v56 = vpop.permute.xlu1 %1240  ;;  %v1857_v0 = vpack.c.bf16 %v6153_v21, %v6147_v6  ;;  %v3224_v21 = vld [vmem:[#allocation2 + $0x2] sm:$0xff] }
 0x21c   : > { %1283 = vst.msk [vmem:[#allocation3 + $0x60] sm:$0xff] %vm1276_vm3, %v1241_v56  ;;  %1387 = vrot.lane.b32.xlu1 %v6278_v42, %s5115_s27 }
 0x21d   : > { %1412 = vst.msk [vmem:[#allocation3 + $0x60] sm:$0xff] %vm1405_vm4, %v1370_v59  ;;  %v3096_v59 = vld [vmem:[#allocation2 + $0x1] sm:$0xff] }
 0x21e   : > { %v1374_v55 = vpop.permute.xlu0 %1373  ;;  %v3128_v6 = vpack.c.bf16 %v3097_v24, %v3096_v59 }
 0x21f   : > { %1516 = vrot.lane.b32.xlu0 %v1856_v26, %s5116_s12  ;;  %v1499_v9 = vpop.permute.xlu1 %1498  ;;  %v2115_v26 = vpack.c.bf16 %v2795_v20, %v2794_v57 }
 0x220   : > { %1541 = vst.msk [vmem:[#allocation3 + $0x60] sm:$0xff] %vm1534_vm5, %v1499_v9  ;;  %1645 = vrot.lane.b32.xlu1 %v1985_v53, %s5114_s26  ;;  %v2142_v38 = vld [vmem:[#allocation3 + $0x50] sm:$0xff] }
 0x221   : > { %1670 = vst.msk [vmem:[#allocation3 + $0x60] sm:$0xff] %vm1663_vm6, %v1628_v52  ;;  %2364 = vmatmul.mubr.bf16.gmra.mrb[20].mxu0 %v2142_v38  ;;  %v3225_v52 = vld [vmem:[#allocation2 + $0xa] sm:$0xff] }
 0x222   : > { %v1632_v42 = vpop.permute.xlu0 %1631  ;;  %4962 = vmatprep.mubr.msk.bf16.mxu0 %vm365_vm0, %v2145_v29  ;;  %2131 = vst.msk [vmem:[#allocation3 + $0xf8] sm:$0xff] %vm365_vm0, %v2115_v26  ;;  %v2147_v38 = vld [vmem:[#allocation3 + $0x78] sm:$0xff] }
 0x223   : > { %1774 = vrot.lane.b32.xlu0 %v1727_v45, %s5117_s18  ;;  %v1757_v41 = vpop.permute.xlu1 %1756  ;;  %v3256_v45 = vpack.c.bf16 %v3225_v52, %v3224_v21 }
 0x224   : > { %1799 = vst.msk [vmem:[#allocation3 + $0x60] sm:$0xff] %vm1792_vm7, %v1757_v41  ;;  %1904 = vrot.lane.b32.xlu1 %v1857_v0, %s5118_s23  ;;  %v2149_v41 = vld [vmem:[#allocation3 + $0x88] sm:$0xff] }
 0x225   : > { %1929 = vst.msk [vmem:[#allocation3 + $0x60] sm:$0xff] %vm1922_vm8, %v6333_v2 }
 0x226   : > { %v1891_v1 = vpop.permute.xlu0 %1890 }
 0x227   : > { %v2016_v53 = vpop.permute.xlu1 %2015  ;;  %2033 = vrot.lane.b32.xlu0 %v1986_v22, %s5119_s30 }
 0x228   : > { %2058 = vst.msk [vmem:[#allocation3 + $0x60] sm:$0xff] %vm2051_vm9, %v2016_v53  ;;  %3160 = vrot.lane.b32.xlu1 %v3128_v6, %s5113_s21  ;;  %v2151_v53 = vld [vmem:[#allocation3 + $0x98] sm:$0xff] }
 0x229   : > { %v6382_v2 = vld [vmem:[#allocation3 + $0xf8] sm:$0xff] }
 0x22a   : > { %v1247_v7 = vpop.permute.xlu0 %1246  ;;  %4055 = vst.msk [vmem:[#allocation3 + $0xf8] sm:$0xff] %vm365_vm0, %v2115_v26 }
 0x22b   : > { %1286 = vst.msk [vmem:[#allocation3 + $0x90] sm:$0xff] %vm1276_vm3, %v1247_v7  ;;  %v1372_v25 = vpop.permute.xlu1 %1371  ;;  %3288 = vrot.lane.b32.xlu0 %v3256_v45, %s5115_s27 }
 0x22c   : > { %1413 = vst.msk [vmem:[#allocation3 + $0x70] sm:$0xff] %vm1405_vm4, %v1372_v25 }
 0x22d   : > { %1542 = vst.msk [vmem:[#allocation3 + $0x70] sm:$0xff] %vm1534_vm5, %v6342_v51 }
 0x22e   : > { %v1505_v49 = vpop.permute.xlu0 %1504 }
 0x22f   : > { %v1630_v56 = vpop.permute.xlu1 %1629  ;;  %v2144_v9 = vld [vmem:[#allocation3 + $0x60] sm:$0xff] }
 0x230   : > { %1671 = vst.msk [vmem:[#allocation3 + $0x70] sm:$0xff] %vm1663_vm6, %v1630_v56  ;;  %2372 = vmatmul.mubr.bf16.gmra.mrb[24].mxu0 %v2144_v9  ;;  %v6414_v56 = vld [vmem:[%s7454_s5] ss:$0 sm:$0xff] }
 0x231   : > { %1800 = vst.msk [vmem:[#allocation3 + $0x70] sm:$0xff] %vm1792_vm7, %v6349_v28  ;;  %4963 = vmatprep.mubr.msk.bf16.mxu0 %vm365_vm0, %v2147_v38 }
 0x232   : > { %v1763_v0 = vpop.permute.xlu0 %1762 }
 0x233   : > { %v1889_v57 = vpop.permute.xlu1 %1888 }
 0x234   : > { %1930 = vst.msk [vmem:[#allocation3 + $0x70] sm:$0xff] %vm1922_vm8, %v1889_v57 }
 0x235   : > { %2059 = vst.msk [vmem:[#allocation3 + $0x70] sm:$0xff] %vm2051_vm9, %v2018_v48 }
 0x236   : > { %v2022_v51 = vpop.permute.xlu0 %2021 }
 0x237   : > { %v1245_v20 = vpop.permute.xlu1 %1244 }
 0x238   : > { %1285 = vst.msk [vmem:[#allocation3 + $0x80] sm:$0xff] %vm1276_vm3, %v1245_v20 }
 0x239   : > { %1414 = vst.msk [vmem:[#allocation3 + $0x80] sm:$0xff] %vm1405_vm4, %v1374_v55 }
 0x23a   : > { %v1378_v29 = vpop.permute.xlu0 %1377 }
 0x23b   : > { %v1503_v59 = vpop.permute.xlu1 %1502 }
 0x23c   : > { %1543 = vst.msk [vmem:[#allocation3 + $0x80] sm:$0xff] %vm1534_vm5, %v1503_v59  ;;  %v2146_v24 = vld [vmem:[#allocation3 + $0x70] sm:$0xff]  ;;  %v2153_v59 = vld [vmem:[#allocation3 + $0xa8] sm:$0xff] }
 0x23d   : > { %1672 = vst.msk [vmem:[#allocation3 + $0x80] sm:$0xff] %vm1663_vm6, %v1632_v42  ;;  %2380 = vmatmul.mubr.bf16.gmra.mrb[28].mxu0 %v2146_v24 }
 0x23e   : > { %v1636_v28 = vpop.permute.xlu0 %1635  ;;  %4964 = vmatprep.mubr.msk.bf16.mxu0 %vm365_vm0, %v2149_v41 }
 0x23f   : > { %v1761_v22 = vpop.permute.xlu1 %1760 }
 0x240   : > { %1801 = vst.msk [vmem:[#allocation3 + $0x80] sm:$0xff] %vm1792_vm7, %v1761_v22 }
 0x241   : > { %1931 = vst.msk [vmem:[#allocation3 + $0x80] sm:$0xff] %vm1922_vm8, %v1891_v1 }
 0x242   : > { %v1895_v48 = vpop.permute.xlu0 %1894 }
 0x243   : > { %v2020_v26 = vpop.permute.xlu1 %2019 }
 0x244   : > { %2060 = vst.msk [vmem:[#allocation3 + $0x80] sm:$0xff] %vm2051_vm9, %v2020_v26 }
 0x246   : > { %v1251_v55 = vpop.permute.xlu0 %1250 }
 0x247   : > { %1288 = vst.msk [vmem:[#allocation3 + $0xb0] sm:$0xff] %vm1276_vm3, %v1251_v55  ;;  %v1376_v6 = vpop.permute.xlu1 %1375 }
 0x248   : > { %1415 = vst.msk [vmem:[#allocation3 + $0x90] sm:$0xff] %vm1405_vm4, %v1376_v6 }
 0x249   : > { %1544 = vst.msk [vmem:[#allocation3 + $0x90] sm:$0xff] %vm1534_vm5, %v1505_v49 }
 0x24a   : > { %v1509_v42 = vpop.permute.xlu0 %1508 }
 0x24b   : > { %v1634_v21 = vpop.permute.xlu1 %1633  ;;  %v2148_v52 = vld [vmem:[#allocation3 + $0x80] sm:$0xff] }
 0x24c   : > { %1673 = vst.msk [vmem:[#allocation3 + $0x90] sm:$0xff] %vm1663_vm6, %v1634_v21  ;;  %2388 = vmatmul.mubr.bf16.gmra.mrb[32].mxu0 %v2148_v52 }
 0x24d   : > { %1802 = vst.msk [vmem:[#allocation3 + $0x90] sm:$0xff] %vm1792_vm7, %v1763_v0  ;;  %4965 = vmatprep.mubr.msk.bf16.mxu0 %vm365_vm0, %v2151_v53 }
 0x24e   : > { %v1767_v1 = vpop.permute.xlu0 %1766 }
 0x24f   : > { %v1893_v45 = vpop.permute.xlu1 %1892 }
 0x250   : > { %1932 = vst.msk [vmem:[#allocation3 + $0x90] sm:$0xff] %vm1922_vm8, %v1893_v45 }
 0x251   : > { %2061 = vst.msk [vmem:[#allocation3 + $0x90] sm:$0xff] %vm2051_vm9, %v2022_v51 }
 0x252   : > { %v2026_v7 = vpop.permute.xlu0 %2025 }
 0x253   : > { %v1249_v25 = vpop.permute.xlu1 %1248 }
 0x254   : > { %1287 = vst.msk [vmem:[#allocation3 + $0xa0] sm:$0xff] %vm1276_vm3, %v1249_v25 }
 0x255   : > { %1416 = vst.msk [vmem:[#allocation3 + $0xa0] sm:$0xff] %vm1405_vm4, %v1378_v29 }
 0x256   : > { %v1382_v49 = vpop.permute.xlu0 %1381 }
 0x257   : > { %v1507_v9 = vpop.permute.xlu1 %1506 }
 0x258   : > { %v2325_v38 = vpop.f32.mrb[0].mxu0  ;;  %1545 = vst.msk [vmem:[#allocation3 + $0xa0] sm:$0xff] %vm1534_vm5, %v1507_v9  ;;  %v2150_v57 = vld [vmem:[#allocation3 + $0x90] sm:$0xff] }
 0x259   : > { %v2326_v0 = vadd.f32 %v6414_v56, %v2325_v38  ;;  %v2327_v51 = vpop.f32.mrb[1].mxu0  ;;  %1674 = vst.msk [vmem:[#allocation3 + $0xa0] sm:$0xff] %vm1663_vm6, %v1636_v28  ;;  %2396 = vmatmul.mubr.bf16.gmra.mrb[36].mxu0 %v2150_v57 }
 0x25a   : > { %v1640_v20 = vpop.permute.xlu0 %1639  ;;  %v2328_v29 = vpop.f32.mrb[2].mxu0  ;;  %4966 = vmatprep.mubr.msk.bf16.mxu0 %vm365_vm0, %v2153_v59 }
 0x25b   : > { %vm2452_vm10 = vcmp.ge.f32.partialorder %v2326_v0, 0.0  ;;  %v2484_v24 = vmul.f32 0.2, %v2326_v0  ;;  %v2329_v41 = vadd.f32 %v6414_v56, %v2328_v29  ;;  %v2330_v22 = vpop.f32.mrb[3].mxu0  ;;  %v1765_v26 = vpop.permute.xlu1 %1764 }
 0x25c   : > { %1803 = vst.msk [vmem:[#allocation3 + $0xa0] sm:$0xff] %vm1792_vm7, %v1765_v26 }
 0x25d   : > { %v2516_v55 = vsel %vm2452_vm10, %v2326_v0, %v2484_v24  ;;  %vm2453_vm11 = vcmp.ge.f32.partialorder %v2329_v41, 0.0  ;;  %v2485_v6 = vmul.f32 0.2, %v2329_v41  ;;  %1933 = vst.msk [vmem:[#allocation3 + $0xa0] sm:$0xff] %vm1922_vm8, %v1895_v48  ;;  %v2155_v48 = vld [vmem:[#allocation3 + $0xb8] sm:$0xff] }
 0x25e   : > { %2548 = vst.msk [vmem:[#allocation2 + $0x19] sm:$0xff] %vm365_vm0, %v2516_v55  ;;  %v1899_v28 = vpop.permute.xlu0 %1898  ;;  %v5091_v55 = vld [vmem:[#allocation2] sm:$0xff] }
 0x25f   : > { %v2517_v21 = vsel %vm2453_vm11, %v2329_v41, %v2485_v6  ;;  %v2024_v52 = vpop.permute.xlu1 %2023  ;;  %v2616_v6 = vmul.f32 0.25, %v5091_v55 }
 0x260   : > { %2549 = vst.msk [vmem:[#allocation2 + $0x21] sm:$0xff] %vm365_vm0, %v2517_v21 }
 0x261   : > { %2062 = vst.msk [vmem:[#allocation3 + $0xa0] sm:$0xff] %vm2051_vm9, %v2024_v52 }
 0x262   : > { %v1255_v53 = vpop.permute.xlu0 %1254 }
 0x263   : > { %1290 = vst.msk [vmem:[#allocation3 + $0xd0] sm:$0xff] %vm1276_vm3, %v1255_v53  ;;  %v1380_v45 = vpop.permute.xlu1 %1379 }
 0x264   : > { %1417 = vst.msk [vmem:[#allocation3 + $0xb0] sm:$0xff] %vm1405_vm4, %v1380_v45 }
 0x265   : > { %1546 = vst.msk [vmem:[#allocation3 + $0xb0] sm:$0xff] %vm1534_vm5, %v1509_v42  ;;  %v2582_v29 = vld [vmem:[#allocation2 + $0x18] sm:$0xff] }
 0x266   : > { %v1513_v0 = vpop.permute.xlu0 %1512  ;;  %v2654_v24 = vld [vmem:[#allocation2 + $0x19] sm:$0xff]  ;;  %v2618_v52 = vmul.f32 0.25, %v2582_v29 }
 0x267   : > { %v1638_v25 = vpop.permute.xlu1 %1637  ;;  %v2690_v53 = vmul.f32 0.5, %v2654_v24  ;;  %v5095_v24 = vld [vmem:[#allocation2 + $0x2] sm:$0xff] }
 0x268   : > { %v2152_v9 = vld [vmem:[#allocation3 + $0xa0] sm:$0xff]  ;;  %1675 = vst.msk [vmem:[#allocation3 + $0xb0] sm:$0xff] %vm1663_vm6, %v1638_v25  ;;  %v2583_v25 = vld [vmem:[#allocation2 + $0x20] sm:$0xff]  ;;  %v2796_v55 = vmul.f32 0.25, %v5095_v24 }
 0x269   : > { %2404 = vmatmul.mubr.bf16.gmra.mrb[40].mxu0 %v2152_v9  ;;  %1804 = vst.msk [vmem:[#allocation3 + $0xb0] sm:$0xff] %vm1792_vm7, %v1767_v1  ;;  %v2157_v1 = vld [vmem:[#allocation3 + $0xc8] sm:$0xff]  ;;  %v2655_v9 = vld [vmem:[#allocation2 + $0x21] sm:$0xff] }
 0x26a   : > { %4967 = vmatprep.mubr.msk.bf16.mxu0 %vm365_vm0, %v2155_v48  ;;  %v6436_v42 = vpop.permute.xlu0 %1770  ;;  %v2691_v23 = vmul.f32 0.5, %v2655_v9 }
 0x26b   : > { %v1897_v38 = vpop.permute.xlu1 %1896 }
 0x26c   : > { %1934 = vst.msk [vmem:[#allocation3 + $0xb0] sm:$0xff] %vm1922_vm8, %v1897_v38 }
 0x26d   : > { %2063 = vst.msk [vmem:[#allocation3 + $0xb0] sm:$0xff] %vm2051_vm9, %v2026_v7 }
 0x26e   : > { %v6442_v22 = vpop.permute.xlu0 %2029 }
 0x26f   : > { %v1253_v57 = vpop.permute.xlu1 %1252 }
 0x270   : > { %1289 = vst.msk [vmem:[#allocation3 + $0xc0] sm:$0xff] %vm1276_vm3, %v1253_v57 }
 0x271   : > { %1418 = vst.msk [vmem:[#allocation3 + $0xc0] sm:$0xff] %vm1405_vm4, %v1382_v49 }
 0x273   : > { %v1511_v51 = vpop.permute.xlu1 %1510 }
 0x274   : > { %1547 = vst.msk [vmem:[#allocation3 + $0xc0] sm:$0xff] %vm1534_vm5, %v1511_v51  ;;  %v2154_v59 = vld [vmem:[#allocation3 + $0xb0] sm:$0xff] }
 0x275   : > { %1676 = vst.msk [vmem:[#allocation3 + $0xc0] sm:$0xff] %vm1663_vm6, %v1640_v20  ;;  %2412 = vmatmul.mubr.bf16.gmra.mrb[44].mxu0 %v2154_v59  ;;  %v5092_v20 = vld [vmem:[#allocation2 + $0x1] sm:$0xff]  ;;  %v5093_v59 = vld [vmem:[#allocation2 + $0x9] sm:$0xff] }
 0x276   : > { %4968 = vmatprep.mubr.msk.bf16.mxu0 %vm365_vm0, %v2157_v1  ;;  %v2688_v21 = vmul.f32 0.5, %v5092_v20  ;;  %v2762_v1 = vld [vmem:[#allocation2 + $0x1a] sm:$0xff]  ;;  %v2619_v20 = vmul.f32 0.25, %v2583_v25 }
 0x277   : > { %v1769_v7 = vpop.permute.xlu1 %1768  ;;  %v2798_v19 = vmul.f32 0.25, %v2762_v1 }
 0x278   : > { %1805 = vst.msk [vmem:[#allocation3 + $0xc0] sm:$0xff] %vm1792_vm7, %v1769_v7  ;;  %v2333_v41 = vpop.f32.mrb[4].mxu0  ;;  %v5094_v7 = vld [vmem:[#allocation2 + $0x8] sm:$0xff]  ;;  %v2724_v12 = vadd.f32 %v2688_v21, %v2616_v6  ;;  %v2727_v25 = vadd.f32 %v2691_v23, %v2619_v20 }
 0x279   : > { %1935 = vst.msk [vmem:[#allocation3 + $0xc0] sm:$0xff] %vm1922_vm8, %v1899_v28  ;;  %v2334_v49 = vadd.f32 %v6414_v56, %v2333_v41  ;;  %v2335_v26 = vpop.f32.mrb[5].mxu0  ;;  %v2689_v28 = vmul.f32 0.5, %v5093_v59  ;;  %v2617_v41 = vmul.f32 0.25, %v5094_v7  ;;  %v2763_v7 = vld [vmem:[#allocation2 + $0x22] sm:$0xff] }
 0x27a   : > { %v2336_v45 = vpop.f32.mrb[6].mxu0  ;;  %v2832_v9 = vadd.f32 %v2796_v55, %v2724_v12 }
 0x27b   : > { %vm2454_vm12 = vcmp.ge.f32.partialorder %v2334_v49, 0.0  ;;  %v2486_v48 = vmul.f32 0.2, %v2334_v49  ;;  %v2337_v38 = vadd.f32 %v6414_v56, %v2336_v45  ;;  %v2028_v57 = vpop.permute.xlu1 %2027  ;;  %v2338_v51 = vpop.f32.mrb[7].mxu0  ;;  %v2726_v45 = vadd.f32 %v2690_v53, %v2618_v52  ;;  %v2159_v53 = vld [vmem:[#allocation3 + $0xd8] sm:$0xff] }
 0x27c   : > { %2064 = vst.msk [vmem:[#allocation3 + $0xc0] sm:$0xff] %vm2051_vm9, %v2028_v57  ;;  %v1386_v51 = vpop.permute.xlu0 %1385  ;;  %v2725_v57 = vadd.f32 %v2689_v28, %v2617_v41  ;;  %v2799_v52 = vmul.f32 0.25, %v2763_v7 }
 0x27d   : > { %v2518_v26 = vsel %vm2454_vm12, %v2334_v49, %v2486_v48  ;;  %vm2455_vm13 = vcmp.ge.f32.partialorder %v2337_v38, 0.0  ;;  %v2487_v29 = vmul.f32 0.2, %v2337_v38  ;;  %v5096_v49 = vld [vmem:[#allocation2 + $0xa] sm:$0xff]  ;;  %v6452_v24 = vadd.f32 %v2798_v19, %v2726_v45 }
 0x27e   : > { %2550 = vst.msk [vmem:[#allocation2 + $0x31] sm:$0xff] %vm365_vm0, %v2518_v26  ;;  %v2797_v48 = vmul.f32 0.25, %v5096_v49  ;;  %v6458_v23 = vadd.f32 %v2799_v52, %v2727_v25 }
 0x27f   : > { %v2519_v46 = vsel %vm2455_vm13, %v2337_v38, %v2487_v29  ;;  %v1384_v59 = vpop.permute.xlu1 %1383  ;;  %v2900_v41 = vmul.f32 0.5, %v6452_v24 }
 0x280   : > { %2551 = vst.msk [vmem:[#allocation2 + $0x39] sm:$0xff] %vm365_vm0, %v2519_v46  ;;  %v2833_v46 = vadd.f32 %v2797_v48, %v2725_v57  ;;  %v1644_v38 = vpop.permute.xlu0 %1643  ;;  %v2901_v25 = vmul.f32 0.5, %v6458_v23 }
 0x281   : > { %1419 = vst.msk [vmem:[#allocation3 + $0xd0] sm:$0xff] %vm1405_vm4, %v1384_v59 }
 0x282   : > { %1548 = vst.msk [vmem:[#allocation3 + $0xd0] sm:$0xff] %vm1534_vm5, %v1513_v0  ;;  %v2868_v0 = vmul.f32 0.25, %v2832_v9 }
 0x283   : > { %v1642_v6 = vpop.permute.xlu1 %1641  ;;  %v2156_v21 = vld [vmem:[#allocation3 + $0xc0] sm:$0xff] }
 0x284   : > { %1677 = vst.msk [vmem:[#allocation3 + $0xd0] sm:$0xff] %vm1663_vm6, %v1642_v6  ;;  %2420 = vmatmul.mubr.bf16.gmra.mrb[48].mxu0 %v2156_v21 }
 0x285   : > { %v2584_v1 = vld [vmem:[#allocation2 + $0x30] sm:$0xff]  ;;  %1806 = vst.msk [vmem:[#allocation3 + $0xd0] sm:$0xff] %vm1792_vm7, %v6436_v42  ;;  %4969 = vmatprep.mubr.msk.bf16.mxu0 %vm365_vm0, %v2159_v53  ;;  %v2869_v42 = vmul.f32 0.25, %v2833_v46  ;;  %v2932_v53 = vadd.f32 %v2900_v41, %v2868_v0  ;;  %v3032_v46 = vld [vmem:[#allocation2] sm:$0xff] }
 0x286   : > { %v2656_v28 = vld [vmem:[#allocation2 + $0x31] sm:$0xff]  ;;  %v2620_v19 = vmul.f32 0.25, %v2584_v1 }
 0x287   : > { %v2692_v12 = vmul.f32 0.5, %v2656_v28  ;;  %v2585_v26 = vld [vmem:[#allocation2 + $0x38] sm:$0xff]  ;;  %v1901_v20 = vpop.permute.xlu1 %1900 }
 0x288   : > { %v2657_v29 = vld [vmem:[#allocation2 + $0x39] sm:$0xff]  ;;  %v2621_v59 = vmul.f32 0.25, %v2585_v26  ;;  %1936 = vst.msk [vmem:[#allocation3 + $0xd0] sm:$0xff] %vm1922_vm8, %v1901_v20  ;;  %v2933_v26 = vadd.f32 %v2901_v25, %v2869_v42 }
 0x289   : > { %v2764_v55 = vld [vmem:[#allocation2 + $0x32] sm:$0xff]  ;;  %v2728_v45 = vadd.f32 %v2692_v12, %v2620_v19  ;;  %v2693_v57 = vmul.f32 0.5, %v2657_v29  ;;  %v2765_v49 = vld [vmem:[#allocation2 + $0x3a] sm:$0xff]  ;;  %2065 = vst.msk [vmem:[#allocation3 + $0xd0] sm:$0xff] %vm2051_vm9, %v6442_v22  ;;  %v1903_v7 = vpop.permute.xlu0 %1902  ;;  %v3033_v19 = vld [vmem:[#allocation2 + $0x8] sm:$0xff] }
 0x28a   : > { %v2800_v48 = vmul.f32 0.25, %v2764_v55  ;;  %v2801_v6 = vmul.f32 0.25, %v2765_v49  ;;  %v3064_v12 = vpack.c.bf16 %v3033_v19, %v3032_v46  ;;  %v2161_v20 = vld [vmem:[#allocation3 + $0xe8] sm:$0xff] }
 0x28b   : > { %v2729_v9 = vadd.f32 %v2693_v57, %v2621_v59  ;;  %v1257_v52 = vpop.permute.xlu1 %1256  ;;  %v5081_v59 = vld [vmem:[%s7455_s6] sm:$0xff]  }
 0x28c   : > { %v6465_v21 = vadd.f32 %v2800_v48, %v2728_v45  ;;  %1291 = vst.msk [vmem:[#allocation3 + $0xe0] sm:$0xff] %vm1276_vm3, %v1257_v52  ;;  %4209 = vmatpush1.bf16.msra.mxu1 %v5081_v59 }
 0x28d   : > { %v6467_v1 = vadd.f32 %v2801_v6, %v2729_v9  ;;  %1420 = vst.msk [vmem:[#allocation3 + $0xe0] sm:$0xff] %vm1405_vm4, %v1386_v51  ;;  %v1259_v22 = vpop.permute.xlu0 %1258  ;;  %4210 = vmatprep.subr.bf16.mxu1 %v7554_v13 }
 0x28e   : > { %v6470_v28 = vmul.f32 0.25, %v6465_v21  ;;  %1292 = vst.msk [vmem:[#allocation3 + $0xf0] sm:$0xff] %vm1276_vm3, %v1259_v22 }
 0x28f   : > { %v6475_v29 = vmul.f32 0.25, %v6467_v1  ;;  %v1515_v0 = vpop.permute.xlu1 %1514  ;;  %3080 = vst.msk [vmem:[#allocation3] sm:$0xff] %vm365_vm0, %v3064_v12  ;;  %v5082_v12 = vld [vmem:[%s7455_s6 + $0x8] sm:$0xff]  }
 0x290   : > { %v2968_v55 = vadd.f32 %v2932_v53, %v6470_v28  ;;  %1549 = vst.msk [vmem:[#allocation3 + $0xe0] sm:$0xff] %vm1534_vm5, %v1515_v0  ;;  %v2158_v51 = vld [vmem:[#allocation3 + $0xd0] sm:$0xff]  ;;  %4211 = vmatpush1.bf16.msra.mxu1 %v5082_v12 }
 0x291   : > { %v2969_v41 = vadd.f32 %v2933_v26, %v6475_v29  ;;  %1678 = vst.msk [vmem:[#allocation3 + $0xe0] sm:$0xff] %vm1663_vm6, %v1644_v38  ;;  %2428 = vmatmul.mubr.bf16.gmra.mrb[52].mxu0 %v2158_v51  ;;  %v1517_v48 = vpop.permute.xlu0 %1516  ;;  %4212 = vmatprep.subr.bf16.mxu1 %v7554_v13 }
 0x292   : > { %3000 = vst.msk [vmem:[#allocation2 + $0x19] sm:$0xff] %vm365_vm0, %v2968_v55  ;;  %4970 = vmatprep.mubr.msk.bf16.mxu0 %vm365_vm0, %v2161_v20 }
 0x293   : > { %3001 = vst.msk [vmem:[#allocation2 + $0x21] sm:$0xff] %vm365_vm0, %v2969_v41  ;;  %v1773_v45 = vpop.permute.xlu1 %1772 }
 0x294   : > { %1807 = vst.msk [vmem:[#allocation3 + $0xe0] sm:$0xff] %vm1792_vm7, %v1773_v45 }
 0x295   : > { %1937 = vst.msk [vmem:[#allocation3 + $0xe0] sm:$0xff] %vm1922_vm8, %v1903_v7  ;;  %v1775_v45 = vpop.permute.xlu0 %1774 }
 0x297   : > { %v2032_v57 = vpop.permute.xlu1 %2031 }
 0x298   : > { %v2341_v49 = vpop.f32.mrb[8].mxu0  ;;  %2066 = vst.msk [vmem:[#allocation3 + $0xe0] sm:$0xff] %vm2051_vm9, %v2032_v57 }
 0x299   : > { %v2342_v38 = vadd.f32 %v6414_v56, %v2341_v49  ;;  %v2343_v42 = vpop.f32.mrb[9].mxu0  ;;  %v3352_v9 = vld [vmem:[#allocation2 + $0x18] sm:$0xff]  ;;  %v5083_v49 = vld [vmem:[%s7455_s6 + $0x10] sm:$0xff]  }
 0x29a   : > { %v2344_v25 = vpop.f32.mrb[10].mxu0  ;;  %v3353_v6 = vld [vmem:[#allocation2 + $0x20] sm:$0xff]  ;;  %4213 = vmatpush1.bf16.msra.mxu1 %v5083_v49 }
 0x29b   : > { %v3481_v52 = vld [vmem:[#allocation2 + $0x21] sm:$0xff]  ;;  %vm2456_vm14 = vcmp.ge.f32.partialorder %v2342_v38, 0.0  ;;  %v2488_v7 = vmul.f32 0.2, %v2342_v38  ;;  %v2345_v53 = vadd.f32 %v6414_v56, %v2344_v25  ;;  %v2346_v46 = vpop.f32.mrb[11].mxu0  ;;  %v3384_v19 = vpack.c.bf16 %v3353_v6, %v3352_v9  ;;  %v3480_v22 = vld [vmem:[#allocation2 + $0x19] sm:$0xff]  ;;  %v1388_v26 = vpop.permute.xlu1 %1387  ;;  %4214 = vmatprep.subr.bf16.mxu1 %v7554_v13 }
 0x29c   : > { %v3512_v55 = vpack.c.bf16 %v3481_v52, %v3480_v22  ;;  %v3608_v0 = vld [vmem:[#allocation2 + $0x1a] sm:$0xff]  ;;  %v3609_v41 = vld [vmem:[#allocation2 + $0x22] sm:$0xff]  ;;  %1421 = vst.msk [vmem:[#allocation3 + $0xf0] sm:$0xff] %vm1405_vm4, %v1388_v26 }
 0x29d   : > { %v2520_v51 = vsel %vm2456_vm14, %v2342_v38, %v2488_v7  ;;  %vm2457_vm15 = vcmp.ge.f32.partialorder %v2345_v53, 0.0  ;;  %v2489_v20 = vmul.f32 0.2, %v2345_v53  ;;  %3416 = vrot.lane.b32.xlu1 %v3384_v19, %s5116_s12  ;;  %3081 = vst.msk [vmem:[#allocation3 + $0x10] sm:$0xff] %vm365_vm0, %v3384_v19  ;;  %v3640_v57 = vpack.c.bf16 %v3609_v41, %v3608_v0  ;;  %v5084_v25 = vld [vmem:[%s7455_s6 + $0x18] sm:$0xff]  }
 0x29e   : > { %2552 = vst.msk [vmem:[#allocation2 + $0x49] sm:$0xff] %vm365_vm0, %v2520_v51  ;;  %3544 = vrot.lane.b32.xlu0 %v3512_v55, %s5114_s26  ;;  %4215 = vmatpush1.bf16.msra.mxu1 %v5084_v25 }
 0x29f   : > { %1550 = vst.msk [vmem:[#allocation3 + $0xf0] sm:$0xff] %vm1534_vm5, %v1517_v48  ;;  %v2521_v59 = vsel %vm2457_vm15, %v2345_v53, %v2489_v20  ;;  %v1646_v38 = vpop.permute.xlu1 %1645  ;;  %v2160_v42 = vld [vmem:[#allocation3 + $0xe0] sm:$0xff]  ;;  %v2034_v48 = vpop.permute.xlu0 %2033  ;;  %4216 = vmatprep.subr.bf16.mxu1 %v7554_v13  ;;  %v5085_v20 = vld [vmem:[%s7455_s6 + $0x20] sm:$0xff]  }
 0x2a0   : > { %2553 = vst.msk [vmem:[#allocation2 + $0x51] sm:$0xff] %vm365_vm0, %v2521_v59  ;;  %2436 = vmatmul.mubr.bf16.gmra.mrb[56].mxu0 %v2160_v42  ;;  %v5086_v42 = vld [vmem:[%s7455_s6 + $0x28] sm:$0xff]  }
 0x2a1   : > { %1679 = vst.msk [vmem:[#allocation3 + $0xf0] sm:$0xff] %vm1663_vm6, %v1646_v38  ;;  %3672 = vrot.lane.b32.xlu1 %v3640_v57, %s5117_s18  ;;  %4971 = vmatprep.mubr.msk.bf16.mxu0 %vm365_vm0, %v6382_v2  ;;  %v2902_v2 = vmul.f32 0.5, %v6465_v21  ;;  %v2903_v21 = vmul.f32 0.5, %v6467_v1 }
 0x2a2   : > { %1808 = vst.msk [vmem:[#allocation3 + $0xf0] sm:$0xff] %vm1792_vm7, %v1775_v45  ;;  %3162 = vrot.lane.b32.xlu0 %v3512_v55, %s5113_s21  ;;  %v2870_v45 = vmul.f32 0.25, %v6452_v24  ;;  %4217 = vmatpush1.bf16.msra.mxu1 %v5085_v20 }
 0x2a3   : > { %v1905_v9 = vpop.permute.xlu1 %1904  ;;  %v3289_v59 = vpop.permute.xlu0 %3288  ;;  %4218 = vmatprep.subr.bf16.mxu1 %v7554_v13 }
 0x2a4   : > { %1938 = vst.msk [vmem:[#allocation3 + $0xf0] sm:$0xff] %vm1922_vm8, %v1905_v9  ;;  %v2934_v25 = vadd.f32 %v2902_v2, %v2870_v45  ;;  %v5088_v2 = vld [vmem:[%s7455_s6 + $0x38] sm:$0xff]  }
 0x2a5   : > { %v2586_v6 = vld [vmem:[#allocation2 + $0x48] sm:$0xff]  ;;  %3290 = vrot.lane.b32.xlu1 %v3640_v57, %s5115_s27  ;;  %2067 = vst.msk [vmem:[#allocation3 + $0xf0] sm:$0xff] %vm2051_vm9, %v2034_v48  ;;  %v2871_v48 = vmul.f32 0.25, %v6458_v23  ;;  %v5087_v23 = vld [vmem:[%s7455_s6 + $0x30] sm:$0xff]  }
 0x2a6   : > { %v2658_v52 = vld [vmem:[#allocation2 + $0x49] sm:$0xff]  ;;  %v2622_v7 = vmul.f32 0.25, %v2586_v6  ;;  %4219 = vmatpush1.bf16.msra.mxu1 %v5086_v42 }
 0x2a7   : > { %v2694_v53 = vmul.f32 0.5, %v2658_v52  ;;  %v2587_v46 = vld [vmem:[#allocation2 + $0x50] sm:$0xff]  ;;  %v3161_v51 = vpop.permute.xlu1 %3160  ;;  %v2935_v6 = vadd.f32 %v2903_v21, %v2871_v48  ;;  %4220 = vmatprep.subr.bf16.mxu1 %v7554_v13 }
 0x2a8   : > { %v2659_v19 = vld [vmem:[#allocation2 + $0x51] sm:$0xff]  ;;  %v2623_v26 = vmul.f32 0.25, %v2587_v46  ;;  %3208 = vst.msk [vmem:[#allocation3] sm:$0xff] %vm1276_vm3, %v3161_v51  ;;  %v5089_v46 = vld [vmem:[%s7455_s6 + $0x40] sm:$0xff]  }
 0x2a9   : > { %v2766_v22 = vld [vmem:[#allocation2 + $0x4a] sm:$0xff]  ;;  %v2730_v12 = vadd.f32 %v2694_v53, %v2622_v7  ;;  %v2695_v55 = vmul.f32 0.5, %v2659_v19  ;;  %v2767_v0 = vld [vmem:[#allocation2 + $0x52] sm:$0xff]  ;;  %3336 = vst.msk [vmem:[#allocation3] sm:$0xff] %vm1405_vm4, %v3289_v59 }
 0x2aa   : > { %v2802_v41 = vmul.f32 0.25, %v2766_v22  ;;  %v2803_v49 = vmul.f32 0.25, %v2767_v0  ;;  %4221 = vmatpush1.bf16.msra.mxu1 %v5087_v23 }
 0x2ab   : > { %v2731_v57 = vadd.f32 %v2695_v55, %v2623_v26  ;;  %4222 = vmatprep.subr.bf16.mxu1 %v7554_v13 }
 0x2ac   : > { %v6530_v38 = vadd.f32 %v2802_v41, %v2730_v12  ;;  %v2162_v1 = vld [vmem:[#allocation3 + $0xf0] sm:$0xff] }
 0x2ad   : > { %v6537_v24 = vadd.f32 %v2803_v49, %v2731_v57  ;;  %2444 = vmatmul.mubr.bf16.gmra.mrb[60].mxu0 %v2162_v1 }
 0x2ae   : > { %v6540_v9 = vmul.f32 0.25, %v6530_v38  ;;  %4223 = vmatpush1.bf16.msra.mxu1 %v5088_v2 }
 0x2af   : > { %v6544_v52 = vmul.f32 0.25, %v6537_v24  ;;  %4224 = vmatprep.subr.bf16.mxu1 %v7554_v13 }
 0x2b0   : > { %v2970_v7 = vadd.f32 %v2934_v25, %v6540_v9 }
 0x2b1   : > { %v2971_v53 = vadd.f32 %v2935_v6, %v6544_v52 }
 0x2b2   : > { %3002 = vst.msk [vmem:[#allocation2 + $0x31] sm:$0xff] %vm365_vm0, %v2970_v7  ;;  %4225 = vmatpush1.bf16.msra.mxu1 %v5089_v46  ;;  %v2904_v46 = vmul.f32 0.5, %v6530_v38 }
 0x2b3   : > { %3003 = vst.msk [vmem:[#allocation2 + $0x39] sm:$0xff] %vm365_vm0, %v2971_v53 }
 0x2b8   : > { %v2349_v19 = vpop.f32.mrb[12].mxu0 }
 0x2b9   : > { %v3864_v22 = vld [vmem:[#allocation2 + $0x31] sm:$0xff]  ;;  %v2350_v26 = vadd.f32 %v6414_v56, %v2349_v19  ;;  %v2351_v55 = vpop.f32.mrb[13].mxu0 }
 0x2ba   : > { %v3736_v12 = vld [vmem:[#allocation2 + $0x30] sm:$0xff]  ;;  %v3865_v0 = vld [vmem:[#allocation2 + $0x39] sm:$0xff]  ;;  %v2352_v20 = vpop.f32.mrb[14].mxu0 }
 0x2bb   : > { %v3737_v41 = vld [vmem:[#allocation2 + $0x38] sm:$0xff]  ;;  %v3896_v45 = vpack.c.bf16 %v3865_v0, %v3864_v22  ;;  %vm2458_vm1 = vcmp.ge.f32.partialorder %v2350_v26, 0.0  ;;  %v2490_v57 = vmul.f32 0.2, %v2350_v26  ;;  %v2353_v49 = vadd.f32 %v6414_v56, %v2352_v20  ;;  %v2354_v42 = vpop.f32.mrb[15].mxu0 }
 0x2bc   : > { %v3992_v51 = vld [vmem:[#allocation2 + $0x32] sm:$0xff]  ;;  %v3768_v59 = vpack.c.bf16 %v3737_v41, %v3736_v12  ;;  %v3993_v21 = vld [vmem:[#allocation2 + $0x3a] sm:$0xff]  ;;  %v2905_v20 = vmul.f32 0.5, %v6537_v24 }
 0x2bd   : > { %v4024_v48 = vpack.c.bf16 %v3993_v21, %v3992_v51  ;;  %3928 = vrot.lane.b32.xlu1 %v3896_v45, %s5119_s30  ;;  %v2522_v13 = vsel %vm2458_vm1, %v2350_v26, %v2490_v57  ;;  %vm2459_vm2 = vcmp.ge.f32.partialorder %v2353_v49, 0.0  ;;  %v2491_v25 = vmul.f32 0.2, %v2353_v49 }
 0x2be   : > { %3800 = vrot.lane.b32.xlu0 %v3768_v59, %s5118_s23  ;;  %3082 = vst.msk [vmem:[#allocation3 + $0x20] sm:$0xff] %vm365_vm0, %v3768_v59  ;;  %2554 = vst.msk [vmem:[#allocation2 + $0x61] sm:$0xff] %vm365_vm0, %v2522_v13  ;;  %v2936_v57 = vadd.f32 %v2904_v46, %v6470_v28  ;;  %v2937_v42 = vadd.f32 %v2905_v20, %v6475_v29 }
 0x2bf   : > { %4040 = vst.msk [vmem:[#allocation3 + $0x8] sm:$0xff] %vm365_vm0, %v4024_v48  ;;  %v2523_v1 = vsel %vm2459_vm2, %v2353_v49, %v2491_v25 }
 0x2c0   : > { %2555 = vst.msk [vmem:[#allocation2 + $0x69] sm:$0xff] %vm365_vm0, %v2523_v1 }
 0x2c1   : > { %3546 = vrot.lane.b32.xlu1 %v3896_v45, %s5114_s26 }
 0x2c2   : > { %3418 = vrot.lane.b32.xlu0 %v3768_v59, %s5116_s12 }
 0x2c5   : > { %3164 = vrot.lane.b32.xlu1 %v3896_v45, %s5113_s21  ;;  %v2588_v7 = vld [vmem:[#allocation2 + $0x60] sm:$0xff] }
 0x2c6   : > { %v4057_v6 = vld [vmem:[#allocation3 + $0x8] sm:$0xff]  ;;  %3674 = vrot.lane.b32.xlu0 %v4024_v48, %s5117_s18  ;;  %v2660_v23 = vld [vmem:[#allocation2 + $0x61] sm:$0xff]  ;;  %v2624_v53 = vmul.f32 0.25, %v2588_v7 }
 0x2c7   : > { %4981 = vmatprep.mubr.msk.bf16.mxu1 %vm365_vm0, %v4057_v6  ;;  %v2696_v2 = vmul.f32 0.5, %v2660_v23  ;;  %v2589_v19 = vld [vmem:[#allocation2 + $0x68] sm:$0xff] }
 0x2c8   : > { %v2661_v22 = vld [vmem:[#allocation2 + $0x69] sm:$0xff]  ;;  %v2625_v55 = vmul.f32 0.25, %v2589_v19 }
 0x2c9   : > { %v2768_v12 = vld [vmem:[#allocation2 + $0x62] sm:$0xff]  ;;  %v2732_v26 = vadd.f32 %v2696_v2, %v2624_v53  ;;  %v2697_v0 = vmul.f32 0.5, %v2661_v22  ;;  %v2769_v41 = vld [vmem:[#allocation2 + $0x6a] sm:$0xff] }
 0x2ca   : > { %v2804_v51 = vmul.f32 0.25, %v2768_v12  ;;  %3292 = vrot.lane.b32.xlu0 %v4024_v48, %s5115_s27  ;;  %v2805_v59 = vmul.f32 0.25, %v2769_v41 }
 0x2cb   : > { %v2733_v45 = vadd.f32 %v2697_v0, %v2625_v55 }
 0x2cc   : > { %v2840_v21 = vadd.f32 %v2804_v51, %v2732_v26 }
 0x2cd   : > { %v6579_v49 = vadd.f32 %v2805_v59, %v2733_v45 }
 0x2ce   : > { %v6581_v38 = vmul.f32 0.25, %v2840_v21 }
 0x2cf   : > { %v6585_v13 = vmul.f32 0.25, %v6579_v49 }
 0x2d0   : > { %v2972_v25 = vadd.f32 %v2936_v57, %v6581_v38 }
 0x2d1   : > { %v2973_v48 = vadd.f32 %v2937_v42, %v6585_v13 }
 0x2d2   : > { %3004 = vst.msk [vmem:[#allocation2 + $0x49] sm:$0xff] %vm365_vm0, %v2972_v25 }
 0x2d3   : > { %3005 = vst.msk [vmem:[#allocation2 + $0x51] sm:$0xff] %vm365_vm0, %v2973_v48 }
 0x2d9   : > { %v3738_v24 = vld [vmem:[#allocation2 + $0x48] sm:$0xff] }
 0x2da   : > { %v3866_v1 = vld [vmem:[#allocation2 + $0x49] sm:$0xff]  ;;  %v3867_v6 = vld [vmem:[#allocation2 + $0x51] sm:$0xff] }
 0x2db   : > { %v3739_v28 = vld [vmem:[#allocation2 + $0x50] sm:$0xff]  ;;  %v3897_v53 = vpack.c.bf16 %v3867_v6, %v3866_v1  ;;  %v3038_v29 = vld [vmem:[#allocation2 + $0x48] sm:$0xff] }
 0x2dc   : > { %v3612_v7 = vld [vmem:[#allocation2 + $0x4a] sm:$0xff]  ;;  %v3769_v23 = vpack.c.bf16 %v3739_v28, %v3738_v24  ;;  %v3613_v2 = vld [vmem:[#allocation2 + $0x52] sm:$0xff] }
 0x2dd   : > { %v3039_v46 = vld [vmem:[#allocation2 + $0x50] sm:$0xff]  ;;  %v3642_v19 = vpack.c.bf16 %v3613_v2, %v3612_v7  ;;  %3930 = vrot.lane.b32.xlu0 %v3897_v53, %s5119_s30  ;;  %v2906_v7 = vmul.f32 0.5, %v2840_v21 }
 0x2de   : > { %v3067_v22 = vpack.c.bf16 %v3039_v46, %v3038_v29  ;;  %3802 = vrot.lane.b32.xlu1 %v3769_v23, %s5118_s23 }
 0x2df   : > { %4041 = vst.msk [vmem:[#allocation3 + $0x18] sm:$0xff] %vm365_vm0, %v3642_v19 }
 0x2e0   : > { %3083 = vst.msk [vmem:[#allocation3 + $0x30] sm:$0xff] %vm365_vm0, %v3067_v22 }
 0x2e1   : > { %3548 = vrot.lane.b32.xlu0 %v3897_v53, %s5114_s26 }
 0x2e2   : > { %3420 = vrot.lane.b32.xlu1 %v3769_v23, %s5116_s12 }
 0x2e5   : > { %3166 = vrot.lane.b32.xlu0 %v3897_v53, %s5113_s21 }
 0x2e6   : > { %3676 = vrot.lane.b32.xlu1 %v3642_v19, %s5117_s18 }
 0x2e8   : > { %v2357_v12 = vpop.f32.mrb[16].mxu0 }
 0x2e9   : > { %v2358_v26 = vadd.f32 %v6414_v56, %v2357_v12  ;;  %v2359_v55 = vpop.f32.mrb[17].mxu0 }
 0x2ea   : > { %3294 = vrot.lane.b32.xlu1 %v3642_v19, %s5115_s27  ;;  %v2360_v0 = vpop.f32.mrb[18].mxu0 }
 0x2eb   : > { %vm2460_vm10 = vcmp.ge.f32.partialorder %v2358_v26, 0.0  ;;  %v2492_v41 = vmul.f32 0.2, %v2358_v26  ;;  %v2361_v51 = vadd.f32 %v6414_v56, %v2360_v0  ;;  %v2362_v20 = vpop.f32.mrb[19].mxu0 }
 0x2ed   : > { %v2524_v45 = vsel %vm2460_vm10, %v2358_v26, %v2492_v41  ;;  %vm2461_vm11 = vcmp.ge.f32.partialorder %v2361_v51, 0.0  ;;  %v2493_v59 = vmul.f32 0.2, %v2361_v51 }
 0x2ee   : > { %2556 = vst.msk [vmem:[#allocation2 + $0x79] sm:$0xff] %vm365_vm0, %v2524_v45 }
 0x2ef   : > { %v2525_v57 = vsel %vm2461_vm11, %v2361_v51, %v2493_v59  ;;  %v2907_v51 = vmul.f32 0.5, %v6579_v49 }
 0x2f0   : > { %2557 = vst.msk [vmem:[#allocation2 + $0x81] sm:$0xff] %vm365_vm0, %v2525_v57 }
 0x2f4   : > { %v2365_v48 = vpop.f32.mrb[20].mxu0 }
 0x2f5   : > { %v2590_v42 = vld [vmem:[#allocation2 + $0x78] sm:$0xff]  ;;  %v2366_v28 = vadd.f32 %v6414_v56, %v2365_v48  ;;  %v2367_v6 = vpop.f32.mrb[21].mxu0 }
 0x2f6   : > { %v2662_v25 = vld [vmem:[#allocation2 + $0x79] sm:$0xff]  ;;  %v2626_v24 = vmul.f32 0.25, %v2590_v42  ;;  %v2368_v29 = vpop.f32.mrb[22].mxu0  ;;  %v2938_v42 = vadd.f32 %v2906_v7, %v6540_v9 }
 0x2f7   : > { %v2698_v1 = vmul.f32 0.5, %v2662_v25  ;;  %v2591_v23 = vld [vmem:[#allocation2 + $0x80] sm:$0xff]  ;;  %v2370_v55 = vpop.f32.mrb[23].mxu0  ;;  %vm2462_vm12 = vcmp.ge.f32.partialorder %v2366_v28, 0.0  ;;  %v2494_v0 = vmul.f32 0.2, %v2366_v28  ;;  %v2369_v41 = vadd.f32 %v6414_v56, %v2368_v29 }
 0x2f8   : > { %v2663_v53 = vld [vmem:[#allocation2 + $0x81] sm:$0xff]  ;;  %v2627_v19 = vmul.f32 0.25, %v2591_v23 }
 0x2f9   : > { %v2770_v2 = vld [vmem:[#allocation2 + $0x7a] sm:$0xff]  ;;  %v2734_v46 = vadd.f32 %v2698_v1, %v2626_v24  ;;  %v2699_v22 = vmul.f32 0.5, %v2663_v53  ;;  %v2771_v12 = vld [vmem:[#allocation2 + $0x82] sm:$0xff]  ;;  %v2526_v21 = vsel %vm2462_vm12, %v2366_v28, %v2494_v0  ;;  %vm2463_vm13 = vcmp.ge.f32.partialorder %v2369_v41, 0.0 }
 0x2fa   : > { %v2806_v26 = vmul.f32 0.25, %v2770_v2  ;;  %v2807_v45 = vmul.f32 0.25, %v2771_v12  ;;  %v2495_v57 = vmul.f32 0.2, %v2369_v41  ;;  %2558 = vst.msk [vmem:[#allocation2 + $0x91] sm:$0xff] %vm365_vm0, %v2526_v21  ;;  %v2939_v1 = vadd.f32 %v2907_v51, %v6544_v52 }
 0x2fb   : > { %v2735_v20 = vadd.f32 %v2699_v22, %v2627_v19 }
 0x2fc   : > { %v2842_v59 = vadd.f32 %v2806_v26, %v2734_v46  ;;  %v2527_v24 = vsel %vm2463_vm13, %v2369_v41, %v2495_v57 }
 0x2fd   : > { %v2843_v25 = vadd.f32 %v2807_v45, %v2735_v20  ;;  %2559 = vst.msk [vmem:[#allocation2 + $0x99] sm:$0xff] %vm365_vm0, %v2527_v24 }
 0x2fe   : > { %v6608_v48 = vmul.f32 0.25, %v2842_v59  ;;  %v2908_v29 = vmul.f32 0.5, %v2842_v59 }
 0x2ff   : > { %v6612_v6 = vmul.f32 0.25, %v2843_v25 }
 0x300   : > { %v2974_v49 = vadd.f32 %v2938_v42, %v6608_v48  ;;  %v2909_v42 = vmul.f32 0.5, %v2843_v25 }
 0x301   : > { %v2975_v28 = vadd.f32 %v2939_v1, %v6612_v6  ;;  %v2592_v9 = vld [vmem:[#allocation2 + $0x90] sm:$0xff] }
 0x302   : > { %3006 = vst.msk [vmem:[#allocation2 + $0x61] sm:$0xff] %vm365_vm0, %v2974_v49  ;;  %v2664_v7 = vld [vmem:[#allocation2 + $0x91] sm:$0xff]  ;;  %v2628_v23 = vmul.f32 0.25, %v2592_v9 }
 0x303   : > { %3007 = vst.msk [vmem:[#allocation2 + $0x69] sm:$0xff] %vm365_vm0, %v2975_v28  ;;  %v2700_v53 = vmul.f32 0.5, %v2664_v7  ;;  %v2373_v2 = vpop.f32.mrb[24].mxu0 }
 0x304   : > { %v2593_v46 = vld [vmem:[#allocation2 + $0x98] sm:$0xff]  ;;  %v2374_v22 = vadd.f32 %v6414_v56, %v2373_v2  ;;  %v2375_v12 = vpop.f32.mrb[25].mxu0 }
 0x305   : > { %v2665_v52 = vld [vmem:[#allocation2 + $0x99] sm:$0xff]  ;;  %v2736_v26 = vadd.f32 %v2700_v53, %v2628_v23  ;;  %v2629_v55 = vmul.f32 0.25, %v2593_v46  ;;  %v2376_v20 = vpop.f32.mrb[26].mxu0  ;;  %v2940_v46 = vadd.f32 %v2908_v29, %v6581_v38 }
 0x306   : > { %v2772_v19 = vld [vmem:[#allocation2 + $0x92] sm:$0xff]  ;;  %v2701_v0 = vmul.f32 0.5, %v2665_v52  ;;  %v2773_v41 = vld [vmem:[#allocation2 + $0x9a] sm:$0xff]  ;;  %vm2464_vm14 = vcmp.ge.f32.partialorder %v2374_v22, 0.0  ;;  %v2496_v45 = vmul.f32 0.2, %v2374_v22  ;;  %v2377_v21 = vadd.f32 %v6414_v56, %v2376_v20 }
 0x307   : > { %v2808_v51 = vmul.f32 0.25, %v2772_v19  ;;  %v2378_v57 = vpop.f32.mrb[27].mxu0  ;;  %v2809_v59 = vmul.f32 0.25, %v2773_v41  ;;  %v2941_v20 = vadd.f32 %v2909_v42, %v6585_v13 }
 0x308   : > { %v2737_v24 = vadd.f32 %v2701_v0, %v2629_v55  ;;  %v2528_v9 = vsel %vm2464_vm14, %v2374_v22, %v2496_v45  ;;  %vm2465_vm15 = vcmp.ge.f32.partialorder %v2377_v21, 0.0  ;;  %v2497_v7 = vmul.f32 0.2, %v2377_v21 }
 0x309   : > { %v2844_v1 = vadd.f32 %v2808_v51, %v2736_v26  ;;  %v3740_v49 = vld [vmem:[#allocation2 + $0x60] sm:$0xff]  ;;  %2560 = vst.msk [vmem:[#allocation2 + $0xa9] sm:$0xff] %vm365_vm0, %v2528_v9 }
 0x30a   : > { %v3868_v28 = vld [vmem:[#allocation2 + $0x61] sm:$0xff]  ;;  %v3869_v53 = vld [vmem:[#allocation2 + $0x69] sm:$0xff]  ;;  %v2845_v52 = vadd.f32 %v2809_v59, %v2737_v24  ;;  %v2529_v26 = vsel %vm2465_vm15, %v2377_v21, %v2497_v7 }
 0x30b   : > { %v3741_v23 = vld [vmem:[#allocation2 + $0x68] sm:$0xff]  ;;  %v6622_v19 = vmul.f32 0.25, %v2844_v1  ;;  %v3040_v55 = vld [vmem:[#allocation2 + $0x60] sm:$0xff]  ;;  %v3898_v41 = vpack.c.bf16 %v3869_v53, %v3868_v28  ;;  %2561 = vst.msk [vmem:[#allocation2 + $0xb1] sm:$0xff] %vm365_vm0, %v2529_v26  ;;  %v2910_v7 = vmul.f32 0.5, %v2844_v1 }
 0x30c   : > { %v3614_v2 = vld [vmem:[#allocation2 + $0x62] sm:$0xff]  ;;  %v3770_v12 = vpack.c.bf16 %v3741_v23, %v3740_v49  ;;  %v3615_v25 = vld [vmem:[#allocation2 + $0x6a] sm:$0xff]  ;;  %v6626_v45 = vmul.f32 0.25, %v2845_v52 }
 0x30d   : > { %v3041_v0 = vld [vmem:[#allocation2 + $0x68] sm:$0xff]  ;;  %v3643_v51 = vpack.c.bf16 %v3615_v25, %v3614_v2  ;;  %v2976_v57 = vadd.f32 %v2940_v46, %v6622_v19  ;;  %3932 = vrot.lane.b32.xlu1 %v3898_v41, %s5119_s30 }
 0x30e   : > { %v3068_v22 = vpack.c.bf16 %v3041_v0, %v3040_v55  ;;  %3804 = vrot.lane.b32.xlu0 %v3770_v12, %s5118_s23  ;;  %v2977_v38 = vadd.f32 %v2941_v20, %v6626_v45 }
 0x30f   : > { %4042 = vst.msk [vmem:[#allocation3 + $0x28] sm:$0xff] %vm365_vm0, %v3643_v51  ;;  %3008 = vst.msk [vmem:[#allocation2 + $0x79] sm:$0xff] %vm365_vm0, %v2976_v57  ;;  %v3417_v29 = vpop.permute.xlu1 %3416 }
 0x310   : > { %3084 = vst.msk [vmem:[#allocation3 + $0x40] sm:$0xff] %vm365_vm0, %v3068_v22  ;;  %3009 = vst.msk [vmem:[#allocation2 + $0x81] sm:$0xff] %vm365_vm0, %v2977_v38  ;;  %v3545_v13 = vpop.permute.xlu0 %3544  ;;  %v2594_v21 = vld [vmem:[#allocation2 + $0xa8] sm:$0xff]  ;;  %v2381_v24 = vpop.f32.mrb[28].mxu0 }
 0x311   : > { %3464 = vst.msk [vmem:[#allocation3] sm:$0xff] %vm1534_vm5, %v3417_v29  ;;  %v2666_v42 = vld [vmem:[#allocation2 + $0xa9] sm:$0xff]  ;;  %3550 = vrot.lane.b32.xlu1 %v3898_v41, %s5114_s26  ;;  %v2630_v59 = vmul.f32 0.25, %v2594_v21  ;;  %v2382_v28 = vadd.f32 %v6414_v56, %v2381_v24  ;;  %v2383_v9 = vpop.f32.mrb[29].mxu0  ;;  %v2911_v29 = vmul.f32 0.5, %v2845_v52 }
 0x312   : > { %3422 = vrot.lane.b32.xlu0 %v3770_v12, %s5116_s12  ;;  %3592 = vst.msk [vmem:[#allocation3] sm:$0xff] %vm1663_vm6, %v3545_v13  ;;  %v2702_v49 = vmul.f32 0.5, %v2666_v42  ;;  %v2595_v23 = vld [vmem:[#allocation2 + $0xb0] sm:$0xff]  ;;  %v2384_v46 = vpop.f32.mrb[30].mxu0 }
 0x313   : > { %v2667_v53 = vld [vmem:[#allocation2 + $0xb1] sm:$0xff]  ;;  %v3673_v12 = vpop.permute.xlu1 %3672  ;;  %v2631_v55 = vmul.f32 0.25, %v2595_v23  ;;  %v2386_v57 = vpop.f32.mrb[31].mxu0  ;;  %vm2466_vm1 = vcmp.ge.f32.partialorder %v2382_v28, 0.0  ;;  %v2498_v38 = vmul.f32 0.2, %v2382_v28  ;;  %v2385_v1 = vadd.f32 %v6414_v56, %v2384_v46 }
 0x314   : > { %v2774_v2 = vld [vmem:[#allocation2 + $0xaa] sm:$0xff]  ;;  %v2738_v25 = vadd.f32 %v2702_v49, %v2630_v59  ;;  %v2703_v0 = vmul.f32 0.5, %v2667_v53  ;;  %v2775_v26 = vld [vmem:[#allocation2 + $0xb2] sm:$0xff]  ;;  %v3163_v20 = vpop.permute.xlu0 %3162  ;;  %3720 = vst.msk [vmem:[#allocation3] sm:$0xff] %vm1792_vm7, %v3673_v12 }
 0x315   : > { %v2810_v22 = vmul.f32 0.25, %v2774_v2  ;;  %3209 = vst.msk [vmem:[#allocation3 + $0x10] sm:$0xff] %vm1276_vm3, %v3163_v20  ;;  %3168 = vrot.lane.b32.xlu1 %v3898_v41, %s5113_s21  ;;  %v2811_v21 = vmul.f32 0.25, %v2775_v26  ;;  %v2530_v24 = vsel %vm2466_vm1, %v2382_v28, %v2498_v38  ;;  %vm2467_vm2 = vcmp.ge.f32.partialorder %v2385_v1, 0.0 }
 0x316   : > { %3678 = vrot.lane.b32.xlu0 %v3643_v51, %s5117_s18  ;;  %v2739_v13 = vadd.f32 %v2703_v0, %v2631_v55  ;;  %v2499_v59 = vmul.f32 0.2, %v2385_v1  ;;  %v3742_v9 = vld [vmem:[#allocation2 + $0x78] sm:$0xff]  ;;  %v2942_v2 = vadd.f32 %v2910_v7, %v6608_v48  ;;  %2562 = vst.msk [vmem:[#allocation2 + $0xc1] sm:$0xff] %vm365_vm0, %v2530_v24  ;;  %v2943_v0 = vadd.f32 %v2911_v29, %v6612_v6 }
 0x317   : > { %v2846_v42 = vadd.f32 %v2810_v22, %v2738_v25  ;;  %v3291_v49 = vpop.permute.xlu1 %3290  ;;  %v3743_v23 = vld [vmem:[#allocation2 + $0x80] sm:$0xff]  ;;  %v3042_v7 = vld [vmem:[#allocation2 + $0x78] sm:$0xff] }
 0x318   : > { %v3871_v53 = vld [vmem:[#allocation2 + $0x81] sm:$0xff]  ;;  %v2847_v12 = vadd.f32 %v2811_v21, %v2739_v13  ;;  %3337 = vst.msk [vmem:[#allocation3 + $0x10] sm:$0xff] %vm1405_vm4, %v3291_v49  ;;  %v3771_v56 = vpack.c.bf16 %v3743_v23, %v3742_v9  ;;  %v2531_v28 = vsel %vm2467_vm2, %v2385_v1, %v2499_v59  ;;  %v3870_v46 = vld [vmem:[#allocation2 + $0x79] sm:$0xff] }
 0x319   : > { %v6648_v57 = vmul.f32 0.25, %v2846_v42  ;;  %v3998_v52 = vld [vmem:[#allocation2 + $0x7a] sm:$0xff]  ;;  %v3999_v41 = vld [vmem:[#allocation2 + $0x82] sm:$0xff]  ;;  %2563 = vst.msk [vmem:[#allocation2 + $0xc9] sm:$0xff] %vm365_vm0, %v2531_v28  ;;  %v2912_v49 = vmul.f32 0.5, %v2846_v42 }
 0x31a   : > { %3296 = vrot.lane.b32.xlu0 %v3643_v51, %s5115_s27  ;;  %v4027_v25 = vpack.c.bf16 %v3999_v41, %v3998_v52  ;;  %v3043_v55 = vld [vmem:[#allocation2 + $0x80] sm:$0xff]  ;;  %v6654_v26 = vmul.f32 0.25, %v2847_v12  ;;  %3806 = vrot.lane.b32.xlu1 %v3771_v56, %s5118_s23  ;;  %v3899_v51 = vpack.c.bf16 %v3871_v53, %v3870_v46 }
 0x31b   : > { %v2978_v48 = vadd.f32 %v2942_v2, %v6648_v57  ;;  %v3069_v22 = vpack.c.bf16 %v3043_v55, %v3042_v7  ;;  %v3616_v6 = vld [vmem:[#allocation2 + $0x7a] sm:$0xff]  ;;  %v3617_v38 = vld [vmem:[#allocation2 + $0x82] sm:$0xff] }
 0x31c   : > { %4043 = vst.msk [vmem:[#allocation3 + $0x38] sm:$0xff] %vm365_vm0, %v4027_v25  ;;  %v2979_v20 = vadd.f32 %v2943_v0, %v6654_v26  ;;  %v3644_v59 = vpack.c.bf16 %v3617_v38, %v3616_v6  ;;  %v6670_v2 = vld [vmem:[%s7454_s5] ss:$0 sm:$0xff] }
 0x31d   : > { %3010 = vst.msk [vmem:[#allocation2 + $0x91] sm:$0xff] %vm365_vm0, %v2978_v48  ;;  %3085 = vst.msk [vmem:[#allocation3 + $0x50] sm:$0xff] %vm365_vm0, %v3069_v22  ;;  %v2596_v1 = vld [vmem:[#allocation2 + $0xc0] sm:$0xff]  ;;  %v2913_v22 = vmul.f32 0.5, %v2847_v12 }
 0x31e   : > { %3934 = vrot.lane.b32.xlu0 %v3899_v51, %s5119_s30  ;;  %3011 = vst.msk [vmem:[#allocation2 + $0x99] sm:$0xff] %vm365_vm0, %v2979_v20  ;;  %3424 = vrot.lane.b32.xlu1 %v3771_v56, %s5116_s12  ;;  %v2668_v29 = vld [vmem:[#allocation2 + $0xc1] sm:$0xff]  ;;  %v2632_v13 = vmul.f32 0.25, %v2596_v1 }
 0x31f   : > { %v2704_v21 = vmul.f32 0.5, %v2668_v29  ;;  %v2389_v24 = vpop.f32.mrb[32].mxu0 }
 0x320   : > { %v2597_v9 = vld [vmem:[#allocation2 + $0xc8] sm:$0xff]  ;;  %v2390_v52 = vadd.f32 %v6670_v2, %v2389_v24  ;;  %v2391_v56 = vpop.f32.mrb[33].mxu0 }
 0x321   : > { %v2669_v23 = vld [vmem:[#allocation2 + $0xc9] sm:$0xff]  ;;  %v2740_v41 = vadd.f32 %v2704_v21, %v2632_v13  ;;  %v2633_v28 = vmul.f32 0.25, %v2597_v9  ;;  %v2392_v0 = vpop.f32.mrb[34].mxu0  ;;  %v2944_v9 = vadd.f32 %v2912_v49, %v6622_v19 }
 0x322   : > { %3552 = vrot.lane.b32.xlu0 %v3899_v51, %s5114_s26  ;;  %v2776_v53 = vld [vmem:[#allocation2 + $0xc2] sm:$0xff]  ;;  %v2705_v46 = vmul.f32 0.5, %v2669_v23  ;;  %v2777_v25 = vld [vmem:[#allocation2 + $0xca] sm:$0xff]  ;;  %3680 = vrot.lane.b32.xlu1 %v3644_v59, %s5117_s18  ;;  %vm2468_vm10 = vcmp.ge.f32.partialorder %v2390_v52, 0.0  ;;  %v2500_v42 = vmul.f32 0.2, %v2390_v52  ;;  %v2393_v48 = vadd.f32 %v6670_v2, %v2392_v0 }
 0x323   : > { %v2812_v55 = vmul.f32 0.25, %v2776_v53  ;;  %v2394_v7 = vpop.f32.mrb[35].mxu0  ;;  %v2813_v6 = vmul.f32 0.25, %v2777_v25 }
 0x324   : > { %v2741_v20 = vadd.f32 %v2705_v46, %v2633_v28  ;;  %v2532_v1 = vsel %vm2468_vm10, %v2390_v52, %v2500_v42  ;;  %vm2469_vm11 = vcmp.ge.f32.partialorder %v2393_v48, 0.0  ;;  %v2501_v29 = vmul.f32 0.2, %v2393_v48  ;;  %v3744_v13 = vld [vmem:[#allocation2 + $0x90] sm:$0xff] }
 0x325   : > { %v2848_v38 = vadd.f32 %v2812_v55, %v2740_v41  ;;  %v3745_v21 = vld [vmem:[#allocation2 + $0x98] sm:$0xff]  ;;  %2564 = vst.msk [vmem:[#allocation2 + $0xd9] sm:$0xff] %vm365_vm0, %v2532_v1  ;;  %v2945_v55 = vadd.f32 %v2913_v22, %v6626_v45  ;;  %v3044_v49 = vld [vmem:[#allocation2 + $0x90] sm:$0xff] }
 0x326   : > { %3170 = vrot.lane.b32.xlu0 %v3899_v51, %s5113_s21  ;;  %v3873_v24 = vld [vmem:[#allocation2 + $0x99] sm:$0xff]  ;;  %v2849_v23 = vadd.f32 %v2813_v6, %v2741_v20  ;;  %3298 = vrot.lane.b32.xlu1 %v3644_v59, %s5115_s27  ;;  %v3772_v12 = vpack.c.bf16 %v3745_v21, %v3744_v13  ;;  %v3872_v56 = vld [vmem:[#allocation2 + $0x91] sm:$0xff]  ;;  %v2533_v51 = vsel %vm2469_vm11, %v2393_v48, %v2501_v29 }
 0x327   : > { %v6677_v53 = vmul.f32 0.25, %v2848_v38  ;;  %v4000_v41 = vld [vmem:[#allocation2 + $0x92] sm:$0xff]  ;;  %v4001_v28 = vld [vmem:[#allocation2 + $0x9a] sm:$0xff]  ;;  %v3900_v52 = vpack.c.bf16 %v3873_v24, %v3872_v56  ;;  %2565 = vst.msk [vmem:[#allocation2 + $0xe1] sm:$0xff] %vm365_vm0, %v2533_v51 }
 0x328   : > { %v4028_v46 = vpack.c.bf16 %v4001_v28, %v4000_v41  ;;  %v3045_v25 = vld [vmem:[#allocation2 + $0x98] sm:$0xff]  ;;  %v6682_v0 = vmul.f32 0.25, %v2849_v23 }
 0x329   : > { %v2980_v19 = vadd.f32 %v2944_v9, %v6677_v53  ;;  %v3070_v59 = vpack.c.bf16 %v3045_v25, %v3044_v49  ;;  %v3618_v48 = vld [vmem:[#allocation2 + $0x92] sm:$0xff]  ;;  %v3619_v45 = vld [vmem:[#allocation2 + $0x9a] sm:$0xff]  ;;  %v2914_v9 = vmul.f32 0.5, %v2848_v38 }
 0x32a   : > { %3808 = vrot.lane.b32.xlu0 %v3772_v12, %s5118_s23  ;;  %4044 = vst.msk [vmem:[#allocation3 + $0x48] sm:$0xff] %vm365_vm0, %v4028_v46  ;;  %v2981_v42 = vadd.f32 %v2945_v55, %v6682_v0  ;;  %3936 = vrot.lane.b32.xlu1 %v3900_v52, %s5119_s30  ;;  %v3645_v24 = vpack.c.bf16 %v3619_v45, %v3618_v48  ;;  %v2915_v48 = vmul.f32 0.5, %v2849_v23 }
 0x32b   : > { %3012 = vst.msk [vmem:[#allocation2 + $0xa9] sm:$0xff] %vm365_vm0, %v2980_v19  ;;  %3086 = vst.msk [vmem:[#allocation3 + $0x60] sm:$0xff] %vm365_vm0, %v3070_v59 }
 0x32c   : > { %3013 = vst.msk [vmem:[#allocation2 + $0xb1] sm:$0xff] %vm365_vm0, %v2981_v42  ;;  %v2598_v7 = vld [vmem:[#allocation2 + $0xd8] sm:$0xff]  ;;  %v2397_v20 = vpop.f32.mrb[36].mxu0 }
 0x32d   : > { %v2670_v22 = vld [vmem:[#allocation2 + $0xd9] sm:$0xff]  ;;  %v2634_v6 = vmul.f32 0.25, %v2598_v7  ;;  %v2398_v29 = vadd.f32 %v6670_v2, %v2397_v20  ;;  %v2399_v13 = vpop.f32.mrb[37].mxu0 }
 0x32e   : > { %3426 = vrot.lane.b32.xlu0 %v3772_v12, %s5116_s12  ;;  %v2706_v1 = vmul.f32 0.5, %v2670_v22  ;;  %3554 = vrot.lane.b32.xlu1 %v3900_v52, %s5114_s26  ;;  %v2599_v56 = vld [vmem:[#allocation2 + $0xe0] sm:$0xff]  ;;  %v2400_v51 = vpop.f32.mrb[38].mxu0 }
 0x32f   : > { %v2671_v41 = vld [vmem:[#allocation2 + $0xe1] sm:$0xff]  ;;  %v3929_v12 = vpop.permute.xlu1 %3928  ;;  %v2635_v25 = vmul.f32 0.25, %v2599_v56  ;;  %v2402_v59 = vpop.f32.mrb[39].mxu0  ;;  %vm2470_vm12 = vcmp.ge.f32.partialorder %v2398_v29, 0.0  ;;  %v2502_v42 = vmul.f32 0.2, %v2398_v29  ;;  %v2401_v38 = vadd.f32 %v6670_v2, %v2400_v51 }
 0x330   : > { %v3801_v21 = vpop.permute.xlu0 %3800  ;;  %v2778_v28 = vld [vmem:[#allocation2 + $0xda] sm:$0xff]  ;;  %v2742_v46 = vadd.f32 %v2706_v1, %v2634_v6  ;;  %v2707_v55 = vmul.f32 0.5, %v2671_v41  ;;  %v2779_v19 = vld [vmem:[#allocation2 + $0xe2] sm:$0xff] }
 0x331   : > { %3848 = vst.msk [vmem:[#allocation3] sm:$0xff] %vm1922_vm8, %v3801_v21  ;;  %v2814_v49 = vmul.f32 0.25, %v2778_v28  ;;  %v2815_v7 = vmul.f32 0.25, %v2779_v19  ;;  %v2534_v6 = vsel %vm2470_vm12, %v2398_v29, %v2502_v42  ;;  %vm2471_vm13 = vcmp.ge.f32.partialorder %v2401_v38, 0.0 }
 0x332   : > { %3682 = vrot.lane.b32.xlu0 %v3645_v24, %s5117_s18  ;;  %3976 = vst.msk [vmem:[#allocation3] sm:$0xff] %vm2051_vm9, %v3929_v12  ;;  %v2743_v45 = vadd.f32 %v2707_v55, %v2635_v25  ;;  %3172 = vrot.lane.b32.xlu1 %v3900_v52, %s5113_s21  ;;  %v2503_v1 = vmul.f32 0.2, %v2401_v38  ;;  %v3746_v21 = vld [vmem:[#allocation2 + $0xa8] sm:$0xff]  ;;  %v2946_v28 = vadd.f32 %v2914_v9, %v6648_v57 }
 0x333   : > { %v2850_v22 = vadd.f32 %v2814_v49, %v2742_v46  ;;  %v3547_v13 = vpop.permute.xlu1 %3546  ;;  %v3747_v56 = vld [vmem:[#allocation2 + $0xb0] sm:$0xff]  ;;  %2566 = vst.msk [vmem:[#allocation2 + $0xf1] sm:$0xff] %vm365_vm0, %v2534_v6  ;;  %v2947_v49 = vadd.f32 %v2915_v48, %v6654_v26  ;;  %v3046_v42 = vld [vmem:[#allocation2 + $0xa8] sm:$0xff] }
 0x334   : > { %v3419_v20 = vpop.permute.xlu0 %3418  ;;  %v3875_v41 = vld [vmem:[#allocation2 + $0xb1] sm:$0xff]  ;;  %v2851_v12 = vadd.f32 %v2815_v7, %v2743_v45  ;;  %v3773_v23 = vpack.c.bf16 %v3747_v56, %v3746_v21  ;;  %v2535_v46 = vsel %vm2471_vm13, %v2401_v38, %v2503_v1  ;;  %v3874_v25 = vld [vmem:[#allocation2 + $0xa9] sm:$0xff] }
 0x335   : > { %3465 = vst.msk [vmem:[#allocation3 + $0x10] sm:$0xff] %vm1534_vm5, %v3419_v20  ;;  %v6703_v51 = vmul.f32 0.25, %v2850_v22  ;;  %v4002_v52 = vld [vmem:[#allocation2 + $0xaa] sm:$0xff]  ;;  %v4003_v29 = vld [vmem:[#allocation2 + $0xb2] sm:$0xff]  ;;  %v3901_v59 = vpack.c.bf16 %v3875_v41, %v3874_v25 }
 0x336   : > { %3300 = vrot.lane.b32.xlu0 %v3645_v24, %s5115_s27  ;;  %3593 = vst.msk [vmem:[#allocation3 + $0x10] sm:$0xff] %vm1663_vm6, %v3547_v13  ;;  %v4029_v55 = vpack.c.bf16 %v4003_v29, %v4002_v52  ;;  %v3047_v19 = vld [vmem:[#allocation2 + $0xb0] sm:$0xff]  ;;  %v6710_v57 = vmul.f32 0.25, %v2851_v12  ;;  %3810 = vrot.lane.b32.xlu1 %v3773_v23, %s5118_s23  ;;  %v4059_v48 = vld [vmem:[#allocation3 + $0x18] sm:$0xff]  ;;  %v2916_v29 = vmul.f32 0.5, %v2850_v22  ;;  %v2917_v22 = vmul.f32 0.5, %v2851_v12 }
 0x337   : > { %v2982_v9 = vadd.f32 %v2946_v28, %v6703_v51  ;;  %2567 = vst.msk [vmem:[#allocation2 + $0xf9] sm:$0xff] %vm365_vm0, %v2535_v46  ;;  %v3165_v45 = vpop.permute.xlu1 %3164  ;;  %v3071_v7 = vpack.c.bf16 %v3047_v19, %v3046_v42  ;;  %v3620_v20 = vld [vmem:[#allocation2 + $0xaa] sm:$0xff]  ;;  %v3621_v6 = vld [vmem:[#allocation2 + $0xb2] sm:$0xff] }
 0x338   : > { %v3675_v24 = vpop.permute.xlu0 %3674  ;;  %4045 = vst.msk [vmem:[#allocation3 + $0x58] sm:$0xff] %vm365_vm0, %v4029_v55  ;;  %v2983_v26 = vadd.f32 %v2947_v49, %v6710_v57  ;;  %v3646_v52 = vpack.c.bf16 %v3621_v6, %v3620_v20 }
 0x339   : > { %3721 = vst.msk [vmem:[#allocation3 + $0x10] sm:$0xff] %vm1792_vm7, %v3675_v24  ;;  %v4056_v38 = vld [vmem:[#allocation3] sm:$0xff] }
 0x33a   : > { %3014 = vst.msk [vmem:[#allocation2 + $0xc1] sm:$0xff] %vm365_vm0, %v2982_v9  ;;  %3938 = vrot.lane.b32.xlu0 %v3901_v59, %s5119_s30  ;;  %4241 = vmatmul.mubr.bf16.vlgmr.msra.gmra.mrb[0].mxu1 %v4056_v38  ;;  %3087 = vst.msk [vmem:[#allocation3 + $0x70] sm:$0xff] %vm365_vm0, %v3071_v7  ;;  %v2600_v13 = vld [vmem:[#allocation2 + $0xf0] sm:$0xff] }
 0x33b   : > { %3210 = vst.msk [vmem:[#allocation3 + $0x20] sm:$0xff] %vm1276_vm3, %v3165_v45  ;;  %4982 = vmatprep.mubr.msk.bf16.mxu1 %vm365_vm0, %v4059_v48  ;;  %3428 = vrot.lane.b32.xlu1 %v3773_v23, %s5116_s12  ;;  %v2672_v21 = vld [vmem:[#allocation2 + $0xf1] sm:$0xff]  ;;  %v2636_v56 = vmul.f32 0.25, %v2600_v13 }
 0x33c   : > { %3015 = vst.msk [vmem:[#allocation2 + $0xc9] sm:$0xff] %vm365_vm0, %v2983_v26  ;;  %v3293_v1 = vpop.permute.xlu0 %3292  ;;  %v2708_v41 = vmul.f32 0.5, %v2672_v21  ;;  %v2405_v28 = vpop.f32.mrb[40].mxu0 }
 0x33d   : > { %3338 = vst.msk [vmem:[#allocation3 + $0x20] sm:$0xff] %vm1405_vm4, %v3293_v1  ;;  %v2406_v19 = vadd.f32 %v6670_v2, %v2405_v28  ;;  %v2407_v49 = vpop.f32.mrb[41].mxu0 }
 0x33e   : > { %3556 = vrot.lane.b32.xlu0 %v3901_v59, %s5114_s26  ;;  %v2601_v46 = vld [vmem:[#allocation2 + $0xf8] sm:$0xff]  ;;  %v2744_v9 = vadd.f32 %v2708_v41, %v2636_v56  ;;  %v2408_v38 = vpop.f32.mrb[42].mxu0 }
 0x33f   : > { %v2673_v25 = vld [vmem:[#allocation2 + $0xf9] sm:$0xff]  ;;  %v2637_v23 = vmul.f32 0.25, %v2601_v46  ;;  %3684 = vrot.lane.b32.xlu1 %v3646_v52, %s5117_s18  ;;  %vm2472_vm14 = vcmp.ge.f32.partialorder %v2406_v19, 0.0  ;;  %v2504_v7 = vmul.f32 0.2, %v2406_v19  ;;  %v2409_v26 = vadd.f32 %v6670_v2, %v2408_v38  ;;  %v2410_v48 = vpop.f32.mrb[43].mxu0 }
 0x340   : > { %v2780_v55 = vld [vmem:[#allocation2 + $0xf2] sm:$0xff]  ;;  %v2709_v24 = vmul.f32 0.5, %v2673_v25  ;;  %v2781_v42 = vld [vmem:[#allocation2 + $0xfa] sm:$0xff]  ;;  %v2949_v38 = vadd.f32 %v2917_v22, %v6682_v0 }
 0x341   : > { %v2816_v45 = vmul.f32 0.25, %v2780_v55  ;;  %v2817_v6 = vmul.f32 0.25, %v2781_v42  ;;  %v3748_v13 = vld [vmem:[#allocation2 + $0xc0] sm:$0xff]  ;;  %v2536_v56 = vsel %vm2472_vm14, %v2406_v19, %v2504_v7  ;;  %vm2473_vm15 = vcmp.ge.f32.partialorder %v2409_v26, 0.0 }
 0x342   : > { %v2745_v20 = vadd.f32 %v2709_v24, %v2637_v23  ;;  %3174 = vrot.lane.b32.xlu0 %v3901_v59, %s5113_s21  ;;  %v3876_v21 = vld [vmem:[#allocation2 + $0xc1] sm:$0xff]  ;;  %v2505_v41 = vmul.f32 0.2, %v2409_v26  ;;  %v2948_v55 = vadd.f32 %v2916_v29, %v6677_v53  ;;  %2568 = vst.msk [vmem:[#allocation2 + $0x109] sm:$0xff] %vm365_vm0, %v2536_v56 }
 0x343   : > { %v2852_v1 = vadd.f32 %v2816_v45, %v2744_v9  ;;  %v3749_v28 = vld [vmem:[#allocation2 + $0xc8] sm:$0xff]  ;;  %3302 = vrot.lane.b32.xlu1 %v3646_v52, %s5115_s27  ;;  %v3048_v59 = vld [vmem:[#allocation2 + $0xc0] sm:$0xff] }
 0x344   : > { %v3877_v46 = vld [vmem:[#allocation2 + $0xc9] sm:$0xff]  ;;  %v2853_v49 = vadd.f32 %v2817_v6, %v2745_v20  ;;  %v3774_v12 = vpack.c.bf16 %v3749_v28, %v3748_v13  ;;  %v2537_v24 = vsel %vm2473_vm15, %v2409_v26, %v2505_v41 }
 0x345   : > { %v3622_v25 = vld [vmem:[#allocation2 + $0xc2] sm:$0xff]  ;;  %v6732_v3 = vmul.f32 0.25, %v2852_v1  ;;  %v3623_v9 = vld [vmem:[#allocation2 + $0xca] sm:$0xff]  ;;  %v3902_v19 = vpack.c.bf16 %v3877_v46, %v3876_v21  ;;  %2569 = vst.msk [vmem:[#allocation2 + $0x111] sm:$0xff] %vm365_vm0, %v2537_v24  ;;  %v2918_v13 = vmul.f32 0.5, %v2852_v1 }
 0x346   : > { %v3049_v23 = vld [vmem:[#allocation2 + $0xc8] sm:$0xff]  ;;  %v3647_v42 = vpack.c.bf16 %v3623_v9, %v3622_v25  ;;  %v6737_v7 = vmul.f32 0.25, %v2853_v49  ;;  %3812 = vrot.lane.b32.xlu0 %v3774_v12, %s5118_s23 }
 0x347   : > { %v3072_v45 = vpack.c.bf16 %v3049_v23, %v3048_v59  ;;  %v2984_v53 = vadd.f32 %v2948_v55, %v6732_v3  ;;  %3940 = vrot.lane.b32.xlu1 %v3902_v19, %s5119_s30 }
 0x348   : > { %4046 = vst.msk [vmem:[#allocation3 + $0x68] sm:$0xff] %vm365_vm0, %v3647_v42  ;;  %v2985_v52 = vadd.f32 %v2949_v38, %v6737_v7  ;;  %v2413_v26 = vpop.f32.mrb[44].mxu0 }
 0x349   : > { %3088 = vst.msk [vmem:[#allocation3 + $0x80] sm:$0xff] %vm365_vm0, %v3072_v45  ;;  %3016 = vst.msk [vmem:[#allocation2 + $0xd9] sm:$0xff] %vm365_vm0, %v2984_v53  ;;  %v2602_v0 = vld [vmem:[#allocation2 + $0x108] sm:$0xff]  ;;  %v2414_v20 = vadd.f32 %v6670_v2, %v2413_v26  ;;  %v2415_v6 = vpop.f32.mrb[45].mxu0  ;;  %v2919_v45 = vmul.f32 0.5, %v2853_v49 }
 0x34a   : > { %3017 = vst.msk [vmem:[#allocation2 + $0xe1] sm:$0xff] %vm365_vm0, %v2985_v52  ;;  %3430 = vrot.lane.b32.xlu0 %v3774_v12, %s5116_s12  ;;  %v2674_v29 = vld [vmem:[#allocation2 + $0x109] sm:$0xff]  ;;  %v2638_v48 = vmul.f32 0.25, %v2602_v0  ;;  %v2416_v28 = vpop.f32.mrb[46].mxu0 }
 0x34b   : > { %v2710_v22 = vmul.f32 0.5, %v2674_v29  ;;  %3558 = vrot.lane.b32.xlu1 %v3902_v19, %s5114_s26  ;;  %v2418_v59 = vpop.f32.mrb[47].mxu0  ;;  %vm2474_vm1 = vcmp.ge.f32.partialorder %v2414_v20, 0.0  ;;  %v2506_v23 = vmul.f32 0.2, %v2414_v20  ;;  %v2417_v24 = vadd.f32 %v6670_v2, %v2416_v28 }
 0x34c   : > { %v2603_v21 = vld [vmem:[#allocation2 + $0x110] sm:$0xff] }
 0x34d   : > { %v2675_v56 = vld [vmem:[#allocation2 + $0x111] sm:$0xff]  ;;  %v2746_v46 = vadd.f32 %v2710_v22, %v2638_v48  ;;  %v2639_v25 = vmul.f32 0.25, %v2603_v21  ;;  %v2538_v26 = vsel %vm2474_vm1, %v2414_v20, %v2506_v23  ;;  %vm2475_vm2 = vcmp.ge.f32.partialorder %v2417_v24, 0.0 }
 0x34e   : > { %v2782_v41 = vld [vmem:[#allocation2 + $0x10a] sm:$0xff]  ;;  %v2711_v55 = vmul.f32 0.5, %v2675_v56  ;;  %v2783_v9 = vld [vmem:[#allocation2 + $0x112] sm:$0xff]  ;;  %3686 = vrot.lane.b32.xlu0 %v3647_v42, %s5117_s18  ;;  %v2507_v48 = vmul.f32 0.2, %v2417_v24  ;;  %v2950_v56 = vadd.f32 %v2918_v13, %v6703_v51  ;;  %2570 = vst.msk [vmem:[#allocation2 + $0x121] sm:$0xff] %vm365_vm0, %v2538_v26  ;;  %v2951_v13 = vadd.f32 %v2919_v45, %v6710_v57 }
 0x34f   : > { %v2818_v12 = vmul.f32 0.25, %v2782_v41  ;;  %v2819_v53 = vmul.f32 0.25, %v2783_v9  ;;  %3176 = vrot.lane.b32.xlu1 %v3902_v19, %s5113_s21  ;;  %v3931_v52 = vpop.permute.xlu0 %3930 }
 0x350   : > { %v2747_v38 = vadd.f32 %v2711_v55, %v2639_v25  ;;  %v3803_v0 = vpop.permute.xlu1 %3802  ;;  %v3750_v29 = vld [vmem:[#allocation2 + $0xd8] sm:$0xff]  ;;  %v2539_v25 = vsel %vm2475_vm2, %v2417_v24, %v2507_v48 }
 0x351   : > { %v2854_v1 = vadd.f32 %v2818_v12, %v2746_v46  ;;  %3849 = vst.msk [vmem:[#allocation3 + $0x10] sm:$0xff] %vm1922_vm8, %v3803_v0  ;;  %v3751_v22 = vld [vmem:[#allocation2 + $0xe0] sm:$0xff]  ;;  %v3050_v28 = vld [vmem:[#allocation2 + $0xd8] sm:$0xff] }
 0x352   : > { %v3879_v6 = vld [vmem:[#allocation2 + $0xe1] sm:$0xff]  ;;  %v6756_v41 = vadd.f32 %v2819_v53, %v2747_v38  ;;  %3304 = vrot.lane.b32.xlu0 %v3647_v42, %s5115_s27  ;;  %3977 = vst.msk [vmem:[#allocation3 + $0x10] sm:$0xff] %vm2051_vm9, %v3931_v52  ;;  %v3775_v19 = vpack.c.bf16 %v3751_v22, %v3750_v29  ;;  %v3878_v55 = vld [vmem:[#allocation2 + $0xd9] sm:$0xff] }
 0x353   : > { %v3624_v21 = vld [vmem:[#allocation2 + $0xda] sm:$0xff]  ;;  %v6758_v49 = vmul.f32 0.25, %v2854_v1  ;;  %v3625_v20 = vld [vmem:[#allocation2 + $0xe2] sm:$0xff]  ;;  %2571 = vst.msk [vmem:[#allocation2 + $0x129] sm:$0xff] %vm365_vm0, %v2539_v25  ;;  %v3549_v42 = vpop.permute.xlu0 %3548  ;;  %v6773_v23 = vpack.c.bf16 %v3879_v6, %v3878_v55  ;;  %v2920_v6 = vmul.f32 0.5, %v2854_v1 }
 0x354   : > { %v3051_v46 = vld [vmem:[#allocation2 + $0xe0] sm:$0xff]  ;;  %v6764_v9 = vpack.c.bf16 %v3625_v20, %v3624_v21  ;;  %v6768_v12 = vmul.f32 0.25, %v6756_v41  ;;  %3814 = vrot.lane.b32.xlu1 %v3775_v19, %s5118_s23  ;;  %v3421_v38 = vpop.permute.xlu1 %3420  ;;  %v4061_v22 = vld [vmem:[#allocation3 + $0x28] sm:$0xff] }
 0x355   : > { %v3073_v51 = vpack.c.bf16 %v3051_v46, %v3050_v28  ;;  %v2986_v59 = vadd.f32 %v2950_v56, %v6758_v49  ;;  %3466 = vst.msk [vmem:[#allocation3 + $0x20] sm:$0xff] %vm1534_vm5, %v3421_v38  ;;  %v2604_v53 = vld [vmem:[#allocation2 + $0x120] sm:$0xff] }
 0x356   : > { %4047 = vst.msk [vmem:[#allocation3 + $0x78] sm:$0xff] %vm365_vm0, %v6764_v9  ;;  %v2987_v57 = vadd.f32 %v2951_v13, %v6768_v12  ;;  %3942 = vrot.lane.b32.xlu0 %v6773_v23, %s5119_s30  ;;  %v2676_v52 = vld [vmem:[#allocation2 + $0x121] sm:$0xff]  ;;  %v2640_v29 = vmul.f32 0.25, %v2604_v53 }
 0x357   : > { %3089 = vst.msk [vmem:[#allocation3 + $0x90] sm:$0xff] %vm365_vm0, %v3073_v51  ;;  %3018 = vst.msk [vmem:[#allocation2 + $0xf1] sm:$0xff] %vm365_vm0, %v2986_v59  ;;  %v3167_v24 = vpop.permute.xlu0 %3166  ;;  %v2712_v26 = vmul.f32 0.5, %v2676_v52  ;;  %v2421_v48 = vpop.f32.mrb[48].mxu0 }
 0x358   : > { %3594 = vst.msk [vmem:[#allocation3 + $0x20] sm:$0xff] %vm1663_vm6, %v3549_v42  ;;  %3432 = vrot.lane.b32.xlu1 %v3775_v19, %s5116_s12  ;;  %v3677_v45 = vpop.permute.xlu1 %3676  ;;  %v2422_v20 = vadd.f32 %v6670_v2, %v2421_v48  ;;  %v2423_v28 = vpop.f32.mrb[49].mxu0 }
 0x359   : > { %3019 = vst.msk [vmem:[#allocation2 + $0xf9] sm:$0xff] %vm365_vm0, %v2987_v57  ;;  %v4058_v0 = vld [vmem:[#allocation3 + $0x10] sm:$0xff]  ;;  %v2748_v46 = vadd.f32 %v2712_v26, %v2640_v29  ;;  %v2424_v59 = vpop.f32.mrb[50].mxu0 }
 0x35a   : > { %3211 = vst.msk [vmem:[#allocation3 + $0x30] sm:$0xff] %vm1276_vm3, %v3167_v24  ;;  %3560 = vrot.lane.b32.xlu0 %v6773_v23, %s5114_s26  ;;  %4249 = vmatmul.mubr.bf16.gmra.mrb[4].mxu1 %v4058_v0  ;;  %v2605_v21 = vld [vmem:[#allocation2 + $0x128] sm:$0xff]  ;;  %vm2476_vm10 = vcmp.ge.f32.partialorder %v2422_v20, 0.0  ;;  %v2508_v1 = vmul.f32 0.2, %v2422_v20  ;;  %v2425_v38 = vadd.f32 %v6670_v2, %v2424_v59  ;;  %v2426_v57 = vpop.f32.mrb[51].mxu0 }
 0x35b   : > { %3722 = vst.msk [vmem:[#allocation3 + $0x20] sm:$0xff] %vm1792_vm7, %v3677_v45  ;;  %v2677_v56 = vld [vmem:[#allocation2 + $0x129] sm:$0xff]  ;;  %4983 = vmatprep.mubr.msk.bf16.mxu1 %vm365_vm0, %v4061_v22  ;;  %v2641_v25 = vmul.f32 0.25, %v2605_v21  ;;  %v2921_v24 = vmul.f32 0.5, %v6756_v41 }
 0x35c   : > { %v2784_v19 = vld [vmem:[#allocation2 + $0x122] sm:$0xff]  ;;  %v2713_v55 = vmul.f32 0.5, %v2677_v56  ;;  %v2785_v51 = vld [vmem:[#allocation2 + $0x12a] sm:$0xff]  ;;  %3688 = vrot.lane.b32.xlu1 %v6764_v9, %s5117_s18  ;;  %v3295_v42 = vpop.permute.xlu1 %3294  ;;  %v2540_v29 = vsel %vm2476_vm10, %v2422_v20, %v2508_v1  ;;  %vm2477_vm11 = vcmp.ge.f32.partialorder %v2425_v38, 0.0  ;;  %v2509_v26 = vmul.f32 0.2, %v2425_v38 }
 0x35d   : > { %v2820_v13 = vmul.f32 0.25, %v2784_v19  ;;  %3339 = vst.msk [vmem:[#allocation3 + $0x30] sm:$0xff] %vm1405_vm4, %v3295_v42  ;;  %v2821_v53 = vmul.f32 0.25, %v2785_v51  ;;  %v2952_v56 = vadd.f32 %v2920_v6, %v6732_v3  ;;  %v2953_v20 = vadd.f32 %v2921_v24, %v6737_v7 }
 0x35e   : > { %v2749_v45 = vadd.f32 %v2713_v55, %v2641_v25  ;;  %v3880_v0 = vld [vmem:[#allocation2 + $0xf1] sm:$0xff]  ;;  %2572 = vst.msk [vmem:[#allocation2 + $0x139] sm:$0xff] %vm365_vm0, %v2540_v29  ;;  %v2541_v55 = vsel %vm2477_vm11, %v2425_v38, %v2509_v26  ;;  %vm4369_vm10 = vcmask 261120  }
 0x35f   : > { %v2856_v52 = vadd.f32 %v2820_v13, %v2748_v46  ;;  %v3752_v41 = vld [vmem:[#allocation2 + $0xf0] sm:$0xff]  ;;  %2573 = vst.msk [vmem:[#allocation2 + $0x141] sm:$0xff] %vm365_vm0, %v2541_v55 }
 0x360   : > { %v3881_v48 = vld [vmem:[#allocation2 + $0xf9] sm:$0xff]  ;;  %v2857_v19 = vadd.f32 %v2821_v53, %v2749_v45 }
 0x361   : > { %v3753_v22 = vld [vmem:[#allocation2 + $0xf8] sm:$0xff]  ;;  %v6798_v28 = vmul.f32 0.25, %v2856_v52  ;;  %v6801_v59 = vpack.c.bf16 %v3881_v48, %v3880_v0  ;;  %v2922_v53 = vmul.f32 0.5, %v2856_v52 }
 0x362   : > { %v3626_v21 = vld [vmem:[#allocation2 + $0xf2] sm:$0xff]  ;;  %v3627_v25 = vld [vmem:[#allocation2 + $0xfa] sm:$0xff]  ;;  %v3776_v46 = vpack.c.bf16 %v3753_v22, %v3752_v41  ;;  %v6806_v13 = vmul.f32 0.25, %v2857_v19  ;;  %v2923_v52 = vmul.f32 0.5, %v2857_v19 }
 0x363   : > { %v6803_v51 = vpack.c.bf16 %v3627_v25, %v3626_v21  ;;  %v2988_v42 = vadd.f32 %v2952_v56, %v6798_v28  ;;  %3944 = vrot.lane.b32.xlu1 %v6801_v59, %s5119_s30 }
 0x364   : > { %3816 = vrot.lane.b32.xlu0 %v3776_v46, %s5118_s23  ;;  %3090 = vst.msk [vmem:[#allocation3 + $0xa0] sm:$0xff] %vm365_vm0, %v3776_v46  ;;  %v2989_v3 = vadd.f32 %v2953_v20, %v6806_v13  ;;  %v2429_v1 = vpop.f32.mrb[52].mxu0 }
 0x365   : > { %4048 = vst.msk [vmem:[#allocation3 + $0x88] sm:$0xff] %vm365_vm0, %v6803_v51  ;;  %3020 = vst.msk [vmem:[#allocation2 + $0x109] sm:$0xff] %vm365_vm0, %v2988_v42  ;;  %v2606_v7 = vld [vmem:[#allocation2 + $0x138] sm:$0xff]  ;;  %v2430_v24 = vadd.f32 %v6670_v2, %v2429_v1  ;;  %v2431_v45 = vpop.f32.mrb[53].mxu0 }
 0x366   : > { %3021 = vst.msk [vmem:[#allocation2 + $0x111] sm:$0xff] %vm365_vm0, %v2989_v3  ;;  %v2678_v6 = vld [vmem:[#allocation2 + $0x139] sm:$0xff]  ;;  %v2642_v38 = vmul.f32 0.25, %v2606_v7  ;;  %v2679_v29 = vld [vmem:[#allocation2 + $0x141] sm:$0xff]  ;;  %v2432_v48 = vpop.f32.mrb[54].mxu0  ;;  %v2954_v45 = vadd.f32 %v2922_v53, %v6758_v49 }
 0x367   : > { %3306 = vrot.lane.b32.xlu1 %v6764_v9, %s5115_s27  ;;  %v2714_v57 = vmul.f32 0.5, %v2678_v6  ;;  %v2607_v0 = vld [vmem:[#allocation2 + $0x140] sm:$0xff]  ;;  %v2715_v56 = vmul.f32 0.5, %v2679_v29  ;;  %vm2478_vm12 = vcmp.ge.f32.partialorder %v2430_v24, 0.0  ;;  %v2510_v25 = vmul.f32 0.2, %v2430_v24 }
 0x368   : > { %3178 = vrot.lane.b32.xlu0 %v6773_v23, %s5113_s21  ;;  %v2786_v26 = vld [vmem:[#allocation2 + $0x13a] sm:$0xff]  ;;  %v2643_v21 = vmul.f32 0.25, %v2607_v0  ;;  %v2787_v9 = vld [vmem:[#allocation2 + $0x142] sm:$0xff]  ;;  %v2434_v23 = vpop.f32.mrb[55].mxu0  ;;  %v2433_v55 = vadd.f32 %v6670_v2, %v2432_v48 }
 0x369   : > { %v2750_v22 = vadd.f32 %v2714_v57, %v2642_v38  ;;  %v2822_v41 = vmul.f32 0.25, %v2786_v26  ;;  %v2823_v42 = vmul.f32 0.25, %v2787_v9  ;;  %v2542_v7 = vsel %vm2478_vm12, %v2430_v24, %v2510_v25 }
 0x36a   : > { %v2751_v20 = vadd.f32 %v2715_v56, %v2643_v21  ;;  %vm2479_vm13 = vcmp.ge.f32.partialorder %v2433_v55, 0.0  ;;  %v2511_v6 = vmul.f32 0.2, %v2433_v55  ;;  %2574 = vst.msk [vmem:[#allocation2 + $0x151] sm:$0xff] %vm365_vm0, %v2542_v7 }
 0x36b   : > { %3562 = vrot.lane.b32.xlu1 %v6801_v59, %s5114_s26  ;;  %v2858_v3 = vadd.f32 %v2822_v41, %v2750_v22  ;;  %v2955_v22 = vadd.f32 %v2923_v52, %v6768_v12 }
 0x36c   : > { %3434 = vrot.lane.b32.xlu0 %v3776_v46, %s5116_s12  ;;  %v3754_v1 = vld [vmem:[#allocation2 + $0x108] sm:$0xff]  ;;  %v2859_v0 = vadd.f32 %v2823_v42, %v2751_v20  ;;  %v2543_v19 = vsel %vm2479_vm13, %v2433_v55, %v2511_v6 }
 0x36d   : > { %v3755_v38 = vld [vmem:[#allocation2 + $0x110] sm:$0xff]  ;;  %v6829_v29 = vmul.f32 0.25, %v2858_v3  ;;  %2575 = vst.msk [vmem:[#allocation2 + $0x159] sm:$0xff] %vm365_vm0, %v2543_v19 }
 0x36e   : > { %v3628_v57 = vld [vmem:[#allocation2 + $0x10a] sm:$0xff]  ;;  %v3777_v26 = vpack.c.bf16 %v3755_v38, %v3754_v1  ;;  %v3629_v46 = vld [vmem:[#allocation2 + $0x112] sm:$0xff]  ;;  %v6837_v21 = vmul.f32 0.25, %v2859_v0  ;;  %v2924_v1 = vmul.f32 0.5, %v2858_v3 }
 0x36f   : > { %v3883_v48 = vld [vmem:[#allocation2 + $0x111] sm:$0xff]  ;;  %v6834_v24 = vpack.c.bf16 %v3629_v46, %v3628_v57  ;;  %v2990_v49 = vadd.f32 %v2954_v45, %v6829_v29  ;;  %v3882_v53 = vld [vmem:[#allocation2 + $0x109] sm:$0xff] }
 0x370   : > { %3690 = vrot.lane.b32.xlu0 %v6803_v51, %s5117_s18  ;;  %3818 = vrot.lane.b32.xlu1 %v3777_v26, %s5118_s23  ;;  %3091 = vst.msk [vmem:[#allocation3 + $0xb0] sm:$0xff] %vm365_vm0, %v3777_v26  ;;  %v6843_v56 = vpack.c.bf16 %v3883_v48, %v3882_v53  ;;  %v2991_v9 = vadd.f32 %v2955_v22, %v6837_v21 }
 0x371   : > { %4049 = vst.msk [vmem:[#allocation3 + $0x98] sm:$0xff] %vm365_vm0, %v6834_v24  ;;  %3022 = vst.msk [vmem:[#allocation2 + $0x121] sm:$0xff] %vm365_vm0, %v2990_v49  ;;  %v2608_v12 = vld [vmem:[#allocation2 + $0x150] sm:$0xff] }
 0x372   : > { %3023 = vst.msk [vmem:[#allocation2 + $0x129] sm:$0xff] %vm365_vm0, %v2991_v9  ;;  %v2680_v41 = vld [vmem:[#allocation2 + $0x151] sm:$0xff]  ;;  %v2644_v25 = vmul.f32 0.25, %v2608_v12 }
 0x373   : > { %v2437_v23 = vpop.f32.mrb[56].mxu0  ;;  %v2716_v55 = vmul.f32 0.5, %v2680_v41 }
 0x374   : > { %3946 = vrot.lane.b32.xlu0 %v6843_v56, %s5119_s30  ;;  %3180 = vrot.lane.b32.xlu1 %v6801_v59, %s5113_s21  ;;  %v2438_v52 = vadd.f32 %v6670_v2, %v2437_v23  ;;  %v2439_v20 = vpop.f32.mrb[57].mxu0  ;;  %v2609_v42 = vld [vmem:[#allocation2 + $0x158] sm:$0xff]  ;;  %v2925_v23 = vmul.f32 0.5, %v2859_v0 }
 0x375   : > { %v2681_v7 = vld [vmem:[#allocation2 + $0x159] sm:$0xff]  ;;  %v2440_v38 = vpop.f32.mrb[58].mxu0  ;;  %v2645_v57 = vmul.f32 0.25, %v2609_v42  ;;  %v2752_v45 = vadd.f32 %v2716_v55, %v2644_v25  ;;  %v2956_v20 = vadd.f32 %v2924_v1, %v6798_v28 }
 0x376   : > { %v2788_v6 = vld [vmem:[#allocation2 + $0x152] sm:$0xff]  ;;  %v2717_v59 = vmul.f32 0.5, %v2681_v7  ;;  %v2789_v48 = vld [vmem:[#allocation2 + $0x15a] sm:$0xff]  ;;  %vm2480_vm14 = vcmp.ge.f32.partialorder %v2438_v52, 0.0  ;;  %v2512_v19 = vmul.f32 0.2, %v2438_v52  ;;  %v2441_v22 = vadd.f32 %v6670_v2, %v2440_v38 }
 0x377   : > { %v2824_v46 = vmul.f32 0.25, %v2788_v6  ;;  %v2825_v12 = vmul.f32 0.25, %v2789_v48  ;;  %v2957_v28 = vadd.f32 %v2925_v23, %v6806_v13 }
 0x378   : > { %3308 = vrot.lane.b32.xlu0 %v6803_v51, %s5115_s27  ;;  %3436 = vrot.lane.b32.xlu1 %v3777_v26, %s5116_s12  ;;  %v2442_v51 = vpop.f32.mrb[59].mxu0  ;;  %v3756_v49 = vld [vmem:[#allocation2 + $0x120] sm:$0xff]  ;;  %v2753_v9 = vadd.f32 %v2717_v59, %v2645_v57  ;;  %v2544_v3 = vsel %vm2480_vm14, %v2438_v52, %v2512_v19  ;;  %vm2481_vm15 = vcmp.ge.f32.partialorder %v2441_v22, 0.0  ;;  %v2513_v26 = vmul.f32 0.2, %v2441_v22 }
 0x379   : > { %v3884_v53 = vld [vmem:[#allocation2 + $0x121] sm:$0xff]  ;;  %v2860_v41 = vadd.f32 %v2824_v46, %v2752_v45  ;;  %v3885_v55 = vld [vmem:[#allocation2 + $0x129] sm:$0xff]  ;;  %2576 = vst.msk [vmem:[#allocation2 + $0x169] sm:$0xff] %vm365_vm0, %v2544_v3 }
 0x37a   : > { %v3757_v25 = vld [vmem:[#allocation2 + $0x128] sm:$0xff]  ;;  %v6865_v6 = vpack.c.bf16 %v3885_v55, %v3884_v53  ;;  %v2861_v0 = vadd.f32 %v2825_v12, %v2753_v9  ;;  %v2545_v57 = vsel %vm2481_vm15, %v2441_v22, %v2513_v26 }
 0x37b   : > { %v3630_v42 = vld [vmem:[#allocation2 + $0x122] sm:$0xff]  ;;  %v3778_v7 = vpack.c.bf16 %v3757_v25, %v3756_v49  ;;  %v6867_v52 = vmul.f32 0.25, %v2860_v41  ;;  %v3631_v38 = vld [vmem:[#allocation2 + $0x12a] sm:$0xff]  ;;  %2577 = vst.msk [vmem:[#allocation2 + $0x171] sm:$0xff] %vm365_vm0, %v2545_v57 }
 0x37c   : > { %3564 = vrot.lane.b32.xlu0 %v6843_v56, %s5114_s26  ;;  %3692 = vrot.lane.b32.xlu1 %v6834_v24, %s5117_s18  ;;  %v6869_v59 = vpack.c.bf16 %v3631_v38, %v3630_v42  ;;  %v6872_v45 = vmul.f32 0.25, %v2861_v0 }
 0x37d   : > { %v2992_v1 = vadd.f32 %v2956_v20, %v6867_v52  ;;  %3092 = vst.msk [vmem:[#allocation3 + $0xc0] sm:$0xff] %vm365_vm0, %v3778_v7 }
 0x37e   : > { %4050 = vst.msk [vmem:[#allocation3 + $0xa8] sm:$0xff] %vm365_vm0, %v6869_v59  ;;  %v2993_v46 = vadd.f32 %v2957_v28, %v6872_v45 }
 0x37f   : > { %3024 = vst.msk [vmem:[#allocation2 + $0x139] sm:$0xff] %vm365_vm0, %v2992_v1  ;;  %v3933_v13 = vpop.permute.xlu1 %3932 }
 0x380   : > { %3820 = vrot.lane.b32.xlu0 %v3778_v7, %s5118_s23  ;;  %3948 = vrot.lane.b32.xlu1 %v6865_v6, %s5119_s30  ;;  %v3805_v48 = vpop.permute.xlu0 %3804  ;;  %3025 = vst.msk [vmem:[#allocation2 + $0x141] sm:$0xff] %vm365_vm0, %v2993_v46  ;;  %v2445_v19 = vpop.f32.mrb[60].mxu0  ;;  %v2610_v22 = vld [vmem:[#allocation2 + $0x168] sm:$0xff]  ;;  %v2926_v46 = vmul.f32 0.5, %v2860_v41 }
 0x381   : > { %3850 = vst.msk [vmem:[#allocation3 + $0x20] sm:$0xff] %vm1922_vm8, %v3805_v48  ;;  %v2682_v51 = vld [vmem:[#allocation2 + $0x169] sm:$0xff]  ;;  %v2446_v49 = vadd.f32 %v6670_v2, %v2445_v19  ;;  %v2447_v9 = vpop.f32.mrb[61].mxu0  ;;  %v2646_v12 = vmul.f32 0.25, %v2610_v22 }
 0x382   : > { %3978 = vst.msk [vmem:[#allocation3 + $0x20] sm:$0xff] %vm2051_vm9, %v3933_v13  ;;  %v2718_v23 = vmul.f32 0.5, %v2682_v51  ;;  %v2448_v26 = vpop.f32.mrb[62].mxu0  ;;  %v2611_v25 = vld [vmem:[#allocation2 + $0x170] sm:$0xff]  ;;  %v4063_v51 = vld [vmem:[#allocation3 + $0x38] sm:$0xff] }
 0x383   : > { %v3551_v3 = vpop.permute.xlu1 %3550  ;;  %v2683_v55 = vld [vmem:[#allocation2 + $0x171] sm:$0xff]  ;;  %vm2482_vm1 = vcmp.ge.f32.partialorder %v2446_v49, 0.0  ;;  %v2449_v42 = vadd.f32 %v6670_v2, %v2448_v26  ;;  %v2450_v57 = vpop.f32.mrb[63].mxu0 }
 0x384   : > { %3182 = vrot.lane.b32.xlu0 %v6843_v56, %s5113_s21  ;;  %3310 = vrot.lane.b32.xlu1 %v6834_v24, %s5115_s27  ;;  %v3423_v53 = vpop.permute.xlu0 %3422  ;;  %v2790_v20 = vld [vmem:[#allocation2 + $0x16a] sm:$0xff]  ;;  %v2514_v56 = vmul.f32 0.2, %v2446_v49  ;;  %v2647_v24 = vmul.f32 0.25, %v2611_v25  ;;  %v2791_v38 = vld [vmem:[#allocation2 + $0x172] sm:$0xff]  ;;  %v2719_v28 = vmul.f32 0.5, %v2683_v55  ;;  %v2754_v1 = vadd.f32 %v2718_v23, %v2646_v12 }
 0x385   : > { %3467 = vst.msk [vmem:[#allocation3 + $0x30] sm:$0xff] %vm1534_vm5, %v3423_v53  ;;  %v2826_v48 = vmul.f32 0.25, %v2790_v20  ;;  %vm2483_vm2 = vcmp.ge.f32.partialorder %v2449_v42, 0.0  ;;  %v2515_v19 = vmul.f32 0.2, %v2449_v42  ;;  %v2827_v53 = vmul.f32 0.25, %v2791_v38 }
 0x386   : > { %3595 = vst.msk [vmem:[#allocation3 + $0x30] sm:$0xff] %vm1663_vm6, %v3551_v3  ;;  %v2546_v13 = vsel %vm2482_vm1, %v2446_v49, %v2514_v56  ;;  %v2755_v2 = vadd.f32 %v2719_v28, %v2647_v24  ;;  %v2927_v3 = vmul.f32 0.5, %v2861_v0  ;;  %v3758_v23 = vld [vmem:[#allocation2 + $0x138] sm:$0xff]  ;;  %v2958_v0 = vadd.f32 %v2926_v46, %v6829_v29 }
 0x387   : > { %2578 = vst.msk [vmem:[#allocation2 + $0x181] sm:$0xff] %vm365_vm0, %v2546_v13  ;;  %v2862_v9 = vadd.f32 %v2826_v48, %v2754_v1  ;;  %v3169_v12 = vpop.permute.xlu1 %3168  ;;  %v2547_v49 = vsel %vm2483_vm2, %v2449_v42, %v2515_v19  ;;  %v3887_v25 = vld [vmem:[#allocation2 + $0x141] sm:$0xff]  ;;  %v3886_v57 = vld [vmem:[#allocation2 + $0x139] sm:$0xff] }
 0x388   : > { %3438 = vrot.lane.b32.xlu0 %v3778_v7, %s5116_s12  ;;  %3566 = vrot.lane.b32.xlu1 %v6865_v6, %s5114_s26  ;;  %v3679_v22 = vpop.permute.xlu0 %3678  ;;  %v3759_v7 = vld [vmem:[#allocation2 + $0x140] sm:$0xff]  ;;  %3212 = vst.msk [vmem:[#allocation3 + $0x40] sm:$0xff] %vm1276_vm3, %v3169_v12  ;;  %v2863_v56 = vadd.f32 %v2827_v53, %v2755_v2  ;;  %v2959_v1 = vadd.f32 %v2927_v3, %v6837_v21 }
 0x389   : > { %3723 = vst.msk [vmem:[#allocation3 + $0x30] sm:$0xff] %vm1792_vm7, %v3679_v22  ;;  %v4060_v41 = vld [vmem:[#allocation3 + $0x20] sm:$0xff]  ;;  %v3779_v26 = vpack.c.bf16 %v3759_v7, %v3758_v23  ;;  %v3632_v55 = vld [vmem:[#allocation2 + $0x13a] sm:$0xff]  ;;  %v3633_v20 = vld [vmem:[#allocation2 + $0x142] sm:$0xff]  ;;  %v6902_v24 = vmul.f32 0.25, %v2862_v9  ;;  %v6917_v29 = vpack.c.bf16 %v3887_v25, %v3886_v57 }
 0x38a   : > { %4257 = vmatmul.mubr.bf16.gmra.mrb[8].mxu1 %v4060_v41  ;;  %2579 = vst.msk [vmem:[#allocation2 + $0x189] sm:$0xff] %vm365_vm0, %v2547_v49  ;;  %v6908_v42 = vpack.c.bf16 %v3633_v20, %v3632_v55  ;;  %v6912_v28 = vmul.f32 0.25, %v2863_v56  ;;  %v5098_v46 = vld [vmem:[#allocation2 + $0x19a] sm:$0xff]  ;;  %v5099_v21 = vld [vmem:[#allocation2 + $0x1a2] sm:$0xff]  ;;  %v2928_v55 = vmul.f32 0.5, %v2862_v9 }
 0x38b   : > { %4984 = vmatprep.mubr.msk.bf16.mxu1 %vm365_vm0, %v4063_v51  ;;  %3093 = vst.msk [vmem:[#allocation3 + $0xd0] sm:$0xff] %vm365_vm0, %v3779_v26  ;;  %v2994_v48 = vadd.f32 %v2958_v0, %v6902_v24  ;;  %v2830_v13 = vmul.f32 0.25, %v5098_v46  ;;  %v2831_v51 = vmul.f32 0.25, %v5099_v21  ;;  %v2929_v46 = vmul.f32 0.5, %v2863_v56 }
 0x38c   : > { %3694 = vrot.lane.b32.xlu0 %v6869_v59, %s5117_s18  ;;  %3822 = vrot.lane.b32.xlu1 %v3779_v26, %s5118_s23  ;;  %v3297_v38 = vpop.permute.xlu0 %3296  ;;  %4051 = vst.msk [vmem:[#allocation3 + $0xb8] sm:$0xff] %vm365_vm0, %v6908_v42  ;;  %v3807_v19 = vpop.permute.xlu1 %3806  ;;  %v2995_v22 = vadd.f32 %v2959_v1, %v6912_v28 }
 0x38d   : > { %3340 = vst.msk [vmem:[#allocation3 + $0x40] sm:$0xff] %vm1405_vm4, %v3297_v38  ;;  %v2866_v23 = vadd.f32 %v2830_v13, %v6180_v4  ;;  %v2961_v56 = vadd.f32 %v2929_v46, %v6872_v45 }
 0x38e   : > { %3026 = vst.msk [vmem:[#allocation2 + $0x151] sm:$0xff] %vm365_vm0, %v2994_v48  ;;  %v2612_v2 = vld [vmem:[#allocation2 + $0x180] sm:$0xff]  ;;  %3027 = vst.msk [vmem:[#allocation2 + $0x159] sm:$0xff] %vm365_vm0, %v2995_v22 }
 0x38f   : > { %3851 = vst.msk [vmem:[#allocation3 + $0x30] sm:$0xff] %vm1922_vm8, %v3807_v19  ;;  %v2684_v53 = vld [vmem:[#allocation2 + $0x181] sm:$0xff]  ;;  %v2648_v12 = vmul.f32 0.25, %v2612_v2  ;;  %v2966_v22 = vmul.f32 0.25, %v2866_v23 }
 0x390   : > { %3950 = vrot.lane.b32.xlu0 %v6917_v29, %s5119_s30  ;;  %3184 = vrot.lane.b32.xlu1 %v6865_v6, %s5113_s21  ;;  %v3935_v3 = vpop.permute.xlu0 %3934  ;;  %v2720_v41 = vmul.f32 0.5, %v2684_v53  ;;  %v3425_v20 = vpop.permute.xlu1 %3424  ;;  %v2867_v6 = vadd.f32 %v2831_v51, %v6182_v10 }
 0x391   : > { %3979 = vst.msk [vmem:[#allocation3 + $0x30] sm:$0xff] %vm2051_vm9, %v3935_v3  ;;  %v2613_v7 = vld [vmem:[#allocation2 + $0x188] sm:$0xff]  ;;  %v2960_v3 = vadd.f32 %v2928_v55, %v6867_v52 }
 0x392   : > { %v2685_v49 = vld [vmem:[#allocation2 + $0x189] sm:$0xff]  ;;  %v2756_v0 = vadd.f32 %v2720_v41, %v2648_v12  ;;  %v2649_v38 = vmul.f32 0.25, %v2613_v7  ;;  %3468 = vst.msk [vmem:[#allocation3 + $0x40] sm:$0xff] %vm1534_vm5, %v3425_v20 }
 0x393   : > { %v2792_v25 = vld [vmem:[#allocation2 + $0x182] sm:$0xff]  ;;  %v2721_v57 = vmul.f32 0.5, %v2685_v49  ;;  %v2793_v1 = vld [vmem:[#allocation2 + $0x18a] sm:$0xff] }
 0x394   : > { %v2828_v48 = vmul.f32 0.25, %v2792_v25  ;;  %3312 = vrot.lane.b32.xlu0 %v6869_v59, %s5115_s27  ;;  %3440 = vrot.lane.b32.xlu1 %v3779_v26, %s5116_s12  ;;  %v3553_v4 = vpop.permute.xlu0 %3552  ;;  %v2829_v19 = vmul.f32 0.25, %v2793_v1  ;;  %v3681_v21 = vpop.permute.xlu1 %3680  ;;  %v4065_v59 = vld [vmem:[#allocation3 + $0x48] sm:$0xff]  ;;  %v2967_v26 = vmul.f32 0.25, %v2867_v6 }
 0x395   : > { %v2757_v13 = vadd.f32 %v2721_v57, %v2649_v38  ;;  %3596 = vst.msk [vmem:[#allocation3 + $0x40] sm:$0xff] %vm1663_vm6, %v3553_v4  ;;  %v3760_v10 = vld [vmem:[#allocation2 + $0x150] sm:$0xff]  ;;  %v3761_v23 = vld [vmem:[#allocation2 + $0x158] sm:$0xff] }
 0x396   : > { %v2864_v9 = vadd.f32 %v2828_v48, %v2756_v0  ;;  %3724 = vst.msk [vmem:[#allocation3 + $0x40] sm:$0xff] %vm1792_vm7, %v3681_v21  ;;  %v3889_v7 = vld [vmem:[#allocation2 + $0x159] sm:$0xff]  ;;  %v3888_v20 = vld [vmem:[#allocation2 + $0x151] sm:$0xff]  ;;  %v3780_v45 = vpack.c.bf16 %v3761_v23, %v3760_v10 }
 0x397   : > { %v2865_v2 = vadd.f32 %v2829_v19, %v2757_v13  ;;  %v3634_v0 = vld [vmem:[#allocation2 + $0x152] sm:$0xff]  ;;  %v3635_v38 = vld [vmem:[#allocation2 + $0x15a] sm:$0xff]  ;;  %v3908_v1 = vpack.c.bf16 %v3889_v7, %v3888_v20 }
 0x398   : > { %v2930_v53 = vmul.f32 0.5, %v2864_v9  ;;  %v2964_v12 = vmul.f32 0.25, %v2864_v9  ;;  %3568 = vrot.lane.b32.xlu0 %v6917_v29, %s5114_s26  ;;  %3696 = vrot.lane.b32.xlu1 %v6908_v42, %s5117_s18  ;;  %v3171_v51 = vpop.permute.xlu0 %3170  ;;  %v4062_v41 = vld [vmem:[#allocation3 + $0x30] sm:$0xff]  ;;  %v3299_v57 = vpop.permute.xlu1 %3298  ;;  %v3653_v48 = vpack.c.bf16 %v3635_v38, %v3634_v0  ;;  %3094 = vst.msk [vmem:[#allocation3 + $0xe0] sm:$0xff] %vm365_vm0, %v3780_v45 }
 0x399   : > { %v2931_v49 = vmul.f32 0.5, %v2865_v2  ;;  %v2965_v25 = vmul.f32 0.25, %v2865_v2  ;;  %3213 = vst.msk [vmem:[#allocation3 + $0x50] sm:$0xff] %vm1276_vm3, %v3171_v51  ;;  %4265 = vmatmul.mubr.bf16.gmra.mrb[12].mxu1 %v4062_v41  ;;  %v4067_v51 = vld [vmem:[#allocation3 + $0x58] sm:$0xff] }
 0x39a   : > { %v2962_v52 = vadd.f32 %v2930_v53, %v6902_v24  ;;  %v2996_v55 = vadd.f32 %v2964_v12, %v2960_v3  ;;  %4985 = vmatprep.mubr.msk.bf16.mxu1 %vm365_vm0, %v4065_v59  ;;  %3341 = vst.msk [vmem:[#allocation3 + $0x50] sm:$0xff] %vm1405_vm4, %v3299_v57 }
 0x39b   : > { %v2963_v6 = vadd.f32 %v2931_v49, %v6912_v28  ;;  %v2997_v46 = vadd.f32 %v2965_v25, %v2961_v56  ;;  %4052 = vst.msk [vmem:[#allocation3 + $0xc8] sm:$0xff] %vm365_vm0, %v3653_v48 }
 0x39c   : > { %v2998_v4 = vadd.f32 %v2966_v22, %v2962_v52  ;;  %3028 = vst.msk [vmem:[#allocation2 + $0x169] sm:$0xff] %vm365_vm0, %v2996_v55  ;;  %3824 = vrot.lane.b32.xlu0 %v3780_v45, %s5118_s23  ;;  %3952 = vrot.lane.b32.xlu1 %v3908_v1, %s5119_s30  ;;  %v3809_v24 = vpop.permute.xlu0 %3808  ;;  %v3937_v28 = vpop.permute.xlu1 %3936 }
 0x39d   : > { %v2999_v13 = vadd.f32 %v2967_v26, %v2963_v6  ;;  %3029 = vst.msk [vmem:[#allocation2 + $0x171] sm:$0xff] %vm365_vm0, %v2997_v46  ;;  %v4069_v6 = vld [vmem:[#allocation3 + $0x68] sm:$0xff] }
 0x39e   : > { %3030 = vst.msk [vmem:[#allocation2 + $0x181] sm:$0xff] %vm365_vm0, %v2998_v4 }
 0x39f   : > { %3852 = vst.msk [vmem:[#allocation3 + $0x40] sm:$0xff] %vm1922_vm8, %v3809_v24 }
 0x3a0   : > { %3031 = vst.msk [vmem:[#allocation2 + $0x189] sm:$0xff] %vm365_vm0, %v2999_v13  ;;  %3186 = vrot.lane.b32.xlu0 %v6917_v29, %s5113_s21  ;;  %3314 = vrot.lane.b32.xlu1 %v6908_v42, %s5115_s27  ;;  %v3427_v19 = vpop.permute.xlu0 %3426  ;;  %v3555_v9 = vpop.permute.xlu1 %3554 }
 0x3a1   : > { %3980 = vst.msk [vmem:[#allocation3 + $0x40] sm:$0xff] %vm2051_vm9, %v3937_v28 }
 0x3a2   : > { %3469 = vst.msk [vmem:[#allocation3 + $0x50] sm:$0xff] %vm1534_vm5, %v3427_v19 }
 0x3a3   : > { %3597 = vst.msk [vmem:[#allocation3 + $0x50] sm:$0xff] %vm1663_vm6, %v3555_v9  ;;  %v3762_v21 = vld [vmem:[#allocation2 + $0x168] sm:$0xff] }
 0x3a4   : > { %3442 = vrot.lane.b32.xlu0 %v3780_v45, %s5116_s12  ;;  %3570 = vrot.lane.b32.xlu1 %v3908_v1, %s5114_s26  ;;  %v3683_v22 = vpop.permute.xlu0 %3682  ;;  %v3763_v2 = vld [vmem:[#allocation2 + $0x170] sm:$0xff]  ;;  %v3173_v12 = vpop.permute.xlu1 %3172 }
 0x3a5   : > { %v3636_v53 = vld [vmem:[#allocation2 + $0x16a] sm:$0xff]  ;;  %3725 = vst.msk [vmem:[#allocation3 + $0x50] sm:$0xff] %vm1792_vm7, %v3683_v22  ;;  %v3781_v29 = vpack.c.bf16 %v3763_v2, %v3762_v21  ;;  %v3637_v3 = vld [vmem:[#allocation2 + $0x172] sm:$0xff]  ;;  %v3892_v46 = vld [vmem:[#allocation2 + $0x181] sm:$0xff] }
 0x3a6   : > { %v3654_v10 = vpack.c.bf16 %v3637_v3, %v3636_v53  ;;  %3214 = vst.msk [vmem:[#allocation3 + $0x60] sm:$0xff] %vm1276_vm3, %v3173_v12  ;;  %v3891_v59 = vld [vmem:[#allocation2 + $0x171] sm:$0xff]  ;;  %v3890_v7 = vld [vmem:[#allocation2 + $0x169] sm:$0xff]  ;;  %v3767_v2 = vld [vmem:[#allocation2 + $0x1a0] sm:$0xff] }
 0x3a7   : > { %v3638_v26 = vld [vmem:[#allocation2 + $0x182] sm:$0xff]  ;;  %v3639_v56 = vld [vmem:[#allocation2 + $0x18a] sm:$0xff]  ;;  %3095 = vst.msk [vmem:[#allocation3 + $0xf0] sm:$0xff] %vm365_vm0, %v3781_v29  ;;  %v3909_v52 = vpack.c.bf16 %v3891_v59, %v3890_v7  ;;  %v3766_v21 = vld [vmem:[#allocation2 + $0x198] sm:$0xff] }
 0x3a8   : > { %v4064_v42 = vld [vmem:[#allocation3 + $0x40] sm:$0xff]  ;;  %3698 = vrot.lane.b32.xlu0 %v3653_v48, %s5117_s18  ;;  %3826 = vrot.lane.b32.xlu1 %v3781_v29, %s5118_s23  ;;  %v3301_v41 = vpop.permute.xlu0 %3300  ;;  %v3655_v23 = vpack.c.bf16 %v3639_v56, %v3638_v26  ;;  %4053 = vst.msk [vmem:[#allocation3 + $0xd8] sm:$0xff] %vm365_vm0, %v3654_v10  ;;  %v3811_v49 = vpop.permute.xlu1 %3810  ;;  %v3765_v38 = vld [vmem:[#allocation2 + $0x188] sm:$0xff]  ;;  %v3894_v3 = vld [vmem:[#allocation2 + $0x199] sm:$0xff] }
 0x3a9   : > { %4273 = vmatmul.mubr.bf16.gmra.mrb[16].mxu1 %v4064_v42  ;;  %3342 = vst.msk [vmem:[#allocation3 + $0x60] sm:$0xff] %vm1405_vm4, %v3301_v41  ;;  %v3893_v57 = vld [vmem:[#allocation2 + $0x189] sm:$0xff]  ;;  %v3895_v12 = vld [vmem:[#allocation2 + $0x1a1] sm:$0xff] }
 0x3aa   : > { %4986 = vmatprep.mubr.msk.bf16.mxu1 %vm365_vm0, %v4067_v51  ;;  %4054 = vst.msk [vmem:[#allocation3 + $0xe8] sm:$0xff] %vm365_vm0, %v3655_v23  ;;  %v3910_v13 = vpack.c.bf16 %v3893_v57, %v3892_v46  ;;  %v4071_v59 = vld [vmem:[#allocation3 + $0x78] sm:$0xff]  ;;  %v3911_v56 = vpack.c.bf16 %v3895_v12, %v3894_v3 }
 0x3ab   : > { %3853 = vst.msk [vmem:[#allocation3 + $0x50] sm:$0xff] %vm1922_vm8, %v3811_v49 }
 0x3ac   : > { %3954 = vrot.lane.b32.xlu0 %v3909_v52, %s5119_s30  ;;  %3188 = vrot.lane.b32.xlu1 %v3908_v1, %s5113_s21  ;;  %v3939_v25 = vpop.permute.xlu0 %3938 }
 0x3ad   : > { %3981 = vst.msk [vmem:[#allocation3 + $0x50] sm:$0xff] %vm2051_vm9, %v3939_v25  ;;  %v3429_v55 = vpop.permute.xlu1 %3428  ;;  %v4073_v25 = vld [vmem:[#allocation3 + $0x88] sm:$0xff] }
 0x3ae   : > { %3470 = vst.msk [vmem:[#allocation3 + $0x60] sm:$0xff] %vm1534_vm5, %v3429_v55 }
 0x3b0   : > { %3316 = vrot.lane.b32.xlu0 %v3653_v48, %s5115_s27  ;;  %3444 = vrot.lane.b32.xlu1 %v3781_v29, %s5116_s12  ;;  %v3557_v20 = vpop.permute.xlu0 %3556  ;;  %v3764_v48 = vld [vmem:[#allocation2 + $0x180] sm:$0xff]  ;;  %v3783_v29 = vpack.c.bf16 %v3767_v2, %v3766_v21  ;;  %v4077_v21 = vld [vmem:[#allocation3 + $0xa8] sm:$0xff] }
 0x3b1   : > { %3598 = vst.msk [vmem:[#allocation3 + $0x60] sm:$0xff] %vm1663_vm6, %v3557_v20  ;;  %v3685_v0 = vpop.permute.xlu1 %3684  ;;  %v3782_v24 = vpack.c.bf16 %v3765_v38, %v3764_v48  ;;  %v4075_v48 = vld [vmem:[#allocation3 + $0x98] sm:$0xff] }
 0x3b2   : > { %3726 = vst.msk [vmem:[#allocation3 + $0x60] sm:$0xff] %vm1792_vm7, %v3685_v0 }
 0x3b4   : > { %3572 = vrot.lane.b32.xlu0 %v3909_v52, %s5114_s26  ;;  %3700 = vrot.lane.b32.xlu1 %v3654_v10, %s5117_s18  ;;  %v3175_v45 = vpop.permute.xlu0 %3174  ;;  %v4066_v1 = vld [vmem:[#allocation3 + $0x50] sm:$0xff] }
 0x3b5   : > { %3215 = vst.msk [vmem:[#allocation3 + $0x70] sm:$0xff] %vm1276_vm3, %v3175_v45  ;;  %4281 = vmatmul.mubr.bf16.gmra.mrb[20].mxu1 %v4066_v1  ;;  %v3303_v4 = vpop.permute.xlu1 %3302 }
 0x3b6   : > { %4987 = vmatprep.mubr.msk.bf16.mxu1 %vm365_vm0, %v4069_v6  ;;  %3343 = vst.msk [vmem:[#allocation3 + $0x70] sm:$0xff] %vm1405_vm4, %v3303_v4 }
 0x3b8   : > { %3828 = vrot.lane.b32.xlu0 %v3782_v24, %s5118_s23  ;;  %3956 = vrot.lane.b32.xlu1 %v3910_v13, %s5119_s30  ;;  %v3813_v28 = vpop.permute.xlu0 %3812 }
 0x3b9   : > { %3854 = vst.msk [vmem:[#allocation3 + $0x60] sm:$0xff] %vm1922_vm8, %v3813_v28  ;;  %v3941_v19 = vpop.permute.xlu1 %3940 }
 0x3ba   : > { %3982 = vst.msk [vmem:[#allocation3 + $0x60] sm:$0xff] %vm2051_vm9, %v3941_v19 }
 0x3bc   : > { %3190 = vrot.lane.b32.xlu0 %v3909_v52, %s5113_s21  ;;  %3318 = vrot.lane.b32.xlu1 %v3654_v10, %s5115_s27  ;;  %v3431_v9 = vpop.permute.xlu0 %3430 }
 0x3bd   : > { %3471 = vst.msk [vmem:[#allocation3 + $0x70] sm:$0xff] %vm1534_vm5, %v3431_v9  ;;  %v3559_v22 = vpop.permute.xlu1 %3558 }
 0x3be   : > { %3599 = vst.msk [vmem:[#allocation3 + $0x70] sm:$0xff] %vm1663_vm6, %v3559_v22 }
 0x3c0   : > { %3446 = vrot.lane.b32.xlu0 %v3782_v24, %s5116_s12  ;;  %3574 = vrot.lane.b32.xlu1 %v3910_v13, %s5114_s26  ;;  %v3687_v53 = vpop.permute.xlu0 %3686 }
 0x3c1   : > { %3727 = vst.msk [vmem:[#allocation3 + $0x70] sm:$0xff] %vm1792_vm7, %v3687_v53  ;;  %v3177_v42 = vpop.permute.xlu1 %3176  ;;  %v4068_v10 = vld [vmem:[#allocation3 + $0x60] sm:$0xff] }
 0x3c2   : > { %3216 = vst.msk [vmem:[#allocation3 + $0x80] sm:$0xff] %vm1276_vm3, %v3177_v42  ;;  %4289 = vmatmul.mubr.bf16.gmra.mrb[24].mxu1 %v4068_v10 }
 0x3c3   : > { %4988 = vmatprep.mubr.msk.bf16.mxu1 %vm365_vm0, %v4071_v59  ;;  %v4079_v59 = vld [vmem:[#allocation3 + $0xb8] sm:$0xff] }
 0x3c4   : > { %3702 = vrot.lane.b32.xlu0 %v3655_v23, %s5117_s18  ;;  %v3305_v26 = vpop.permute.xlu0 %3304  ;;  %3830 = vrot.lane.b32.xlu1 %v3783_v29, %s5118_s23  ;;  %s7127_s18 = sld [smem:[#allocation5]]  ;;  %s4943_s23 = sshll.u32 %s4936_s16, 3 }
 0x3c5   : > { %3344 = vst.msk [vmem:[#allocation3 + $0x80] sm:$0xff] %vm1405_vm4, %v3305_v26  ;;  %p359_p4 = scmp.lt.s32.totalorder %s4943_s23, 31 }
 0x3c6   : > { %v3815_v51 = vpop.permute.xlu1 %3814 }
 0x3c7   : > { %3855 = vst.msk [vmem:[#allocation3 + $0x70] sm:$0xff] %vm1922_vm8, %v3815_v51  ;;  %s7682_s23 = smov (!%p359_p4, %s4943_s23), 31 }
 0x3c8   : > { %3958 = vrot.lane.b32.xlu0 %v3911_v56, %s5119_s30  ;;  %v3943_v41 = vpop.permute.xlu0 %3942  ;;  %s4944_s16 = sshll.u32 %s7682_s23, 3 }
 0x3c9   : > { %3983 = vst.msk [vmem:[#allocation3 + $0x70] sm:$0xff] %vm2051_vm9, %v3943_v41  ;;  %s7154_s24 = scalar_lea.vmem %s7459_s10, %s4944_s16 }
 0x3ca   : > { %v3433_v7 = vpop.permute.xlu1 %3432  ;;  %s4854_s0 = ssub.f32 1.0, %s7127_s18 }
 0x3cb   : > { %3472 = vst.msk [vmem:[#allocation3 + $0x80] sm:$0xff] %vm1534_vm5, %v3433_v7 }
 0x3cc   : > { %v3561_v23 = vpop.permute.xlu0 %3560 }
 0x3cd   : > { %3600 = vst.msk [vmem:[#allocation3 + $0x80] sm:$0xff] %vm1663_vm6, %v3561_v23 }
 0x3ce   : > { %v3689_v49 = vpop.permute.xlu1 %3688 }
 0x3cf   : > { %3728 = vst.msk [vmem:[#allocation3 + $0x80] sm:$0xff] %vm1792_vm7, %v3689_v49  ;;  %v4536_v49 = vld [vmem:[%s7457_s8] sm:$0x7] }
 0x3d0   : > { %v4070_v52 = vld [vmem:[#allocation3 + $0x70] sm:$0xff] }
 0x3d1   : > { %4297 = vmatmul.mubr.bf16.gmra.mrb[28].mxu1 %v4070_v52  ;;  %v7608_v52 = vsub.s32 0, %v5367_v37 }
 0x3d2   : > { %4989 = vmatprep.mubr.msk.bf16.mxu1 %vm365_vm0, %v4073_v25 }
 0x3d3   : > { %v7047_v25 = vrot.slane %v4536_v49, %v7608_v52 }
 0x3d5   : > { %v3945_v55 = vpop.permute.xlu1 %3944 }
 0x3d6   : > { %v3817_v20 = vpop.permute.xlu0 %3816 }
 0x3d7   : > { %3856 = vst.msk [vmem:[#allocation3 + $0x80] sm:$0xff] %vm1922_vm8, %v3817_v20 }
 0x3d8   : > { %3984 = vst.msk [vmem:[#allocation3 + $0x80] sm:$0xff] %vm2051_vm9, %v3945_v55 }
 0x3d9   : > { %v3307_v0 = vpop.permute.xlu1 %3306 }
 0x3da   : > { %v3179_v38 = vpop.permute.xlu0 %3178 }
 0x3db   : > { %3217 = vst.msk [vmem:[#allocation3 + $0x90] sm:$0xff] %vm1276_vm3, %v3179_v38  ;;  %v4081_v38 = vld [vmem:[#allocation3 + $0xc8] sm:$0xff] }
 0x3dc   : > { %3345 = vst.msk [vmem:[#allocation3 + $0x90] sm:$0xff] %vm1405_vm4, %v3307_v0 }
 0x3dd   : > { %v3563_v57 = vpop.permute.xlu1 %3562 }
 0x3de   : > { %v3435_v45 = vpop.permute.xlu0 %3434 }
 0x3df   : > { %3473 = vst.msk [vmem:[#allocation3 + $0x90] sm:$0xff] %vm1534_vm5, %v3435_v45  ;;  %v4072_v1 = vld [vmem:[#allocation3 + $0x80] sm:$0xff]  ;;  %v4543_v45 = vmul.f32 %v7047_v25, %v5420_v58 }
 0x3e0   : > { %3601 = vst.msk [vmem:[#allocation3 + $0x90] sm:$0xff] %vm1663_vm6, %v3563_v57  ;;  %4305 = vmatmul.mubr.bf16.gmra.mrb[32].mxu1 %v4072_v1  ;;  %v4542_v57 = vmul.f32 %v7047_v25, %v5399_v50  ;;  %v7609_v1 = vsub.s32 1, %v5367_v37 }
 0x3e1   : > { %4990 = vmatprep.mubr.msk.bf16.mxu1 %vm365_vm0, %v4075_v48 }
 0x3e2   : > { %v3691_v6 = vpop.permute.xlu0 %3690  ;;  %v3819_v46 = vpop.permute.xlu1 %3818  ;;  %v7058_v48 = vrot.slane %v4536_v49, %v7609_v1  ;;  %v4544_v1 = vmul.f32 %v7047_v25, %v5436_v8 }
 0x3e3   : > { %3729 = vst.msk [vmem:[#allocation3 + $0x90] sm:$0xff] %vm1792_vm7, %v3691_v6 }
 0x3e4   : > { %3857 = vst.msk [vmem:[#allocation3 + $0x90] sm:$0xff] %vm1922_vm8, %v3819_v46  ;;  %v7063_v46 = vld [vmem:[%s7458_s9] ss:$0 sm:$0xff] }
 0x3e5   : > { %v4580_v58 = vadd.f32 %v7063_v46, %v4542_v57 }
 0x3e6   : > { %v3947_v4 = vpop.permute.xlu0 %3946  ;;  %v3181_v24 = vpop.permute.xlu1 %3180 }
 0x3e7   : > { %3985 = vst.msk [vmem:[#allocation3 + $0x90] sm:$0xff] %vm2051_vm9, %v3947_v4 }
 0x3e8   : > { %3218 = vst.msk [vmem:[#allocation3 + $0xa0] sm:$0xff] %vm1276_vm3, %v3181_v24  ;;  %v4581_v24 = vadd.f32 %v7063_v46, %v4543_v45 }
 0x3ea   : > { %v3309_v13 = vpop.permute.xlu0 %3308  ;;  %v3437_v28 = vpop.permute.xlu1 %3436 }
 0x3eb   : > { %3346 = vst.msk [vmem:[#allocation3 + $0xa0] sm:$0xff] %vm1405_vm4, %v3309_v13 }
 0x3ec   : > { %3474 = vst.msk [vmem:[#allocation3 + $0xa0] sm:$0xff] %vm1534_vm5, %v3437_v28 }
 0x3ee   : > { %v3565_v19 = vpop.permute.xlu0 %3564  ;;  %v4074_v9 = vld [vmem:[#allocation3 + $0x90] sm:$0xff]  ;;  %v3693_v22 = vpop.permute.xlu1 %3692 }
 0x3ef   : > { %3602 = vst.msk [vmem:[#allocation3 + $0xa0] sm:$0xff] %vm1663_vm6, %v3565_v19  ;;  %4313 = vmatmul.mubr.bf16.gmra.mrb[36].mxu1 %v4074_v9  ;;  %v7610_v19 = vsub.s32 2, %v5367_v37 }
 0x3f0   : > { %3730 = vst.msk [vmem:[#allocation3 + $0xa0] sm:$0xff] %vm1792_vm7, %v3693_v22  ;;  %4991 = vmatprep.mubr.msk.bf16.mxu1 %vm365_vm0, %v4077_v21  ;;  %v4616_v22 = vmul.f32 %v7058_v48, %v5354_v31  ;;  %v4617_v21 = vmul.f32 %v7058_v48, %v5357_v32 }
 0x3f1   : > { %v7072_v9 = vrot.slane %v4536_v49, %v7610_v19  ;;  %v4618_v19 = vmul.f32 %v7058_v48, %v5390_v47 }
 0x3f2   : > { %v3821_v2 = vpop.permute.xlu0 %3820  ;;  %v3949_v53 = vpop.permute.xlu1 %3948 }
 0x3f3   : > { %3858 = vst.msk [vmem:[#allocation3 + $0xa0] sm:$0xff] %vm1922_vm8, %v3821_v2  ;;  %v4684_v37 = vmul.f32 %v7072_v9, %v5351_v30  ;;  %v4685_v31 = vmul.f32 %v7072_v9, %v5372_v40  ;;  %v4686_v47 = vmul.f32 %v7072_v9, %v5413_v54 }
 0x3f4   : > { %3986 = vst.msk [vmem:[#allocation3 + $0xa0] sm:$0xff] %vm2051_vm9, %v3949_v53 }
 0x3f6   : > { %v3183_v29 = vpop.permute.xlu0 %3182  ;;  %v3311_v3 = vpop.permute.xlu1 %3310 }
 0x3f7   : > { %3219 = vst.msk [vmem:[#allocation3 + $0xb0] sm:$0xff] %vm1276_vm3, %v3183_v29 }
 0x3f8   : > { %3347 = vst.msk [vmem:[#allocation3 + $0xb0] sm:$0xff] %vm1405_vm4, %v3311_v3  ;;  %v4648_v3 = vadd.f32 %v4616_v22, %v4580_v58 }
 0x3fa   : > { %v3439_v12 = vpop.permute.xlu0 %3438  ;;  %v3567_v42 = vpop.permute.xlu1 %3566  ;;  %v4716_v32 = vadd.f32 %v4684_v37, %v4648_v3 }
 0x3fb   : > { %3475 = vst.msk [vmem:[#allocation3 + $0xb0] sm:$0xff] %vm1534_vm5, %v3439_v12  ;;  %v4076_v10 = vld [vmem:[#allocation3 + $0xa0] sm:$0xff]  ;;  %v4649_v12 = vadd.f32 %v4617_v21, %v4581_v24  ;;  %v4582_v24 = vadd.f32 %v7063_v46, %v4544_v1  ;;  %v7147_v1 = vstv %s4854_s0 }
 0x3fc   : > { %3603 = vst.msk [vmem:[#allocation3 + $0xb0] sm:$0xff] %vm1663_vm6, %v3567_v42  ;;  %4321 = vmatmul.mubr.bf16.gmra.mrb[40].mxu1 %v4076_v10 }
 0x3fd   : > { %4992 = vmatprep.mubr.msk.bf16.mxu1 %vm365_vm0, %v4079_v59  ;;  %v4717_v59 = vadd.f32 %v4685_v31, %v4649_v12  ;;  %v4650_v3 = vadd.f32 %v4618_v19, %v4582_v24  ;;  %v4547_v24 = vmul.f32 %v7047_v25, %v5447_v16 }
 0x3fe   : > { %v3695_v26 = vpop.permute.xlu0 %3694  ;;  %v3823_v56 = vpop.permute.xlu1 %3822 }
 0x3ff   : > { %3731 = vst.msk [vmem:[#allocation3 + $0xb0] sm:$0xff] %vm1792_vm7, %v3695_v26 }
 0x400   : > { %3859 = vst.msk [vmem:[#allocation3 + $0xb0] sm:$0xff] %vm1922_vm8, %v3823_v56 }
 0x402   : > { %v3951_v51 = vpop.permute.xlu0 %3950  ;;  %v3185_v41 = vpop.permute.xlu1 %3184 }
 0x403   : > { %3987 = vst.msk [vmem:[#allocation3 + $0xb0] sm:$0xff] %vm2051_vm9, %v3951_v51 }
 0x404   : > { %3220 = vst.msk [vmem:[#allocation3 + $0xc0] sm:$0xff] %vm1276_vm3, %v3185_v41  ;;  %v4083_v41 = vld [vmem:[#allocation3 + $0xd8] sm:$0xff] }
 0x406   : > { %v3313_v7 = vpop.permute.xlu0 %3312  ;;  %v3441_v23 = vpop.permute.xlu1 %3440 }
 0x407   : > { %3348 = vst.msk [vmem:[#allocation3 + $0xc0] sm:$0xff] %vm1405_vm4, %v3313_v7 }
 0x408   : > { %3476 = vst.msk [vmem:[#allocation3 + $0xc0] sm:$0xff] %vm1534_vm5, %v3441_v23 }
 0x40a   : > { %v3569_v55 = vpop.permute.xlu0 %3568  ;;  %v4078_v20 = vld [vmem:[#allocation3 + $0xb0] sm:$0xff]  ;;  %v3697_v0 = vpop.permute.xlu1 %3696 }
 0x40b   : > { %3604 = vst.msk [vmem:[#allocation3 + $0xc0] sm:$0xff] %vm1663_vm6, %v3569_v55  ;;  %4329 = vmatmul.mubr.bf16.gmra.mrb[44].mxu1 %v4078_v20 }
 0x40c   : > { %3732 = vst.msk [vmem:[#allocation3 + $0xc0] sm:$0xff] %vm1792_vm7, %v3697_v0  ;;  %4993 = vmatprep.mubr.msk.bf16.mxu1 %vm365_vm0, %v4081_v38  ;;  %v4085_v38 = vld [vmem:[#allocation3 + $0xe8] sm:$0xff] }
 0x40d   : > { %v4242_v6 = vpop.f32.mrb[0].mxu1 }
 0x40e   : > { %v3825_v4 = vpop.permute.xlu0 %3824  ;;  %v3953_v50 = vpop.permute.xlu1 %3952  ;;  %4370 = vst.msk [vmem:[#allocation4] sm:$0xff] %vm4369_vm10, %v4242_v6  ;;  %v4545_v6 = vmul.f32 %v7047_v25, %v5364_v36 }
 0x40f   : > { %3860 = vst.msk [vmem:[#allocation3 + $0xc0] sm:$0xff] %vm1922_vm8, %v3825_v4  ;;  %v4244_v13 = vpop.f32.mrb[1].mxu1 }
 0x410   : > { %3988 = vst.msk [vmem:[#allocation3 + $0xc0] sm:$0xff] %vm2051_vm9, %v3953_v50  ;;  %v4245_v28 = vpop.f32.mrb[2].mxu1 }
 0x411   : > { %4371 = vst.msk [vmem:[#allocation4 + $0x8] sm:$0xff] %vm4369_vm10, %v4245_v28  ;;  %v4247_v2 = vpop.f32.mrb[3].mxu1  ;;  %v4583_v28 = vadd.f32 %v7063_v46, %v4545_v6 }
 0x412   : > { %v3187_v53 = vpop.permute.xlu0 %3186  ;;  %v3315_v29 = vpop.permute.xlu1 %3314  ;;  %v4087_v2 = vld [vmem:[#allocation3 + $0xf8] sm:$0xff] }
 0x413   : > { %3221 = vst.msk [vmem:[#allocation3 + $0xd0] sm:$0xff] %vm1276_vm3, %v3187_v53  ;;  %v4619_v53 = vmul.f32 %v7058_v48, %v5359_v33  ;;  %v4718_v33 = vadd.f32 %v4686_v47, %v4650_v3 }
 0x414   : > { %3349 = vst.msk [vmem:[#allocation3 + $0xd0] sm:$0xff] %vm1405_vm4, %v3315_v29  ;;  %v4687_v29 = vmul.f32 %v7072_v9, %v5428_v63 }
 0x415   : > { %v4651_v37 = vadd.f32 %v4619_v53, %v4583_v28  ;;  %v7611_v53 = vld [vmem:[#allocation11_spill] sm:$0xff] }
 0x416   : > { %v3443_v42 = vpop.permute.xlu0 %3442  ;;  %v3571_v10 = vpop.permute.xlu1 %3570 }
 0x417   : > { %3477 = vst.msk [vmem:[#allocation3 + $0xd0] sm:$0xff] %vm1534_vm5, %v3443_v42  ;;  %v4080_v26 = vld [vmem:[#allocation3 + $0xc0] sm:$0xff]  ;;  %v4719_v42 = vadd.f32 %v4687_v29, %v4651_v37  ;;  %v4689_v29 = vmul.f32 %v7072_v9, %v7611_v53 }
 0x418   : > { %v7086_v56 = vld [vmem:[#allocation4] ss:$2 sm:$0xff]  ;;  %v7088_v51 = vld [vmem:[#allocation4 + $0x1] ss:$2 sm:$0xff]  ;;  %3605 = vst.msk [vmem:[#allocation3 + $0xd0] sm:$0xff] %vm1663_vm6, %v3571_v10  ;;  %4337 = vmatmul.mubr.bf16.gmra.mrb[48].mxu1 %v4080_v26 }
 0x419   : > { %4748 = vst.msk [vmem:[#allocation4] sm:$0xff] %vm4369_vm10, %v4716_v32  ;;  %4749 = vst.msk [vmem:[#allocation4 + $0x8] sm:$0xff] %vm4369_vm10, %v4717_v59  ;;  %4994 = vmatprep.mubr.msk.bf16.mxu1 %vm365_vm0, %v4083_v41  ;;  %v4465_v59 = vadd.f32 %v7088_v51, %v7086_v56  ;;  %v7620_v53 = vld [vmem:[#allocation22_spill] sm:$0xff] }
 0x41a   : > { %v3699_v30 = vpop.permute.xlu0 %3698  ;;  %v3827_v40 = vpop.permute.xlu1 %3826 }
 0x41b   : > { %3733 = vst.msk [vmem:[#allocation3 + $0xd0] sm:$0xff] %vm1792_vm7, %v3699_v30  ;;  %v7140_v30 = vld [vmem:[%s7456_s7] ss:$0 sm:$0xff] }
 0x41c   : > { %3861 = vst.msk [vmem:[#allocation3 + $0xd0] sm:$0xff] %vm1922_vm8, %v3827_v40 }
 0x41e   : > { %v3955_v7 = vpop.permute.xlu0 %3954  ;;  %v3189_v23 = vpop.permute.xlu1 %3188 }
 0x41f   : > { %3989 = vst.msk [vmem:[#allocation3 + $0xd0] sm:$0xff] %vm2051_vm9, %v3955_v7 }
 0x420   : > { %3222 = vst.msk [vmem:[#allocation3 + $0xe0] sm:$0xff] %vm1276_vm3, %v3189_v23  ;;  %v4780_v56 = vld [vmem:[#allocation4] ss:$2 sm:$0xff]  ;;  %v4796_v51 = vld [vmem:[#allocation4 + $0x1] ss:$2 sm:$0xff] }
 0x422   : > { %v3317_v49 = vpop.permute.xlu0 %3316  ;;  %v3445_v52 = vpop.permute.xlu1 %3444 }
 0x423   : > { %3350 = vst.msk [vmem:[#allocation3 + $0xe0] sm:$0xff] %vm1405_vm4, %v3317_v49 }
 0x424   : > { %3478 = vst.msk [vmem:[#allocation3 + $0xe0] sm:$0xff] %vm1534_vm5, %v3445_v52 }
 0x426   : > { %v3573_v55 = vpop.permute.xlu0 %3572  ;;  %v4082_v20 = vld [vmem:[#allocation3 + $0xd0] sm:$0xff]  ;;  %v3701_v0 = vpop.permute.xlu1 %3700 }
 0x427   : > { %3606 = vst.msk [vmem:[#allocation3 + $0xe0] sm:$0xff] %vm1663_vm6, %v3573_v55  ;;  %4345 = vmatmul.mubr.bf16.gmra.mrb[52].mxu1 %v4082_v20  ;;  %v4812_v55 = vadd.f32 %v4796_v51, %v4780_v56 }
 0x428   : > { %3734 = vst.msk [vmem:[#allocation3 + $0xe0] sm:$0xff] %vm1792_vm7, %v3701_v0  ;;  %4995 = vmatprep.mubr.msk.bf16.mxu1 %vm365_vm0, %v4085_v38 }
 0x42a   : > { %v3829_v57 = vpop.permute.xlu0 %3828  ;;  %v3957_v45 = vpop.permute.xlu1 %3956 }
 0x42b   : > { %3862 = vst.msk [vmem:[#allocation3 + $0xe0] sm:$0xff] %vm1922_vm8, %v3829_v57 }
 0x42c   : > { %3990 = vst.msk [vmem:[#allocation3 + $0xe0] sm:$0xff] %vm2051_vm9, %v3957_v45  ;;  %v7145_v45 = vstv %s7127_s18 }
 0x42d   : > { %v4250_v4 = vpop.f32.mrb[4].mxu1 }
 0x42e   : > { %v3191_v50 = vpop.permute.xlu0 %3190  ;;  %v3319_v58 = vpop.permute.xlu1 %3318  ;;  %4372 = vst.msk [vmem:[#allocation4 + $0x10] sm:$0xff] %vm4369_vm10, %v4250_v4 }
 0x42f   : > { %3223 = vst.msk [vmem:[#allocation3 + $0xf0] sm:$0xff] %vm1276_vm3, %v3191_v50  ;;  %v4252_v13 = vpop.f32.mrb[5].mxu1 }
 0x430   : > { %3351 = vst.msk [vmem:[#allocation3 + $0xf0] sm:$0xff] %vm1405_vm4, %v3319_v58  ;;  %v4253_v8 = vpop.f32.mrb[6].mxu1 }
 0x431   : > { %4373 = vst.msk [vmem:[#allocation4 + $0x18] sm:$0xff] %vm4369_vm10, %v4253_v8  ;;  %v4255_v36 = vpop.f32.mrb[7].mxu1  ;;  %v4546_v8 = vmul.f32 %v7047_v25, %v5450_v17  ;;  %v4688_v17 = vmul.f32 %v7072_v9, %v5476_v61 }
 0x432   : > { %v3447_v22 = vpop.permute.xlu0 %3446  ;;  %v3575_v21 = vpop.permute.xlu1 %3574  ;;  %v4585_v36 = vadd.f32 %v7063_v46, %v4547_v24 }
 0x433   : > { %3479 = vst.msk [vmem:[#allocation3 + $0xf0] sm:$0xff] %vm1534_vm5, %v3447_v22  ;;  %v4084_v12 = vld [vmem:[#allocation3 + $0xe0] sm:$0xff]  ;;  %v4620_v22 = vmul.f32 %v7058_v48, %v5464_v34  ;;  %v4584_v16 = vadd.f32 %v7063_v46, %v4546_v8  ;;  %v7619_v8 = vld [vmem:[#allocation9_spill] sm:$0xff] }
 0x434   : > { %3607 = vst.msk [vmem:[#allocation3 + $0xf0] sm:$0xff] %vm1663_vm6, %v3575_v21  ;;  %4353 = vmatmul.mubr.bf16.gmra.mrb[56].mxu1 %v4084_v12 }
 0x435   : > { %4996 = vmatprep.mubr.msk.bf16.mxu1 %vm365_vm0, %v4087_v2  ;;  %v4621_v2 = vmul.f32 %v7058_v48, %v5362_v35  ;;  %v4652_v3 = vadd.f32 %v4620_v22, %v4584_v16 }
 0x436   : > { %v3703_v31 = vpop.permute.xlu0 %3702  ;;  %v3831_v63 = vpop.permute.xlu1 %3830 }
 0x437   : > { %3735 = vst.msk [vmem:[#allocation3 + $0xf0] sm:$0xff] %vm1792_vm7, %v3703_v31  ;;  %v4653_v12 = vadd.f32 %v4621_v2, %v4585_v36  ;;  %v4720_v47 = vadd.f32 %v4688_v17, %v4652_v3 }
 0x438   : > { %v4404_v10 = vld [vmem:[#allocation4 + $0x10] ss:$2 sm:$0xff]  ;;  %v4436_v32 = vld [vmem:[#allocation4 + $0x11] ss:$2 sm:$0xff]  ;;  %3863 = vst.msk [vmem:[#allocation3 + $0xf0] sm:$0xff] %vm1922_vm8, %v3831_v63 }
 0x439   : > { %v4466_v54 = vadd.f32 %v4436_v32, %v4404_v10  ;;  %4750 = vst.msk [vmem:[#allocation4 + $0x10] sm:$0xff] %vm4369_vm10, %v4718_v33  ;;  %4751 = vst.msk [vmem:[#allocation4 + $0x18] sm:$0xff] %vm4369_vm10, %v4719_v42  ;;  %v4721_v37 = vadd.f32 %v4689_v29, %v4653_v12  ;;  %v7612_v42 = vld [vmem:[#allocation13_spill] sm:$0xff]  ;;  %v7613_v63 = vld [vmem:[#allocation8_spill] sm:$0xff]  ;;  %v4624_v29 = vmul.f32 %v7058_v48, %v7620_v53 }
 0x43a   : > { %v3959_v26 = vpop.permute.xlu0 %3958  ;;  %v4549_v35 = vmul.f32 %v7047_v25, %v7612_v42  ;;  %v4548_v61 = vmul.f32 %v7047_v25, %v7613_v63 }
 0x43b   : > { %v4481_v41 = vadd.f32 %v4466_v54, %v4465_v59  ;;  %3991 = vst.msk [vmem:[#allocation3 + $0xf0] sm:$0xff] %vm2051_vm9, %v3959_v26  ;;  %v7614_v54 = vld [vmem:[#allocation15_spill] sm:$0xff] }
 0x43c   : > { %v4587_v59 = vadd.f32 %v7063_v46, %v4549_v35  ;;  %v4622_v26 = vmul.f32 %v7058_v48, %v7614_v54  ;;  %v4586_v51 = vadd.f32 %v7063_v46, %v4548_v61  ;;  %v7623_v35 = vld [vmem:[#allocation24_spill] sm:$0xff] }
 0x43d   : > { %v4489_v40 = vmul.f32 0.25, %v4481_v41 }
 0x43f   : > { %v4504_v7 = vadd.f32 %v7140_v30, %v4489_v40  ;;  %v7615_v40 = vld [vmem:[#allocation6_spill] sm:$0xff] }
 0x440   : > { %v4781_v23 = vld [vmem:[#allocation4 + $0x10] ss:$2 sm:$0xff]  ;;  %v4797_v49 = vld [vmem:[#allocation4 + $0x11] ss:$2 sm:$0xff]  ;;  %v4623_v56 = vmul.f32 %v7058_v48, %v7615_v40 }
 0x441   : > { %vm4512_vm0 = vcmp.ge.f32.partialorder %v4504_v7, 0.0  ;;  %v4520_v52 = vmul.f32 0.2, %v4504_v7  ;;  %v4813_v20 = vadd.f32 %v4797_v49, %v4781_v23  ;;  %v7617_v49 = vld [vmem:[#allocation20_spill] sm:$0xff] }
 0x442   : > { %v4086_v0 = vld [vmem:[#allocation3 + $0xf0] sm:$0xff] }
 0x443   : > { %v4828_v38 = vadd.f32 %v4813_v20, %v4812_v55  ;;  %4361 = vmatmul.mubr.bf16.gmra.mrb[60].mxu1 %v4086_v0  ;;  %v4528_v57 = vsel %vm4512_vm0, %v4504_v7, %v4520_v52  ;;  %v7616_v7 = vld [vmem:[#allocation18_spill] sm:$0xff]  ;;  %v4691_v52 = vmul.f32 %v7072_v9, %v7617_v49  ;;  %v4654_v55 = vadd.f32 %v4622_v26, %v4586_v51 }
 0x444   : > { %v4846_v4 = vmul.f32 %v7145_v45, %v4528_v57  ;;  %v4690_v23 = vmul.f32 %v7072_v9, %v7616_v7  ;;  %v4655_v20 = vadd.f32 %v4623_v56, %v4587_v59 }
 0x445   : > { %v4836_v6 = vmul.f32 0.25, %v4828_v38 }
 0x446   : > { %v4722_v0 = vadd.f32 %v4690_v23, %v4654_v55  ;;  %v4723_v38 = vadd.f32 %v4691_v52, %v4655_v20  ;;  %v4553_v20 = vmul.f32 %v7047_v25, %v5654_v62 }
 0x447   : > { %v4856_v50 = vmul.f32 %v7147_v1, %v4836_v6 }
 0x449   : > { %v4864_v58 = vadd.f32 %v4856_v50, %v4846_v4 }
 0x44b   : > { %4872 = vst.msk [vmem:[%s7154_s24] sm:$0xff] %vm4369_vm10, %v4864_v58  ;;  %v7618_v58 = vld [vmem:[#allocation21_spill] sm:$0xff] }
 0x44c   : > { %v4551_v24 = vmul.f32 %v7047_v25, %v7618_v58 }
 0x44e   : > { %v4589_v17 = vadd.f32 %v7063_v46, %v4551_v24  ;;  %v4591_v24 = vadd.f32 %v7063_v46, %v4553_v20 }
 0x45d   : > { %v4258_v13 = vpop.f32.mrb[8].mxu1 }
 0x45e   : > { %4374 = vst.msk [vmem:[#allocation4 + $0x20] sm:$0xff] %vm4369_vm10, %v4258_v13  ;;  %v4260_v28 = vpop.f32.mrb[9].mxu1 }
 0x45f   : > { %v4261_v19 = vpop.f32.mrb[10].mxu1  ;;  %v4550_v28 = vmul.f32 %v7047_v25, %v7619_v8 }
 0x460   : > { %4375 = vst.msk [vmem:[#allocation4 + $0x28] sm:$0xff] %vm4369_vm10, %v4261_v19  ;;  %v4263_v21 = vpop.f32.mrb[11].mxu1 }
 0x467   : > { %v4406_v31 = vld [vmem:[#allocation4 + $0x20] ss:$2 sm:$0xff]  ;;  %v4438_v34 = vld [vmem:[#allocation4 + $0x21] ss:$2 sm:$0xff] }
 0x468   : > { %4752 = vst.msk [vmem:[#allocation4 + $0x20] sm:$0xff] %vm4369_vm10, %v4720_v47  ;;  %4753 = vst.msk [vmem:[#allocation4 + $0x28] sm:$0xff] %vm4369_vm10, %v4721_v37  ;;  %v4467_v4 = vadd.f32 %v4438_v34, %v4406_v31  ;;  %v7621_v47 = vld [vmem:[#allocation7_spill] sm:$0xff]  ;;  %v4588_v31 = vadd.f32 %v7063_v46, %v4550_v28 }
 0x469   : > { %v4625_v37 = vmul.f32 %v7058_v48, %v7621_v47  ;;  %v7622_v34 = vld [vmem:[#allocation23_spill] sm:$0xff]  ;;  %v7628_v47 = vld [vmem:[#allocation28_spill] sm:$0xff] }
 0x46a   : > { %v4692_v42 = vmul.f32 %v7072_v9, %v7622_v34  ;;  %v4656_v54 = vadd.f32 %v4624_v29, %v4588_v31  ;;  %v7629_v34 = vld [vmem:[#allocation12_spill] sm:$0xff] }
 0x46b   : > { %v4657_v26 = vadd.f32 %v4625_v37, %v4589_v17  ;;  %v4555_v37 = vmul.f32 %v7047_v25, %v7628_v47 }
 0x46c   : > { %v4266_v33 = vpop.f32.mrb[12].mxu1  ;;  %v4724_v56 = vadd.f32 %v4692_v42, %v4656_v54  ;;  %v4554_v42 = vmul.f32 %v7047_v25, %v7629_v34 }
 0x46d   : > { %4376 = vst.msk [vmem:[#allocation4 + $0x30] sm:$0xff] %vm4369_vm10, %v4266_v33  ;;  %v4268_v10 = vpop.f32.mrb[13].mxu1  ;;  %v4693_v33 = vmul.f32 %v7072_v9, %v7623_v35  ;;  %v7630_v35 = vld [vmem:[#allocation53_spill] sm:$0xff] }
 0x46e   : > { %v4269_v32 = vpop.f32.mrb[14].mxu1 }
 0x46f   : > { %4377 = vst.msk [vmem:[#allocation4 + $0x38] sm:$0xff] %vm4369_vm10, %v4269_v32  ;;  %v4271_v41 = vpop.f32.mrb[15].mxu1  ;;  %v4782_v21 = vld [vmem:[#allocation4 + $0x20] ss:$2 sm:$0xff]  ;;  %v4798_v2 = vld [vmem:[#allocation4 + $0x21] ss:$2 sm:$0xff]  ;;  %v4725_v51 = vadd.f32 %v4693_v33, %v4657_v26  ;;  %v4629_v33 = vmul.f32 %v7058_v48, %v7630_v35 }
 0x470   : > { %v4814_v32 = vadd.f32 %v4798_v2, %v4782_v21  ;;  %v7627_v21 = vld [vmem:[#allocation27_spill] sm:$0xff] }
 0x471   : > { %v4695_v2 = vmul.f32 %v7072_v9, %v7627_v21 }
 0x476   : > { %v4408_v57 = vld [vmem:[#allocation4 + $0x30] ss:$2 sm:$0xff]  ;;  %v4440_v6 = vld [vmem:[#allocation4 + $0x31] ss:$2 sm:$0xff] }
 0x477   : > { %v4468_v50 = vadd.f32 %v4440_v6, %v4408_v57  ;;  %4754 = vst.msk [vmem:[#allocation4 + $0x30] sm:$0xff] %vm4369_vm10, %v4722_v0  ;;  %4755 = vst.msk [vmem:[#allocation4 + $0x38] sm:$0xff] %vm4369_vm10, %v4723_v38  ;;  %v7624_v57 = vld [vmem:[#allocation10_spill] sm:$0xff] }
 0x478   : > { %v4552_v6 = vmul.f32 %v7047_v25, %v7624_v57 }
 0x479   : > { %v4482_v13 = vadd.f32 %v4468_v50, %v4467_v4  ;;  %v4627_v4 = vmul.f32 %v7058_v48, %v5902_v14 }
 0x47a   : > { %v4590_v28 = vadd.f32 %v7063_v46, %v4552_v6 }
 0x47b   : > { %v4490_v36 = vmul.f32 0.25, %v4482_v13  ;;  %v7625_v13 = vld [vmem:[#allocation25_spill] sm:$0xff]  ;;  %v4659_v14 = vadd.f32 %v4627_v4, %v4591_v24  ;;  %v7633_v4 = vld [vmem:[#allocation31_spill] sm:$0xff] }
 0x47c   : > { %v4274_v19 = vpop.f32.mrb[16].mxu1  ;;  %v4626_v8 = vmul.f32 %v7058_v48, %v7625_v13 }
 0x47d   : > { %4378 = vst.msk [vmem:[#allocation4 + $0x40] sm:$0xff] %vm4369_vm10, %v4274_v19  ;;  %v4276_v22 = vpop.f32.mrb[17].mxu1  ;;  %v4505_v3 = vadd.f32 %v7140_v30, %v4490_v36  ;;  %v7626_v19 = vld [vmem:[#allocation26_spill] sm:$0xff]  ;;  %v4727_v17 = vadd.f32 %v4695_v2, %v4659_v14 }
 0x47e   : > { %v4277_v16 = vpop.f32.mrb[18].mxu1  ;;  %v4783_v63 = vld [vmem:[#allocation4 + $0x30] ss:$2 sm:$0xff]  ;;  %v4799_v61 = vld [vmem:[#allocation4 + $0x31] ss:$2 sm:$0xff]  ;;  %v4694_v36 = vmul.f32 %v7072_v9, %v7626_v19  ;;  %v4658_v22 = vadd.f32 %v4626_v8, %v4590_v28 }
 0x47f   : > { %4379 = vst.msk [vmem:[#allocation4 + $0x48] sm:$0xff] %vm4369_vm10, %v4277_v16  ;;  %v4279_v12 = vpop.f32.mrb[19].mxu1  ;;  %vm4513_vm3 = vcmp.ge.f32.partialorder %v4505_v3, 0.0  ;;  %v4521_v10 = vmul.f32 0.2, %v4505_v3  ;;  %v4815_v59 = vadd.f32 %v4799_v61, %v4783_v63 }
 0x480   : > { %v4726_v16 = vadd.f32 %v4694_v36, %v4658_v22  ;;  %v7634_v22 = vld [vmem:[#allocation32_spill] sm:$0xff] }
 0x481   : > { %v4829_v41 = vadd.f32 %v4815_v59, %v4814_v32  ;;  %v4529_v40 = vsel %vm4513_vm3, %v4505_v3, %v4521_v10  ;;  %v4593_v32 = vadd.f32 %v7063_v46, %v4555_v37  ;;  %v4557_v21 = vmul.f32 %v7047_v25, %v7634_v22 }
 0x482   : > { %v4847_v52 = vmul.f32 %v7145_v45, %v4529_v40 }
 0x483   : > { %v4837_v7 = vmul.f32 0.25, %v4829_v41  ;;  %v7631_v41 = vld [vmem:[#allocation29_spill] sm:$0xff]  ;;  %v4595_v37 = vadd.f32 %v7063_v46, %v4557_v21 }
 0x484   : > { %v4628_v40 = vmul.f32 %v7058_v48, %v7631_v41 }
 0x485   : > { %v4857_v55 = vmul.f32 %v7147_v1, %v4837_v7  ;;  %v4592_v7 = vadd.f32 %v7063_v46, %v4554_v42 }
 0x486   : > { %v4410_v23 = vld [vmem:[#allocation4 + $0x40] ss:$2 sm:$0xff]  ;;  %v4442_v49 = vld [vmem:[#allocation4 + $0x41] ss:$2 sm:$0xff] }
 0x487   : > { %4756 = vst.msk [vmem:[#allocation4 + $0x40] sm:$0xff] %vm4369_vm10, %v4724_v56  ;;  %4757 = vst.msk [vmem:[#allocation4 + $0x48] sm:$0xff] %vm4369_vm10, %v4725_v51  ;;  %v4865_v0 = vadd.f32 %v4857_v55, %v4847_v52  ;;  %v4469_v3 = vadd.f32 %v4442_v49, %v4410_v23  ;;  %v7632_v23 = vld [vmem:[#allocation30_spill] sm:$0xff]  ;;  %v4661_v52 = vadd.f32 %v4629_v33, %v4593_v32  ;;  %v7639_v32 = vld [vmem:[#allocation35_spill] sm:$0xff] }
 0x488   : > { %v4282_v38 = vpop.f32.mrb[20].mxu1  ;;  %v4696_v49 = vmul.f32 %v7072_v9, %v7632_v23  ;;  %v4660_v6 = vadd.f32 %v4628_v40, %v4592_v7  ;;  %v7638_v33 = vld [vmem:[#allocation34_spill] sm:$0xff]  ;;  %v7640_v7 = vld [vmem:[#allocation36_spill] sm:$0xff] }
 0x489   : > { %4873 = vst.msk [vmem:[%s7154_s24 + $0x8] sm:$0xff] %vm4369_vm10, %v4865_v0  ;;  %4380 = vst.msk [vmem:[#allocation4 + $0x50] sm:$0xff] %vm4369_vm10, %v4282_v38  ;;  %v4284_v50 = vpop.f32.mrb[21].mxu1  ;;  %v4559_v23 = vmul.f32 %v7047_v25, %v7640_v7 }
 0x48a   : > { %v4285_v58 = vpop.f32.mrb[22].mxu1  ;;  %v4697_v50 = vmul.f32 %v7072_v9, %v7633_v4  ;;  %v4728_v13 = vadd.f32 %v4696_v49, %v4660_v6 }
 0x48b   : > { %4381 = vst.msk [vmem:[#allocation4 + $0x58] sm:$0xff] %vm4369_vm10, %v4285_v58  ;;  %v4287_v62 = vpop.f32.mrb[23].mxu1  ;;  %v4597_v4 = vadd.f32 %v7063_v46, %v4559_v23 }
 0x48c   : > { %v4729_v8 = vadd.f32 %v4697_v50, %v4661_v52  ;;  %v7641_v52 = vld [vmem:[#allocation16_spill] sm:$0xff] }
 0x48e   : > { %v4784_v59 = vld [vmem:[#allocation4 + $0x40] ss:$2 sm:$0xff]  ;;  %v4800_v54 = vld [vmem:[#allocation4 + $0x41] ss:$2 sm:$0xff] }
 0x48f   : > { %v4816_v38 = vadd.f32 %v4800_v54, %v4784_v59  ;;  %v4699_v59 = vmul.f32 %v7072_v9, %v7639_v32  ;;  %v7646_v32 = vld [vmem:[#allocation41_spill] sm:$0xff] }
 0x492   : > { %v4412_v53 = vld [vmem:[#allocation4 + $0x50] ss:$2 sm:$0xff]  ;;  %v4444_v29 = vld [vmem:[#allocation4 + $0x51] ss:$2 sm:$0xff] }
 0x493   : > { %v4470_v12 = vadd.f32 %v4444_v29, %v4412_v53  ;;  %4758 = vst.msk [vmem:[#allocation4 + $0x50] sm:$0xff] %vm4369_vm10, %v4726_v16  ;;  %4759 = vst.msk [vmem:[#allocation4 + $0x58] sm:$0xff] %vm4369_vm10, %v4727_v17  ;;  %v7635_v17 = vld [vmem:[#allocation14_spill] sm:$0xff]  ;;  %v7636_v29 = vld [vmem:[#allocation55_spill] sm:$0xff] }
 0x494   : > { %v4556_v53 = vmul.f32 %v7047_v25, %v7635_v17 }
 0x495   : > { %v4483_v31 = vadd.f32 %v4470_v12, %v4469_v3  ;;  %v4290_v63 = vpop.f32.mrb[24].mxu1  ;;  %v4631_v3 = vmul.f32 %v7058_v48, %v7636_v29 }
 0x496   : > { %4382 = vst.msk [vmem:[#allocation4 + $0x60] sm:$0xff] %vm4369_vm10, %v4290_v63  ;;  %v4292_v10 = vpop.f32.mrb[25].mxu1  ;;  %v4594_v35 = vadd.f32 %v7063_v46, %v4556_v53  ;;  %v4698_v63 = vmul.f32 %v7072_v9, %v7638_v33 }
 0x497   : > { %v4491_v61 = vmul.f32 0.25, %v4483_v31  ;;  %v4293_v26 = vpop.f32.mrb[26].mxu1  ;;  %v7637_v31 = vld [vmem:[#allocation33_spill] sm:$0xff] }
 0x498   : > { %4383 = vst.msk [vmem:[#allocation4 + $0x68] sm:$0xff] %vm4369_vm10, %v4293_v26  ;;  %v4295_v51 = vpop.f32.mrb[27].mxu1  ;;  %v4630_v34 = vmul.f32 %v7058_v48, %v7637_v31 }
 0x499   : > { %v4506_v56 = vadd.f32 %v7140_v30, %v4491_v61  ;;  %v4663_v61 = vadd.f32 %v4631_v3, %v4595_v37  ;;  %v7645_v3 = vld [vmem:[#allocation40_spill] sm:$0xff] }
 0x49a   : > { %v4785_v55 = vld [vmem:[#allocation4 + $0x50] ss:$2 sm:$0xff]  ;;  %v4801_v20 = vld [vmem:[#allocation4 + $0x51] ss:$2 sm:$0xff]  ;;  %v4662_v10 = vadd.f32 %v4630_v34, %v4594_v35 }
 0x49b   : > { %vm4514_vm4 = vcmp.ge.f32.partialorder %v4506_v56, 0.0  ;;  %v4522_v0 = vmul.f32 0.2, %v4506_v56  ;;  %v4817_v57 = vadd.f32 %v4801_v20, %v4785_v55  ;;  %v4731_v26 = vadd.f32 %v4699_v59, %v4663_v61  ;;  %v7642_v20 = vld [vmem:[#allocation56_spill] sm:$0xff] }
 0x49c   : > { %v4730_v54 = vadd.f32 %v4698_v63, %v4662_v10  ;;  %v4558_v55 = vmul.f32 %v7047_v25, %v7641_v52  ;;  %v4561_v59 = vmul.f32 %v7047_v25, %v7646_v32 }
 0x49d   : > { %v4830_v58 = vadd.f32 %v4817_v57, %v4816_v38  ;;  %v4530_v24 = vsel %vm4514_vm4, %v4506_v56, %v4522_v0  ;;  %v4633_v0 = vmul.f32 %v7058_v48, %v7642_v20 }
 0x49e   : > { %v4848_v36 = vmul.f32 %v7145_v45, %v4530_v24  ;;  %v4599_v23 = vadd.f32 %v7063_v46, %v4561_v59 }
 0x49f   : > { %v4838_v62 = vmul.f32 0.25, %v4830_v58  ;;  %v4414_v28 = vld [vmem:[#allocation4 + $0x60] ss:$2 sm:$0xff]  ;;  %v4446_v19 = vld [vmem:[#allocation4 + $0x61] ss:$2 sm:$0xff]  ;;  %v4665_v22 = vadd.f32 %v4633_v0, %v4597_v4  ;;  %v7651_v4 = vld [vmem:[#allocation44_spill] sm:$0xff] }
 0x4a0   : > { %4760 = vst.msk [vmem:[#allocation4 + $0x60] sm:$0xff] %vm4369_vm10, %v4728_v13  ;;  %4761 = vst.msk [vmem:[#allocation4 + $0x68] sm:$0xff] %vm4369_vm10, %v4729_v8  ;;  %v4471_v56 = vadd.f32 %v4446_v19, %v4414_v28  ;;  %v7643_v13 = vld [vmem:[#allocation37_spill] sm:$0xff]  ;;  %v4596_v19 = vadd.f32 %v7063_v46, %v4558_v55  ;;  %v7650_v0 = vld [vmem:[#allocation43_spill] sm:$0xff] }
 0x4a1   : > { %v4858_v14 = vmul.f32 %v7147_v1, %v4838_v62  ;;  %v4632_v8 = vmul.f32 %v7058_v48, %v7643_v13 }
 0x4a3   : > { %v4866_v2 = vadd.f32 %v4858_v14, %v4848_v36  ;;  %v7644_v36 = vld [vmem:[#allocation39_spill] sm:$0xff]  ;;  %v4664_v29 = vadd.f32 %v4632_v8, %v4596_v19  ;;  %v7652_v19 = vld [vmem:[#allocation46_spill] sm:$0xff] }
 0x4a4   : > { %v4298_v16 = vpop.f32.mrb[28].mxu1  ;;  %v4700_v14 = vmul.f32 %v7072_v9, %v7644_v36  ;;  %v4563_v36 = vmul.f32 %v7047_v25, %v7652_v19 }
 0x4a5   : > { %4874 = vst.msk [vmem:[%s7154_s24 + $0x10] sm:$0xff] %vm4369_vm10, %v4866_v2  ;;  %4384 = vst.msk [vmem:[#allocation4 + $0x70] sm:$0xff] %vm4369_vm10, %v4298_v16  ;;  %v4300_v12 = vpop.f32.mrb[29].mxu1 }
 0x4a6   : > { %v4301_v47 = vpop.f32.mrb[30].mxu1  ;;  %v4701_v12 = vmul.f32 %v7072_v9, %v7645_v3  ;;  %v4732_v31 = vadd.f32 %v4700_v14, %v4664_v29 }
 0x4a7   : > { %4385 = vst.msk [vmem:[#allocation4 + $0x78] sm:$0xff] %vm4369_vm10, %v4301_v47  ;;  %v4303_v42 = vpop.f32.mrb[31].mxu1  ;;  %v4786_v50 = vld [vmem:[#allocation4 + $0x60] ss:$2 sm:$0xff]  ;;  %v4802_v58 = vld [vmem:[#allocation4 + $0x61] ss:$2 sm:$0xff] }
 0x4a8   : > { %v4818_v17 = vadd.f32 %v4802_v58, %v4786_v50  ;;  %v4733_v34 = vadd.f32 %v4701_v12, %v4665_v22  ;;  %v4703_v50 = vmul.f32 %v7072_v9, %v7651_v4  ;;  %v4601_v12 = vadd.f32 %v7063_v46, %v4563_v36 }
 0x4ae   : > { %v4416_v41 = vld [vmem:[#allocation4 + $0x70] ss:$2 sm:$0xff]  ;;  %v4448_v40 = vld [vmem:[#allocation4 + $0x71] ss:$2 sm:$0xff] }
 0x4af   : > { %v4472_v51 = vadd.f32 %v4448_v40, %v4416_v41  ;;  %4762 = vst.msk [vmem:[#allocation4 + $0x70] sm:$0xff] %vm4369_vm10, %v4730_v54  ;;  %4763 = vst.msk [vmem:[#allocation4 + $0x78] sm:$0xff] %vm4369_vm10, %v4731_v26  ;;  %v7647_v26 = vld [vmem:[#allocation17_spill] sm:$0xff] }
 0x4b0   : > { %v4560_v41 = vmul.f32 %v7047_v25, %v7647_v26  ;;  %v7648_v40 = vld [vmem:[#allocation57_spill] sm:$0xff] }
 0x4b1   : > { %v4484_v49 = vadd.f32 %v4472_v51, %v4471_v56  ;;  %v4635_v56 = vmul.f32 %v7058_v48, %v7648_v40 }
 0x4b2   : > { %v4598_v20 = vadd.f32 %v7063_v46, %v4560_v41 }
 0x4b3   : > { %v4306_v38 = vpop.f32.mrb[32].mxu1  ;;  %v4492_v57 = vmul.f32 0.25, %v4484_v49  ;;  %v7649_v49 = vld [vmem:[#allocation42_spill] sm:$0xff] }
 0x4b4   : > { %4386 = vst.msk [vmem:[#allocation4 + $0x80] sm:$0xff] %vm4369_vm10, %v4306_v38  ;;  %v4308_v6 = vpop.f32.mrb[33].mxu1  ;;  %v4634_v52 = vmul.f32 %v7058_v48, %v7649_v49  ;;  %v4702_v38 = vmul.f32 %v7072_v9, %v7650_v0 }
 0x4b5   : > { %v4309_v24 = vpop.f32.mrb[34].mxu1  ;;  %v4507_v62 = vadd.f32 %v7140_v30, %v4492_v57  ;;  %v4667_v57 = vadd.f32 %v4635_v56, %v4599_v23  ;;  %v7657_v56 = vld [vmem:[#allocation50_spill] sm:$0xff] }
 0x4b6   : > { %4387 = vst.msk [vmem:[#allocation4 + $0x88] sm:$0xff] %vm4369_vm10, %v4309_v24  ;;  %v4311_v28 = vpop.f32.mrb[35].mxu1  ;;  %v4787_v21 = vld [vmem:[#allocation4 + $0x70] ss:$2 sm:$0xff]  ;;  %v4803_v2 = vld [vmem:[#allocation4 + $0x71] ss:$2 sm:$0xff]  ;;  %v4666_v6 = vadd.f32 %v4634_v52, %v4598_v20 }
 0x4b7   : > { %vm4515_vm5 = vcmp.ge.f32.partialorder %v4507_v62, 0.0  ;;  %v4523_v16 = vmul.f32 0.2, %v4507_v62  ;;  %v4819_v53 = vadd.f32 %v4803_v2, %v4787_v21  ;;  %v4735_v24 = vadd.f32 %v4703_v50, %v4667_v57  ;;  %v7653_v21 = vld [vmem:[#allocation19_spill] sm:$0xff] }
 0x4b8   : > { %v4734_v58 = vadd.f32 %v4702_v38, %v4666_v6  ;;  %v4562_v2 = vmul.f32 %v7047_v25, %v7653_v21  ;;  %v7658_v6 = vld [vmem:[#allocation51_spill] sm:$0xff] }
 0x4b9   : > { %v4831_v47 = vadd.f32 %v4819_v53, %v4818_v17  ;;  %v4531_v37 = vsel %vm4515_vm5, %v4507_v62, %v4523_v16  ;;  %v7654_v16 = vld [vmem:[#allocation59_spill] sm:$0xff]  ;;  %v4565_v4 = vmul.f32 %v7047_v25, %v7658_v6 }
 0x4ba   : > { %v4849_v63 = vmul.f32 %v7145_v45, %v4531_v37  ;;  %v4637_v17 = vmul.f32 %v7058_v48, %v7654_v16  ;;  %v7669_v6 = vld [vmem:[#allocation67_spill] sm:$0xff] }
 0x4bb   : > { %v4839_v42 = vmul.f32 0.25, %v4831_v47  ;;  %v7655_v47 = vld [vmem:[#allocation47_spill] sm:$0xff]  ;;  %v4603_v36 = vadd.f32 %v7063_v46, %v4565_v4  ;;  %v4708_v4 = vmul.f32 %v7072_v9, %v7669_v6 }
 0x4bc   : > { %v4636_v37 = vmul.f32 %v7058_v48, %v7655_v47 }
 0x4bd   : > { %v4418_v35 = vld [vmem:[#allocation4 + $0x80] ss:$2 sm:$0xff]  ;;  %v4450_v33 = vld [vmem:[#allocation4 + $0x81] ss:$2 sm:$0xff]  ;;  %v4859_v61 = vmul.f32 %v7147_v1, %v4839_v42 }
 0x4be   : > { %4764 = vst.msk [vmem:[#allocation4 + $0x80] sm:$0xff] %vm4369_vm10, %v4732_v31  ;;  %4765 = vst.msk [vmem:[#allocation4 + $0x88] sm:$0xff] %vm4369_vm10, %v4733_v34  ;;  %v4473_v62 = vadd.f32 %v4450_v33, %v4418_v35  ;;  %v4600_v33 = vadd.f32 %v7063_v46, %v4562_v2 }
 0x4bf   : > { %v4867_v10 = vadd.f32 %v4859_v61, %v4849_v63  ;;  %v7656_v63 = vld [vmem:[#allocation49_spill] sm:$0xff] }
 0x4c0   : > { %v4704_v61 = vmul.f32 %v7072_v9, %v7656_v63  ;;  %v4668_v40 = vadd.f32 %v4636_v37, %v4600_v33  ;;  %v7664_v33 = vld [vmem:[#allocation58_spill] sm:$0xff] }
 0x4c1   : > { %4875 = vst.msk [vmem:[%s7154_s24 + $0x18] sm:$0xff] %vm4369_vm10, %v4867_v10  ;;  %v4669_v10 = vadd.f32 %v4637_v17, %v4601_v12  ;;  %v7662_v17 = vld [vmem:[#allocation65_spill] sm:$0xff]  ;;  %v4567_v63 = vmul.f32 %v7047_v25, %v7664_v33 }
 0x4c2   : > { %v4314_v54 = vpop.f32.mrb[36].mxu1  ;;  %v4736_v23 = vadd.f32 %v4704_v61, %v4668_v40 }
 0x4c3   : > { %4388 = vst.msk [vmem:[#allocation4 + $0x90] sm:$0xff] %vm4369_vm10, %v4314_v54  ;;  %v4316_v51 = vpop.f32.mrb[37].mxu1 }
 0x4c4   : > { %v4317_v7 = vpop.f32.mrb[38].mxu1  ;;  %v4705_v51 = vmul.f32 %v7072_v9, %v7657_v56 }
 0x4c5   : > { %4389 = vst.msk [vmem:[#allocation4 + $0x98] sm:$0xff] %vm4369_vm10, %v4317_v7  ;;  %v4319_v55 = vpop.f32.mrb[39].mxu1  ;;  %v4788_v31 = vld [vmem:[#allocation4 + $0x80] ss:$2 sm:$0xff]  ;;  %v4804_v34 = vld [vmem:[#allocation4 + $0x81] ss:$2 sm:$0xff] }
 0x4c6   : > { %v4820_v26 = vadd.f32 %v4804_v34, %v4788_v31  ;;  %v4737_v49 = vadd.f32 %v4705_v51, %v4669_v10  ;;  %v7665_v10 = vld [vmem:[#allocation45_spill] sm:$0xff]  ;;  %v4605_v51 = vadd.f32 %v7063_v46, %v4567_v63 }
 0x4cc   : > { %v4420_v13 = vld [vmem:[#allocation4 + $0x90] ss:$2 sm:$0xff]  ;;  %v4452_v8 = vld [vmem:[#allocation4 + $0x91] ss:$2 sm:$0xff] }
 0x4cd   : > { %v4474_v28 = vadd.f32 %v4452_v8, %v4420_v13  ;;  %4766 = vst.msk [vmem:[#allocation4 + $0x90] sm:$0xff] %vm4369_vm10, %v4734_v58  ;;  %4767 = vst.msk [vmem:[#allocation4 + $0x98] sm:$0xff] %vm4369_vm10, %v4735_v24  ;;  %v7659_v24 = vld [vmem:[#allocation38_spill] sm:$0xff]  ;;  %v7660_v8 = vld [vmem:[#allocation60_spill] sm:$0xff] }
 0x4ce   : > { %v4564_v13 = vmul.f32 %v7047_v25, %v7659_v24 }
 0x4cf   : > { %v4485_v14 = vadd.f32 %v4474_v28, %v4473_v62  ;;  %v4322_v22 = vpop.f32.mrb[40].mxu1  ;;  %v4639_v62 = vmul.f32 %v7058_v48, %v7660_v8 }
 0x4d0   : > { %4390 = vst.msk [vmem:[#allocation4 + $0xa0] sm:$0xff] %vm4369_vm10, %v4322_v22  ;;  %v4324_v53 = vpop.f32.mrb[41].mxu1  ;;  %v4602_v2 = vadd.f32 %v7063_v46, %v4564_v13 }
 0x4d1   : > { %v4493_v29 = vmul.f32 0.25, %v4485_v14  ;;  %v4325_v3 = vpop.f32.mrb[42].mxu1  ;;  %v7661_v14 = vld [vmem:[#allocation52_spill] sm:$0xff]  ;;  %v4671_v16 = vadd.f32 %v4639_v62, %v4603_v36  ;;  %v4706_v53 = vmul.f32 %v7072_v9, %v7662_v17 }
 0x4d2   : > { %4391 = vst.msk [vmem:[#allocation4 + $0xa8] sm:$0xff] %vm4369_vm10, %v4325_v3  ;;  %v4327_v42 = vpop.f32.mrb[43].mxu1  ;;  %v4638_v22 = vmul.f32 %v7058_v48, %v7661_v14  ;;  %v7663_v3 = vld [vmem:[#allocation54_spill] sm:$0xff] }
 0x4d3   : > { %v4508_v35 = vadd.f32 %v7140_v30, %v4493_v29  ;;  %v4707_v12 = vmul.f32 %v7072_v9, %v7663_v3  ;;  %v7670_v3 = vld [vmem:[#allocation48_spill] sm:$0xff] }
 0x4d4   : > { %v4789_v32 = vld [vmem:[#allocation4 + $0x90] ss:$2 sm:$0xff]  ;;  %v4805_v59 = vld [vmem:[#allocation4 + $0x91] ss:$2 sm:$0xff]  ;;  %v4670_v29 = vadd.f32 %v4638_v22, %v4602_v2 }
 0x4d5   : > { %vm4516_vm6 = vcmp.ge.f32.partialorder %v4508_v35, 0.0  ;;  %v4524_v54 = vmul.f32 0.2, %v4508_v35  ;;  %v4821_v41 = vadd.f32 %v4805_v59, %v4789_v32  ;;  %v4739_v47 = vadd.f32 %v4707_v12, %v4671_v16 }
 0x4d6   : > { %v4738_v37 = vadd.f32 %v4706_v53, %v4670_v29  ;;  %v4566_v32 = vmul.f32 %v7047_v25, %v7665_v10  ;;  %v4568_v12 = vmul.f32 %v7047_v25, %v7670_v3  ;;  %v4572_v3 = vmul.f32 %v7047_v25, %v5894_v18 }
 0x4d7   : > { %v4832_v7 = vadd.f32 %v4821_v41, %v4820_v26  ;;  %v4532_v52 = vsel %vm4516_vm6, %v4508_v35, %v4524_v54 }
 0x4d8   : > { %v4850_v38 = vmul.f32 %v7145_v45, %v4532_v52  ;;  %v4606_v63 = vadd.f32 %v7063_v46, %v4568_v12  ;;  %v7674_v12 = vld [vmem:[#allocation71_spill] sm:$0xff] }
 0x4d9   : > { %v4840_v55 = vmul.f32 0.25, %v4832_v7  ;;  %v4422_v20 = vld [vmem:[#allocation4 + $0xa0] ss:$2 sm:$0xff]  ;;  %v4454_v0 = vld [vmem:[#allocation4 + $0xa1] ss:$2 sm:$0xff]  ;;  %v7666_v7 = vld [vmem:[#allocation61_spill] sm:$0xff] }
 0x4da   : > { %4768 = vst.msk [vmem:[#allocation4 + $0xa0] sm:$0xff] %vm4369_vm10, %v4736_v23  ;;  %4769 = vst.msk [vmem:[#allocation4 + $0xa8] sm:$0xff] %vm4369_vm10, %v4737_v49  ;;  %v4475_v42 = vadd.f32 %v4454_v0, %v4422_v20  ;;  %v4640_v23 = vmul.f32 %v7058_v48, %v7666_v7  ;;  %v7667_v49 = vld [vmem:[#allocation62_spill] sm:$0xff]  ;;  %v4604_v0 = vadd.f32 %v7063_v46, %v4566_v32 }
 0x4db   : > { %v4860_v57 = vmul.f32 %v7147_v1, %v4840_v55  ;;  %v4641_v52 = vmul.f32 %v7058_v48, %v7667_v49  ;;  %v4643_v32 = vmul.f32 %v7058_v48, %v6035_v11  ;;  %v4570_v11 = vmul.f32 %v7047_v25, %v5877_v39 }
 0x4dc   : > { %v4672_v62 = vadd.f32 %v4640_v23, %v4604_v0 }
 0x4dd   : > { %v4868_v50 = vadd.f32 %v4860_v57, %v4850_v38  ;;  %v7668_v38 = vld [vmem:[#allocation63_spill] sm:$0xff] }
 0x4de   : > { %v4330_v58 = vpop.f32.mrb[44].mxu1  ;;  %v4709_v57 = vmul.f32 %v7072_v9, %v7668_v38  ;;  %v4740_v22 = vadd.f32 %v4708_v4, %v4672_v62  ;;  %v4608_v4 = vadd.f32 %v7063_v46, %v4570_v11  ;;  %v4713_v62 = vmul.f32 %v7072_v9, %v6257_v43 }
 0x4df   : > { %4876 = vst.msk [vmem:[%s7154_s24 + $0x20] sm:$0xff] %vm4369_vm10, %v4868_v50  ;;  %4392 = vst.msk [vmem:[#allocation4 + $0xb0] sm:$0xff] %vm4369_vm10, %v4330_v58  ;;  %v4332_v28 = vpop.f32.mrb[45].mxu1 }
 0x4e0   : > { %v4333_v19 = vpop.f32.mrb[46].mxu1  ;;  %v4673_v28 = vadd.f32 %v4641_v52, %v4605_v51 }
 0x4e1   : > { %4393 = vst.msk [vmem:[#allocation4 + $0xb8] sm:$0xff] %vm4369_vm10, %v4333_v19  ;;  %v4335_v21 = vpop.f32.mrb[47].mxu1  ;;  %v4790_v41 = vld [vmem:[#allocation4 + $0xa0] ss:$2 sm:$0xff]  ;;  %v4806_v40 = vld [vmem:[#allocation4 + $0xa1] ss:$2 sm:$0xff] }
 0x4e2   : > { %v4822_v13 = vadd.f32 %v4806_v40, %v4790_v41  ;;  %v4741_v14 = vadd.f32 %v4709_v57, %v4673_v28  ;;  %v4711_v41 = vmul.f32 %v7072_v9, %v6190_v44  ;;  %v4644_v44 = vmul.f32 %v7058_v48, %v6233_v5 }
 0x4e3   : > { %v4712_v5 = vmul.f32 %v7072_v9, %v6138_v27 }
 0x4e8   : > { %v4424_v31 = vld [vmem:[#allocation4 + $0xb0] ss:$2 sm:$0xff]  ;;  %v4456_v34 = vld [vmem:[#allocation4 + $0xb1] ss:$2 sm:$0xff] }
 0x4e9   : > { %v4476_v35 = vadd.f32 %v4456_v34, %v4424_v31  ;;  %4770 = vst.msk [vmem:[#allocation4 + $0xb0] sm:$0xff] %vm4369_vm10, %v4738_v37  ;;  %4771 = vst.msk [vmem:[#allocation4 + $0xb8] sm:$0xff] %vm4369_vm10, %v4739_v47  ;;  %v7671_v47 = vld [vmem:[#allocation66_spill] sm:$0xff]  ;;  %v7672_v34 = vld [vmem:[#allocation69_spill] sm:$0xff] }
 0x4ea   : > { %v4569_v37 = vmul.f32 %v7047_v25, %v7671_v47  ;;  %v4573_v47 = vmul.f32 %v7047_v25, %v7674_v12 }
 0x4eb   : > { %v4486_v61 = vadd.f32 %v4476_v35, %v4475_v42  ;;  %v4338_v59 = vpop.f32.mrb[48].mxu1  ;;  %v4642_v42 = vmul.f32 %v7058_v48, %v7672_v34  ;;  %v7675_v34 = vld [vmem:[#allocation72_spill] sm:$0xff] }
 0x4ec   : > { %4394 = vst.msk [vmem:[#allocation4 + $0xc0] sm:$0xff] %vm4369_vm10, %v4338_v59  ;;  %v4340_v26 = vpop.f32.mrb[49].mxu1  ;;  %v7673_v59 = vld [vmem:[#allocation68_spill] sm:$0xff] }
 0x4ed   : > { %v4494_v54 = vmul.f32 0.25, %v4486_v61  ;;  %v4341_v56 = vpop.f32.mrb[50].mxu1  ;;  %v4607_v61 = vadd.f32 %v7063_v46, %v4569_v37  ;;  %v4674_v26 = vadd.f32 %v4642_v42, %v4606_v63  ;;  %v4646_v42 = vmul.f32 %v7058_v48, %v7675_v34  ;;  %v5100_v63 = vld [vmem:[%s7458_s9] ss:$0 sm:$0xff] }
 0x4ee   : > { %4395 = vst.msk [vmem:[#allocation4 + $0xc8] sm:$0xff] %vm4369_vm10, %v4341_v56  ;;  %v4343_v20 = vpop.f32.mrb[51].mxu1  ;;  %v4611_v18 = vadd.f32 %v5100_v63, %v4573_v47 }
 0x4ef   : > { %v4509_v55 = vadd.f32 %v7140_v30, %v4494_v54  ;;  %v4710_v54 = vmul.f32 %v7072_v9, %v7673_v59  ;;  %v4675_v40 = vadd.f32 %v4643_v32, %v4607_v61  ;;  %v4610_v61 = vadd.f32 %v5100_v63, %v4572_v3 }
 0x4f0   : > { %v4791_v50 = vld [vmem:[#allocation4 + $0xb0] ss:$2 sm:$0xff]  ;;  %v4807_v58 = vld [vmem:[#allocation4 + $0xb1] ss:$2 sm:$0xff] }
 0x4f1   : > { %vm4517_vm7 = vcmp.ge.f32.partialorder %v4509_v55, 0.0  ;;  %v4525_v24 = vmul.f32 0.2, %v4509_v55  ;;  %v4823_v8 = vadd.f32 %v4807_v58, %v4791_v50  ;;  %v4742_v56 = vadd.f32 %v4710_v54, %v4674_v26  ;;  %v7677_v54 = vld [vmem:[#allocation73_spill] sm:$0xff] }
 0x4f2   : > { %v4743_v51 = vadd.f32 %v4711_v41, %v4675_v40  ;;  %v4678_v59 = vadd.f32 %v4646_v42, %v4610_v61  ;;  %v4715_v26 = vmul.f32 %v7072_v9, %v7677_v54  ;;  %v7678_v41 = vld [vmem:[#allocation70_spill] sm:$0xff] }
 0x4f3   : > { %v4833_v19 = vadd.f32 %v4823_v8, %v4822_v13  ;;  %v4533_v36 = vsel %vm4517_vm7, %v4509_v55, %v4525_v24  ;;  %v4571_v55 = vmul.f32 %v7047_v25, %v6211_v15  ;;  %v4645_v13 = vmul.f32 %v7058_v48, %v6056_v60 }
 0x4f4   : > { %v4851_v17 = vmul.f32 %v7145_v45, %v4533_v36  ;;  %v4676_v8 = vadd.f32 %v4644_v44, %v4608_v4  ;;  %v4714_v40 = vmul.f32 %v7072_v9, %v7678_v41 }
 0x4f5   : > { %v4841_v21 = vmul.f32 0.25, %v4833_v19  ;;  %v4426_v2 = vld [vmem:[#allocation4 + $0xc0] ss:$2 sm:$0xff]  ;;  %v4458_v16 = vld [vmem:[#allocation4 + $0xc1] ss:$2 sm:$0xff]  ;;  %v4609_v50 = vadd.f32 %v7063_v46, %v4571_v55 }
 0x4f6   : > { %4772 = vst.msk [vmem:[#allocation4 + $0xc0] sm:$0xff] %vm4369_vm10, %v4740_v22  ;;  %4773 = vst.msk [vmem:[#allocation4 + $0xc8] sm:$0xff] %vm4369_vm10, %v4741_v14  ;;  %v4477_v49 = vadd.f32 %v4458_v16, %v4426_v2  ;;  %v4744_v2 = vadd.f32 %v4712_v5, %v4676_v8 }
 0x4f7   : > { %v4861_v53 = vmul.f32 %v7147_v1, %v4841_v21  ;;  %v4677_v22 = vadd.f32 %v4645_v13, %v4609_v50 }
 0x4f9   : > { %v4869_v29 = vadd.f32 %v4861_v53, %v4851_v17  ;;  %v4745_v16 = vadd.f32 %v4713_v62, %v4677_v22 }
 0x4fa   : > { %v4346_v31 = vpop.f32.mrb[52].mxu1 }
 0x4fb   : > { %4877 = vst.msk [vmem:[%s7154_s24 + $0x28] sm:$0xff] %vm4369_vm10, %v4869_v29  ;;  %4396 = vst.msk [vmem:[#allocation4 + $0xd0] sm:$0xff] %vm4369_vm10, %v4346_v31  ;;  %v4348_v35 = vpop.f32.mrb[53].mxu1 }
 0x4fc   : > { %v4349_v33 = vpop.f32.mrb[54].mxu1 }
 0x4fd   : > { %4397 = vst.msk [vmem:[#allocation4 + $0xd8] sm:$0xff] %vm4369_vm10, %v4349_v33  ;;  %v4351_v10 = vpop.f32.mrb[55].mxu1  ;;  %v4792_v58 = vld [vmem:[#allocation4 + $0xc0] ss:$2 sm:$0xff]  ;;  %v4808_v24 = vld [vmem:[#allocation4 + $0xc1] ss:$2 sm:$0xff] }
 0x4fe   : > { %v4824_v36 = vadd.f32 %v4808_v24, %v4792_v58  ;;  %v7676_v10 = vld [vmem:[#allocation64_spill] sm:$0xff] }
 0x4ff   : > { %v4647_v32 = vmul.f32 %v7058_v48, %v7676_v10 }
 0x504   : > { %v4428_v7 = vld [vmem:[#allocation4 + $0xd0] ss:$2 sm:$0xff]  ;;  %v4460_v23 = vld [vmem:[#allocation4 + $0xd1] ss:$2 sm:$0xff] }
 0x505   : > { %v4478_v52 = vadd.f32 %v4460_v23, %v4428_v7  ;;  %4774 = vst.msk [vmem:[#allocation4 + $0xd0] sm:$0xff] %vm4369_vm10, %v4742_v56  ;;  %4775 = vst.msk [vmem:[#allocation4 + $0xd8] sm:$0xff] %vm4369_vm10, %v4743_v51  ;;  %v4679_v56 = vadd.f32 %v4647_v32, %v4611_v18  ;;  %v4746_v51 = vadd.f32 %v4714_v40, %v4678_v59 }
 0x507   : > { %v4487_v20 = vadd.f32 %v4478_v52, %v4477_v49  ;;  %v4354_v0 = vpop.f32.mrb[56].mxu1  ;;  %v4747_v7 = vadd.f32 %v4715_v26, %v4679_v56 }
 0x508   : > { %4398 = vst.msk [vmem:[#allocation4 + $0xe0] sm:$0xff] %vm4369_vm10, %v4354_v0  ;;  %v4356_v38 = vpop.f32.mrb[57].mxu1 }
 0x509   : > { %v4495_v57 = vmul.f32 0.25, %v4487_v20  ;;  %v4357_v6 = vpop.f32.mrb[58].mxu1 }
 0x50a   : > { %4399 = vst.msk [vmem:[#allocation4 + $0xe8] sm:$0xff] %vm4369_vm10, %v4357_v6  ;;  %v4359_v39 = vpop.f32.mrb[59].mxu1 }
 0x50b   : > { %v4510_v15 = vadd.f32 %v7140_v30, %v4495_v57 }
 0x50c   : > { %v4793_v28 = vld [vmem:[#allocation4 + $0xd0] ss:$2 sm:$0xff]  ;;  %v4809_v19 = vld [vmem:[#allocation4 + $0xd1] ss:$2 sm:$0xff] }
 0x50d   : > { %vm4518_vm8 = vcmp.ge.f32.partialorder %v4510_v15, 0.0  ;;  %v4526_v46 = vmul.f32 0.2, %v4510_v15  ;;  %v4825_v14 = vadd.f32 %v4809_v19, %v4793_v28 }
 0x50f   : > { %v4834_v21 = vadd.f32 %v4825_v14, %v4824_v36  ;;  %v4534_v17 = vsel %vm4518_vm8, %v4510_v15, %v4526_v46 }
 0x510   : > { %v4852_v27 = vmul.f32 %v7145_v45, %v4534_v17 }
 0x511   : > { %v4842_v60 = vmul.f32 0.25, %v4834_v21  ;;  %v4430_v53 = vld [vmem:[#allocation4 + $0xe0] ss:$2 sm:$0xff]  ;;  %v4462_v29 = vld [vmem:[#allocation4 + $0xe1] ss:$2 sm:$0xff] }
 0x512   : > { %4776 = vst.msk [vmem:[#allocation4 + $0xe0] sm:$0xff] %vm4369_vm10, %v4744_v2  ;;  %4777 = vst.msk [vmem:[#allocation4 + $0xe8] sm:$0xff] %vm4369_vm10, %v4745_v16  ;;  %v4479_v52 = vadd.f32 %v4462_v29, %v4430_v53 }
 0x513   : > { %v4862_v43 = vmul.f32 %v7147_v1, %v4842_v60 }
 0x515   : > { %v4870_v37 = vadd.f32 %v4862_v43, %v4852_v27 }
 0x516   : > { %v4362_v31 = vpop.f32.mrb[60].mxu1 }
 0x517   : > { %4878 = vst.msk [vmem:[%s7154_s24 + $0x30] sm:$0xff] %vm4369_vm10, %v4870_v37  ;;  %4400 = vst.msk [vmem:[#allocation4 + $0xf0] sm:$0xff] %vm4369_vm10, %v4362_v31  ;;  %v4364_v35 = vpop.f32.mrb[61].mxu1 }
 0x518   : > { %v4365_v33 = vpop.f32.mrb[62].mxu1 }
 0x519   : > { %4401 = vst.msk [vmem:[#allocation4 + $0xf8] sm:$0xff] %vm4369_vm10, %v4365_v33  ;;  %v4367_v25 = vpop.f32.mrb[63].mxu1  ;;  %v4794_v20 = vld [vmem:[#allocation4 + $0xe0] ss:$2 sm:$0xff]  ;;  %v4810_v0 = vld [vmem:[#allocation4 + $0xe1] ss:$2 sm:$0xff] }
 0x51a   : > { %v4826_v6 = vadd.f32 %v4810_v0, %v4794_v20 }
 0x520   : > { %v4432_v23 = vld [vmem:[#allocation4 + $0xf0] ss:$2 sm:$0xff]  ;;  %v4464_v49 = vld [vmem:[#allocation4 + $0xf1] ss:$2 sm:$0xff] }
 0x521   : > { %v4480_v11 = vadd.f32 %v4464_v49, %v4432_v23  ;;  %4778 = vst.msk [vmem:[#allocation4 + $0xf0] sm:$0xff] %vm4369_vm10, %v4746_v51  ;;  %4779 = vst.msk [vmem:[#allocation4 + $0xf8] sm:$0xff] %vm4369_vm10, %v4747_v7 }
 0x523   : > { %v4488_v55 = vadd.f32 %v4480_v11, %v4479_v52 }
 0x525   : > { %v4496_v48 = vmul.f32 0.25, %v4488_v55 }
 0x527   : > { %v4511_v44 = vadd.f32 %v7140_v30, %v4496_v48 }
 0x528   : > { %v4795_v38 = vld [vmem:[#allocation4 + $0xf0] ss:$2 sm:$0xff]  ;;  %v4811_v9 = vld [vmem:[#allocation4 + $0xf1] ss:$2 sm:$0xff] }
 0x529   : > { %vm4519_vm9 = vcmp.ge.f32.partialorder %v4511_v44, 0.0  ;;  %v4527_v57 = vmul.f32 0.2, %v4511_v44  ;;  %v4827_v4 = vadd.f32 %v4811_v9, %v4795_v38 }
 0x52b   : > { %v4835_v50 = vadd.f32 %v4827_v4, %v4826_v6  ;;  %v4535_v58 = vsel %vm4519_vm9, %v4511_v44, %v4527_v57 }
 0x52c   : > { %v4853_v39 = vmul.f32 %v7145_v45, %v4535_v58 }
 0x52d   : > { %v4843_v24 = vmul.f32 0.25, %v4835_v50 }
 0x52f   : > { %v4863_v15 = vmul.f32 %v7147_v1, %v4843_v24 }
 0x531   : > { %v4871_v13 = vadd.f32 %v4863_v15, %v4853_v39 }
 0x533   : > { %4879 = vst.msk [vmem:[%s7154_s24 + $0x38] sm:$0xff] %vm4369_vm10, %v4871_v13 }
 0x534 PF: > { %s21_s15 = sadd.s32 1, %s5107_s15  }
 0x535   : > { %p18_p5 = scmp.ge.s32.totalorder %s21_s15, 6  }
 0x537   :  { %20 = sbr.rel (!%p18_p5) target bundleno = 2 (0x2), region = 124 }

// kernel: discriminator_forward.5
= control target key start
LH: loop header
LB: loop body
LE: loop exit
PB: predicated region body
PF: predicated region fallthrough
CT: control target
= control target key end

     0   :  { %vm135_vm0 = vcmask 253952   ;;  %vm192_vm1 = vcmask 257024   ;;  %vm124_vm2 = vcmask 259072   ;;  %v3293_v2 = vmov 0.0   ;;  %s3294_s28 = smov 32   ;;  %s3295_s29 = smov 64   ;;  %s4048_s0 = inlined_call_operand.vmem [shape: f32[64,32], index: 0, kind: input, shape index: {}]   ;;  %s4049_s1 = inlined_call_operand.vmem [shape: bf16[288,32], index: 1, kind: input, shape index: {}]   ;;  %s4050_s3 = inlined_call_operand.vmem [shape: f32[16,32], index: 3, kind: input, shape index: {}]   ;;  %s4051_s2 = inlined_call_operand.vmem [shape: f32[1,32], index: 2, kind: input, shape index: {}]   ;;  %s4052_s4 = inlined_call_operand.vmem [shape: bf16[512,32], index: 4, kind: input, shape index: {}]   ;;  %s4053_s7 = inlined_call_operand.<no memory space> [shape: f32[1,1], index: 7, kind: input, shape index: {}]   ;;  %s4054_s5 = inlined_call_operand.vmem [shape: f32[1,32], index: 5, kind: input, shape index: {}]   ;;  %s4055_s6 = inlined_call_operand.vmem [shape: f32[1,32], index: 6, kind: input, shape index: {}]   ;;  %s4056_s8 = inlined_call_operand.vmem [shape: f32[4,1], index: 8, kind: output, shape index: {}]  }
   0x1   :  { %v3346_v0 = vld [vmem:[%s4048_s0] sm:$0xff]  ;;  %v3351_v1 = vld [vmem:[%s4048_s0 + $0x8] sm:$0xff]  ;;  %152 = vst.msk [vmem:[#allocation2 + $0xd] sm:$0x1] %vm135_vm0, %v3293_v2  ;;  %153 = vst.msk [vmem:[#allocation2 + $0x15] sm:$0x1] %vm135_vm0, %v3293_v2 }
   0x2   :  { %154 = vst.msk [vmem:[#allocation2 + $0x1d] sm:$0x1] %vm135_vm0, %v3293_v2  ;;  %155 = vst.msk [vmem:[#allocation2 + $0x25] sm:$0x1] %vm135_vm0, %v3293_v2  ;;  %v3396_v3 = vld [vmem:[%s4048_s0 + $0x10] sm:$0xff]  ;;  %v176_v4 = vcombine.high %v3346_v0, %v3346_v0  ;;  %v177_v5 = vcombine.high %v3351_v1, %v3351_v1  ;;  %v3409_v6 = vld [vmem:[%s4048_s0 + $0x18] sm:$0xff] }
   0x3   :  { %136 = vst.msk [vmem:[#allocation2 + $0x8] sm:$0x1] %vm135_vm0, %v3293_v2  ;;  %137 = vst.msk [vmem:[#allocation2 + $0x10] sm:$0x1] %vm135_vm0, %v3293_v2  ;;  %v178_v7 = vcombine.high %v3396_v3, %v3396_v3  ;;  %v3418_v8 = vld [vmem:[%s4048_s0 + $0x20] sm:$0xff]  ;;  %v3423_v9 = vld [vmem:[%s4048_s0 + $0x28] sm:$0xff]  ;;  %v179_v10 = vcombine.high %v3409_v6, %v3409_v6 }
   0x4   :  { %138 = vst.msk [vmem:[#allocation2 + $0x18] sm:$0x1] %vm135_vm0, %v3293_v2  ;;  %139 = vst.msk [vmem:[#allocation2 + $0x20] sm:$0x1] %vm135_vm0, %v3293_v2  ;;  %v180_v11 = vcombine.high %v3418_v8, %v3418_v8  ;;  %v181_v12 = vcombine.high %v3423_v9, %v3423_v9  ;;  %v3440_v13 = vld [vmem:[%s4048_s0 + $0x30] sm:$0xff]  ;;  %v3445_v14 = vld [vmem:[%s4048_s0 + $0x38] sm:$0xff] }
   0x5   :  { %140 = vst.msk [vmem:[#allocation2 + $0x38] sm:$0x1] %vm135_vm0, %v3293_v2  ;;  %141 = vst.msk [vmem:[#allocation2 + $0x40] sm:$0x1] %vm135_vm0, %v3293_v2  ;;  %v182_v15 = vcombine.high %v3440_v13, %v3440_v13  ;;  %v183_v16 = vcombine.high %v3445_v14, %v3445_v14  ;;  %v3214_v17 = vld [vmem:[%s4049_s1 + $0x40] sm:$0xff]   ;;  %v3216_v19 = vld [vmem:[%s4049_s1 + $0x48] sm:$0xff]  }
   0x6   :  { %142 = vst.msk [vmem:[#allocation2 + $0x48] sm:$0x1] %vm135_vm0, %v3293_v2  ;;  %143 = vst.msk [vmem:[#allocation2 + $0x50] sm:$0x1] %vm135_vm0, %v3293_v2  ;;  %v3215_v18 = vld [vmem:[%s4049_s1] sm:$0xff]   ;;  %3053 = vmatprep.subr.bf16.mxu0 %v3214_v17  ;;  %v3217_v20 = vld [vmem:[%s4049_s1 + $0x8] sm:$0xff]  }
   0x7   :  { %144 = vst.msk [vmem:[#allocation2 + $0x68] sm:$0x1] %vm135_vm0, %v3293_v2  ;;  %145 = vst.msk [vmem:[#allocation2 + $0x70] sm:$0x1] %vm135_vm0, %v3293_v2  ;;  %3054 = vmatpush3.bf16.msra.mxu0 %v3215_v18  ;;  %s3296_s30 = smov 96   ;;  %vm40_vm3 = vcmask 261120  }
   0x8   :  { %146 = vst.msk [vmem:[#allocation2 + $0x78] sm:$0x1] %vm135_vm0, %v3293_v2  ;;  %147 = vst.msk [vmem:[#allocation2 + $0x80] sm:$0x1] %vm135_vm0, %v3293_v2  ;;  %3055 = vmatprep.subr.bf16.mxu0 %v3216_v19  ;;  %vm333_vm8 = vcmask 523520   ;;  %vm406_vm9 = vcmask 785920  }
   0x9   :  { %148 = vst.msk [vmem:[#allocation2 + $0x98] sm:$0x1] %vm135_vm0, %v3293_v2  ;;  %149 = vst.msk [vmem:[#allocation2 + $0xa0] sm:$0x1] %vm135_vm0, %v3293_v2  ;;  %vm479_vm10 = vcmask 1048320   ;;  %vm1235_vm15 = vcmask 1041409  }
   0xa   :  { %150 = vst.msk [vmem:[#allocation2 + $0xa8] sm:$0x1] %vm135_vm0, %v3293_v2  ;;  %151 = vst.msk [vmem:[#allocation2 + $0xb0] sm:$0x1] %vm135_vm0, %v3293_v2 }
   0xb   :  { %156 = vst.msk [vmem:[#allocation2 + $0x3d] sm:$0x1] %vm135_vm0, %v3293_v2  ;;  %157 = vst.msk [vmem:[#allocation2 + $0x45] sm:$0x1] %vm135_vm0, %v3293_v2  ;;  %3056 = vmatpush3.bf16.msra.mxu0 %v3217_v20 }
   0xc   :  { %158 = vst.msk [vmem:[#allocation2 + $0x4d] sm:$0x1] %vm135_vm0, %v3293_v2  ;;  %159 = vst.msk [vmem:[#allocation2 + $0x55] sm:$0x1] %vm135_vm0, %v3293_v2 }
   0xd   :  { %160 = vst.msk [vmem:[#allocation2 + $0x6d] sm:$0x1] %vm135_vm0, %v3293_v2  ;;  %161 = vst.msk [vmem:[#allocation2 + $0x75] sm:$0x1] %vm135_vm0, %v3293_v2 }
   0xe   :  { %162 = vst.msk [vmem:[#allocation2 + $0x7d] sm:$0x1] %vm135_vm0, %v3293_v2  ;;  %163 = vst.msk [vmem:[#allocation2 + $0x85] sm:$0x1] %vm135_vm0, %v3293_v2 }
   0xf   :  { %164 = vst.msk [vmem:[#allocation2 + $0x9d] sm:$0x1] %vm135_vm0, %v3293_v2  ;;  %165 = vst.msk [vmem:[#allocation2 + $0xa5] sm:$0x1] %vm135_vm0, %v3293_v2 }
  0x10   :  { %166 = vst.msk [vmem:[#allocation2 + $0xad] sm:$0x1] %vm135_vm0, %v3293_v2  ;;  %167 = vst.msk [vmem:[#allocation2 + $0xb5] sm:$0x1] %vm135_vm0, %v3293_v2 }
  0x11   :  { %130 = vst.msk [vmem:[#allocation2 + $0x28] sm:$0x3f] %vm124_vm2, %v3293_v2  ;;  %125 = vst.msk [vmem:[#allocation2] sm:$0x3f] %vm124_vm2, %v3293_v2 }
  0x12   :  { %126 = vst.msk [vmem:[#allocation2 + $0x30] sm:$0x3f] %vm124_vm2, %v3293_v2  ;;  %127 = vst.msk [vmem:[#allocation2 + $0x60] sm:$0x3f] %vm124_vm2, %v3293_v2 }
  0x13   :  { %128 = vst.msk [vmem:[#allocation2 + $0x90] sm:$0x3f] %vm124_vm2, %v3293_v2  ;;  %131 = vst.msk [vmem:[#allocation2 + $0x58] sm:$0x3f] %vm124_vm2, %v3293_v2 }
  0x14   :  { %132 = vst.msk [vmem:[#allocation2 + $0x88] sm:$0x3f] %vm124_vm2, %v3293_v2  ;;  %133 = vst.msk [vmem:[#allocation2 + $0xb8] sm:$0x3f] %vm124_vm2, %v3293_v2 }
  0x15   :  { %193 = vst.msk [vmem:[#allocation2 + $0x9] sm:$0xf] %vm192_vm1, %v3346_v0  ;;  %195 = vst.msk [vmem:[#allocation2 + $0x19] sm:$0xf] %vm192_vm1, %v3351_v1 }
  0x16   :  { %197 = vst.msk [vmem:[#allocation2 + $0x39] sm:$0xf] %vm192_vm1, %v3396_v3  ;;  %199 = vst.msk [vmem:[#allocation2 + $0x49] sm:$0xf] %vm192_vm1, %v3409_v6 }
  0x17   :  { %201 = vst.msk [vmem:[#allocation2 + $0x69] sm:$0xf] %vm192_vm1, %v3418_v8  ;;  %203 = vst.msk [vmem:[#allocation2 + $0x79] sm:$0xf] %vm192_vm1, %v3423_v9 }
  0x18   :  { %194 = vst.msk [vmem:[#allocation2 + $0x11] sm:$0xf] %vm192_vm1, %v176_v4  ;;  %196 = vst.msk [vmem:[#allocation2 + $0x21] sm:$0xf] %vm192_vm1, %v177_v5 }
  0x19   :  { %198 = vst.msk [vmem:[#allocation2 + $0x41] sm:$0xf] %vm192_vm1, %v178_v7  ;;  %205 = vst.msk [vmem:[#allocation2 + $0x99] sm:$0xf] %vm192_vm1, %v3440_v13 }
  0x1a   :  { %207 = vst.msk [vmem:[#allocation2 + $0xa9] sm:$0xf] %vm192_vm1, %v3445_v14  ;;  %200 = vst.msk [vmem:[#allocation2 + $0x51] sm:$0xf] %vm192_vm1, %v179_v10 }
  0x1b   :  { %202 = vst.msk [vmem:[#allocation2 + $0x71] sm:$0xf] %vm192_vm1, %v180_v11  ;;  %204 = vst.msk [vmem:[#allocation2 + $0x81] sm:$0xf] %vm192_vm1, %v181_v12 }
  0x1c   :  { %206 = vst.msk [vmem:[#allocation2 + $0xa1] sm:$0xf] %vm192_vm1, %v182_v15  ;;  %208 = vst.msk [vmem:[#allocation2 + $0xb1] sm:$0xf] %vm192_vm1, %v183_v16  ;;  %v3164_v21 = vld [vmem:[#allocation2 + $0x1] ss:$8 sps:$4 sm:$0xff]  }
  0x1d   :  { %v3166_v29 = vld [vmem:[#allocation2 + $0x2] ss:$8 sps:$4 sm:$0xff]   ;;  %v3176_v41 = vld [vmem:[#allocation2 + $0x31] ss:$8 sps:$4 sm:$0xff]  }
  0x1e   :  { %v3180_v47 = vld [vmem:[#allocation2 + $0x32] ss:$8 sps:$4 sm:$0xff]   ;;  %v3190_v59 = vld [vmem:[#allocation2 + $0x61] ss:$8 sps:$4 sm:$0xff]  }
  0x1f   :  { %v3160_v22 = vld [vmem:[#allocation2 + $0xa] ss:$8 sps:$4 sm:$0xff]   ;;  %v3161_v23 = vld [vmem:[#allocation2 + $0x1a] ss:$8 sps:$4 sm:$0xff]  }
  0x20   :  { %v3162_v24 = vld [vmem:[#allocation2 + $0x10] ss:$8 sps:$4 sm:$0xff]   ;;  %v3163_v25 = vld [vmem:[#allocation2 + $0x20] ss:$8 sps:$4 sm:$0xff]   ;;  %v588_v26 = vpack.c.bf16 %v3161_v23, %v3160_v22 }
  0x21   :  { %v3165_v27 = vld [vmem:[#allocation2 + $0x11] ss:$8 sps:$4 sm:$0xff]   ;;  %v661_v28 = vpack.c.bf16 %v3163_v25, %v3162_v24  ;;  %v3169_v34 = vld [vmem:[#allocation2 + $0x21] ss:$8 sps:$4 sm:$0xff]  }
  0x22   :  { %v3167_v30 = vld [vmem:[#allocation2 + $0x12] ss:$8 sps:$4 sm:$0xff]   ;;  %596 = vrot.lane.b32.xlu0 %v588_v26, %s3294_s28  ;;  %v313_v31 = vpack.c.bf16 %v3165_v27, %v3164_v21  ;;  %v3177_v42 = vld [vmem:[#allocation2 + $0x41] ss:$8 sps:$4 sm:$0xff]  }
  0x23   :  { %669 = vrot.lane.b32.xlu1 %v661_v28, %s3295_s29  ;;  %v386_v32 = vpack.c.bf16 %v3167_v30, %v3166_v29  ;;  %v3168_v33 = vld [vmem:[#allocation2 + $0x11] ss:$8 sps:$4 sm:$0xff]   ;;  %v314_v44 = vpack.c.bf16 %v3177_v42, %v3176_v41  ;;  %v3178_v45 = vld [vmem:[#allocation2 + $0x40] ss:$8 sps:$4 sm:$0xff]   ;;  %v49_v41 = vsel %vm40_vm3, %v3409_v6, 0.0 }
  0x24   :  { %v3170_v35 = vld [vmem:[#allocation2 + $0x8] ss:$8 sps:$4 sm:$0xff]   ;;  %v3171_v36 = vld [vmem:[#allocation2 + $0x18] ss:$8 sps:$4 sm:$0xff]   ;;  %v733_v37 = vpack.c.bf16 %v3169_v34, %v3168_v33 }
  0x25   :  { %v459_v38 = vpack.c.bf16 %v3171_v36, %v3170_v35  ;;  %v3174_v39 = vld [vmem:[#allocation2 + $0x3a] ss:$8 sps:$4 sm:$0xff]   ;;  %v3175_v40 = vld [vmem:[#allocation2 + $0x4a] ss:$8 sps:$4 sm:$0xff]  }
  0x26   :  { %321 = vrot.lane.b32.xlu0 %v313_v31, %s3294_s28  ;;  %v589_v43 = vpack.c.bf16 %v3175_v40, %v3174_v39  ;;  %v3179_v46 = vld [vmem:[#allocation2 + $0x50] ss:$8 sps:$4 sm:$0xff]   ;;  %v3181_v48 = vld [vmem:[#allocation2 + $0x42] ss:$8 sps:$4 sm:$0xff]   ;;  %v48_v39 = vsel %vm40_vm3, %v3351_v1, 0.0 }
  0x27   :  { %394 = vrot.lane.b32.xlu1 %v386_v32, %s3295_s29  ;;  %v662_v49 = vpack.c.bf16 %v3179_v46, %v3178_v45  ;;  %v387_v50 = vpack.c.bf16 %v3181_v48, %v3180_v47  ;;  %v3182_v51 = vld [vmem:[#allocation2 + $0x41] ss:$8 sps:$4 sm:$0xff]   ;;  %v3183_v52 = vld [vmem:[#allocation2 + $0x51] ss:$8 sps:$4 sm:$0xff]  }
  0x28   :  { %v3184_v53 = vld [vmem:[#allocation2 + $0x38] ss:$8 sps:$4 sm:$0xff]   ;;  %v3185_v54 = vld [vmem:[#allocation2 + $0x48] ss:$8 sps:$4 sm:$0xff]   ;;  %v734_v55 = vpack.c.bf16 %v3183_v52, %v3182_v51 }
  0x29   :  { %v460_v56 = vpack.c.bf16 %v3185_v54, %v3184_v53  ;;  %v3188_v57 = vld [vmem:[#allocation2 + $0x6a] ss:$8 sps:$4 sm:$0xff]   ;;  %v3189_v58 = vld [vmem:[#allocation2 + $0x7a] ss:$8 sps:$4 sm:$0xff]  }
  0x2a   :  { %741 = vrot.lane.b32.xlu0 %v733_v37, %s3296_s30  ;;  %v3191_v60 = vld [vmem:[#allocation2 + $0x71] ss:$8 sps:$4 sm:$0xff]   ;;  %v590_v61 = vpack.c.bf16 %v3189_v58, %v3188_v57  ;;  %v3193_v2 = vld [vmem:[#allocation2 + $0x80] ss:$8 sps:$4 sm:$0xff]  }
  0x2b   :  { %467 = vrot.lane.b32.xlu1 %v459_v38, %s3296_s30  ;;  %v315_v62 = vpack.c.bf16 %v3191_v60, %v3190_v59  ;;  %v3192_v63 = vld [vmem:[#allocation2 + $0x70] ss:$8 sps:$4 sm:$0xff]   ;;  %v3194_v4 = vld [vmem:[#allocation2 + $0x62] ss:$8 sps:$4 sm:$0xff]   ;;  %v41_v59 = vsel %vm40_vm3, %v3346_v0, 0.0 }
  0x2c   :  { %v3195_v5 = vld [vmem:[#allocation2 + $0x72] ss:$8 sps:$4 sm:$0xff]   ;;  %v663_v7 = vpack.c.bf16 %v3193_v2, %v3192_v63  ;;  %v3197_v12 = vld [vmem:[#allocation2 + $0x81] ss:$8 sps:$4 sm:$0xff]   ;;  %v42_v2 = vsel %vm40_vm3, %v3396_v3, 0.0 }
  0x2d   :  { %v388_v10 = vpack.c.bf16 %v3195_v5, %v3194_v4  ;;  %v3196_v11 = vld [vmem:[#allocation2 + $0x71] ss:$8 sps:$4 sm:$0xff]   ;;  %v3205_v22 = vld [vmem:[#allocation2 + $0xa1] ss:$8 sps:$4 sm:$0xff]  }
  0x2e   :  { %598 = vrot.lane.b32.xlu0 %v589_v43, %s3294_s28  ;;  %v3198_v15 = vld [vmem:[#allocation2 + $0x68] ss:$8 sps:$4 sm:$0xff]   ;;  %v3199_v16 = vld [vmem:[#allocation2 + $0x78] ss:$8 sps:$4 sm:$0xff]   ;;  %v735_v17 = vpack.c.bf16 %v3197_v12, %v3196_v11  ;;  %v50_v43 = vadd.f32 %v49_v41, %v48_v39  ;;  %v43_v39 = vadd.f32 %v42_v2, %v41_v59 }
  0x2f   :  { %323 = vrot.lane.b32.xlu1 %v314_v44, %s3294_s28  ;;  %v461_v18 = vpack.c.bf16 %v3199_v16, %v3198_v15  ;;  %v3202_v19 = vld [vmem:[#allocation2 + $0x9a] ss:$8 sps:$4 sm:$0xff]   ;;  %v3203_v20 = vld [vmem:[#allocation2 + $0xaa] ss:$8 sps:$4 sm:$0xff]   ;;  %v51_v44 = vsel %vm40_vm3, %v3423_v9, 0.0 }
  0x30   :  { %v3204_v21 = vld [vmem:[#allocation2 + $0x91] ss:$8 sps:$4 sm:$0xff]   ;;  %v591_v23 = vpack.c.bf16 %v3203_v20, %v3202_v19  ;;  %v3206_v25 = vld [vmem:[#allocation2 + $0xa0] ss:$8 sps:$4 sm:$0xff]   ;;  %v52_v47 = vadd.f32 %v51_v44, %v50_v43 }
  0x31   :  { %v316_v24 = vpack.c.bf16 %v3205_v22, %v3204_v21  ;;  %v3207_v26 = vld [vmem:[#allocation2 + $0xb0] ss:$8 sps:$4 sm:$0xff]   ;;  %v3209_v28 = vld [vmem:[#allocation2 + $0xa2] ss:$8 sps:$4 sm:$0xff]  }
  0x32   :  { %671 = vrot.lane.b32.xlu0 %v662_v49, %s3295_s29  ;;  %v3208_v27 = vld [vmem:[#allocation2 + $0x92] ss:$8 sps:$4 sm:$0xff]   ;;  %v664_v29 = vpack.c.bf16 %v3207_v26, %v3206_v25  ;;  %v3210_v31 = vld [vmem:[#allocation2 + $0xa1] ss:$8 sps:$4 sm:$0xff]   ;;  %v53_v49 = vsel %vm40_vm3, %v3445_v14, 0.0 }
  0x33   :  { %396 = vrot.lane.b32.xlu1 %v387_v50, %s3295_s29  ;;  %v389_v30 = vpack.c.bf16 %v3209_v28, %v3208_v27  ;;  %v3211_v32 = vld [vmem:[#allocation2 + $0xb1] ss:$8 sps:$4 sm:$0xff]   ;;  %v3224_v48 = vld [vmem:[%s4049_s1 + $0x60] sm:$0xff]   ;;  %v54_v52 = vadd.f32 %v53_v49, %v52_v47  ;;  %v3229_v58 = vld [vmem:[%s4049_s1 + $0x28] sm:$0xff]  }
  0x34   :  { %v3212_v33 = vld [vmem:[#allocation2 + $0x98] ss:$8 sps:$4 sm:$0xff]   ;;  %v3213_v34 = vld [vmem:[#allocation2 + $0xa8] ss:$8 sps:$4 sm:$0xff]   ;;  %v736_v35 = vpack.c.bf16 %v3211_v32, %v3210_v31 }
  0x35   :  { %v3218_v36 = vld [vmem:[%s4049_s1 + $0x50] sm:$0xff]   ;;  %v462_v37 = vpack.c.bf16 %v3213_v34, %v3212_v33  ;;  %v3220_v40 = vld [vmem:[%s4049_s1 + $0x58] sm:$0xff]   ;;  %v3225_v51 = vld [vmem:[%s4049_s1 + $0x20] sm:$0xff]  }
  0x36   :  { %743 = vrot.lane.b32.xlu0 %v734_v55, %s3296_s30  ;;  %v3219_v38 = vld [vmem:[%s4049_s1 + $0x10] sm:$0xff]   ;;  %3057 = vmatprep.subr.bf16.mxu0 %v3218_v36  ;;  %v3221_v42 = vld [vmem:[%s4049_s1 + $0x18] sm:$0xff]   ;;  %v3226_v53 = vld [vmem:[#allocation2] ss:$8 sps:$4 sm:$0xff]  }
  0x37   :  { %469 = vrot.lane.b32.xlu1 %v460_v56, %s3296_s30  ;;  %3058 = vmatpush3.bf16.msra.mxu0 %v3219_v38  ;;  %v3222_v45 = vld [vmem:[#allocation2 + $0x19] ss:$8 sps:$4 sm:$0xff]   ;;  %v3223_v46 = vld [vmem:[#allocation2 + $0x9] ss:$8 sps:$4 sm:$0xff]   ;;  %v57_v56 = vmul.f32 0.25, %v54_v52 }
  0x38   :  { %3059 = vmatprep.subr.bf16.mxu0 %v3220_v40  ;;  %v532_v50 = vpack.c.bf16 %v3222_v45, %v3223_v46  ;;  %v3227_v54 = vld [vmem:[#allocation2 + $0x10] ss:$8 sps:$4 sm:$0xff]   ;;  %v3228_v55 = vld [vmem:[%s4049_s1 + $0x68] sm:$0xff]   ;;  %v3237_v20 = vld [vmem:[%s4049_s1 + $0x80] sm:$0xff]  }
  0x39   :  { %v257_v57 = vpack.c.bf16 %v3227_v54, %v3226_v53  ;;  %v3230_v60 = vld [vmem:[%s4049_s1 + $0x70] sm:$0xff]   ;;  %v63_v63 = vsub.f32 %v3423_v9, %v57_v56  ;;  %v65_v5 = vsub.f32 %v3445_v14, %v57_v56  ;;  %v3235_v16 = vld [vmem:[#allocation2 + $0x40] ss:$8 sps:$4 sm:$0xff]   ;;  %v3238_v22 = vld [vmem:[%s4049_s1 + $0x38] sm:$0xff]   ;;  %3143 = vmatprep.subr.bf16.mxu1 %v3237_v20  ;;  %v46_v54 = vsel %vm40_vm3, %v3440_v13, 0.0 }
  0x3a   :  { %600 = vrot.lane.b32.xlu0 %v590_v61, %s3294_s28  ;;  %536 = vst.msk [vmem:[#allocation3 + $0x8] sm:$0xff] %vm40_vm3, %v532_v50  ;;  %v59_v61 = vsub.f32 %v3351_v1, %v57_v56  ;;  %v3231_v4 = vld [vmem:[%s4049_s1 + $0x30] sm:$0xff]   ;;  %v3232_v1 = vld [vmem:[#allocation2 + $0x39] ss:$8 sps:$4 sm:$0xff]   ;;  %3144 = vmatpush3.bf16.msra.mxu1 %v3237_v20 }
  0x3b   :  { %325 = vrot.lane.b32.xlu1 %v315_v62, %s3294_s28  ;;  %3060 = vmatpush3.bf16.msra.mxu0 %v3221_v42  ;;  %v61_v62 = vsub.f32 %v3409_v6, %v57_v56  ;;  %261 = vst.msk [vmem:[#allocation3] sm:$0xff] %vm40_vm3, %v257_v57  ;;  %v3233_v6 = vld [vmem:[#allocation2 + $0x49] ss:$8 sps:$4 sm:$0xff]   ;;  %v71_v9 = vmul.f32 %v63_v63, %v63_v63  ;;  %v3248_v42 = vld [vmem:[#allocation2 + $0x99] ss:$8 sps:$4 sm:$0xff]  }
  0x3c   :  { %3061 = vmatprep.subr.bf16.mxu0 %v3224_v48  ;;  %v533_v12 = vpack.c.bf16 %v3233_v6, %v3232_v1  ;;  %v3234_v15 = vld [vmem:[#allocation2 + $0x30] ss:$8 sps:$4 sm:$0xff]   ;;  %v3241_v28 = vld [vmem:[#allocation2 + $0x22] ss:$8 sps:$4 sm:$0xff]  }
  0x3d   :  { %v69_v11 = vmul.f32 %v61_v62, %v61_v62  ;;  %v258_v19 = vpack.c.bf16 %v3235_v16, %v3234_v15  ;;  %v3240_v27 = vld [vmem:[#allocation2 + $0x12] ss:$8 sps:$4 sm:$0xff]   ;;  %v3251_v46 = vld [vmem:[#allocation2 + $0xa0] ss:$8 sps:$4 sm:$0xff]  }
  0x3e   :  { %673 = vrot.lane.b32.xlu0 %v663_v7, %s3295_s29  ;;  %v44_v7 = vsel %vm40_vm3, %v3418_v8, 0.0  ;;  %537 = vst.msk [vmem:[#allocation3 + $0x20] sm:$0xff] %vm40_vm3, %v533_v12  ;;  %v3243_v31 = vld [vmem:[#allocation2 + $0x52] ss:$8 sps:$4 sm:$0xff]   ;;  %v3253_v52 = vld [vmem:[#allocation2 + $0x82] ss:$8 sps:$4 sm:$0xff]  }
  0x3f   :  { %398 = vrot.lane.b32.xlu1 %v388_v10, %s3295_s29  ;;  %3062 = vmatpush3.bf16.msra.mxu0 %v3225_v51  ;;  %v67_v10 = vmul.f32 %v59_v61, %v59_v61  ;;  %v82_v21 = vsel %vm40_vm3, %v69_v11, 0.0  ;;  %262 = vst.msk [vmem:[#allocation3 + $0x18] sm:$0xff] %vm40_vm3, %v258_v19  ;;  %v3244_v34 = vld [vmem:[#allocation2 + $0x69] ss:$8 sps:$4 sm:$0xff]   ;;  %v45_v47 = vadd.f32 %v44_v7, %v43_v39 }
  0x40   :  { %3063 = vmatprep.subr.bf16.mxu0 %v3228_v55  ;;  %v3247_v38 = vld [vmem:[#allocation2 + $0x70] ss:$8 sps:$4 sm:$0xff]   ;;  %v3254_v56 = vld [vmem:[#allocation2 + $0xa2] ss:$8 sps:$4 sm:$0xff]  }
  0x41   :  { %v81_v14 = vsel %vm40_vm3, %v67_v10, 0.0  ;;  %v3249_v43 = vld [vmem:[#allocation2 + $0xa9] ss:$8 sps:$4 sm:$0xff]   ;;  %v47_v57 = vadd.f32 %v46_v54, %v45_v47 }
  0x42   :  { %745 = vrot.lane.b32.xlu0 %v735_v17, %s3296_s30  ;;  %v73_v17 = vmul.f32 %v65_v5, %v65_v5  ;;  %v83_v26 = vadd.f32 %v82_v21, %v81_v14  ;;  %v535_v44 = vpack.c.bf16 %v3249_v43, %v3248_v42  ;;  %v3250_v45 = vld [vmem:[#allocation2 + $0x90] ss:$8 sps:$4 sm:$0xff]  }
  0x43   :  { %471 = vrot.lane.b32.xlu1 %v461_v18, %s3296_s30  ;;  %3064 = vmatpush3.bf16.msra.mxu0 %v3229_v58  ;;  %v3236_v18 = vld [vmem:[%s4049_s1 + $0x78] sm:$0xff]   ;;  %v260_v50 = vpack.c.bf16 %v3251_v46, %v3250_v45 }
  0x44   :  { %3065 = vmatprep.subr.bf16.mxu0 %v3230_v60  ;;  %v86_v25 = vsel %vm40_vm3, %v73_v17, 0.0  ;;  %539 = vst.msk [vmem:[#allocation3 + $0x50] sm:$0xff] %vm40_vm3, %v535_v44  ;;  %v3252_v51 = vld [vmem:[#allocation2 + $0x72] ss:$8 sps:$4 sm:$0xff]   ;;  %v56_v60 = vmul.f32 0.25, %v47_v57 }
  0x45   :  { %264 = vst.msk [vmem:[#allocation3 + $0x48] sm:$0xff] %vm40_vm3, %v260_v50  ;;  %v807_v55 = vpack.c.bf16 %v3253_v52, %v3252_v51  ;;  %v3255_v58 = vld [vmem:[#allocation2 + $0xb2] ss:$8 sps:$4 sm:$0xff]  }
  0x46   :  { %602 = vrot.lane.b32.xlu0 %v591_v23, %s3294_s28  ;;  %v84_v23 = vsel %vm40_vm3, %v71_v9, 0.0  ;;  %v808_v61 = vpack.c.bf16 %v3255_v58, %v3254_v56  ;;  %v58_v62 = vsub.f32 %v3346_v0, %v56_v60  ;;  %v60_v63 = vsub.f32 %v3396_v3, %v56_v60 }
  0x47   :  { %327 = vrot.lane.b32.xlu1 %v316_v24, %s3294_s28  ;;  %3066 = vmatpush3.bf16.msra.mxu0 %v3231_v4  ;;  %v3239_v24 = vld [vmem:[%s4049_s1 + $0x88] sm:$0xff]   ;;  %v85_v32 = vadd.f32 %v84_v23, %v83_v26  ;;  %811 = vst.msk [vmem:[#allocation3 + $0x40] sm:$0xff] %vm40_vm3, %v807_v55  ;;  %v62_v2 = vsub.f32 %v3418_v8, %v56_v60 }
  0x48   :  { %3067 = vmatprep.subr.bf16.mxu0 %v3236_v18  ;;  %3145 = vmatprep.subr.bf16.mxu1 %v3239_v24  ;;  %812 = vst.msk [vmem:[#allocation3 + $0x58] sm:$0xff] %vm40_vm3, %v808_v61  ;;  %v64_v4 = vsub.f32 %v3440_v13, %v56_v60  ;;  %v66_v5 = vmul.f32 %v58_v62, %v58_v62 }
  0x49   :  { %3146 = vmatpush3.bf16.msra.mxu1 %v3239_v24  ;;  %v87_v40 = vadd.f32 %v86_v25, %v85_v32  ;;  %v68_v7 = vmul.f32 %v60_v63, %v60_v63  ;;  %v70_v10 = vmul.f32 %v62_v2, %v62_v2 }
  0x4a   :  { %675 = vrot.lane.b32.xlu0 %v664_v29, %s3295_s29  ;;  %v805_v29 = vpack.c.bf16 %v3241_v28, %v3240_v27  ;;  %v72_v1 = vmul.f32 %v64_v4, %v64_v4  ;;  %v74_v6 = vsel %vm40_vm3, %v66_v5, 0.0 }
  0x4b   :  { %400 = vrot.lane.b32.xlu1 %v389_v30, %s3295_s29  ;;  %3068 = vmatpush3.bf16.msra.mxu0 %v3238_v22  ;;  %v3242_v30 = vld [vmem:[#allocation2 + $0x42] ss:$8 sps:$4 sm:$0xff]   ;;  %v89_v49 = vmul.f32 0.25, %v87_v40  ;;  %v75_v11 = vsel %vm40_vm3, %v68_v7, 0.0  ;;  %v77_v9 = vsel %vm40_vm3, %v70_v10, 0.0 }
  0x4c   :  { %809 = vst.msk [vmem:[#allocation3 + $0x10] sm:$0xff] %vm40_vm3, %v805_v29  ;;  %v806_v33 = vpack.c.bf16 %v3243_v31, %v3242_v30  ;;  %v76_v0 = vadd.f32 %v75_v11, %v74_v6  ;;  %v79_v3 = vsel %vm40_vm3, %v72_v1, 0.0 }
  0x4d   :  { %v91_v59 = vadd.f32 1e-08, %v89_v49 }
  0x4e   :  { %747 = vrot.lane.b32.xlu0 %v736_v35, %s3296_s30  ;;  %v3245_v35 = vld [vmem:[#allocation2 + $0x79] ss:$8 sps:$4 sm:$0xff]   ;;  %810 = vst.msk [vmem:[#allocation3 + $0x28] sm:$0xff] %vm40_vm3, %v806_v33  ;;  %v78_v8 = vadd.f32 %v77_v9, %v76_v0 }
  0x4f   :  { %473 = vrot.lane.b32.xlu1 %v462_v37, %s3296_s30  ;;  %v534_v36 = vpack.c.bf16 %v3245_v35, %v3244_v34  ;;  %v3246_v37 = vld [vmem:[#allocation2 + $0x60] ss:$8 sps:$4 sm:$0xff]   ;;  %3289 = vrsqrt.f32 %v91_v59  ;;  %v824_v15 = vld [vmem:[#allocation3 + $0x58] sm:$0xff]  ;;  %vm101_vm4 = vcmp.eq.f32.partialorder %v91_v59, inf  ;;  %v104_v13 = vand.u32 2147483648, %v91_v59 }
  0x50   :  { %v259_v41 = vpack.c.bf16 %v3247_v38, %v3246_v37  ;;  %v821_v12 = vld [vmem:[#allocation3 + $0x40] sm:$0xff]  ;;  %v80_v17 = vadd.f32 %v79_v3, %v78_v8  ;;  %vm103_vm5 = vcmp.eq.f32.partialorder %v91_v59, 0.0 }
  0x51   :  { %538 = vst.msk [vmem:[#allocation3 + $0x38] sm:$0xff] %vm40_vm3, %v534_v36 }
  0x52   :  { %263 = vst.msk [vmem:[#allocation3 + $0x30] sm:$0xff] %vm40_vm3, %v259_v41  ;;  %v88_v14 = vmul.f32 0.25, %v80_v17 }
  0x53   :  { %v815_v48 = vld [vmem:[#allocation3 + $0x10] sm:$0xff] }
  0x54   :  { %3147 = vmatprep.mubr.msk.bf16.mxu1 %vm40_vm3, %v815_v48  ;;  %v90_v21 = vadd.f32 1e-08, %v88_v14  ;;  %v862_v14 = vld [vmem:[%s4050_s3 + $0x8] sm:$0xff] }
  0x55   :  { %v818_v53 = vld [vmem:[#allocation3 + $0x28] sm:$0xff] }
  0x56   :  { %3148 = vmatmul.mubr.msk.bf16.vlgmr.msra.gmra.mrb[0].mxu1 %vm40_vm3, %v818_v53  ;;  %3291 = vrsqrt.f32 %v90_v21  ;;  %vm94_vm6 = vcmp.eq.f32.partialorder %v90_v21, inf  ;;  %v97_v24 = vand.u32 2147483648, %v90_v21  ;;  %vm96_vm7 = vcmp.eq.f32.partialorder %v90_v21, 0.0 }
  0x57   :  { %3151 = vmatprep.mubr.msk.bf16.mxu1 %vm40_vm3, %v821_v12 }
  0x59   :  { %v3290_v16 = vpop.eup %3289 }
  0x5a   :  { %v100_v18 = vmul.f32 %v3290_v16, %v91_v59 }
  0x5c   :  { %v102_v19 = vsel %vm101_vm4, %v91_v59, %v100_v18  ;;  %v861_v18 = vld [vmem:[%s4050_s3] sm:$0xff]  ;;  %vm1238_vm4 = vcmask 1042434  }
  0x5d   :  { %v105_v20 = vsel %vm103_vm5, %v104_v13, %v102_v19 }
  0x5e   :  { %3152 = vmatmul.mubr.msk.bf16.gmra.mrb[4].mxu1 %vm40_vm3, %v824_v15  ;;  %v109_v22 = vsel %vm40_vm3, %v105_v20, 0.0 }
  0x60   :  { %v3292_v23 = vpop.eup %3291 }
  0x61   :  { %v93_v25 = vmul.f32 %v3292_v23, %v90_v21 }
  0x63   :  { %v95_v26 = vsel %vm94_vm6, %v90_v21, %v93_v25 }
  0x64   :  { %v98_v27 = vsel %vm96_vm7, %v97_v24, %v95_v26  ;;  %vm1252_vm7 = vcmask 254976  }
  0x65   :  { %v106_v28 = vsel %vm40_vm3, %v98_v27, 0.0 }
  0x6d   :  { %107 = vadd.xlane.f32.xlu0 %v106_v28  ;;  %v3637_v28 = vld [vmem:[%s4051_s2] ss:$0 sm:$0xff] }
  0x73   :  { %110 = vadd.xlane.f32.xlu1 %v109_v22 }
  0x94   :  { %v597_v29 = vpop.permute.xlu0 %596 }
  0x95   :  { %608 = vst.msk [vmem:[#allocation3 + $0x8] sm:$0xff] %vm333_vm8, %v597_v29  ;;  %v670_v30 = vpop.permute.xlu1 %669 }
  0x96   :  { %681 = vst.msk [vmem:[#allocation3 + $0x8] sm:$0xff] %vm406_vm9, %v670_v30 }
  0x98   :  { %v322_v31 = vpop.permute.xlu0 %321 }
  0x99   :  { %334 = vst.msk [vmem:[#allocation3] sm:$0xff] %vm333_vm8, %v322_v31  ;;  %v395_v32 = vpop.permute.xlu1 %394 }
  0x9a   :  { %407 = vst.msk [vmem:[#allocation3] sm:$0xff] %vm406_vm9, %v395_v32 }
  0x9c   :  { %v742_v33 = vpop.permute.xlu0 %741 }
  0x9d   :  { %753 = vst.msk [vmem:[#allocation3 + $0x8] sm:$0xff] %vm479_vm10, %v742_v33  ;;  %v468_v34 = vpop.permute.xlu1 %467 }
  0x9e   :  { %480 = vst.msk [vmem:[#allocation3] sm:$0xff] %vm479_vm10, %v468_v34 }
  0xa0   :  { %v599_v35 = vpop.permute.xlu0 %598 }
  0xa1   :  { %609 = vst.msk [vmem:[#allocation3 + $0x20] sm:$0xff] %vm333_vm8, %v599_v35  ;;  %v324_v36 = vpop.permute.xlu1 %323  ;;  %v3297_v35 = vmov 1983009808  }
  0xa2   :  { %335 = vst.msk [vmem:[#allocation3 + $0x18] sm:$0xff] %vm333_vm8, %v324_v36  ;;  %v1175_v36 = vunpack.c.l.s4 %v3297_v35 }
  0xa4   :  { %v672_v37 = vpop.permute.xlu0 %671  ;;  %v814_v38 = vld [vmem:[#allocation3 + $0x8] sm:$0xff] }
  0xa5   :  { %682 = vst.msk [vmem:[#allocation3 + $0x20] sm:$0xff] %vm406_vm9, %v672_v37  ;;  %v397_v39 = vpop.permute.xlu1 %396  ;;  %1017 = vmatprep.mubr.bf16.mxu0 %v814_v38  ;;  %v813_v40 = vld [vmem:[#allocation3] sm:$0xff]  ;;  %v1177_v37 = vlaneseq }
  0xa6   :  { %408 = vst.msk [vmem:[#allocation3 + $0x18] sm:$0xff] %vm406_vm9, %v397_v39  ;;  %1018 = vmatmul.mubr.bf16.vlgmr.msra.gmra.mrb[0].mxu0 %v813_v40 }
  0xa8   :  { %v744_v41 = vpop.permute.xlu0 %743 }
  0xa9   :  { %754 = vst.msk [vmem:[#allocation3 + $0x20] sm:$0xff] %vm479_vm10, %v744_v41  ;;  %v470_v42 = vpop.permute.xlu1 %469 }
  0xaa   :  { %481 = vst.msk [vmem:[#allocation3 + $0x18] sm:$0xff] %vm479_vm10, %v470_v42 }
  0xac   :  { %v601_v43 = vpop.permute.xlu0 %600 }
  0xad   :  { %610 = vst.msk [vmem:[#allocation3 + $0x38] sm:$0xff] %vm333_vm8, %v601_v43  ;;  %v326_v44 = vpop.permute.xlu1 %325 }
  0xae   :  { %336 = vst.msk [vmem:[#allocation3 + $0x30] sm:$0xff] %vm333_vm8, %v326_v44 }
  0xb0   :  { %v674_v45 = vpop.permute.xlu0 %673  ;;  %v817_v46 = vld [vmem:[#allocation3 + $0x20] sm:$0xff] }
  0xb1   :  { %683 = vst.msk [vmem:[#allocation3 + $0x38] sm:$0xff] %vm406_vm9, %v674_v45  ;;  %v399_v47 = vpop.permute.xlu1 %398  ;;  %1025 = vmatprep.mubr.bf16.mxu0 %v817_v46  ;;  %v816_v48 = vld [vmem:[#allocation3 + $0x18] sm:$0xff]  ;;  %v1176_v46 = vunpack.c.0.s8 %v1175_v36 }
  0xb2   :  { %409 = vst.msk [vmem:[#allocation3 + $0x30] sm:$0xff] %vm406_vm9, %v399_v47  ;;  %1026 = vmatmul.mubr.bf16.gmra.mrb[4].mxu0 %v816_v48  ;;  %v1178_v47 = vshrl.u32 %v1177_v37, 7 }
  0xb4   :  { %v746_v49 = vpop.permute.xlu0 %745 }
  0xb5   :  { %755 = vst.msk [vmem:[#allocation3 + $0x38] sm:$0xff] %vm479_vm10, %v746_v49  ;;  %v472_v50 = vpop.permute.xlu1 %471 }
  0xb6   :  { %482 = vst.msk [vmem:[#allocation3 + $0x30] sm:$0xff] %vm479_vm10, %v472_v50 }
  0xb8   :  { %v603_v51 = vpop.permute.xlu0 %602 }
  0xb9   :  { %611 = vst.msk [vmem:[#allocation3 + $0x50] sm:$0xff] %vm333_vm8, %v603_v51  ;;  %v328_v52 = vpop.permute.xlu1 %327 }
  0xba   :  { %337 = vst.msk [vmem:[#allocation3 + $0x48] sm:$0xff] %vm333_vm8, %v328_v52  ;;  %v3646_v52 = vsub.s32 %v1176_v46, %v1178_v47  ;;  %vm1343_vm8 = vcmask 517376  }
  0xbc   :  { %v676_v53 = vpop.permute.xlu0 %675  ;;  %v820_v54 = vld [vmem:[#allocation3 + $0x38] sm:$0xff] }
  0xbd   :  { %684 = vst.msk [vmem:[#allocation3 + $0x50] sm:$0xff] %vm406_vm9, %v676_v53  ;;  %v401_v55 = vpop.permute.xlu1 %400  ;;  %1033 = vmatprep.mubr.bf16.mxu0 %v820_v54  ;;  %v819_v56 = vld [vmem:[#allocation3 + $0x30] sm:$0xff] }
  0xbe   :  { %410 = vst.msk [vmem:[#allocation3 + $0x48] sm:$0xff] %vm406_vm9, %v401_v55  ;;  %1034 = vmatmul.mubr.bf16.gmra.mrb[8].mxu0 %v819_v56  ;;  %vm1434_vm9 = vcmask 779776  }
  0xc0   :  { %v748_v57 = vpop.permute.xlu0 %747 }
  0xc1   :  { %756 = vst.msk [vmem:[#allocation3 + $0x50] sm:$0xff] %vm479_vm10, %v748_v57  ;;  %v474_v58 = vpop.permute.xlu1 %473 }
  0xc2   :  { %483 = vst.msk [vmem:[#allocation3 + $0x48] sm:$0xff] %vm479_vm10, %v474_v58  ;;  %vm1525_vm10 = vcmask 1042176  }
  0xc8   :  { %v823_v59 = vld [vmem:[#allocation3 + $0x50] sm:$0xff] }
  0xc9   :  { %1041 = vmatprep.mubr.bf16.mxu0 %v823_v59  ;;  %v822_v60 = vld [vmem:[#allocation3 + $0x48] sm:$0xff] }
  0xca   :  { %1042 = vmatmul.mubr.bf16.gmra.mrb[12].mxu0 %v822_v60 }
  0xfa   :  { %v108_v1 = vpop.xlane.xlu0 %107 }
  0xfb   :  { %v113_v9 = vmul.f32 0.03125, %v108_v1 }
 0x100   :  { %v111_v7 = vpop.xlane.xlu1 %110 }
 0x101   :  { %v114_v11 = vmul.f32 0.03125, %v111_v7 }
 0x103   :  { %v115_v12 = vadd.f32 %v114_v11, %v113_v9 }
 0x105   :  { %v116_v0 = vrot.slane %v115_v12, 4 }
 0x107   :  { %v117_v3 = vadd.f32 %v116_v0, %v115_v12 }
 0x109   :  { %v118_v8 = vrot.slane %v117_v3, 2 }
 0x10b   :  { %v119_v15 = vadd.f32 %v118_v8, %v117_v3 }
 0x10d   :  { %v120_v16 = vrot.slane %v119_v15, 1 }
 0x10f   :  { %v121_v13 = vadd.f32 %v120_v16, %v119_v15 }
 0x111   :  { %v123_v17 = vmul.f32 0.0625, %v121_v13 }
 0x113   :  { %v3629_v20 = vmul.f32 %v861_v18, %v123_v17  ;;  %v3631_v24 = vmul.f32 %v862_v14, %v123_v17 }
 0x129   :  { %v3149_v61 = vpop.f32.mrb[0].mxu1 }
 0x12a   :  { %v1084_v62 = vpop.f32.mrb[1].mxu1 }
 0x12b   :  { %v3150_v63 = vpop.f32.mrb[2].mxu1 }
 0x12c   :  { %v1087_v2 = vpop.f32.mrb[3].mxu1 }
 0x131   :  { %v3615_v4 = vpop.f32.mrb[4].mxu1 }
 0x132   :  { %v3617_v5 = vpop.f32.mrb[5].mxu1 }
 0x133   :  { %v3619_v10 = vpop.f32.mrb[6].mxu1 }
 0x134   :  { %v3621_v6 = vpop.f32.mrb[7].mxu1 }
 0x179   :  { %v3069_v19 = vpop.f32.mrb[0].mxu0 }
 0x17a   :  { %v3070_v21 = vpop.f32.mrb[1].mxu0 }
 0x17b   :  { %v3071_v22 = vadd.f32 %v3070_v21, %v3069_v19  ;;  %v3072_v23 = vpop.f32.mrb[2].mxu0 }
 0x17c   :  { %v3073_v25 = vpop.f32.mrb[3].mxu0 }
 0x17d   :  { %v3074_v26 = vadd.f32 %v3073_v25, %v3072_v23  ;;  %v1020_v27 = vadd.f32 %v3071_v22, %v3629_v20 }
 0x17f   :  { %v1085_v29 = vadd.f32 %v1084_v62, %v1020_v27  ;;  %v1023_v30 = vadd.f32 %v3074_v26, %v3631_v24 }
 0x181   :  { %v1122_v31 = vadd.f32 %v3637_v28, %v1085_v29  ;;  %v1088_v32 = vadd.f32 %v1087_v2, %v1023_v30 }
 0x183   :  { %vm1130_vm11 = vcmp.ge.f32.partialorder %v1122_v31, 0.0  ;;  %v1138_v33 = vmul.f32 0.2, %v1122_v31  ;;  %v1123_v34 = vadd.f32 %v3637_v28, %v1088_v32 }
 0x185   :  { %v1146_v38 = vsel %vm1130_vm11, %v1122_v31, %v1138_v33  ;;  %vm1131_vm12 = vcmp.ge.f32.partialorder %v1123_v34, 0.0  ;;  %v1139_v39 = vmul.f32 0.2, %v1123_v34  ;;  %v3075_v40 = vpop.f32.mrb[4].mxu0 }
 0x186   :  { %1154 = vst.msk [vmem:[#allocation4] sm:$0xff] %vm40_vm3, %v1146_v38  ;;  %v3076_v41 = vpop.f32.mrb[5].mxu0 }
 0x187   :  { %v1147_v42 = vsel %vm1131_vm12, %v1123_v34, %v1139_v39  ;;  %v3077_v43 = vadd.f32 %v3076_v41, %v3075_v40  ;;  %v3078_v44 = vpop.f32.mrb[6].mxu0  ;;  %vm2989_vm12 = vcmask 3072  }
 0x188   :  { %1155 = vst.msk [vmem:[#allocation4 + $0x8] sm:$0xff] %vm40_vm3, %v1147_v42  ;;  %v3079_v45 = vpop.f32.mrb[7].mxu0 }
 0x189   :  { %v1028_v48 = vadd.f32 %v3077_v43, %v3629_v20  ;;  %v3080_v49 = vadd.f32 %v3079_v45, %v3078_v44 }
 0x18b   :  { %v1093_v50 = vadd.f32 %v3149_v61, %v1028_v48  ;;  %v1031_v51 = vadd.f32 %v3080_v49, %v3631_v24 }
 0x18d   :  { %v1124_v53 = vadd.f32 %v3637_v28, %v1093_v50  ;;  %v1096_v54 = vadd.f32 %v3150_v63, %v1031_v51  ;;  %v1615_v55 = vld [vmem:[#allocation4 + $0x5] sm:$0x1]  ;;  %v1254_v56 = vld [vmem:[#allocation4 + $0x1] sm:$0x1]  ;;  %v1705_v57 = vld [vmem:[#allocation4 + $0x6] sm:$0x1] }
 0x18e   :  { %v1619_v58 = vpack.c.bf16 %v1615_v55, %v1615_v55  ;;  %v1258_v59 = vpack.c.bf16 %v1254_v56, %v1254_v56  ;;  %v1709_v60 = vpack.c.bf16 %v1705_v57, %v1705_v57  ;;  %v1345_v62 = vld [vmem:[#allocation4 + $0x2] sm:$0x1]  ;;  %v1795_v2 = vld [vmem:[#allocation4 + $0x7] sm:$0x1]  ;;  %v1436_v0 = vld [vmem:[#allocation4 + $0x3] sm:$0x1] }
 0x18f   :  { %vm1132_vm13 = vcmp.ge.f32.partialorder %v1124_v53, 0.0  ;;  %v1140_v7 = vmul.f32 0.2, %v1124_v53  ;;  %v1125_v1 = vadd.f32 %v3637_v28, %v1096_v54  ;;  %v1349_v61 = vpack.c.bf16 %v1345_v62, %v1345_v62  ;;  %v2331_v21 = vld [vmem:[#allocation4 + $0xd] sm:$0x1] }
 0x190   :  { %v1633_v11 = vrot.slane %v1619_v58, %v3646_v52  ;;  %v1272_v9 = vrot.slane %v1258_v59, %v3646_v52  ;;  %v1723_v12 = vrot.slane %v1709_v60, %v3646_v52  ;;  %v1799_v63 = vpack.c.bf16 %v1795_v2, %v1795_v2  ;;  %v1973_v29 = vld [vmem:[#allocation4 + $0x9] sm:$0x1]  ;;  %v2421_v30 = vld [vmem:[#allocation4 + $0xe] sm:$0x1]  ;;  %v2063_v35 = vld [vmem:[#allocation4 + $0xa] sm:$0x1] }
 0x191   :  { %v1148_v3 = vsel %vm1132_vm13, %v1124_v53, %v1140_v7  ;;  %vm1133_vm14 = vcmp.ge.f32.partialorder %v1125_v1, 0.0  ;;  %v1141_v8 = vmul.f32 0.2, %v1125_v1  ;;  %v3081_v15 = vpop.f32.mrb[8].mxu0  ;;  %v1363_v16 = vrot.slane %v1349_v61, %v3646_v52  ;;  %v3672_v44 = vld [vmem:[#allocation4 + $0xf] sm:$0x1] }
 0x192   :  { %1156 = vst.msk [vmem:[#allocation4 + $0x10] sm:$0xff] %vm40_vm3, %v1148_v3  ;;  %v3082_v13 = vpop.f32.mrb[9].mxu0  ;;  %v1661_v17 = vrot.slane %v1633_v11, %v3646_v52  ;;  %v1300_v18 = vrot.slane %v1272_v9, %v3646_v52  ;;  %v1751_v14 = vrot.slane %v1723_v12, %v3646_v52  ;;  %v1813_v19 = vrot.slane %v1799_v63, %v3646_v52 }
 0x193   :  { %v1149_v22 = vsel %vm1133_vm14, %v1125_v1, %v1141_v8  ;;  %v3083_v23 = vadd.f32 %v3082_v13, %v3081_v15  ;;  %v3084_v25 = vpop.f32.mrb[10].mxu0  ;;  %v1391_v26 = vrot.slane %v1363_v16, %v3646_v52  ;;  %v1440_v27 = vpack.c.bf16 %v1436_v0, %v1436_v0 }
 0x194   :  { %1157 = vst.msk [vmem:[#allocation4 + $0x18] sm:$0xff] %vm40_vm3, %v1149_v22  ;;  %v3085_v31 = vpop.f32.mrb[11].mxu0  ;;  %v3661_v32 = vunpack.c.l.b16 %v1661_v17  ;;  %v3663_v33 = vunpack.c.l.b16 %v1300_v18  ;;  %v1841_v34 = vrot.slane %v1813_v19, %v3646_v52  ;;  %v3667_v38 = vunpack.c.l.b16 %v1751_v14 }
 0x195   :  { %v3086_v36 = vadd.f32 %v3085_v31, %v3084_v25  ;;  %v1036_v37 = vadd.f32 %v3083_v23, %v3629_v20  ;;  %v1454_v39 = vrot.slane %v1440_v27, %v3646_v52  ;;  %v3670_v40 = vunpack.c.l.b16 %v1391_v26 }
 0x196   :  { %v2335_v41 = vpack.c.bf16 %v2331_v21, %v2331_v21  ;;  %v1977_v42 = vpack.c.bf16 %v1973_v29, %v1973_v29  ;;  %v2425_v43 = vpack.c.bf16 %v2421_v30, %v2421_v30  ;;  %v2067_v48 = vpack.c.bf16 %v2063_v35, %v2063_v35 }
 0x197   :  { %v1101_v45 = vadd.f32 %v3617_v5, %v1036_v37  ;;  %v1039_v46 = vadd.f32 %v3086_v36, %v3631_v24  ;;  %v1482_v47 = vrot.slane %v1454_v39, %v3646_v52  ;;  %v3677_v49 = vunpack.c.l.b16 %v1841_v34 }
 0x198   :  { %v3680_v50 = vrot.slane %v2335_v41, %v3646_v52  ;;  %v3683_v51 = vrot.slane %v1977_v42, %v3646_v52  ;;  %v3686_v53 = vrot.slane %v2425_v43, %v3646_v52  ;;  %v2515_v59 = vpack.c.bf16 %v3672_v44, %v3672_v44 }
 0x199   :  { %v1126_v54 = vadd.f32 %v3637_v28, %v1101_v45  ;;  %v1104_v5 = vadd.f32 %v3621_v6, %v1039_v46  ;;  %v1616_v55 = vld [vmem:[#allocation4 + $0x15] sm:$0x1]  ;;  %v1255_v56 = vld [vmem:[#allocation4 + $0x11] sm:$0x1]  ;;  %v1706_v57 = vld [vmem:[#allocation4 + $0x16] sm:$0x1]  ;;  %v3690_v58 = vunpack.c.l.b16 %v1482_v47  ;;  %v3695_v61 = vrot.slane %v2067_v48, %v3646_v52 }
 0x19a   :  { %v1620_v60 = vpack.c.bf16 %v1616_v55, %v1616_v55  ;;  %v1259_v62 = vpack.c.bf16 %v1255_v56, %v1255_v56  ;;  %v1710_v2 = vpack.c.bf16 %v1706_v57, %v1706_v57  ;;  %v1346_v7 = vld [vmem:[#allocation4 + $0x12] sm:$0x1]  ;;  %v1796_v1 = vld [vmem:[#allocation4 + $0x17] sm:$0x1]  ;;  %v1437_v8 = vld [vmem:[#allocation4 + $0x13] sm:$0x1] }
 0x19b   :  { %vm1134_vm0 = vcmp.ge.f32.partialorder %v1126_v54, 0.0  ;;  %v1142_v11 = vmul.f32 0.2, %v1126_v54  ;;  %v1127_v6 = vadd.f32 %v3637_v28, %v1104_v5  ;;  %v1350_v9 = vpack.c.bf16 %v1346_v7, %v1346_v7 }
 0x19c   :  { %v1640_v12 = vrot.slane %v1620_v60, %v3646_v52  ;;  %v1279_v63 = vrot.slane %v1259_v62, %v3646_v52  ;;  %v1730_v0 = vrot.slane %v1710_v2, %v3646_v52  ;;  %v1800_v3 = vpack.c.bf16 %v1796_v1, %v1796_v1 }
 0x19d   :  { %v1150_v15 = vsel %vm1134_vm0, %v1126_v54, %v1142_v11  ;;  %vm1135_vm2 = vcmp.ge.f32.partialorder %v1127_v6, 0.0  ;;  %v1143_v16 = vmul.f32 0.2, %v1127_v6  ;;  %v3087_v13 = vpop.f32.mrb[12].mxu0  ;;  %v1370_v17 = vrot.slane %v1350_v9, %v3646_v52 }
 0x19e   :  { %1158 = vst.msk [vmem:[#allocation4 + $0x20] sm:$0xff] %vm40_vm3, %v1150_v15  ;;  %v3088_v18 = vpop.f32.mrb[13].mxu0  ;;  %v1668_v14 = vrot.slane %v1640_v12, %v3646_v52  ;;  %v1307_v19 = vrot.slane %v1279_v63, %v3646_v52  ;;  %v1758_v21 = vrot.slane %v1730_v0, %v3646_v52  ;;  %v1820_v22 = vrot.slane %v1800_v3, %v3646_v52 }
 0x19f   :  { %v1151_v23 = vsel %vm1135_vm2, %v1127_v6, %v1143_v16  ;;  %v3089_v25 = vadd.f32 %v3088_v18, %v3087_v13  ;;  %v3090_v26 = vpop.f32.mrb[14].mxu0  ;;  %v1398_v27 = vrot.slane %v1370_v17, %v3646_v52  ;;  %v1441_v29 = vpack.c.bf16 %v1437_v8, %v1437_v8 }
 0x1a0   :  { %1159 = vst.msk [vmem:[#allocation4 + $0x28] sm:$0xff] %vm40_vm3, %v1151_v23  ;;  %v3091_v30 = vpop.f32.mrb[15].mxu0  ;;  %v1684_v31 = vunpack.c.l.b16 %v1668_v14  ;;  %v1323_v34 = vunpack.c.l.b16 %v1307_v19  ;;  %v1774_v35 = vunpack.c.l.b16 %v1758_v21  ;;  %v1848_v36 = vrot.slane %v1820_v22, %v3646_v52  ;;  %v2332_v22 = vld [vmem:[#allocation4 + $0x1d] sm:$0x1] }
 0x1a1   :  { %v1044_v37 = vadd.f32 %v3089_v25, %v3629_v20  ;;  %v3092_v39 = vadd.f32 %v3091_v30, %v3090_v26  ;;  %v1414_v41 = vunpack.c.l.b16 %v1398_v27  ;;  %v1461_v42 = vrot.slane %v1441_v29, %v3646_v52 }
 0x1a2   :  { %v1687_v43 = vrot.slane %v1684_v31, 7  ;;  %v1326_v45 = vrot.slane %v1323_v34, 7  ;;  %v1777_v46 = vrot.slane %v1774_v35, 7  ;;  %v1864_v47 = vunpack.c.l.b16 %v1848_v36 }
 0x1a3   :  { %v1109_v48 = vadd.f32 %v3615_v4, %v1044_v37  ;;  %v1047_v54 = vadd.f32 %v3092_v39, %v3631_v24  ;;  %v1417_v5 = vrot.slane %v1414_v41, 7  ;;  %v1489_v55 = vrot.slane %v1461_v42, %v3646_v52 }
 0x1a4   :  { %v1688_v56 = vsel %vm1235_vm15, %v1687_v43, %v3661_v32  ;;  %v1327_v20 = vsel %vm1235_vm15, %v1326_v45, %v3663_v33  ;;  %v1867_v57 = vrot.slane %v1864_v47, 7  ;;  %v2377_v60 = vrot.slane %v3680_v50, %v3646_v52 }
 0x1a5   :  { %v1128_v62 = vadd.f32 %v3637_v28, %v1109_v48  ;;  %v1112_v2 = vadd.f32 %v3619_v10, %v1047_v54  ;;  %v1617_v4 = vld [vmem:[#allocation4 + $0x25] sm:$0x1]  ;;  %v1256_v24 = vld [vmem:[#allocation4 + $0x21] sm:$0x1]  ;;  %v1707_v7 = vld [vmem:[#allocation4 + $0x26] sm:$0x1]  ;;  %v1778_v1 = vsel %vm1235_vm15, %v1777_v46, %v3667_v38  ;;  %v1418_v32 = vsel %vm1235_vm15, %v1417_v5, %v3670_v40 }
 0x1a6   :  { %v1621_v11 = vpack.c.bf16 %v1617_v4, %v1617_v4  ;;  %v1260_v33 = vpack.c.bf16 %v1256_v24, %v1256_v24  ;;  %v1711_v6 = vpack.c.bf16 %v1707_v7, %v1707_v7  ;;  %v1347_v9 = vld [vmem:[#allocation4 + $0x22] sm:$0x1]  ;;  %v1797_v12 = vld [vmem:[#allocation4 + $0x27] sm:$0x1]  ;;  %v1505_v63 = vunpack.c.l.b16 %v1489_v55  ;;  %v1438_v13 = vld [vmem:[#allocation4 + $0x23] sm:$0x1] }
 0x1a7   :  { %vm1136_vm5 = vcmp.ge.f32.partialorder %v1128_v62, 0.0  ;;  %v1144_v0 = vmul.f32 0.2, %v1128_v62  ;;  %v1129_v10 = vadd.f32 %v3637_v28, %v1112_v2  ;;  %v1351_v3 = vpack.c.bf16 %v1347_v9, %v1347_v9  ;;  %v2333_v35 = vld [vmem:[#allocation4 + $0x2d] sm:$0x1] }
 0x1a8   :  { %v1647_v8 = vrot.slane %v1621_v11, %v3646_v52  ;;  %v1286_v15 = vrot.slane %v1260_v33, %v3646_v52  ;;  %v1737_v38 = vrot.slane %v1711_v6, %v3646_v52  ;;  %v1801_v16 = vpack.c.bf16 %v1797_v12, %v1797_v12 }
 0x1a9   :  { %v1152_v40 = vsel %vm1136_vm5, %v1128_v62, %v1144_v0  ;;  %vm1137_vm6 = vcmp.ge.f32.partialorder %v1129_v10, 0.0  ;;  %v1145_v17 = vmul.f32 0.2, %v1129_v10  ;;  %v1377_v18 = vrot.slane %v1351_v3, %v3646_v52 }
 0x1aa   :  { %1160 = vst.msk [vmem:[#allocation4 + $0x30] sm:$0xff] %vm40_vm3, %v1152_v40  ;;  %v1675_v14 = vrot.slane %v1647_v8, %v3646_v52  ;;  %v1314_v28 = vrot.slane %v1286_v15, %v3646_v52  ;;  %v1765_v19 = vrot.slane %v1737_v38, %v3646_v52  ;;  %v1827_v21 = vrot.slane %v1801_v16, %v3646_v52 }
 0x1ab   :  { %v1153_v23 = vsel %vm1137_vm6, %v1129_v10, %v1145_v17  ;;  %v1405_v25 = vrot.slane %v1377_v18, %v3646_v52  ;;  %v1442_v26 = vpack.c.bf16 %v1438_v13, %v1438_v13  ;;  %v1508_v27 = vrot.slane %v1505_v63, 7 }
 0x1ac   :  { %1161 = vst.msk [vmem:[#allocation4 + $0x38] sm:$0xff] %vm40_vm3, %v1153_v23  ;;  %v1685_v29 = vunpack.c.l.b16 %v1675_v14  ;;  %v1324_v30 = vunpack.c.l.b16 %v1314_v28  ;;  %v1775_v31 = vunpack.c.l.b16 %v1765_v19  ;;  %v1855_v34 = vrot.slane %v1827_v21, %v3646_v52  ;;  %v3256_v23 = vld [vmem:[%s4052_s4 + $0x40] sm:$0xff]  }
 0x1ad   :  { %v1415_v36 = vunpack.c.l.b16 %v1405_v25  ;;  %v1868_v37 = vsel %vm1235_vm15, %v1867_v57, %v3677_v49  ;;  %v1468_v39 = vrot.slane %v1442_v26, %v3646_v52  ;;  %v2336_v41 = vpack.c.bf16 %v2332_v22, %v2332_v22  ;;  %3099 = vmatprep.subr.bf16.mxu1 %v3256_v23 }
 0x1ae   :  { %v1689_v42 = vrot.slane %v1685_v29, 6  ;;  %v1328_v43 = vrot.slane %v1324_v30, 6  ;;  %v1779_v45 = vrot.slane %v1775_v31, 6  ;;  %v1865_v46 = vunpack.c.l.b16 %v1855_v34  ;;  %v3257_v30 = vld [vmem:[%s4052_s4] sm:$0xff]  }
 0x1af   :  { %v1419_v47 = vrot.slane %v1415_v36, 6  ;;  %v1496_v48 = vrot.slane %v1468_v39, %v3646_v52  ;;  %v2337_v54 = vpack.c.bf16 %v2333_v35, %v2333_v35  ;;  %v2356_v5 = vrot.slane %v2336_v41, %v3646_v52  ;;  %3100 = vmatpush3.bf16.msra.mxu1 %v3257_v30 }
 0x1b0   :  { %v3746_v55 = vsel %vm1238_vm4, %v1689_v42, %v1688_v56  ;;  %v3749_v62 = vsel %vm1238_vm4, %v1328_v43, %v1327_v20  ;;  %v1869_v49 = vrot.slane %v1865_v46, 6  ;;  %v1509_v57 = vsel %vm1235_vm15, %v1508_v27, %v3690_v58 }
 0x1b1   :  { %vm1241_vm3 = vcmask 1043459   ;;  %v1618_v2 = vld [vmem:[#allocation4 + $0x35] sm:$0x1]  ;;  %v1257_v4 = vld [vmem:[#allocation4 + $0x31] sm:$0x1]  ;;  %v1780_v7 = vsel %vm1238_vm4, %v1779_v45, %v1778_v1  ;;  %v3755_v11 = vsel %vm1238_vm4, %v1419_v47, %v1418_v32  ;;  %v1506_v33 = vunpack.c.l.b16 %v1496_v48  ;;  %v3259_v45 = vld [vmem:[%s4052_s4 + $0x80] sm:$0xff]  }
 0x1b2   :  { %v1708_v24 = vld [vmem:[#allocation4 + $0x36] sm:$0x1]  ;;  %v2363_v56 = vrot.slane %v2337_v54, %v3646_v52  ;;  %v1622_v6 = vpack.c.bf16 %v1618_v2, %v1618_v2  ;;  %v1261_v9 = vpack.c.bf16 %v1257_v4, %v1257_v4  ;;  %v1348_v12 = vld [vmem:[#allocation4 + $0x32] sm:$0x1]  ;;  %v1798_v63 = vld [vmem:[#allocation4 + $0x37] sm:$0x1]  ;;  %v2384_v58 = vrot.slane %v2356_v5, %v3646_v52 }
 0x1b3   :  { %v1712_v20 = vpack.c.bf16 %v1708_v24, %v1708_v24  ;;  %v1439_v0 = vld [vmem:[#allocation4 + $0x33] sm:$0x1]  ;;  %v1352_v10 = vpack.c.bf16 %v1348_v12, %v1348_v12  ;;  %v1802_v3 = vpack.c.bf16 %v1798_v63, %v1798_v63  ;;  %v1870_v8 = vsel %vm1238_vm4, %v1869_v49, %v1868_v37  ;;  %v2334_v1 = vld [vmem:[#allocation4 + $0x3d] sm:$0x1]  ;;  %v3258_v37 = vld [vmem:[%s4052_s4 + $0xc0] sm:$0xff]  }
 0x1b4   :  { %v1443_v15 = vpack.c.bf16 %v1439_v0, %v1439_v0  ;;  %v1654_v32 = vrot.slane %v1622_v6, %v3646_v52  ;;  %v1293_v38 = vrot.slane %v1261_v9, %v3646_v52  ;;  %v2338_v13 = vpack.c.bf16 %v2334_v1, %v2334_v1  ;;  %3121 = vmatprep.subr.bf16.mxu0 %v3258_v37  ;;  %v3260_v5 = vld [vmem:[%s4052_s4 + $0x48] sm:$0xff]  }
 0x1b5   :  { %v1744_v16 = vrot.slane %v1712_v20, %v3646_v52  ;;  %v1384_v40 = vrot.slane %v1352_v10, %v3646_v52  ;;  %v1834_v17 = vrot.slane %v1802_v3, %v3646_v52  ;;  %v1510_v14 = vrot.slane %v1506_v33, 6  ;;  %3122 = vmatpush3.bf16.msra.mxu0 %v3259_v45  ;;  %v1974_v20 = vld [vmem:[#allocation4 + $0x19] sm:$0x1]  ;;  %v1975_v12 = vld [vmem:[#allocation4 + $0x29] sm:$0x1]  ;;  %3101 = vmatprep.subr.bf16.mxu1 %v3260_v5 }
 0x1b6   :  { %v1475_v18 = vrot.slane %v1443_v15, %v3646_v52  ;;  %v1682_v28 = vrot.slane %v1654_v32, %v3646_v52  ;;  %v1321_v19 = vrot.slane %v1293_v38, %v3646_v52  ;;  %v2370_v22 = vrot.slane %v2338_v13, %v3646_v52  ;;  %v1976_v3 = vld [vmem:[#allocation4 + $0x39] sm:$0x1]  ;;  %v2422_v32 = vld [vmem:[#allocation4 + $0x1e] sm:$0x1]  ;;  %v3263_v38 = vld [vmem:[%s4052_s4 + $0x88] sm:$0xff]  }
 0x1b7   :  { %v1772_v21 = vrot.slane %v1744_v16, %v3646_v52  ;;  %v1412_v25 = vrot.slane %v1384_v40, %v3646_v52  ;;  %v1862_v26 = vrot.slane %v1834_v17, %v3646_v52  ;;  %v2391_v29 = vrot.slane %v2363_v56, %v3646_v52  ;;  %v2423_v17 = vld [vmem:[#allocation4 + $0x2e] sm:$0x1]  ;;  %v2065_v5 = vld [vmem:[#allocation4 + $0x2a] sm:$0x1] }
 0x1b8   :  { %v1503_v27 = vrot.slane %v1475_v18, %v3646_v52  ;;  %v1686_v31 = vunpack.c.l.b16 %v1682_v28  ;;  %v1325_v34 = vunpack.c.l.b16 %v1321_v19  ;;  %v2398_v36 = vrot.slane %v2370_v22, %v3646_v52 }
 0x1b9   :  { %v1776_v35 = vunpack.c.l.b16 %v1772_v21  ;;  %v1416_v39 = vunpack.c.l.b16 %v1412_v25  ;;  %v1866_v41 = vunpack.c.l.b16 %v1862_v26  ;;  %v1511_v43 = vsel %vm1238_vm4, %v1510_v14, %v1509_v57  ;;  %v3261_v57 = vld [vmem:[%s4052_s4 + $0x8] sm:$0xff]   ;;  %v3265_v21 = vld [vmem:[%s4052_s4 + $0x10] sm:$0xff]   ;;  %v2424_v25 = vld [vmem:[#allocation4 + $0x3e] sm:$0x1] }
 0x1ba   :  { %v1507_v42 = vunpack.c.l.b16 %v1503_v27  ;;  %v1691_v46 = vrot.slane %v1686_v31, 5  ;;  %v1330_v47 = vrot.slane %v1325_v34, 5  ;;  %v2400_v54 = vunpack.c.l.b16 %v2384_v58  ;;  %3102 = vmatpush3.bf16.msra.mxu1 %v3261_v57  ;;  %v3266_v26 = vld [vmem:[%s4052_s4 + $0xd0] sm:$0xff]  }
 0x1bb   :  { %v1781_v48 = vrot.slane %v1776_v35, 5  ;;  %v1421_v49 = vrot.slane %v1416_v39, 5  ;;  %v1871_v2 = vrot.slane %v1866_v41, 5  ;;  %v2401_v24 = vunpack.c.l.b16 %v2391_v29  ;;  %v3267_v34 = vld [vmem:[%s4052_s4 + $0x90] sm:$0xff]   ;;  %v2064_v41 = vld [vmem:[#allocation4 + $0x1a] sm:$0x1] }
 0x1bc   :  { %v1512_v4 = vrot.slane %v1507_v42, 5  ;;  %v1692_v33 = vsel %vm1241_vm3, %v1691_v46, %v3746_v55  ;;  %v1331_v56 = vsel %vm1241_vm3, %v1330_v47, %v3749_v62  ;;  %v2402_v9 = vunpack.c.l.b16 %v2398_v36  ;;  %v3262_v55 = vld [vmem:[%s4052_s4 + $0xc8] sm:$0xff]  }
 0x1bd   :  { %v1782_v6 = vsel %vm1241_vm3, %v1781_v48, %v1780_v7  ;;  %v1693_v63 = vpack.c.b16 %v1692_v33, %v1692_v33  ;;  %v1332_v0 = vpack.c.b16 %v1331_v56, %v1331_v56  ;;  %v1422_v10 = vsel %vm1241_vm3, %v1421_v49, %v3755_v11  ;;  %3123 = vmatprep.subr.bf16.mxu0 %v3262_v55  ;;  %v3268_v49 = vld [vmem:[%s4052_s4 + $0x58] sm:$0xff]  }
 0x1be   :  { %v1783_v58 = vpack.c.b16 %v1782_v6, %v1782_v6  ;;  %v1423_v15 = vpack.c.b16 %v1422_v10, %v1422_v10  ;;  %v1872_v62 = vsel %vm1241_vm3, %v1871_v2, %v1870_v8  ;;  %v1513_v7 = vsel %vm1241_vm3, %v1512_v4, %v1511_v43  ;;  %v3264_v8 = vld [vmem:[%s4052_s4 + $0x50] sm:$0xff]   ;;  %3124 = vmatpush3.bf16.msra.mxu0 %v3263_v38  ;;  %v3269_v2 = vld [vmem:[%s4052_s4 + $0x18] sm:$0xff]  }
 0x1bf   :  { %v2403_v1 = vrot.slane %v2400_v54, 7  ;;  %v1700_v16 = vrot.slane %v1693_v63, %v3646_v52  ;;  %v1339_v11 = vrot.slane %v1332_v0, %v3646_v52  ;;  %v1873_v13 = vpack.c.b16 %v1872_v62, %v1872_v62  ;;  %3103 = vmatprep.subr.bf16.mxu1 %v3264_v8  ;;  %3125 = vmatprep.subr.bf16.mxu0 %v3266_v26  ;;  %v2066_v56 = vld [vmem:[#allocation4 + $0x3a] sm:$0x1] }
 0x1c0   :  { %v2399_v40 = vunpack.c.l.b16 %v2377_v60  ;;  %v1790_v18 = vrot.slane %v1783_v58, %v3646_v52  ;;  %v1430_v14 = vrot.slane %v1423_v15, %v3646_v52  ;;  %v1514_v28 = vpack.c.b16 %v1513_v7, %v1513_v7  ;;  %3104 = vmatpush3.bf16.msra.mxu1 %v3265_v21  ;;  %v3270_v6 = vld [vmem:[%s4052_s4 + $0xd8] sm:$0xff]   ;;  %v2513_v21 = vld [vmem:[#allocation4 + $0x2f] sm:$0x1] }
 0x1c1   :  { %v2405_v19 = vrot.slane %v2401_v24, 6  ;;  %1701 = vrot.lane.b32.xlu1 %v1700_v16, %s3294_s28  ;;  %1340 = vrot.lane.b32.xlu0 %v1339_v11, %s3294_s28  ;;  %v2407_v60 = vrot.slane %v2402_v9, 5  ;;  %v1978_v22 = vpack.c.bf16 %v1974_v20, %v1974_v20  ;;  %v1979_v23 = vpack.c.bf16 %v1975_v12, %v1975_v12  ;;  %v3271_v0 = vld [vmem:[%s4052_s4 + $0x98] sm:$0xff]  }
 0x1c2   :  { %v2404_v50 = vsel %vm1235_vm15, %v2403_v1, %v2399_v40  ;;  %v1880_v27 = vrot.slane %v1873_v13, %v3646_v52  ;;  %v1980_v30 = vpack.c.bf16 %v1976_v3, %v1976_v3  ;;  %v2019_v31 = vrot.slane %v3683_v51, %v3646_v52  ;;  %3126 = vmatpush3.bf16.msra.mxu0 %v3267_v34  ;;  %v2512_v11 = vld [vmem:[#allocation4 + $0x1f] sm:$0x1]  ;;  %v3273_v34 = vld [vmem:[%s4052_s4 + $0x20] sm:$0xff]  }
 0x1c3   :  { %v2406_v29 = vsel %vm1238_vm4, %v2405_v19, %v2404_v50  ;;  %v1998_v36 = vrot.slane %v1978_v22, %v3646_v52  ;;  %v2005_v37 = vrot.slane %v1979_v23, %v3646_v52  ;;  %v2426_v39 = vpack.c.bf16 %v2422_v32, %v2422_v32  ;;  %3105 = vmatprep.subr.bf16.mxu1 %v3268_v49  ;;  %v2514_v50 = vld [vmem:[#allocation4 + $0x3f] sm:$0x1] }
 0x1c4   :  { %v2408_v35 = vsel %vm1241_vm3, %v2407_v60, %v2406_v29  ;;  %v1521_v42 = vrot.slane %v1514_v28, %v3646_v52  ;;  %v2012_v45 = vrot.slane %v1980_v30, %v3646_v52  ;;  %v2427_v51 = vpack.c.bf16 %v2423_v17, %v2423_v17  ;;  %3106 = vmatpush3.bf16.msra.mxu1 %v3269_v2  ;;  %v2155_v2 = vld [vmem:[#allocation4 + $0x2b] sm:$0x1] }
 0x1c5   :  { %v2409_v43 = vpack.c.b16 %v2408_v35, %v2408_v35  ;;  %1791 = vrot.lane.b32.xlu1 %v1790_v18, %s3295_s29  ;;  %1431 = vrot.lane.b32.xlu0 %v1430_v14, %s3295_s29  ;;  %v2026_v46 = vrot.slane %v1998_v36, %v3646_v52  ;;  %v2033_v47 = vrot.slane %v2005_v37, %v3646_v52  ;;  %v2041_v48 = vunpack.c.l.b16 %v2019_v31  ;;  %v3272_v31 = vld [vmem:[%s4052_s4 + $0x60] sm:$0xff]  }
 0x1c6   :  { %v2428_v54 = vpack.c.bf16 %v2424_v25, %v2424_v25  ;;  %v2040_v24 = vrot.slane %v2012_v45, %v3646_v52  ;;  %v2446_v57 = vrot.slane %v2426_v39, %v3646_v52  ;;  %v2453_v33 = vrot.slane %v2427_v51, %v3646_v52  ;;  %3127 = vmatprep.subr.bf16.mxu0 %v3270_v6  ;;  %v3274_v35 = vld [vmem:[%s4052_s4 + $0xe0] sm:$0xff]  }
 0x1c7   :  { %v2416_v4 = vrot.slane %v2409_v43, %v3646_v52  ;;  %v2042_v9 = vunpack.c.l.b16 %v2026_v46  ;;  %v2043_v20 = vunpack.c.l.b16 %v2033_v47  ;;  %v2467_v63 = vrot.slane %v3686_v53, %v3646_v52  ;;  %3128 = vmatpush3.bf16.msra.mxu0 %v3271_v0  ;;  %v2154_v47 = vld [vmem:[#allocation4 + $0x1b] sm:$0x1]  ;;  %3107 = vmatprep.subr.bf16.mxu1 %v3272_v31 }
 0x1c8   :  { %v2460_v12 = vrot.slane %v2428_v54, %v3646_v52  ;;  %v2044_v58 = vunpack.c.l.b16 %v2040_v24  ;;  %v2474_v10 = vrot.slane %v2446_v57, %v3646_v52  ;;  %v2481_v3 = vrot.slane %v2453_v33, %v3646_v52  ;;  %3129 = vmatprep.subr.bf16.mxu0 %v3274_v35  ;;  %3108 = vmatpush3.bf16.msra.mxu1 %v3273_v34 }
 0x1c9   :  { %v2068_v55 = vpack.c.bf16 %v2064_v41, %v2064_v41  ;;  %1881 = vrot.lane.b32.xlu1 %v1880_v27, %s3296_s30  ;;  %1522 = vrot.lane.b32.xlu0 %v1521_v42, %s3296_s30  ;;  %v2045_v15 = vrot.slane %v2042_v9, 7  ;;  %v2047_v62 = vrot.slane %v2043_v20, 6  ;;  %v2489_v7 = vunpack.c.l.b16 %v2467_v63  ;;  %v2153_v41 = vld [vmem:[#allocation4 + $0xb] sm:$0x1]  ;;  %v3275_v42 = vld [vmem:[%s4052_s4 + $0xa0] sm:$0xff]  }
 0x1ca   :  { %v2488_v53 = vrot.slane %v2460_v12, %v3646_v52  ;;  %v2049_v1 = vrot.slane %v2044_v58, 5  ;;  %v2490_v32 = vunpack.c.l.b16 %v2474_v10  ;;  %v2491_v38 = vunpack.c.l.b16 %v2481_v3 }
 0x1cb   :  { %v2069_v16 = vpack.c.bf16 %v2065_v5, %v2065_v5  ;;  %v2046_v13 = vsel %vm1235_vm15, %v2045_v15, %v2041_v48  ;;  %v2070_v17 = vpack.c.bf16 %v2066_v56, %v2066_v56  ;;  %v2088_v8 = vrot.slane %v2068_v55, %v3646_v52  ;;  %3130 = vmatpush3.bf16.msra.mxu0 %v3275_v42  ;;  %v2156_v56 = vld [vmem:[#allocation4 + $0x3b] sm:$0x1] }
 0x1cc   :  { %v2492_v40 = vunpack.c.l.b16 %v2488_v53  ;;  %v2048_v18 = vsel %vm1238_vm4, %v2047_v62, %v2046_v13  ;;  %v2493_v14 = vrot.slane %v2490_v32, 7  ;;  %v2495_v28 = vrot.slane %v2491_v38, 6 }
 0x1cd   :  { %v2095_v19 = vrot.slane %v2069_v16, %v3646_v52  ;;  %2417 = vrot.lane.b32.xlu1 %v2416_v4, %s3294_s28  ;;  %v2050_v60 = vsel %vm1241_vm3, %v2049_v1, %v2048_v18  ;;  %v2102_v23 = vrot.slane %v2070_v17, %v3646_v52  ;;  %v2109_v25 = vrot.slane %v3695_v61, %v3646_v52  ;;  %v1529_v18 = vld [vmem:[#allocation4 + $0x24] sm:$0x1] }
 0x1ce   :  { %v2497_v22 = vrot.slane %v2492_v40, 5  ;;  %v2051_v26 = vpack.c.b16 %v2050_v60, %v2050_v60  ;;  %v2494_v27 = vsel %vm1235_vm15, %v2493_v14, %v2489_v7  ;;  %v2116_v29 = vrot.slane %v2088_v8, %v3646_v52  ;;  %v1528_v8 = vld [vmem:[#allocation4 + $0x14] sm:$0x1] }
 0x1cf   :  { %v2123_v30 = vrot.slane %v2095_v19, %v3646_v52  ;;  %v2496_v61 = vsel %vm1238_vm4, %v2495_v28, %v2494_v27  ;;  %v2130_v36 = vrot.slane %v2102_v23, %v3646_v52  ;;  %v2131_v37 = vunpack.c.l.b16 %v2109_v25  ;;  %v3277_v27 = vld [vmem:[%s4052_s4 + $0x28] sm:$0xff]  }
 0x1d0   :  { %v2516_v39 = vpack.c.bf16 %v2512_v11, %v2512_v11  ;;  %v2058_v43 = vrot.slane %v2051_v26, %v3646_v52  ;;  %v2498_v45 = vsel %vm1241_vm3, %v2497_v22, %v2496_v61  ;;  %v2132_v51 = vunpack.c.l.b16 %v2116_v29  ;;  %v3276_v26 = vld [vmem:[%s4052_s4 + $0x68] sm:$0xff]   ;;  %v1527_v61 = vld [vmem:[#allocation4 + $0x4] sm:$0x1] }
 0x1d1   :  { %v2133_v46 = vunpack.c.l.b16 %v2123_v30  ;;  %v2499_v48 = vpack.c.b16 %v2498_v45, %v2498_v45  ;;  %v2134_v54 = vunpack.c.l.b16 %v2130_v36  ;;  %v2517_v5 = vpack.c.bf16 %v2513_v21, %v2513_v21  ;;  %v3278_v29 = vld [vmem:[%s4052_s4 + $0xe8] sm:$0xff]   ;;  %3109 = vmatprep.subr.bf16.mxu1 %v3276_v26  ;;  %v3282_v45 = vld [vmem:[%s4052_s4 + $0xf0] sm:$0xff]  }
 0x1d2   :  { %v2518_v49 = vpack.c.bf16 %v2514_v50, %v2514_v50  ;;  %2059 = vrot.lane.b32.xlu0 %v2058_v43, %s3294_s28  ;;  %v2135_v4 = vrot.slane %v2132_v51, 7  ;;  %v2529_v57 = vrot.slane %v2515_v59, %v3646_v52  ;;  %v2536_v33 = vrot.slane %v2516_v39, %v3646_v52  ;;  %v1530_v50 = vld [vmem:[#allocation4 + $0x34] sm:$0x1]  ;;  %v3279_v36 = vld [vmem:[%s4052_s4 + $0xa8] sm:$0xff]   ;;  %3131 = vmatprep.subr.bf16.mxu0 %v3278_v29 }
 0x1d3   :  { %v2137_v24 = vrot.slane %v2133_v46, 6  ;;  %v2506_v6 = vrot.slane %v2499_v48, %v3646_v52  ;;  %v2139_v9 = vrot.slane %v2134_v54, 5  ;;  %v2543_v20 = vrot.slane %v2517_v5, %v3646_v52  ;;  %v1163_v54 = vld [vmem:[#allocation4 + $0x10] sm:$0x1]  ;;  %3110 = vmatpush3.bf16.msra.mxu1 %v3277_v27  ;;  %3132 = vmatpush3.bf16.msra.mxu0 %v3279_v36 }
 0x1d4   :  { %v2550_v12 = vrot.slane %v2518_v49, %v3646_v52  ;;  %v2136_v63 = vsel %vm1235_vm15, %v2135_v4, %v2131_v37  ;;  %v2557_v0 = vrot.slane %v2529_v57, %v3646_v52  ;;  %v2564_v58 = vrot.slane %v2536_v33, %v3646_v52  ;;  %v3280_v37 = vld [vmem:[%s4052_s4 + $0x70] sm:$0xff]   ;;  %v1164_v57 = vld [vmem:[#allocation4 + $0x20] sm:$0x1]  ;;  %3133 = vmatprep.subr.bf16.mxu0 %v3282_v45 }
 0x1d5   :  { %v2157_v10 = vpack.c.bf16 %v2153_v41, %v2153_v41  ;;  %2507 = vrot.lane.b32.xlu1 %v2506_v6, %s3295_s29  ;;  %v2138_v44 = vsel %vm1238_vm4, %v2137_v24, %v2136_v63  ;;  %v2571_v59 = vrot.slane %v2543_v20, %v3646_v52  ;;  %v2158_v55 = vpack.c.bf16 %v2154_v47, %v2154_v47  ;;  %v3281_v5 = vld [vmem:[%s4052_s4 + $0x30] sm:$0xff]  }
 0x1d6   :  { %v2578_v3 = vrot.slane %v2550_v12, %v3646_v52  ;;  %v2140_v15 = vsel %vm1241_vm3, %v2139_v9, %v2138_v44  ;;  %v2579_v62 = vunpack.c.l.b16 %v2557_v0  ;;  %v2580_v53 = vunpack.c.l.b16 %v2564_v58  ;;  %3111 = vmatprep.subr.bf16.mxu1 %v3280_v37  ;;  %v3283_v33 = vld [vmem:[%s4052_s4 + $0xb0] sm:$0xff]   ;;  %v3286_v0 = vld [vmem:[%s4052_s4 + $0xf8] sm:$0xff]  }
 0x1d7   :  { %v2159_v7 = vpack.c.bf16 %v2155_v2, %v2155_v2  ;;  %v2141_v1 = vpack.c.b16 %v2140_v15, %v2140_v15  ;;  %v2581_v32 = vunpack.c.l.b16 %v2571_v59  ;;  %v2160_v16 = vpack.c.bf16 %v2156_v56, %v2156_v56  ;;  %v3284_v56 = vld [vmem:[%s4052_s4 + $0x78] sm:$0xff]   ;;  %v1165_v63 = vld [vmem:[#allocation4 + $0x30] sm:$0x1]  ;;  %3112 = vmatpush3.bf16.msra.mxu1 %v3281_v5  ;;  %3134 = vmatpush3.bf16.msra.mxu0 %v3283_v33 }
 0x1d8   :  { %v2582_v38 = vunpack.c.l.b16 %v2578_v3  ;;  %v2583_v11 = vrot.slane %v2580_v53, 7  ;;  %v2171_v13 = vrot.slane %v2157_v10, %v3646_v52  ;;  %v2178_v40 = vrot.slane %v2158_v55, %v3646_v52  ;;  %v3285_v53 = vld [vmem:[%s4052_s4 + $0x38] sm:$0xff]   ;;  %3113 = vmatprep.subr.bf16.mxu1 %v3284_v56  ;;  %3135 = vmatprep.subr.bf16.mxu0 %v3286_v0 }
 0x1d9   :  { %v2185_v17 = vrot.slane %v2159_v7, %v3646_v52  ;;  %v2148_v14 = vrot.slane %v2141_v1, %v3646_v52  ;;  %v2585_v28 = vrot.slane %v2581_v32, 6  ;;  %v2192_v21 = vrot.slane %v2160_v16, %v3646_v52  ;;  %v1162_v16 = vld [vmem:[#allocation4] sm:$0x1] }
 0x1da   :  { %v2587_v19 = vrot.slane %v2582_v38, 5  ;;  %v2584_v60 = vsel %vm1235_vm15, %v2583_v11, %v2579_v62  ;;  %v2199_v22 = vrot.slane %v2171_v13, %v3646_v52  ;;  %v2206_v23 = vrot.slane %v2178_v40, %v3646_v52  ;;  %v3287_v11 = vld [vmem:[%s4052_s4 + $0xb8] sm:$0xff]  }
 0x1db   :  { %v2213_v25 = vrot.slane %v2185_v17, %v3646_v52  ;;  %2149 = vrot.lane.b32.xlu0 %v2148_v14, %s3295_s29  ;;  %v2586_v30 = vsel %vm1238_vm4, %v2585_v28, %v2584_v60  ;;  %v2220_v31 = vrot.slane %v2192_v21, %v3646_v52  ;;  %v1532_v34 = vpack.c.bf16 %v1528_v8, %v1528_v8  ;;  %v2243_v21 = vld [vmem:[#allocation4 + $0xc] sm:$0x1] }
 0x1dc   :  { %v1533_v35 = vpack.c.bf16 %v1529_v18, %v1529_v18  ;;  %v2588_v39 = vsel %vm1241_vm3, %v2587_v19, %v2586_v30  ;;  %v2221_v41 = vunpack.c.l.b16 %v2199_v22  ;;  %v2222_v42 = vunpack.c.l.b16 %v2206_v23  ;;  %3114 = vmatpush3.bf16.msra.mxu1 %v3285_v53  ;;  %v2245_v30 = vld [vmem:[#allocation4 + $0x2c] sm:$0x1]  ;;  %3136 = vmatpush3.bf16.msra.mxu0 %v3287_v11 }
 0x1dd   :  { %v2223_v43 = vunpack.c.l.b16 %v2213_v25  ;;  %v2589_v51 = vpack.c.b16 %v2588_v39, %v2588_v39  ;;  %v2224_v46 = vunpack.c.l.b16 %v2220_v31  ;;  %v1534_v47 = vpack.c.bf16 %v1530_v50, %v1530_v50  ;;  %v2244_v25 = vld [vmem:[#allocation4 + $0x1c] sm:$0x1] }
 0x1de   :  { %v1552_v48 = vrot.slane %v1532_v34, %v3646_v52  ;;  %v2225_v49 = vrot.slane %v2222_v42, 7  ;;  %v1559_v4 = vrot.slane %v1533_v35, %v3646_v52  ;;  %v1531_v24 = vpack.c.bf16 %v1527_v61, %v1527_v61  ;;  %v2246_v61 = vld [vmem:[#allocation4 + $0x3c] sm:$0x1] }
 0x1df   :  { %v2227_v2 = vrot.slane %v2223_v43, 6  ;;  %v2596_v6 = vrot.slane %v2589_v51, %v3646_v52  ;;  %v2229_v9 = vrot.slane %v2224_v46, 5  ;;  %v1566_v20 = vrot.slane %v1534_v47, %v3646_v52  ;;  %v1885_v47 = vld [vmem:[#allocation4 + $0x8] sm:$0x1] }
 0x1e0   :  { %v1580_v12 = vrot.slane %v1552_v48, %v3646_v52  ;;  %v2226_v58 = vsel %vm1235_vm15, %v2225_v49, %v2221_v41  ;;  %v1587_v10 = vrot.slane %v1559_v4, %v3646_v52  ;;  %v1545_v44 = vrot.slane %v1531_v24, %v3646_v52  ;;  %v1886_v48 = vld [vmem:[#allocation4 + $0x18] sm:$0x1]  ;;  %v1887_v4 = vld [vmem:[#allocation4 + $0x28] sm:$0x1] }
 0x1e1   :  { %v1167_v59 = vpack.c.bf16 %v1163_v54, %v1163_v54  ;;  %2597 = vrot.lane.b32.xlu1 %v2596_v6, %s3296_s30  ;;  %v2228_v3 = vsel %vm1238_vm4, %v2227_v2, %v2226_v58  ;;  %v1594_v55 = vrot.slane %v1566_v20, %v3646_v52  ;;  %v1168_v62 = vpack.c.bf16 %v1164_v57, %v1164_v57  ;;  %v1888_v6 = vld [vmem:[#allocation4 + $0x38] sm:$0x1] }
 0x1e2   :  { %v1596_v15 = vunpack.c.l.b16 %v1580_v12  ;;  %v2230_v7 = vsel %vm1241_vm3, %v2229_v9, %v2228_v3  ;;  %v1597_v1 = vunpack.c.l.b16 %v1587_v10  ;;  %v1573_v32 = vrot.slane %v1545_v44, %v3646_v52 }
 0x1e3   :  { %v1169_v38 = vpack.c.bf16 %v1165_v63, %v1165_v63  ;;  %v2231_v13 = vpack.c.b16 %v2230_v7, %v2230_v7  ;;  %v1598_v40 = vunpack.c.l.b16 %v1594_v55  ;;  %v1187_v8 = vrot.slane %v1167_v59, %v3646_v52 }
 0x1e4   :  { %v1599_v17 = vrot.slane %v1596_v15, 7  ;;  %v1601_v18 = vrot.slane %v1597_v1, 6  ;;  %v1595_v14 = vunpack.c.l.b16 %v1573_v32  ;;  %v1194_v28 = vrot.slane %v1168_v62, %v3646_v52 }
 0x1e5   :  { %v1201_v19 = vrot.slane %v1169_v38, %v3646_v52  ;;  %v2238_v50 = vrot.slane %v2231_v13, %v3646_v52  ;;  %v1603_v60 = vrot.slane %v1598_v40, 5  ;;  %v1215_v22 = vrot.slane %v1187_v8, %v3646_v52 }
 0x1e6   :  { %v1166_v23 = vpack.c.bf16 %v1162_v16, %v1162_v16  ;;  %v1600_v26 = vsel %vm1235_vm15, %v1599_v17, %v1595_v14  ;;  %v1222_v27 = vrot.slane %v1194_v28, %v3646_v52  ;;  %v2247_v36 = vpack.c.bf16 %v2243_v21, %v2243_v21 }
 0x1e7   :  { %v1229_v29 = vrot.slane %v1201_v19, %v3646_v52  ;;  %2239 = vrot.lane.b32.xlu0 %v2238_v50, %s3296_s30  ;;  %v1602_v31 = vsel %vm1238_vm4, %v1601_v18, %v1600_v26  ;;  %v1231_v34 = vunpack.c.l.b16 %v1215_v22  ;;  %v2248_v42 = vpack.c.bf16 %v2244_v25, %v2244_v25 }
 0x1e8   :  { %v1180_v35 = vrot.slane %v1166_v23, %v3646_v52  ;;  %v1604_v37 = vsel %vm1241_vm3, %v1603_v60, %v1602_v31  ;;  %v1232_v39 = vunpack.c.l.b16 %v1222_v27  ;;  %v2249_v46 = vpack.c.bf16 %v2245_v30, %v2245_v30 }
 0x1e9   :  { %v1233_v41 = vunpack.c.l.b16 %v1229_v29  ;;  %v1605_v43 = vpack.c.b16 %v1604_v37, %v1604_v37  ;;  %v1234_v45 = vrot.slane %v1231_v34, 7  ;;  %v2250_v49 = vpack.c.bf16 %v2246_v61, %v2246_v61 }
 0x1ea   :  { %v1208_v51 = vrot.slane %v1180_v35, %v3646_v52  ;;  %v1237_v54 = vrot.slane %v1232_v39, 6  ;;  %v2261_v2 = vrot.slane %v2247_v36, %v3646_v52  ;;  %v2268_v33 = vrot.slane %v2248_v42, %v3646_v52 }
 0x1eb   :  { %v1240_v5 = vrot.slane %v1233_v41, 5  ;;  %v1612_v24 = vrot.slane %v1605_v43, %v3646_v52  ;;  %v2275_v56 = vrot.slane %v2249_v46, %v3646_v52  ;;  %v2282_v9 = vrot.slane %v2250_v49, %v3646_v52 }
 0x1ec   :  { %v1230_v57 = vunpack.c.l.b16 %v1208_v51  ;;  %v2289_v20 = vrot.slane %v2261_v2, %v3646_v52  ;;  %v1889_v12 = vpack.c.bf16 %v1885_v47, %v1885_v47  ;;  %v1890_v63 = vpack.c.bf16 %v1886_v48, %v1886_v48 }
 0x1ed   :  { %1614 = vst.msk [vmem:[#allocation5 + $0x2] sm:$0x3] %vm1252_vm7, %v1612_v24  ;;  %v2296_v58 = vrot.slane %v2268_v33, %v3646_v52  ;;  %v2303_v10 = vrot.slane %v2275_v56, %v3646_v52  ;;  %v1891_v44 = vpack.c.bf16 %v1887_v4, %v1887_v4  ;;  %v2310_v3 = vrot.slane %v2282_v9, %v3646_v52 }
 0x1ee   :  { %v1236_v0 = vsel %vm1235_vm15, %v1234_v45, %v1230_v57  ;;  %v2311_v55 = vunpack.c.l.b16 %v2289_v20  ;;  %v1892_v15 = vpack.c.bf16 %v1888_v6, %v1888_v6  ;;  %v1903_v1 = vrot.slane %v1889_v12, %v3646_v52 }
 0x1ef   :  { %v1239_v59 = vsel %vm1238_vm4, %v1237_v54, %v1236_v0  ;;  %v2312_v53 = vunpack.c.l.b16 %v2296_v58  ;;  %v2313_v7 = vunpack.c.l.b16 %v2303_v10  ;;  %v2314_v38 = vunpack.c.l.b16 %v2310_v3 }
 0x1f0   :  { %v1242_v62 = vsel %vm1241_vm3, %v1240_v5, %v1239_v59  ;;  %v1910_v16 = vrot.slane %v1890_v63, %v3646_v52  ;;  %v1917_v11 = vrot.slane %v1891_v44, %v3646_v52  ;;  %v1924_v17 = vrot.slane %v1892_v15, %v3646_v52  ;;  %v3018_v63 = vld [vmem:[%s4054_s5] ss:$0 sm:$0xff] }
 0x1f1   :  { %v1243_v32 = vpack.c.b16 %v1242_v62, %v1242_v62  ;;  %v2315_v13 = vrot.slane %v2312_v53, 7  ;;  %v2317_v40 = vrot.slane %v2313_v7, 6  ;;  %v1931_v8 = vrot.slane %v1903_v1, %v3646_v52  ;;  %v3051_v1 = vld [vmem:[%s4055_s6] ss:$0 sm:$0xff] }
 0x1f2   :  { %v2319_v14 = vrot.slane %v2314_v38, 5  ;;  %v1938_v28 = vrot.slane %v1910_v16, %v3646_v52  ;;  %v1945_v19 = vrot.slane %v1917_v11, %v3646_v52  ;;  %v1952_v50 = vrot.slane %v1924_v17, %v3646_v52 }
 0x1f3   :  { %v1250_v18 = vrot.slane %v1243_v32, %v3646_v52  ;;  %v2316_v21 = vsel %vm1235_vm15, %v2315_v13, %v2311_v55  ;;  %v1953_v29 = vunpack.c.l.b16 %v1931_v8  ;;  %v13_v20 = vstv %s4053_s7 }
 0x1f4   :  { %v2318_v60 = vsel %vm1238_vm4, %v2317_v40, %v2316_v21  ;;  %v1954_v22 = vunpack.c.l.b16 %v1938_v28  ;;  %v1955_v23 = vunpack.c.l.b16 %v1945_v19  ;;  %v1956_v26 = vunpack.c.l.b16 %v1952_v50  ;;  %14 = vst [vmem:[#allocation6] sm:$0x1] %v13_v20 }
 0x1f5   :  { %1253 = vst.msk [vmem:[#allocation5] sm:$0x3] %vm1252_vm7, %v1250_v18  ;;  %v2320_v25 = vsel %vm1241_vm3, %v2319_v14, %v2318_v60 }
 0x1f6   :  { %v2321_v27 = vpack.c.b16 %v2320_v25, %v2320_v25  ;;  %v1957_v30 = vrot.slane %v1954_v22, 7  ;;  %v1959_v31 = vrot.slane %v1955_v23, 6  ;;  %v1961_v34 = vrot.slane %v1956_v26, 5 }
 0x1f8   :  { %v2328_v35 = vrot.slane %v2321_v27, %v3646_v52  ;;  %v1958_v61 = vsel %vm1235_vm15, %v1957_v30, %v1953_v29 }
 0x1f9   :  { %v1960_v36 = vsel %vm1238_vm4, %v1959_v31, %v1958_v61 }
 0x1fa   :  { %2330 = vst.msk [vmem:[#allocation5 + $0x6] sm:$0x3] %vm1252_vm7, %v2328_v35  ;;  %v1962_v37 = vsel %vm1241_vm3, %v1961_v34, %v1960_v36 }
 0x1fb   :  { %v1963_v39 = vpack.c.b16 %v1962_v37, %v1962_v37  ;;  %v3052_v11 = vld [vmem:[#allocation6] ss:$0 sm:$0xff] }
 0x1fd   :  { %v1970_v41 = vrot.slane %v1963_v39, %v3646_v52 }
 0x1ff   :  { %1972 = vst.msk [vmem:[#allocation5 + $0x4] sm:$0x3] %vm1252_vm7, %v1970_v41 }
 0x233   :  { %v1702_v42 = vpop.permute.xlu1 %1701  ;;  %v1341_v43 = vpop.permute.xlu0 %1340 }
 0x234   :  { %1704 = vst.msk [vmem:[#allocation5 + $0x2] sm:$0x3] %vm1343_vm8, %v1702_v42  ;;  %1344 = vst.msk [vmem:[#allocation5] sm:$0x3] %vm1343_vm8, %v1341_v43 }
 0x237   :  { %v1792_v45 = vpop.permute.xlu1 %1791  ;;  %v1432_v51 = vpop.permute.xlu0 %1431 }
 0x238   :  { %1794 = vst.msk [vmem:[#allocation5 + $0x2] sm:$0x3] %vm1434_vm9, %v1792_v45  ;;  %1435 = vst.msk [vmem:[#allocation5] sm:$0x3] %vm1434_vm9, %v1432_v51 }
 0x23b   :  { %v1882_v46 = vpop.permute.xlu1 %1881  ;;  %v1523_v47 = vpop.permute.xlu0 %1522 }
 0x23c   :  { %1884 = vst.msk [vmem:[#allocation5 + $0x2] sm:$0x3] %vm1525_vm10, %v1882_v46  ;;  %1526 = vst.msk [vmem:[#allocation5] sm:$0x3] %vm1525_vm10, %v1523_v47 }
 0x23f   :  { %v2418_v48 = vpop.permute.xlu1 %2417 }
 0x240   :  { %2420 = vst.msk [vmem:[#allocation5 + $0x6] sm:$0x3] %vm1343_vm8, %v2418_v48 }
 0x244   :  { %v2060_v54 = vpop.permute.xlu0 %2059 }
 0x245   :  { %2062 = vst.msk [vmem:[#allocation5 + $0x4] sm:$0x3] %vm1343_vm8, %v2060_v54 }
 0x247   :  { %v2508_v5 = vpop.permute.xlu1 %2507 }
 0x248   :  { %2510 = vst.msk [vmem:[#allocation5 + $0x6] sm:$0x3] %vm1434_vm9, %v2508_v5 }
 0x24d   :  { %v2150_v49 = vpop.permute.xlu0 %2149 }
 0x24e   :  { %2152 = vst.msk [vmem:[#allocation5 + $0x4] sm:$0x3] %vm1434_vm9, %v2150_v49 }
 0x253   :  { %v2598_v2 = vpop.permute.xlu1 %2597 }
 0x254   :  { %2600 = vst.msk [vmem:[#allocation5 + $0x6] sm:$0x3] %vm1525_vm10, %v2598_v2 }
 0x259   :  { %v2240_v4 = vpop.permute.xlu0 %2239 }
 0x25a   :  { %2242 = vst.msk [vmem:[#allocation5 + $0x4] sm:$0x3] %vm1525_vm10, %v2240_v4 }
 0x261   :  { %v2601_v24 = vld [vmem:[#allocation5] sm:$0xff] }
 0x262   :  { %v2681_v57 = vrot.slane %v2601_v24, %v3646_v52  ;;  %v2674_v33 = vcombine.high %v2601_v24, %v2601_v24 }
 0x264   :  { %v2689_v56 = vcombine.high %v2681_v57, %v2681_v57  ;;  %v2688_v6 = vrot.slane %v2674_v33, %v3646_v52 }
 0x266   :  { %2919 = vmatprep.mubr.bf16.mxu1 %v2689_v56  ;;  %v2690_v9 = vcombine.high %v2688_v6, %v2688_v6 }
 0x267   :  { %2920 = vmatmul.mubr.bf16.vlgmr.msra.gmra.mrb[8].mxu1 %v2681_v57 }
 0x268   :  { %2959 = vmatprep.mubr.bf16.mxu0 %v2690_v9 }
 0x269   :  { %2960 = vmatmul.mubr.bf16.vlgmr.msra.gmra.mrb[16].mxu0 %v2688_v6 }
 0x33a   :  { %v3115_v12 = vpop.f32.mrb[8].mxu1 }
 0x33b   :  { %v3116_v0 = vpop.f32.mrb[9].mxu1 }
 0x33c   :  { %v3117_v58 = vadd.f32 %v3116_v0, %v3115_v12  ;;  %v3118_v10 = vpop.f32.mrb[10].mxu1  ;;  %v3137_v44 = vpop.f32.mrb[16].mxu0 }
 0x33d   :  { %v3119_v52 = vpop.f32.mrb[11].mxu1  ;;  %v3138_v59 = vpop.f32.mrb[17].mxu0 }
 0x33e   :  { %v2922_v3 = vadd.f32 %v3117_v58, %v3018_v63  ;;  %v3139_v55 = vadd.f32 %v3138_v59, %v3137_v44  ;;  %v3140_v15 = vpop.f32.mrb[18].mxu0 }
 0x33f   :  { %v3141_v62 = vpop.f32.mrb[19].mxu0 }
 0x340   :  { %v2962_v53 = vadd.f32 %v3139_v55, %v2922_v3 }
 0x342   :  { %v2968_v7 = vmul.f32 0.2, %v2962_v53  ;;  %vm2967_vm11 = vcmp.ge.f32.partialorder %v2962_v53, 0.0 }
 0x344   :  { %v2969_v32 = vsel %vm2967_vm11, %v2962_v53, %v2968_v7 }
 0x345   :  { %v2977_v38 = vmul.f32 %v3051_v1, %v2969_v32 }
 0x347   :  { %v2978_v16 = vsel %vm192_vm1, %v2977_v38, 0.0 }
 0x348   :  { %2979 = vadd.xlane.f32.xlu0 %v2978_v16 }
 0x3d5   :  { %v2980_v13 = vpop.xlane.xlu0 %2979 }
 0x3d6   :  { %v2988_v40 = vadd.f32 %v3052_v11, %v2980_v13 }
 0x3d8   :  { %2990 = vst.msk [vmem:[%s4056_s8] sm:$0xf] %vm2989_vm12, %v2988_v40 }

</bundles_post_ra>
